<compile_context>
chip_gen: v7x
topology: tpu7x:2x2x1
jax: 0.10.0
libtpu: 0.0.40
codegen_flags: <defaults>
</compile_context>

<pallas_src>
import functools

import jax
import jax.numpy as jnp
from jax.experimental import pallas as pl
from jax.experimental.pallas import tpu as pltpu

TM = 128  # node-row tile (sublane aligned)


# ----------------------------------------------------------------------------
# elementwise helpers (run inside kernels)
# ----------------------------------------------------------------------------
def _gelu(x):
    # tanh-approx GELU: tanh runs on the EUP slot (nearly free filler).
    # TODO(synk): torch.nn.GELU uses exact erf; tanh approx differs by <~1e-3 abs.
    c = 0.7978845608028654  # sqrt(2/pi)
    return 0.5 * x * (1.0 + jnp.tanh(c * (x + 0.044715 * x * x * x)))


def _layernorm(x, g, b, eps):
    mu = jnp.mean(x, axis=-1, keepdims=True)
    var = jnp.mean(jnp.square(x - mu), axis=-1, keepdims=True)
    return (x - mu) * jax.lax.rsqrt(var + eps) * g + b


# ----------------------------------------------------------------------------
# K1: ln1 + fused projection (fx | folded slice-logits) + per-head softmax
#     + masked scatter_add into VMEM slice-token accumulators
#     + (last grid step) slice self-attention for all (B,H) and W_out fold.
# ----------------------------------------------------------------------------
def _attn_pre_scatter_kernel(batch_ref, fx_ref, g_ref, b_ref, w_ref, bias_ref,
                             wqkv_ref, wout_ref, sw_ref, oproj_ref,
                             tok_acc, norm_acc, *, B, heads, slice_num,
                             dim_head, inner, eps, scale):
    i = pl.program_id(0)
    hs = heads * slice_num

    @pl.when(i == 0)
    def _init():
        tok_acc[...] = jnp.zeros_like(tok_acc)
        norm_acc[...] = jnp.zeros_like(norm_acc)

    # --- ln1 + fused projection ---------------------------------------------
    h = _layernorm(fx_ref[...], g_ref[...], b_ref[...], eps)
    y = jnp.dot(h, w_ref[...], preferred_element_type=jnp.float32) + bias_ref[...]
    fx_flat = y[:, :inner]                                       # (TM, inner)
    segs = []
    for hh in range(heads):                                      # per-head softmax
        z = y[:, inner + hh * slice_num: inner + (hh + 1) * slice_num]
        z = z - jnp.max(z, axis=-1, keepdims=True)
        e = jnp.exp(z)
        segs.append(e * pl.reciprocal(jnp.sum(e, axis=-1, keepdims=True), approx=True))
    sw = jnp.concatenate(segs, axis=-1)                          # (TM, H*S)
    sw_ref[...] = sw                                             # only sw leaves the kernel

    # --- masked scatter_add over graphs: one matmul per tile ----------------
    sw_t = sw.T                                                  # (H*S, TM)
    bidx = batch_ref[...]                                        # (1, TM) int32
    lhs = jnp.concatenate(
        [sw_t * (bidx == b).astype(jnp.float32) for b in range(B)], axis=0)  # (B*H*S, TM)
    tok_acc[...] += jnp.dot(lhs, fx_flat, preferred_element_type=jnp.float32)
    norm_acc[...] += jnp.sum(lhs, axis=-1, keepdims=True)        # XLU row-sum (free slot)

    # --- last step: slice self-attention + per-head W_out fold --------------
    @pl.when(i == pl.num_programs(0) - 1)
    def _attend():
        inv = pl.reciprocal(norm_acc[...] + 1e-5, approx=True)   # (B*H*S, 1)
        wqkv = wqkv_ref[...]
        wout = wout_ref[...]
        for b in range(B):
            for hh in range(heads):
                r0 = b * hs + hh * slice_num
                c0 = hh * dim_head
                t = (tok_acc[r0:r0 + slice_num, c0:c0 + dim_head]
                     * inv[r0:r0 + slice_num, :])                # (S, D) slice token
                qkv = jnp.dot(t, wqkv, preferred_element_type=jnp.float32)  # (S, 3D)
                q = qkv[:, :dim_head]
                k = qkv[:, dim_head:2 * dim_head]
                v = qkv[:, 2 * dim_head:]
                dots = jnp.dot(q, k.T, preferred_element_type=jnp.float32) * scale
                dots = dots - jnp.max(dots, axis=-1, keepdims=True)
                e = jnp.exp(dots)
                attn = e * pl.reciprocal(jnp.sum(e, axis=-1, keepdims=True), approx=True)
                ob = jnp.dot(attn, v, preferred_element_type=jnp.float32)   # (S, D)
                # fold the per-head slice of W_out here (once per graph, not per node)
                oproj_ref[r0:r0 + slice_num, :] = jnp.dot(
                    ob, wout[c0:c0 + dim_head, :], preferred_element_type=jnp.float32)


def attn_pre_scatter(batch_lane, fx, g, b, w_big, b_big, wqkv, w_out, *,
                     B, heads, slice_num, dim_head, inner, hidden):
    npad = fx.shape[0]
    hs = heads * slice_num
    mid_w = inner + hs
    kern = functools.partial(_attn_pre_scatter_kernel, B=B, heads=heads,
                             slice_num=slice_num, dim_head=dim_head,
                             inner=inner, eps=1e-5, scale=dim_head ** (-0.5))
    return pl.pallas_call(
        kern,
        out_shape=(jax.ShapeDtypeStruct((npad, hs), jnp.float32),
                   jax.ShapeDtypeStruct((B * hs, hidden), jnp.float32)),
        grid=(npad // TM,),
        in_specs=[
            pl.BlockSpec((1, TM), lambda i: (0, i)),             # batch idx (lane-major)
            pl.BlockSpec((TM, hidden), lambda i: (i, 0)),        # fx
            pl.BlockSpec((1, hidden), lambda i: (0, 0)),         # ln1 gamma
            pl.BlockSpec((1, hidden), lambda i: (0, 0)),         # ln1 beta
            pl.BlockSpec((hidden, mid_w), lambda i: (0, 0)),     # fused proj weight
            pl.BlockSpec((1, mid_w), lambda i: (0, 0)),          # fused proj bias
            pl.BlockSpec((dim_head, 3 * dim_head), lambda i: (0, 0)),  # Wq|Wk|Wv
            pl.BlockSpec((inner, hidden), lambda i: (0, 0)),     # W_out
        ],
        out_specs=(
            pl.BlockSpec((TM, hs), lambda i: (i, 0)),            # slice weights per node
            pl.BlockSpec((B * hs, hidden), lambda i: (0, 0)),    # folded slice output
        ),
        scratch_shapes=[
            pltpu.VMEM((B * hs, inner), jnp.float32),            # slice-token accumulator
            pltpu.VMEM((B * hs, 1), jnp.float32),                # slice-norm accumulator
        ],
        compiler_params=pltpu.CompilerParams(dimension_semantics=("arbitrary",)),
    )(batch_lane, fx, g.reshape(1, hidden), b.reshape(1, hidden),
      w_big, b_big.reshape(1, mid_w), wqkv, w_out)


# ----------------------------------------------------------------------------
# K2: gather back to nodes (W_out already folded) as one masked matmul
#     + b_out + residual + ln2 + MLP(GELU) + residual
# ----------------------------------------------------------------------------
def _gather_mlp_kernel(batch_ref, sw_ref, oproj_ref, bout_ref, fx_ref,
                       g2_ref, be2_ref, w1_ref, b1_ref, w2_ref, b2_ref,
                       o_ref, *, B, eps):
    sw = sw_ref[...]                                             # (TM, H*S)
    bidx = batch_ref[...]                                        # (TM, 1) int32
    lhs = jnp.concatenate(
        [sw * (bidx == b).astype(jnp.float32) for b in range(B)], axis=-1)  # (TM, B*H*S)
    attn = jnp.dot(lhs, oproj_ref[...], preferred_element_type=jnp.float32)  # (TM, hidden)
    fx1 = attn + bout_ref[...] + fx_ref[...]                     # attention out + residual
    h2 = _layernorm(fx1, g2_ref[...], be2_ref[...], eps)
    m = _gelu(jnp.dot(h2, w1_ref[...], preferred_element_type=jnp.float32) + b1_ref[...])
    o_ref[...] = (jnp.dot(m, w2_ref[...], preferred_element_type=jnp.float32)
                  + b2_ref[...] + fx1)


def gather_out_mlp(batch_row, sw, oproj, b_out, fx, g2, be2, w1, b1, w2, b2, *, B):
    npad, hidden = fx.shape
    hs = sw.shape[1]
    mlp_hidden = w1.shape[1]
    kern = functools.partial(_gather_mlp_kernel, B=B, eps=1e-5)
    return pl.pallas_call(
        kern,
        out_shape=jax.ShapeDtypeStruct((npad, hidden), jnp.float32),
        grid=(npad // TM,),
        in_specs=[
            pl.BlockSpec((TM, 1), lambda i: (i, 0)),             # batch idx (row-major)
            pl.BlockSpec((TM, hs), lambda i: (i, 0)),            # slice weights
            pl.BlockSpec((B * hs, hidden), lambda i: (0, 0)),    # folded slice output
            pl.BlockSpec((1, hidden), lambda i: (0, 0)),         # b_out
            pl.BlockSpec((TM, hidden), lambda i: (i, 0)),        # fx residual
            pl.BlockSpec((1, hidden), lambda i: (0, 0)),         # ln2 gamma
            pl.BlockSpec((1, hidden), lambda i: (0, 0)),         # ln2 beta
            pl.BlockSpec((hidden, mlp_hidden), lambda i: (0, 0)),
            pl.BlockSpec((1, mlp_hidden), lambda i: (0, 0)),
            pl.BlockSpec((mlp_hidden, hidden), lambda i: (0, 0)),
            pl.BlockSpec((1, hidden), lambda i: (0, 0)),
        ],
        out_specs=pl.BlockSpec((TM, hidden), lambda i: (i, 0)),
        compiler_params=pltpu.CompilerParams(dimension_semantics=("parallel",)),
    )(batch_row, sw, oproj, b_out.reshape(1, hidden), fx,
      g2.reshape(1, hidden), be2.reshape(1, hidden),
      w1, b1.reshape(1, mlp_hidden), w2, b2.reshape(1, hidden))


# ----------------------------------------------------------------------------
# fused preprocess: Linear + GELU + Linear (+placeholder folded into bias)
# ----------------------------------------------------------------------------
def _preprocess_kernel(x_ref, w1_ref, b1_ref, w2_ref, b2_ref, o_ref):
    h = _gelu(jnp.dot(x_ref[...], w1_ref[...], preferred_element_type=jnp.float32)
              + b1_ref[...])
    o_ref[...] = jnp.dot(h, w2_ref[...], preferred_element_type=jnp.float32) + b2_ref[...]


def preprocess(x, params):
    npad, in_dim = x.shape
    h2 = params["pre_w1"].shape[1]
    hidden = params["pre_w2"].shape[1]
    b2 = (params["pre_b2"] + params["placeholder"]).reshape(1, hidden)
    return pl.pallas_call(
        _preprocess_kernel,
        out_shape=jax.ShapeDtypeStruct((npad, hidden), jnp.float32),
        grid=(npad // TM,),
        in_specs=[
            pl.BlockSpec((TM, in_dim), lambda i: (i, 0)),
            pl.BlockSpec((in_dim, h2), lambda i: (0, 0)),
            pl.BlockSpec((1, h2), lambda i: (0, 0)),
            pl.BlockSpec((h2, hidden), lambda i: (0, 0)),
            pl.BlockSpec((1, hidden), lambda i: (0, 0)),
        ],
        out_specs=pl.BlockSpec((TM, hidden), lambda i: (i, 0)),
        compiler_params=pltpu.CompilerParams(dimension_semantics=("parallel",)),
    )(x, params["pre_w1"], params["pre_b1"].reshape(1, h2), params["pre_w2"], b2)


# ----------------------------------------------------------------------------
# fused decoder: LayerNorm + Linear
# ----------------------------------------------------------------------------
def _decoder_kernel(fx_ref, g_ref, b_ref, w_ref, bias_ref, o_ref, *, eps):
    h = _layernorm(fx_ref[...], g_ref[...], b_ref[...], eps)
    o_ref[...] = jnp.dot(h, w_ref[...], preferred_element_type=jnp.float32) + bias_ref[...]


def decode(fx, params):
    npad, hidden = fx.shape
    out_dim = params["dec_w"].shape[1]
    kern = functools.partial(_decoder_kernel, eps=1e-5)
    return pl.pallas_call(
        kern,
        out_shape=jax.ShapeDtypeStruct((npad, out_dim), jnp.float32),
        grid=(npad // TM,),
        in_specs=[
            pl.BlockSpec((TM, hidden), lambda i: (i, 0)),
            pl.BlockSpec((1, hidden), lambda i: (0, 0)),
            pl.BlockSpec((1, hidden), lambda i: (0, 0)),
            pl.BlockSpec((hidden, out_dim), lambda i: (0, 0)),
            pl.BlockSpec((1, out_dim), lambda i: (0, 0)),
        ],
        out_specs=pl.BlockSpec((TM, out_dim), lambda i: (i, 0)),
        compiler_params=pltpu.CompilerParams(dimension_semantics=("parallel",)),
    )(fx, params["dec_ln_g"].reshape(1, hidden), params["dec_ln_b"].reshape(1, hidden),
      params["dec_w"], params["dec_b"].reshape(1, out_dim))


# ----------------------------------------------------------------------------
# parameter fusion (exact algebraic folding, plain JAX, runs once under jit)
# ----------------------------------------------------------------------------
def _fuse_block_params(blk, *, heads, dim_head, slice_num):
    hidden = blk["w_x"].shape[0]
    temp = blk["graph_temp"].reshape(heads)                         # (H,)
    w_x3 = blk["w_x"].reshape(hidden, heads, dim_head)
    # logits[n, h, s] / temp[h] == x_norm @ w_comb + b_comb  (exact)
    w_comb = jnp.einsum("khd,ds->khs", w_x3, blk["w_slice"]) / temp[None, :, None]
    b_comb = (blk["b_x"].reshape(heads, dim_head) @ blk["w_slice"]
              + blk["b_slice"][None, :]) / temp[:, None]
    w_big = jnp.concatenate([blk["w_fx"], w_comb.reshape(hidden, heads * slice_num)], axis=1)
    b_big = jnp.concatenate([blk["b_fx"], b_comb.reshape(heads * slice_num)], axis=0)
    wqkv = jnp.concatenate([blk["wq"], blk["wk"], blk["wv"]], axis=1)
    return w_big, b_big, wqkv


# ----------------------------------------------------------------------------
# model composition
# ----------------------------------------------------------------------------
def transolver_block(fx, batch_row, batch_lane, blk, *, heads, dim_head,
                     slice_num, B):
    inner = heads * dim_head
    hidden = fx.shape[1]
    w_big, b_big, wqkv = _fuse_block_params(blk, heads=heads, dim_head=dim_head,
                                            slice_num=slice_num)
    sw, oproj = attn_pre_scatter(batch_lane, fx, blk["ln1_g"], blk["ln1_b"],
                                 w_big, b_big, wqkv, blk["w_out"], B=B,
                                 heads=heads, slice_num=slice_num,
                                 dim_head=dim_head, inner=inner, hidden=hidden)
    return gather_out_mlp(batch_row, sw, oproj, blk["b_out"], fx,
                          blk["ln2_g"], blk["ln2_b"],
                          blk["mlp_w1"], blk["mlp_b1"], blk["mlp_w2"], blk["mlp_b2"],
                          B=B)


def transolver_forward(x, batch_idx, params, *, heads, dim_head, slice_num, B):
    N = x.shape[0]
    npad = ((N + TM - 1) // TM) * TM
    pad = npad - N
    if pad:
        x = jnp.pad(x, ((0, pad), (0, 0)))
        # padded nodes get an out-of-range graph id so they never contribute
        batch_idx = jnp.pad(batch_idx, ((0, pad), (0, 0)), constant_values=B)
    batch_row = batch_idx                       # (npad, 1) for node-row masking
    batch_lane = batch_idx.reshape(1, npad)     # (1, npad) for node-lane masking
    fx = preprocess(x, params)                  # Linear+GELU+Linear, placeholder in bias
    for blk in params["blocks"]:
        fx = transolver_block(fx, batch_row, batch_lane, blk, heads=heads,
                              dim_head=dim_head, slice_num=slice_num, B=B)
    y = decode(fx, params)
    return y[:N]


# ----------------------------------------------------------------------------
# deterministic synthetic parameters (weights stored as (in, out) = W^T of
# torch.nn.Linear.weight, so y = x @ W + b)
# ----------------------------------------------------------------------------
def init_params(key, *, in_dim, hidden, heads, dim_head, slice_num, mlp_ratio,
                out_dim, n_layers):
    inner = heads * dim_head
    keys = iter(jax.random.split(key, 4 + 9 * n_layers))

    def w(shape, std=0.02):
        return (std * jax.random.truncated_normal(next(keys), -2.0, 2.0, shape)
                ).astype(jnp.float32)

    def zeros(n):
        return jnp.zeros((n,), jnp.float32)

    params = {
        "pre_w1": w((in_dim, hidden * 2)), "pre_b1": zeros(hidden * 2),
        "pre_w2": w((hidden * 2, hidden)), "pre_b2": zeros(hidden),
        "placeholder": (jax.random.uniform(next(keys), (hidden,), jnp.float32) / hidden),
        "dec_ln_g": jnp.ones((hidden,), jnp.float32), "dec_ln_b": zeros(hidden),
        "dec_w": w((hidden, out_dim)), "dec_b": zeros(out_dim),
        "blocks": [],
    }
    for _ in range(n_layers):
        blk = {
            "ln1_g": jnp.ones((hidden,), jnp.float32), "ln1_b": zeros(hidden),
            "w_fx": w((hidden, inner)), "b_fx": zeros(inner),
            "w_x": w((hidden, inner)), "b_x": zeros(inner),
            # TODO(synk): torch uses orthogonal_ init here; synthetic trunc-normal used instead.
            "w_slice": w((dim_head, slice_num)), "b_slice": zeros(slice_num),
            "graph_temp": 0.5 * jnp.ones((1, heads, 1), jnp.float32),
            "wq": w((dim_head, dim_head)),
            "wk": w((dim_head, dim_head)),
            "wv": w((dim_head, dim_head)),
            "w_out": w((inner, hidden)), "b_out": zeros(hidden),
            "ln2_g": jnp.ones((hidden,), jnp.float32), "ln2_b": zeros(hidden),
            "mlp_w1": w((hidden, hidden * mlp_ratio)), "mlp_b1": zeros(hidden * mlp_ratio),
            "mlp_w2": w((hidden * mlp_ratio, hidden)), "mlp_b2": zeros(hidden),
        }
        params["blocks"].append(blk)
    return params


if __name__ == "__main__":
    # small shapes consistent with the module
    N, B = 256, 2                      # total graph nodes, number of graphs in batch
    fun_dim, space_dim = 1, 1          # -> input feature dim = 2
    hidden, heads, slice_num = 64, 4, 16
    mlp_ratio, out_dim, n_layers = 1, 1, 2
    dim_head = hidden // heads

    key = jax.random.PRNGKey(0)
    kx, kp = jax.random.split(key)
    x = jax.random.normal(kx, (N, fun_dim + space_dim), dtype=jnp.float32)
    batch_idx = jnp.repeat(jnp.arange(B, dtype=jnp.int32), N // B).reshape(N, 1)
    params = init_params(kp, in_dim=fun_dim + space_dim, hidden=hidden, heads=heads,
                         dim_head=dim_head, slice_num=slice_num, mlp_ratio=mlp_ratio,
                         out_dim=out_dim, n_layers=n_layers)

    @jax.jit
    def fwd(x, batch_idx, params):
        return transolver_forward(x, batch_idx, params, heads=heads,
                                  dim_head=dim_head, slice_num=slice_num, B=B)

    y = fwd(x, batch_idx, params)
    jax.block_until_ready(y)
    assert y.shape == (N, out_dim) and y.dtype == jnp.float32
    assert bool(jnp.all(jnp.isfinite(y)))
    print("KERNEL_OK")
</pallas_src>

<mosaic_0001>
module attributes {stable_mosaic.version = 11 : i64} {
  func.func @_preprocess_kernel(%arg0: i32, %arg1: memref<128x2xf32, #tpu.memory_space<vmem>>, %arg2: memref<2x128xf32, #tpu.memory_space<vmem>>, %arg3: memref<1x128xf32, #tpu.memory_space<vmem>>, %arg4: memref<128x64xf32, #tpu.memory_space<vmem>>, %arg5: memref<1x64xf32, #tpu.memory_space<vmem>>, %arg6: memref<128x64xf32, #tpu.memory_space<vmem>>) attributes {dimension_semantics = [#tpu.dimension_semantics<parallel>], iteration_bounds = array<i64: 2>, scalar_prefetch = 0 : i64, scratch_operands = 0 : i64, tpu.core_type = #tpu.core_type<tc>, window_params = [{transform_indices = @transform_0, window_bounds = array<i64: 128, 2>}, {pipeline_mode = #tpu.pipeline_mode<synchronous>, transform_indices = @transform_1, window_bounds = array<i64: 2, 128>}, {pipeline_mode = #tpu.pipeline_mode<synchronous>, transform_indices = @transform_2, window_bounds = array<i64: 1, 128>}, {pipeline_mode = #tpu.pipeline_mode<synchronous>, transform_indices = @transform_3, window_bounds = array<i64: 128, 64>}, {pipeline_mode = #tpu.pipeline_mode<synchronous>, transform_indices = @transform_4, window_bounds = array<i64: 1, 64>}, {transform_indices = @transform_5, window_bounds = array<i64: 128, 64>}]} {
    %c0 = arith.constant 0 : index
    %c0_0 = arith.constant 0 : index
    %0 = vector.load %arg1[%c0, %c0_0] : memref<128x2xf32, #tpu.memory_space<vmem>>, vector<128x2xf32>
    %c0_1 = arith.constant 0 : index
    %c0_2 = arith.constant 0 : index
    %1 = vector.load %arg2[%c0_1, %c0_2] : memref<2x128xf32, #tpu.memory_space<vmem>>, vector<2x128xf32>
    %cst = arith.constant dense<0.000000e+00> : vector<128x128xf32>
    %2 = tpu.matmul %0, %1, %cst {dimension_numbers = #tpu.dot_dimension_numbers<[1], [0], [0], [1], [0, 0, 1, 1], [], []>} : vector<128x2xf32>, vector<2x128xf32>, vector<128x128xf32> -> vector<128x128xf32>
    %c0_3 = arith.constant 0 : index
    %c0_4 = arith.constant 0 : index
    %3 = vector.load %arg3[%c0_3, %c0_4] : memref<1x128xf32, #tpu.memory_space<vmem>>, vector<1x128xf32>
    %4 = vector.broadcast %3 : vector<1x128xf32> to vector<128x128xf32>
    %5 = arith.addf %2, %4 : vector<128x128xf32>
    %cst_5 = arith.constant 5.000000e-01 : f32
    %6 = vector.broadcast %cst_5 : f32 to vector<128x128xf32>
    %7 = arith.mulf %6, %5 : vector<128x128xf32>
    %cst_6 = arith.constant 4.471500e-02 : f32
    %8 = vector.broadcast %cst_6 : f32 to vector<128x128xf32>
    %9 = arith.mulf %8, %5 : vector<128x128xf32>
    %10 = arith.mulf %9, %5 : vector<128x128xf32>
    %11 = arith.mulf %10, %5 : vector<128x128xf32>
    %12 = arith.addf %5, %11 : vector<128x128xf32>
    %cst_7 = arith.constant 0.797884583 : f32
    %13 = vector.broadcast %cst_7 : f32 to vector<128x128xf32>
    %14 = arith.mulf %13, %12 : vector<128x128xf32>
    %15 = math.tanh %14 : vector<128x128xf32>
    %cst_8 = arith.constant 1.000000e+00 : f32
    %16 = vector.broadcast %cst_8 : f32 to vector<128x128xf32>
    %17 = arith.addf %16, %15 : vector<128x128xf32>
    %18 = arith.mulf %7, %17 : vector<128x128xf32>
    %c0_9 = arith.constant 0 : index
    %c0_10 = arith.constant 0 : index
    %19 = vector.load %arg4[%c0_9, %c0_10] : memref<128x64xf32, #tpu.memory_space<vmem>>, vector<128x64xf32>
    %cst_11 = arith.constant dense<0.000000e+00> : vector<128x64xf32>
    %20 = tpu.matmul %18, %19, %cst_11 {dimension_numbers = #tpu.dot_dimension_numbers<[1], [0], [0], [1], [0, 0, 1, 1], [], []>} : vector<128x128xf32>, vector<128x64xf32>, vector<128x64xf32> -> vector<128x64xf32>
    %c0_12 = arith.constant 0 : index
    %c0_13 = arith.constant 0 : index
    %21 = vector.load %arg5[%c0_12, %c0_13] : memref<1x64xf32, #tpu.memory_space<vmem>>, vector<1x64xf32>
    %22 = vector.broadcast %21 : vector<1x64xf32> to vector<128x64xf32>
    %23 = arith.addf %20, %22 : vector<128x64xf32>
    %c0_14 = arith.constant 0 : index
    %c0_15 = arith.constant 0 : index
    %24 = vector.load %arg6[%c0_14, %c0_15] : memref<128x64xf32, #tpu.memory_space<vmem>>, vector<128x64xf32>
    tpu.vector_store %arg6[%c0_14, %c0_15], %23 {strides = array<i32>} : memref<128x64xf32, #tpu.memory_space<vmem>>, vector<128x64xf32>,
    return
  }
  func.func @transform_0(%arg0: i32) -> (i32, i32) {
    %c0_i32 = arith.constant 0 : i32
    %c0_i32_0 = arith.constant 0 : i32
    return %arg0, %c0_i32 : i32, i32
  }
  func.func @transform_1(%arg0: i32) -> (i32, i32) {
    %c0_i32 = arith.constant 0 : i32
    %c0_i32_0 = arith.constant 0 : i32
    %c0_i32_1 = arith.constant 0 : i32
    return %c0_i32, %c0_i32_0 : i32, i32
  }
  func.func @transform_2(%arg0: i32) -> (i32, i32) {
    %c0_i32 = arith.constant 0 : i32
    %c0_i32_0 = arith.constant 0 : i32
    %c0_i32_1 = arith.constant 0 : i32
    return %c0_i32, %c0_i32_0 : i32, i32
  }
  func.func @transform_3(%arg0: i32) -> (i32, i32) {
    %c0_i32 = arith.constant 0 : i32
    %c0_i32_0 = arith.constant 0 : i32
    %c0_i32_1 = arith.constant 0 : i32
    return %c0_i32, %c0_i32_0 : i32, i32
  }
  func.func @transform_4(%arg0: i32) -> (i32, i32) {
    %c0_i32 = arith.constant 0 : i32
    %c0_i32_0 = arith.constant 0 : i32
    %c0_i32_1 = arith.constant 0 : i32
    return %c0_i32, %c0_i32_0 : i32, i32
  }
  func.func @transform_5(%arg0: i32) -> (i32, i32) {
    %c0_i32 = arith.constant 0 : i32
    %c0_i32_0 = arith.constant 0 : i32
    return %arg0, %c0_i32 : i32, i32
  }
}

module attributes {stable_mosaic.version = 11 : i64} {
  func.func @_attn_pre_scatter_kernel(%arg0: i32, %arg1: memref<1x128xi32, #tpu.memory_space<vmem>>, %arg2: memref<128x64xf32, #tpu.memory_space<vmem>>, %arg3: memref<1x64xf32, #tpu.memory_space<vmem>>, %arg4: memref<1x64xf32, #tpu.memory_space<vmem>>, %arg5: memref<64x128xf32, #tpu.memory_space<vmem>>, %arg6: memref<1x128xf32, #tpu.memory_space<vmem>>, %arg7: memref<16x48xf32, #tpu.memory_space<vmem>>, %arg8: memref<64x64xf32, #tpu.memory_space<vmem>>, %arg9: memref<128x64xf32, #tpu.memory_space<vmem>>, %arg10: memref<128x64xf32, #tpu.memory_space<vmem>>, %arg11: memref<128x64xf32, #tpu.memory_space<vmem>>, %arg12: memref<128x1xf32, #tpu.memory_space<vmem>>) attributes {dimension_semantics = [#tpu.dimension_semantics<arbitrary>], iteration_bounds = array<i64: 2>, scalar_prefetch = 0 : i64, scratch_operands = 2 : i64, tpu.core_type = #tpu.core_type<tc>, window_params = [{transform_indices = @transform_0, window_bounds = array<i64: 1, 128>}, {transform_indices = @transform_1, window_bounds = array<i64: 128, 64>}, {pipeline_mode = #tpu.pipeline_mode<synchronous>, transform_indices = @transform_2, window_bounds = array<i64: 1, 64>}, {pipeline_mode = #tpu.pipeline_mode<synchronous>, transform_indices = @transform_3, window_bounds = array<i64: 1, 64>}, {pipeline_mode = #tpu.pipeline_mode<synchronous>, transform_indices = @transform_4, window_bounds = array<i64: 64, 128>}, {pipeline_mode = #tpu.pipeline_mode<synchronous>, transform_indices = @transform_5, window_bounds = array<i64: 1, 128>}, {pipeline_mode = #tpu.pipeline_mode<synchronous>, transform_indices = @transform_6, window_bounds = array<i64: 16, 48>}, {pipeline_mode = #tpu.pipeline_mode<synchronous>, transform_indices = @transform_7, window_bounds = array<i64: 64, 64>}, {transform_indices = @transform_8, window_bounds = array<i64: 128, 64>}, {pipeline_mode = #tpu.pipeline_mode<synchronous>, transform_indices = @transform_9, window_bounds = array<i64: 128, 64>}]} {
    %c0_i32 = arith.constant 0 : i32
    %0 = arith.cmpi eq, %arg0, %c0_i32 : i32
    %1 = arith.extui %0 : i1 to i32
    %c0_i32_0 = arith.constant 0 : i32
    %2 = arith.cmpi ne, %1, %c0_i32_0 : i32
    scf.if %2 {
      %cst_40 = arith.constant 0.000000e+00 : f32
      %107 = vector.broadcast %cst_40 : f32 to vector<128x64xf32>
      %c0_41 = arith.constant 0 : index
      %c0_42 = arith.constant 0 : index
      %108 = vector.load %arg11[%c0_41, %c0_42] : memref<128x64xf32, #tpu.memory_space<vmem>>, vector<128x64xf32>
      tpu.vector_store %arg11[%c0_41, %c0_42], %107 {strides = array<i32>} : memref<128x64xf32, #tpu.memory_space<vmem>>, vector<128x64xf32>,
      %cst_43 = arith.constant 0.000000e+00 : f32
      %109 = vector.broadcast %cst_43 : f32 to vector<128x1xf32>
      %c0_44 = arith.constant 0 : index
      %c0_45 = arith.constant 0 : index
      %110 = vector.load %arg12[%c0_44, %c0_45] : memref<128x1xf32, #tpu.memory_space<vmem>>, vector<128x1xf32>
      tpu.vector_store %arg12[%c0_44, %c0_45], %109 {strides = array<i32>} : memref<128x1xf32, #tpu.memory_space<vmem>>, vector<128x1xf32>,
    } else {
    }
    %c0 = arith.constant 0 : index
    %c0_1 = arith.constant 0 : index
    %3 = vector.load %arg2[%c0, %c0_1] : memref<128x64xf32, #tpu.memory_space<vmem>>, vector<128x64xf32>
    %c0_2 = arith.constant 0 : index
    %c0_3 = arith.constant 0 : index
    %4 = vector.load %arg3[%c0_2, %c0_3] : memref<1x64xf32, #tpu.memory_space<vmem>>, vector<1x64xf32>
    %c0_4 = arith.constant 0 : index
    %c0_5 = arith.constant 0 : index
    %5 = vector.load %arg4[%c0_4, %c0_5] : memref<1x64xf32, #tpu.memory_space<vmem>>, vector<1x64xf32>
    %cst = arith.constant dense<0.000000e+00> : vector<128xf32>
    %6 = vector.multi_reduction <add>, %3, %cst [1] : vector<128x64xf32> to vector<128xf32>
    %7 = vector.shape_cast %6 : vector<128xf32> to vector<128x1xf32>
    %cst_6 = arith.constant 6.400000e+01 : f32
    %8 = vector.broadcast %cst_6 : f32 to vector<128x1xf32>
    %9 = arith.divf %7, %8 : vector<128x1xf32>
    %10 = vector.broadcast %9 : vector<128x1xf32> to vector<128x64xf32>
    %11 = arith.subf %3, %10 : vector<128x64xf32>
    %12 = arith.mulf %11, %11 : vector<128x64xf32>
    %cst_7 = arith.constant dense<0.000000e+00> : vector<128xf32>
    %13 = vector.multi_reduction <add>, %12, %cst_7 [1] : vector<128x64xf32> to vector<128xf32>
    %14 = vector.shape_cast %13 : vector<128xf32> to vector<128x1xf32>
    %cst_8 = arith.constant 6.400000e+01 : f32
    %15 = vector.broadcast %cst_8 : f32 to vector<128x1xf32>
    %16 = arith.divf %14, %15 : vector<128x1xf32>
    %17 = vector.broadcast %9 : vector<128x1xf32> to vector<128x64xf32>
    %18 = arith.subf %3, %17 : vector<128x64xf32>
    %cst_9 = arith.constant 9.99999974E-6 : f32
    %19 = vector.broadcast %cst_9 : f32 to vector<128x1xf32>
    %20 = arith.addf %16, %19 : vector<128x1xf32>
    %21 = math.rsqrt %20 : vector<128x1xf32>
    %22 = vector.broadcast %21 : vector<128x1xf32> to vector<128x64xf32>
    %23 = arith.mulf %18, %22 : vector<128x64xf32>
    %24 = vector.broadcast %4 : vector<1x64xf32> to vector<128x64xf32>
    %25 = arith.mulf %23, %24 : vector<128x64xf32>
    %26 = vector.broadcast %5 : vector<1x64xf32> to vector<128x64xf32>
    %27 = arith.addf %25, %26 : vector<128x64xf32>
    %c0_10 = arith.constant 0 : index
    %c0_11 = arith.constant 0 : index
    %28 = vector.load %arg5[%c0_10, %c0_11] : memref<64x128xf32, #tpu.memory_space<vmem>>, vector<64x128xf32>
    %cst_12 = arith.constant dense<0.000000e+00> : vector<128x128xf32>
    %29 = tpu.matmul %27, %28, %cst_12 {dimension_numbers = #tpu.dot_dimension_numbers<[1], [0], [0], [1], [0, 0, 1, 1], [], []>} : vector<128x64xf32>, vector<64x128xf32>, vector<128x128xf32> -> vector<128x128xf32>
    %c0_13 = arith.constant 0 : index
    %c0_14 = arith.constant 0 : index
    %30 = vector.load %arg6[%c0_13, %c0_14] : memref<1x128xf32, #tpu.memory_space<vmem>>, vector<1x128xf32>
    %31 = vector.broadcast %30 : vector<1x128xf32> to vector<128x128xf32>
    %32 = arith.addf %29, %31 : vector<128x128xf32>
    %33 = vector.extract_strided_slice %32 {offsets = [0, 0], sizes = [128, 64], strides = [1, 1]} : vector<128x128xf32> to vector<128x64xf32>
    %34 = vector.extract_strided_slice %32 {offsets = [0, 64], sizes = [128, 16], strides = [1, 1]} : vector<128x128xf32> to vector<128x16xf32>
    %cst_15 = arith.constant dense<0xFF800000> : vector<128xf32>
    %35 = vector.multi_reduction <maximumf>, %34, %cst_15 [1] : vector<128x16xf32> to vector<128xf32>
    %36 = vector.shape_cast %35 : vector<128xf32> to vector<128x1xf32>
    %37 = vector.broadcast %36 : vector<128x1xf32> to vector<128x16xf32>
    %38 = arith.subf %34, %37 : vector<128x16xf32>
    %39 = math.exp %38 : vector<128x16xf32>
    %cst_16 = arith.constant dense<0.000000e+00> : vector<128xf32>
    %40 = vector.multi_reduction <add>, %39, %cst_16 [1] : vector<128x16xf32> to vector<128xf32>
    %41 = vector.shape_cast %40 : vector<128xf32> to vector<128x1xf32>
    %42 = tpu.reciprocal %41 {approx = true} : vector<128x1xf32> -> vector<128x1xf32>
    %43 = vector.broadcast %42 : vector<128x1xf32> to vector<128x16xf32>
    %44 = arith.mulf %39, %43 : vector<128x16xf32>
    %45 = vector.extract_strided_slice %32 {offsets = [0, 80], sizes = [128, 16], strides = [1, 1]} : vector<128x128xf32> to vector<128x16xf32>
    %cst_17 = arith.constant dense<0xFF800000> : vector<128xf32>
    %46 = vector.multi_reduction <maximumf>, %45, %cst_17 [1] : vector<128x16xf32> to vector<128xf32>
    %47 = vector.shape_cast %46 : vector<128xf32> to vector<128x1xf32>
    %48 = vector.broadcast %47 : vector<128x1xf32> to vector<128x16xf32>
    %49 = arith.subf %45, %48 : vector<128x16xf32>
    %50 = math.exp %49 : vector<128x16xf32>
    %cst_18 = arith.constant dense<0.000000e+00> : vector<128xf32>
    %51 = vector.multi_reduction <add>, %50, %cst_18 [1] : vector<128x16xf32> to vector<128xf32>
    %52 = vector.shape_cast %51 : vector<128xf32> to vector<128x1xf32>
    %53 = tpu.reciprocal %52 {approx = true} : vector<128x1xf32> -> vector<128x1xf32>
    %54 = vector.broadcast %53 : vector<128x1xf32> to vector<128x16xf32>
    %55 = arith.mulf %50, %54 : vector<128x16xf32>
    %56 = vector.extract_strided_slice %32 {offsets = [0, 96], sizes = [128, 16], strides = [1, 1]} : vector<128x128xf32> to vector<128x16xf32>
    %cst_19 = arith.constant dense<0xFF800000> : vector<128xf32>
    %57 = vector.multi_reduction <maximumf>, %56, %cst_19 [1] : vector<128x16xf32> to vector<128xf32>
    %58 = vector.shape_cast %57 : vector<128xf32> to vector<128x1xf32>
    %59 = vector.broadcast %58 : vector<128x1xf32> to vector<128x16xf32>
    %60 = arith.subf %56, %59 : vector<128x16xf32>
    %61 = math.exp %60 : vector<128x16xf32>
    %cst_20 = arith.constant dense<0.000000e+00> : vector<128xf32>
    %62 = vector.multi_reduction <add>, %61, %cst_20 [1] : vector<128x16xf32> to vector<128xf32>
    %63 = vector.shape_cast %62 : vector<128xf32> to vector<128x1xf32>
    %64 = tpu.reciprocal %63 {approx = true} : vector<128x1xf32> -> vector<128x1xf32>
    %65 = vector.broadcast %64 : vector<128x1xf32> to vector<128x16xf32>
    %66 = arith.mulf %61, %65 : vector<128x16xf32>
    %67 = vector.extract_strided_slice %32 {offsets = [0, 112], sizes = [128, 16], strides = [1, 1]} : vector<128x128xf32> to vector<128x16xf32>
    %cst_21 = arith.constant dense<0xFF800000> : vector<128xf32>
    %68 = vector.multi_reduction <maximumf>, %67, %cst_21 [1] : vector<128x16xf32> to vector<128xf32>
    %69 = vector.shape_cast %68 : vector<128xf32> to vector<128x1xf32>
    %70 = vector.broadcast %69 : vector<128x1xf32> to vector<128x16xf32>
    %71 = arith.subf %67, %70 : vector<128x16xf32>
    %72 = math.exp %71 : vector<128x16xf32>
    %cst_22 = arith.constant dense<0.000000e+00> : vector<128xf32>
    %73 = vector.multi_reduction <add>, %72, %cst_22 [1] : vector<128x16xf32> to vector<128xf32>
    %74 = vector.shape_cast %73 : vector<128xf32> to vector<128x1xf32>
    %75 = tpu.reciprocal %74 {approx = true} : vector<128x1xf32> -> vector<128x1xf32>
    %76 = vector.broadcast %75 : vector<128x1xf32> to vector<128x16xf32>
    %77 = arith.mulf %72, %76 : vector<128x16xf32>
    %78 = tpu.concatenate %44, %55, %66, %77 in 1 : vector<128x16xf32>, vector<128x16xf32>, vector<128x16xf32>, vector<128x16xf32> -> vector<128x64xf32>
    %c0_23 = arith.constant 0 : index
    %c0_24 = arith.constant 0 : index
    %79 = vector.load %arg9[%c0_23, %c0_24] : memref<128x64xf32, #tpu.memory_space<vmem>>, vector<128x64xf32>
    tpu.vector_store %arg9[%c0_23, %c0_24], %78 {strides = array<i32>} : memref<128x64xf32, #tpu.memory_space<vmem>>, vector<128x64xf32>,
    %80 = tpu.transpose %78, [1, 0] : vector<128x64xf32> -> vector<64x128xf32>
    %c0_25 = arith.constant 0 : index
    %c0_26 = arith.constant 0 : index
    %81 = vector.load %arg1[%c0_25, %c0_26] : memref<1x128xi32, #tpu.memory_space<vmem>>, vector<1x128xi32>
    %c0_i32_27 = arith.constant 0 : i32
    %82 = vector.broadcast %c0_i32_27 : i32 to vector<1x128xi32>
    %83 = arith.cmpi eq, %81, %82 : vector<1x128xi32>
    %84 = arith.extui %83 : vector<1x128xi1> to vector<1x128xi32>
    %85 = arith.sitofp %84 : vector<1x128xi32> to vector<1x128xf32>
    %86 = vector.broadcast %85 : vector<1x128xf32> to vector<64x128xf32>
    %87 = arith.mulf %80, %86 : vector<64x128xf32>
    %c1_i32 = arith.constant 1 : i32
    %88 = vector.broadcast %c1_i32 : i32 to vector<1x128xi32>
    %89 = arith.cmpi eq, %81, %88 : vector<1x128xi32>
    %90 = arith.extui %89 : vector<1x128xi1> to vector<1x128xi32>
    %91 = arith.sitofp %90 : vector<1x128xi32> to vector<1x128xf32>
    %92 = vector.broadcast %91 : vector<1x128xf32> to vector<64x128xf32>
    %93 = arith.mulf %80, %92 : vector<64x128xf32>
    %94 = tpu.concatenate %87, %93 in 0 : vector<64x128xf32>, vector<64x128xf32> -> vector<128x128xf32>
    %c0_28 = arith.constant 0 : index
    %c0_29 = arith.constant 0 : index
    %95 = vector.load %arg11[%c0_28, %c0_29] : memref<128x64xf32, #tpu.memory_space<vmem>>, vector<128x64xf32>
    %cst_30 = arith.constant dense<0.000000e+00> : vector<128x64xf32>
    %96 = tpu.matmul %94, %33, %cst_30 {dimension_numbers = #tpu.dot_dimension_numbers<[1], [0], [0], [1], [0, 0, 1, 1], [], []>} : vector<128x128xf32>, vector<128x64xf32>, vector<128x64xf32> -> vector<128x64xf32>
    %97 = arith.addf %95, %96 : vector<128x64xf32>
    %c0_31 = arith.constant 0 : index
    %c0_32 = arith.constant 0 : index
    %98 = vector.load %arg11[%c0_31, %c0_32] : memref<128x64xf32, #tpu.memory_space<vmem>>, vector<128x64xf32>
    tpu.vector_store %arg11[%c0_31, %c0_32], %97 {strides = array<i32>} : memref<128x64xf32, #tpu.memory_space<vmem>>, vector<128x64xf32>,
    %c0_33 = arith.constant 0 : index
    %c0_34 = arith.constant 0 : index
    %99 = vector.load %arg12[%c0_33, %c0_34] : memref<128x1xf32, #tpu.memory_space<vmem>>, vector<128x1xf32>
    %cst_35 = arith.constant dense<0.000000e+00> : vector<128xf32>
    %100 = vector.multi_reduction <add>, %94, %cst_35 [1] : vector<128x128xf32> to vector<128xf32>
    %101 = vector.shape_cast %100 : vector<128xf32> to vector<128x1xf32>
    %102 = arith.addf %99, %101 : vector<128x1xf32>
    %c0_36 = arith.constant 0 : index
    %c0_37 = arith.constant 0 : index
    %103 = vector.load %arg12[%c0_36, %c0_37] : memref<128x1xf32, #tpu.memory_space<vmem>>, vector<128x1xf32>
    tpu.vector_store %arg12[%c0_36, %c0_37], %102 {strides = array<i32>} : memref<128x1xf32, #tpu.memory_space<vmem>>, vector<128x1xf32>,
    %c1_i32_38 = arith.constant 1 : i32
    %104 = arith.cmpi eq, %arg0, %c1_i32_38 : i32
    %105 = arith.extui %104 : i1 to i32
    %c0_i32_39 = arith.constant 0 : i32
    %106 = arith.cmpi ne, %105, %c0_i32_39 : i32
    scf.if %106 {
      %c0_40 = arith.constant 0 : index
      %c0_41 = arith.constant 0 : index
      %107 = vector.load %arg12[%c0_40, %c0_41] : memref<128x1xf32, #tpu.memory_space<vmem>>, vector<128x1xf32>
      %cst_42 = arith.constant 9.99999974E-6 : f32
      %108 = vector.broadcast %cst_42 : f32 to vector<128x1xf32>
      %109 = arith.addf %107, %108 : vector<128x1xf32>
      %110 = tpu.reciprocal %109 {approx = true} : vector<128x1xf32> -> vector<128x1xf32>
      %c0_43 = arith.constant 0 : index
      %c0_44 = arith.constant 0 : index
      %111 = vector.load %arg7[%c0_43, %c0_44] : memref<16x48xf32, #tpu.memory_space<vmem>>, vector<16x48xf32>
      %c0_45 = arith.constant 0 : index
      %c0_46 = arith.constant 0 : index
      %112 = vector.load %arg8[%c0_45, %c0_46] : memref<64x64xf32, #tpu.memory_space<vmem>>, vector<64x64xf32>
      %c0_47 = arith.constant 0 : index
      %c0_48 = arith.constant 0 : index
      %113 = vector.load %arg11[%c0_47, %c0_48] : memref<128x64xf32, #tpu.memory_space<vmem>>, vector<16x16xf32>
      %114 = vector.extract_strided_slice %110 {offsets = [0, 0], sizes = [16, 1], strides = [1, 1]} : vector<128x1xf32> to vector<16x1xf32>
      %115 = vector.broadcast %114 : vector<16x1xf32> to vector<16x16xf32>
      %116 = arith.mulf %113, %115 : vector<16x16xf32>
      %cst_49 = arith.constant dense<0.000000e+00> : vector<16x48xf32>
      %117 = tpu.matmul %116, %111, %cst_49 {dimension_numbers = #tpu.dot_dimension_numbers<[1], [0], [0], [1], [0, 0, 1, 1], [], []>} : vector<16x16xf32>, vector<16x48xf32>, vector<16x48xf32> -> vector<16x48xf32>
      %118 = vector.extract_strided_slice %117 {offsets = [0, 0], sizes = [16, 16], strides = [1, 1]} : vector<16x48xf32> to vector<16x16xf32>
      %119 = vector.extract_strided_slice %117 {offsets = [0, 16], sizes = [16, 16], strides = [1, 1]} : vector<16x48xf32> to vector<16x16xf32>
      %120 = vector.extract_strided_slice %117 {offsets = [0, 32], sizes = [16, 16], strides = [1, 1]} : vector<16x48xf32> to vector<16x16xf32>
      %121 = tpu.transpose %119, [1, 0] : vector<16x16xf32> -> vector<16x16xf32>
      %cst_50 = arith.constant dense<0.000000e+00> : vector<16x16xf32>
      %122 = tpu.matmul %118, %121, %cst_50 {dimension_numbers = #tpu.dot_dimension_numbers<[1], [0], [0], [1], [0, 0, 1, 1], [], []>} : vector<16x16xf32>, vector<16x16xf32>, vector<16x16xf32> -> vector<16x16xf32>
      %cst_51 = arith.constant 2.500000e-01 : f32
      %123 = vector.broadcast %cst_51 : f32 to vector<16x16xf32>
      %124 = arith.mulf %122, %123 : vector<16x16xf32>
      %cst_52 = arith.constant dense<0xFF800000> : vector<16xf32>
      %125 = vector.multi_reduction <maximumf>, %124, %cst_52 [1] : vector<16x16xf32> to vector<16xf32>
      %126 = vector.shape_cast %125 : vector<16xf32> to vector<16x1xf32>
      %127 = vector.broadcast %126 : vector<16x1xf32> to vector<16x16xf32>
      %128 = arith.subf %124, %127 : vector<16x16xf32>
      %129 = math.exp %128 : vector<16x16xf32>
      %cst_53 = arith.constant dense<0.000000e+00> : vector<16xf32>
      %130 = vector.multi_reduction <add>, %129, %cst_53 [1] : vector<16x16xf32> to vector<16xf32>
      %131 = vector.shape_cast %130 : vector<16xf32> to vector<16x1xf32>
      %132 = tpu.reciprocal %131 {approx = true} : vector<16x1xf32> -> vector<16x1xf32>
      %133 = vector.broadcast %132 : vector<16x1xf32> to vector<16x16xf32>
      %134 = arith.mulf %129, %133 : vector<16x16xf32>
      %cst_54 = arith.constant dense<0.000000e+00> : vector<16x16xf32>
      %135 = tpu.matmul %134, %120, %cst_54 {dimension_numbers = #tpu.dot_dimension_numbers<[1], [0], [0], [1], [0, 0, 1, 1], [], []>} : vector<16x16xf32>, vector<16x16xf32>, vector<16x16xf32> -> vector<16x16xf32>
      %136 = vector.extract_strided_slice %112 {offsets = [0, 0], sizes = [16, 64], strides = [1, 1]} : vector<64x64xf32> to vector<16x64xf32>
      %cst_55 = arith.constant dense<0.000000e+00> : vector<16x64xf32>
      %137 = tpu.matmul %135, %136, %cst_55 {dimension_numbers = #tpu.dot_dimension_numbers<[1], [0], [0], [1], [0, 0, 1, 1], [], []>} : vector<16x16xf32>, vector<16x64xf32>, vector<16x64xf32> -> vector<16x64xf32>
      %c0_56 = arith.constant 0 : index
      %c0_57 = arith.constant 0 : index
      %138 = vector.load %arg10[%c0_56, %c0_57] : memref<128x64xf32, #tpu.memory_space<vmem>>, vector<16x64xf32>
      tpu.vector_store %arg10[%c0_56, %c0_57], %137 {strides = array<i32>} : memref<128x64xf32, #tpu.memory_space<vmem>>, vector<16x64xf32>,
      %c16 = arith.constant 16 : index
      %c16_58 = arith.constant 16 : index
      %139 = vector.load %arg11[%c16, %c16_58] : memref<128x64xf32, #tpu.memory_space<vmem>>, vector<16x16xf32>
      %140 = vector.extract_strided_slice %110 {offsets = [16, 0], sizes = [16, 1], strides = [1, 1]} : vector<128x1xf32> to vector<16x1xf32>
      %141 = vector.broadcast %140 : vector<16x1xf32> to vector<16x16xf32>
      %142 = arith.mulf %139, %141 : vector<16x16xf32>
      %cst_59 = arith.constant dense<0.000000e+00> : vector<16x48xf32>
      %143 = tpu.matmul %142, %111, %cst_59 {dimension_numbers = #tpu.dot_dimension_numbers<[1], [0], [0], [1], [0, 0, 1, 1], [], []>} : vector<16x16xf32>, vector<16x48xf32>, vector<16x48xf32> -> vector<16x48xf32>
      %144 = vector.extract_strided_slice %143 {offsets = [0, 0], sizes = [16, 16], strides = [1, 1]} : vector<16x48xf32> to vector<16x16xf32>
      %145 = vector.extract_strided_slice %143 {offsets = [0, 16], sizes = [16, 16], strides = [1, 1]} : vector<16x48xf32> to vector<16x16xf32>
      %146 = vector.extract_strided_slice %143 {offsets = [0, 32], sizes = [16, 16], strides = [1, 1]} : vector<16x48xf32> to vector<16x16xf32>
      %147 = tpu.transpose %145, [1, 0] : vector<16x16xf32> -> vector<16x16xf32>
      %cst_60 = arith.constant dense<0.000000e+00> : vector<16x16xf32>
      %148 = tpu.matmul %144, %147, %cst_60 {dimension_numbers = #tpu.dot_dimension_numbers<[1], [0], [0], [1], [0, 0, 1, 1], [], []>} : vector<16x16xf32>, vector<16x16xf32>, vector<16x16xf32> -> vector<16x16xf32>
      %cst_61 = arith.constant 2.500000e-01 : f32
      %149 = vector.broadcast %cst_61 : f32 to vector<16x16xf32>
      %150 = arith.mulf %148, %149 : vector<16x16xf32>
      %cst_62 = arith.constant dense<0xFF800000> : vector<16xf32>
      %151 = vector.multi_reduction <maximumf>, %150, %cst_62 [1] : vector<16x16xf32> to vector<16xf32>
      %152 = vector.shape_cast %151 : vector<16xf32> to vector<16x1xf32>
      %153 = vector.broadcast %152 : vector<16x1xf32> to vector<16x16xf32>
      %154 = arith.subf %150, %153 : vector<16x16xf32>
      %155 = math.exp %154 : vector<16x16xf32>
      %cst_63 = arith.constant dense<0.000000e+00> : vector<16xf32>
      %156 = vector.multi_reduction <add>, %155, %cst_63 [1] : vector<16x16xf32> to vector<16xf32>
      %157 = vector.shape_cast %156 : vector<16xf32> to vector<16x1xf32>
      %158 = tpu.reciprocal %157 {approx = true} : vector<16x1xf32> -> vector<16x1xf32>
      %159 = vector.broadcast %158 : vector<16x1xf32> to vector<16x16xf32>
      %160 = arith.mulf %155, %159 : vector<16x16xf32>
      %cst_64 = arith.constant dense<0.000000e+00> : vector<16x16xf32>
      %161 = tpu.matmul %160, %146, %cst_64 {dimension_numbers = #tpu.dot_dimension_numbers<[1], [0], [0], [1], [0, 0, 1, 1], [], []>} : vector<16x16xf32>, vector<16x16xf32>, vector<16x16xf32> -> vector<16x16xf32>
      %162 = vector.extract_strided_slice %112 {offsets = [16, 0], sizes = [16, 64], strides = [1, 1]} : vector<64x64xf32> to vector<16x64xf32>
      %cst_65 = arith.constant dense<0.000000e+00> : vector<16x64xf32>
      %163 = tpu.matmul %161, %162, %cst_65 {dimension_numbers = #tpu.dot_dimension_numbers<[1], [0], [0], [1], [0, 0, 1, 1], [], []>} : vector<16x16xf32>, vector<16x64xf32>, vector<16x64xf32> -> vector<16x64xf32>
      %c16_66 = arith.constant 16 : index
      %c0_67 = arith.constant 0 : index
      %164 = vector.load %arg10[%c16_66, %c0_67] : memref<128x64xf32, #tpu.memory_space<vmem>>, vector<16x64xf32>
      tpu.vector_store %arg10[%c16_66, %c0_67], %163 {strides = array<i32>} : memref<128x64xf32, #tpu.memory_space<vmem>>, vector<16x64xf32>,
      %c32 = arith.constant 32 : index
      %c32_68 = arith.constant 32 : index
      %165 = vector.load %arg11[%c32, %c32_68] : memref<128x64xf32, #tpu.memory_space<vmem>>, vector<16x16xf32>
      %166 = vector.extract_strided_slice %110 {offsets = [32, 0], sizes = [16, 1], strides = [1, 1]} : vector<128x1xf32> to vector<16x1xf32>
      %167 = vector.broadcast %166 : vector<16x1xf32> to vector<16x16xf32>
      %168 = arith.mulf %165, %167 : vector<16x16xf32>
      %cst_69 = arith.constant dense<0.000000e+00> : vector<16x48xf32>
      %169 = tpu.matmul %168, %111, %cst_69 {dimension_numbers = #tpu.dot_dimension_numbers<[1], [0], [0], [1], [0, 0, 1, 1], [], []>} : vector<16x16xf32>, vector<16x48xf32>, vector<16x48xf32> -> vector<16x48xf32>
      %170 = vector.extract_strided_slice %169 {offsets = [0, 0], sizes = [16, 16], strides = [1, 1]} : vector<16x48xf32> to vector<16x16xf32>
      %171 = vector.extract_strided_slice %169 {offsets = [0, 16], sizes = [16, 16], strides = [1, 1]} : vector<16x48xf32> to vector<16x16xf32>
      %172 = vector.extract_strided_slice %169 {offsets = [0, 32], sizes = [16, 16], strides = [1, 1]} : vector<16x48xf32> to vector<16x16xf32>
      %173 = tpu.transpose %171, [1, 0] : vector<16x16xf32> -> vector<16x16xf32>
      %cst_70 = arith.constant dense<0.000000e+00> : vector<16x16xf32>
      %174 = tpu.matmul %170, %173, %cst_70 {dimension_numbers = #tpu.dot_dimension_numbers<[1], [0], [0], [1], [0, 0, 1, 1], [], []>} : vector<16x16xf32>, vector<16x16xf32>, vector<16x16xf32> -> vector<16x16xf32>
      %cst_71 = arith.constant 2.500000e-01 : f32
      %175 = vector.broadcast %cst_71 : f32 to vector<16x16xf32>
      %176 = arith.mulf %174, %175 : vector<16x16xf32>
      %cst_72 = arith.constant dense<0xFF800000> : vector<16xf32>
      %177 = vector.multi_reduction <maximumf>, %176, %cst_72 [1] : vector<16x16xf32> to vector<16xf32>
      %178 = vector.shape_cast %177 : vector<16xf32> to vector<16x1xf32>
      %179 = vector.broadcast %178 : vector<16x1xf32> to vector<16x16xf32>
      %180 = arith.subf %176, %179 : vector<16x16xf32>
      %181 = math.exp %180 : vector<16x16xf32>
      %cst_73 = arith.constant dense<0.000000e+00> : vector<16xf32>
      %182 = vector.multi_reduction <add>, %181, %cst_73 [1] : vector<16x16xf32> to vector<16xf32>
      %183 = vector.shape_cast %182 : vector<16xf32> to vector<16x1xf32>
      %184 = tpu.reciprocal %183 {approx = true} : vector<16x1xf32> -> vector<16x1xf32>
      %185 = vector.broadcast %184 : vector<16x1xf32> to vector<16x16xf32>
      %186 = arith.mulf %181, %185 : vector<16x16xf32>
      %cst_74 = arith.constant dense<0.000000e+00> : vector<16x16xf32>
      %187 = tpu.matmul %186, %172, %cst_74 {dimension_numbers = #tpu.dot_dimension_numbers<[1], [0], [0], [1], [0, 0, 1, 1], [], []>} : vector<16x16xf32>, vector<16x16xf32>, vector<16x16xf32> -> vector<16x16xf32>
      %188 = vector.extract_strided_slice %112 {offsets = [32, 0], sizes = [16, 64], strides = [1, 1]} : vector<64x64xf32> to vector<16x64xf32>
      %cst_75 = arith.constant dense<0.000000e+00> : vector<16x64xf32>
      %189 = tpu.matmul %187, %188, %cst_75 {dimension_numbers = #tpu.dot_dimension_numbers<[1], [0], [0], [1], [0, 0, 1, 1], [], []>} : vector<16x16xf32>, vector<16x64xf32>, vector<16x64xf32> -> vector<16x64xf32>
      %c32_76 = arith.constant 32 : index
      %c0_77 = arith.constant 0 : index
      %190 = vector.load %arg10[%c32_76, %c0_77] : memref<128x64xf32, #tpu.memory_space<vmem>>, vector<16x64xf32>
      tpu.vector_store %arg10[%c32_76, %c0_77], %189 {strides = array<i32>} : memref<128x64xf32, #tpu.memory_space<vmem>>, vector<16x64xf32>,
      %c48 = arith.constant 48 : index
      %c48_78 = arith.constant 48 : index
      %191 = vector.load %arg11[%c48, %c48_78] : memref<128x64xf32, #tpu.memory_space<vmem>>, vector<16x16xf32>
      %192 = vector.extract_strided_slice %110 {offsets = [48, 0], sizes = [16, 1], strides = [1, 1]} : vector<128x1xf32> to vector<16x1xf32>
      %193 = vector.broadcast %192 : vector<16x1xf32> to vector<16x16xf32>
      %194 = arith.mulf %191, %193 : vector<16x16xf32>
      %cst_79 = arith.constant dense<0.000000e+00> : vector<16x48xf32>
      %195 = tpu.matmul %194, %111, %cst_79 {dimension_numbers = #tpu.dot_dimension_numbers<[1], [0], [0], [1], [0, 0, 1, 1], [], []>} : vector<16x16xf32>, vector<16x48xf32>, vector<16x48xf32> -> vector<16x48xf32>
      %196 = vector.extract_strided_slice %195 {offsets = [0, 0], sizes = [16, 16], strides = [1, 1]} : vector<16x48xf32> to vector<16x16xf32>
      %197 = vector.extract_strided_slice %195 {offsets = [0, 16], sizes = [16, 16], strides = [1, 1]} : vector<16x48xf32> to vector<16x16xf32>
      %198 = vector.extract_strided_slice %195 {offsets = [0, 32], sizes = [16, 16], strides = [1, 1]} : vector<16x48xf32> to vector<16x16xf32>
      %199 = tpu.transpose %197, [1, 0] : vector<16x16xf32> -> vector<16x16xf32>
      %cst_80 = arith.constant dense<0.000000e+00> : vector<16x16xf32>
      %200 = tpu.matmul %196, %199, %cst_80 {dimension_numbers = #tpu.dot_dimension_numbers<[1], [0], [0], [1], [0, 0, 1, 1], [], []>} : vector<16x16xf32>, vector<16x16xf32>, vector<16x16xf32> -> vector<16x16xf32>
      %cst_81 = arith.constant 2.500000e-01 : f32
      %201 = vector.broadcast %cst_81 : f32 to vector<16x16xf32>
      %202 = arith.mulf %200, %201 : vector<16x16xf32>
      %cst_82 = arith.constant dense<0xFF800000> : vector<16xf32>
      %203 = vector.multi_reduction <maximumf>, %202, %cst_82 [1] : vector<16x16xf32> to vector<16xf32>
      %204 = vector.shape_cast %203 : vector<16xf32> to vector<16x1xf32>
      %205 = vector.broadcast %204 : vector<16x1xf32> to vector<16x16xf32>
      %206 = arith.subf %202, %205 : vector<16x16xf32>
      %207 = math.exp %206 : vector<16x16xf32>
      %cst_83 = arith.constant dense<0.000000e+00> : vector<16xf32>
      %208 = vector.multi_reduction <add>, %207, %cst_83 [1] : vector<16x16xf32> to vector<16xf32>
      %209 = vector.shape_cast %208 : vector<16xf32> to vector<16x1xf32>
      %210 = tpu.reciprocal %209 {approx = true} : vector<16x1xf32> -> vector<16x1xf32>
      %211 = vector.broadcast %210 : vector<16x1xf32> to vector<16x16xf32>
      %212 = arith.mulf %207, %211 : vector<16x16xf32>
      %cst_84 = arith.constant dense<0.000000e+00> : vector<16x16xf32>
      %213 = tpu.matmul %212, %198, %cst_84 {dimension_numbers = #tpu.dot_dimension_numbers<[1], [0], [0], [1], [0, 0, 1, 1], [], []>} : vector<16x16xf32>, vector<16x16xf32>, vector<16x16xf32> -> vector<16x16xf32>
      %214 = vector.extract_strided_slice %112 {offsets = [48, 0], sizes = [16, 64], strides = [1, 1]} : vector<64x64xf32> to vector<16x64xf32>
      %cst_85 = arith.constant dense<0.000000e+00> : vector<16x64xf32>
      %215 = tpu.matmul %213, %214, %cst_85 {dimension_numbers = #tpu.dot_dimension_numbers<[1], [0], [0], [1], [0, 0, 1, 1], [], []>} : vector<16x16xf32>, vector<16x64xf32>, vector<16x64xf32> -> vector<16x64xf32>
      %c48_86 = arith.constant 48 : index
      %c0_87 = arith.constant 0 : index
      %216 = vector.load %arg10[%c48_86, %c0_87] : memref<128x64xf32, #tpu.memory_space<vmem>>, vector<16x64xf32>
      tpu.vector_store %arg10[%c48_86, %c0_87], %215 {strides = array<i32>} : memref<128x64xf32, #tpu.memory_space<vmem>>, vector<16x64xf32>,
      %c64 = arith.constant 64 : index
      %c0_88 = arith.constant 0 : index
      %217 = vector.load %arg11[%c64, %c0_88] : memref<128x64xf32, #tpu.memory_space<vmem>>, vector<16x16xf32>
      %218 = vector.extract_strided_slice %110 {offsets = [64, 0], sizes = [16, 1], strides = [1, 1]} : vector<128x1xf32> to vector<16x1xf32>
      %219 = vector.broadcast %218 : vector<16x1xf32> to vector<16x16xf32>
      %220 = arith.mulf %217, %219 : vector<16x16xf32>
      %cst_89 = arith.constant dense<0.000000e+00> : vector<16x48xf32>
      %221 = tpu.matmul %220, %111, %cst_89 {dimension_numbers = #tpu.dot_dimension_numbers<[1], [0], [0], [1], [0, 0, 1, 1], [], []>} : vector<16x16xf32>, vector<16x48xf32>, vector<16x48xf32> -> vector<16x48xf32>
      %222 = vector.extract_strided_slice %221 {offsets = [0, 0], sizes = [16, 16], strides = [1, 1]} : vector<16x48xf32> to vector<16x16xf32>
      %223 = vector.extract_strided_slice %221 {offsets = [0, 16], sizes = [16, 16], strides = [1, 1]} : vector<16x48xf32> to vector<16x16xf32>
      %224 = vector.extract_strided_slice %221 {offsets = [0, 32], sizes = [16, 16], strides = [1, 1]} : vector<16x48xf32> to vector<16x16xf32>
      %225 = tpu.transpose %223, [1, 0] : vector<16x16xf32> -> vector<16x16xf32>
      %cst_90 = arith.constant dense<0.000000e+00> : vector<16x16xf32>
      %226 = tpu.matmul %222, %225, %cst_90 {dimension_numbers = #tpu.dot_dimension_numbers<[1], [0], [0], [1], [0, 0, 1, 1], [], []>} : vector<16x16xf32>, vector<16x16xf32>, vector<16x16xf32> -> vector<16x16xf32>
      %cst_91 = arith.constant 2.500000e-01 : f32
      %227 = vector.broadcast %cst_91 : f32 to vector<16x16xf32>
      %228 = arith.mulf %226, %227 : vector<16x16xf32>
      %cst_92 = arith.constant dense<0xFF800000> : vector<16xf32>
      %229 = vector.multi_reduction <maximumf>, %228, %cst_92 [1] : vector<16x16xf32> to vector<16xf32>
      %230 = vector.shape_cast %229 : vector<16xf32> to vector<16x1xf32>
      %231 = vector.broadcast %230 : vector<16x1xf32> to vector<16x16xf32>
      %232 = arith.subf %228, %231 : vector<16x16xf32>
      %233 = math.exp %232 : vector<16x16xf32>
      %cst_93 = arith.constant dense<0.000000e+00> : vector<16xf32>
      %234 = vector.multi_reduction <add>, %233, %cst_93 [1] : vector<16x16xf32> to vector<16xf32>
      %235 = vector.shape_cast %234 : vector<16xf32> to vector<16x1xf32>
      %236 = tpu.reciprocal %235 {approx = true} : vector<16x1xf32> -> vector<16x1xf32>
      %237 = vector.broadcast %236 : vector<16x1xf32> to vector<16x16xf32>
      %238 = arith.mulf %233, %237 : vector<16x16xf32>
      %cst_94 = arith.constant dense<0.000000e+00> : vector<16x16xf32>
      %239 = tpu.matmul %238, %224, %cst_94 {dimension_numbers = #tpu.dot_dimension_numbers<[1], [0], [0], [1], [0, 0, 1, 1], [], []>} : vector<16x16xf32>, vector<16x16xf32>, vector<16x16xf32> -> vector<16x16xf32>
      %240 = vector.extract_strided_slice %112 {offsets = [0, 0], sizes = [16, 64], strides = [1, 1]} : vector<64x64xf32> to vector<16x64xf32>
      %cst_95 = arith.constant dense<0.000000e+00> : vector<16x64xf32>
      %241 = tpu.matmul %239, %240, %cst_95 {dimension_numbers = #tpu.dot_dimension_numbers<[1], [0], [0], [1], [0, 0, 1, 1], [], []>} : vector<16x16xf32>, vector<16x64xf32>, vector<16x64xf32> -> vector<16x64xf32>
      %c64_96 = arith.constant 64 : index
      %c0_97 = arith.constant 0 : index
      %242 = vector.load %arg10[%c64_96, %c0_97] : memref<128x64xf32, #tpu.memory_space<vmem>>, vector<16x64xf32>
      tpu.vector_store %arg10[%c64_96, %c0_97], %241 {strides = array<i32>} : memref<128x64xf32, #tpu.memory_space<vmem>>, vector<16x64xf32>,
      %c80 = arith.constant 80 : index
      %c16_98 = arith.constant 16 : index
      %243 = vector.load %arg11[%c80, %c16_98] : memref<128x64xf32, #tpu.memory_space<vmem>>, vector<16x16xf32>
      %244 = vector.extract_strided_slice %110 {offsets = [80, 0], sizes = [16, 1], strides = [1, 1]} : vector<128x1xf32> to vector<16x1xf32>
      %245 = vector.broadcast %244 : vector<16x1xf32> to vector<16x16xf32>
      %246 = arith.mulf %243, %245 : vector<16x16xf32>
      %cst_99 = arith.constant dense<0.000000e+00> : vector<16x48xf32>
      %247 = tpu.matmul %246, %111, %cst_99 {dimension_numbers = #tpu.dot_dimension_numbers<[1], [0], [0], [1], [0, 0, 1, 1], [], []>} : vector<16x16xf32>, vector<16x48xf32>, vector<16x48xf32> -> vector<16x48xf32>
      %248 = vector.extract_strided_slice %247 {offsets = [0, 0], sizes = [16, 16], strides = [1, 1]} : vector<16x48xf32> to vector<16x16xf32>
      %249 = vector.extract_strided_slice %247 {offsets = [0, 16], sizes = [16, 16], strides = [1, 1]} : vector<16x48xf32> to vector<16x16xf32>
      %250 = vector.extract_strided_slice %247 {offsets = [0, 32], sizes = [16, 16], strides = [1, 1]} : vector<16x48xf32> to vector<16x16xf32>
      %251 = tpu.transpose %249, [1, 0] : vector<16x16xf32> -> vector<16x16xf32>
      %cst_100 = arith.constant dense<0.000000e+00> : vector<16x16xf32>
      %252 = tpu.matmul %248, %251, %cst_100 {dimension_numbers = #tpu.dot_dimension_numbers<[1], [0], [0], [1], [0, 0, 1, 1], [], []>} : vector<16x16xf32>, vector<16x16xf32>, vector<16x16xf32> -> vector<16x16xf32>
      %cst_101 = arith.constant 2.500000e-01 : f32
      %253 = vector.broadcast %cst_101 : f32 to vector<16x16xf32>
      %254 = arith.mulf %252, %253 : vector<16x16xf32>
      %cst_102 = arith.constant dense<0xFF800000> : vector<16xf32>
      %255 = vector.multi_reduction <maximumf>, %254, %cst_102 [1] : vector<16x16xf32> to vector<16xf32>
      %256 = vector.shape_cast %255 : vector<16xf32> to vector<16x1xf32>
      %257 = vector.broadcast %256 : vector<16x1xf32> to vector<16x16xf32>
      %258 = arith.subf %254, %257 : vector<16x16xf32>
      %259 = math.exp %258 : vector<16x16xf32>
      %cst_103 = arith.constant dense<0.000000e+00> : vector<16xf32>
      %260 = vector.multi_reduction <add>, %259, %cst_103 [1] : vector<16x16xf32> to vector<16xf32>
      %261 = vector.shape_cast %260 : vector<16xf32> to vector<16x1xf32>
      %262 = tpu.reciprocal %261 {approx = true} : vector<16x1xf32> -> vector<16x1xf32>
      %263 = vector.broadcast %262 : vector<16x1xf32> to vector<16x16xf32>
      %264 = arith.mulf %259, %263 : vector<16x16xf32>
      %cst_104 = arith.constant dense<0.000000e+00> : vector<16x16xf32>
      %265 = tpu.matmul %264, %250, %cst_104 {dimension_numbers = #tpu.dot_dimension_numbers<[1], [0], [0], [1], [0, 0, 1, 1], [], []>} : vector<16x16xf32>, vector<16x16xf32>, vector<16x16xf32> -> vector<16x16xf32>
      %266 = vector.extract_strided_slice %112 {offsets = [16, 0], sizes = [16, 64], strides = [1, 1]} : vector<64x64xf32> to vector<16x64xf32>
      %cst_105 = arith.constant dense<0.000000e+00> : vector<16x64xf32>
      %267 = tpu.matmul %265, %266, %cst_105 {dimension_numbers = #tpu.dot_dimension_numbers<[1], [0], [0], [1], [0, 0, 1, 1], [], []>} : vector<16x16xf32>, vector<16x64xf32>, vector<16x64xf32> -> vector<16x64xf32>
      %c80_106 = arith.constant 80 : index
      %c0_107 = arith.constant 0 : index
      %268 = vector.load %arg10[%c80_106, %c0_107] : memref<128x64xf32, #tpu.memory_space<vmem>>, vector<16x64xf32>
      tpu.vector_store %arg10[%c80_106, %c0_107], %267 {strides = array<i32>} : memref<128x64xf32, #tpu.memory_space<vmem>>, vector<16x64xf32>,
      %c96 = arith.constant 96 : index
      %c32_108 = arith.constant 32 : index
      %269 = vector.load %arg11[%c96, %c32_108] : memref<128x64xf32, #tpu.memory_space<vmem>>, vector<16x16xf32>
      %270 = vector.extract_strided_slice %110 {offsets = [96, 0], sizes = [16, 1], strides = [1, 1]} : vector<128x1xf32> to vector<16x1xf32>
      %271 = vector.broadcast %270 : vector<16x1xf32> to vector<16x16xf32>
      %272 = arith.mulf %269, %271 : vector<16x16xf32>
      %cst_109 = arith.constant dense<0.000000e+00> : vector<16x48xf32>
      %273 = tpu.matmul %272, %111, %cst_109 {dimension_numbers = #tpu.dot_dimension_numbers<[1], [0], [0], [1], [0, 0, 1, 1], [], []>} : vector<16x16xf32>, vector<16x48xf32>, vector<16x48xf32> -> vector<16x48xf32>
      %274 = vector.extract_strided_slice %273 {offsets = [0, 0], sizes = [16, 16], strides = [1, 1]} : vector<16x48xf32> to vector<16x16xf32>
      %275 = vector.extract_strided_slice %273 {offsets = [0, 16], sizes = [16, 16], strides = [1, 1]} : vector<16x48xf32> to vector<16x16xf32>
      %276 = vector.extract_strided_slice %273 {offsets = [0, 32], sizes = [16, 16], strides = [1, 1]} : vector<16x48xf32> to vector<16x16xf32>
      %277 = tpu.transpose %275, [1, 0] : vector<16x16xf32> -> vector<16x16xf32>
      %cst_110 = arith.constant dense<0.000000e+00> : vector<16x16xf32>
      %278 = tpu.matmul %274, %277, %cst_110 {dimension_numbers = #tpu.dot_dimension_numbers<[1], [0], [0], [1], [0, 0, 1, 1], [], []>} : vector<16x16xf32>, vector<16x16xf32>, vector<16x16xf32> -> vector<16x16xf32>
      %cst_111 = arith.constant 2.500000e-01 : f32
      %279 = vector.broadcast %cst_111 : f32 to vector<16x16xf32>
      %280 = arith.mulf %278, %279 : vector<16x16xf32>
      %cst_112 = arith.constant dense<0xFF800000> : vector<16xf32>
      %281 = vector.multi_reduction <maximumf>, %280, %cst_112 [1] : vector<16x16xf32> to vector<16xf32>
      %282 = vector.shape_cast %281 : vector<16xf32> to vector<16x1xf32>
      %283 = vector.broadcast %282 : vector<16x1xf32> to vector<16x16xf32>
      %284 = arith.subf %280, %283 : vector<16x16xf32>
      %285 = math.exp %284 : vector<16x16xf32>
      %cst_113 = arith.constant dense<0.000000e+00> : vector<16xf32>
      %286 = vector.multi_reduction <add>, %285, %cst_113 [1] : vector<16x16xf32> to vector<16xf32>
      %287 = vector.shape_cast %286 : vector<16xf32> to vector<16x1xf32>
      %288 = tpu.reciprocal %287 {approx = true} : vector<16x1xf32> -> vector<16x1xf32>
      %289 = vector.broadcast %288 : vector<16x1xf32> to vector<16x16xf32>
      %290 = arith.mulf %285, %289 : vector<16x16xf32>
      %cst_114 = arith.constant dense<0.000000e+00> : vector<16x16xf32>
      %291 = tpu.matmul %290, %276, %cst_114 {dimension_numbers = #tpu.dot_dimension_numbers<[1], [0], [0], [1], [0, 0, 1, 1], [], []>} : vector<16x16xf32>, vector<16x16xf32>, vector<16x16xf32> -> vector<16x16xf32>
      %292 = vector.extract_strided_slice %112 {offsets = [32, 0], sizes = [16, 64], strides = [1, 1]} : vector<64x64xf32> to vector<16x64xf32>
      %cst_115 = arith.constant dense<0.000000e+00> : vector<16x64xf32>
      %293 = tpu.matmul %291, %292, %cst_115 {dimension_numbers = #tpu.dot_dimension_numbers<[1], [0], [0], [1], [0, 0, 1, 1], [], []>} : vector<16x16xf32>, vector<16x64xf32>, vector<16x64xf32> -> vector<16x64xf32>
      %c96_116 = arith.constant 96 : index
      %c0_117 = arith.constant 0 : index
      %294 = vector.load %arg10[%c96_116, %c0_117] : memref<128x64xf32, #tpu.memory_space<vmem>>, vector<16x64xf32>
      tpu.vector_store %arg10[%c96_116, %c0_117], %293 {strides = array<i32>} : memref<128x64xf32, #tpu.memory_space<vmem>>, vector<16x64xf32>,
      %c112 = arith.constant 112 : index
      %c48_118 = arith.constant 48 : index
      %295 = vector.load %arg11[%c112, %c48_118] : memref<128x64xf32, #tpu.memory_space<vmem>>, vector<16x16xf32>
      %296 = vector.extract_strided_slice %110 {offsets = [112, 0], sizes = [16, 1], strides = [1, 1]} : vector<128x1xf32> to vector<16x1xf32>
      %297 = vector.broadcast %296 : vector<16x1xf32> to vector<16x16xf32>
      %298 = arith.mulf %295, %297 : vector<16x16xf32>
      %cst_119 = arith.constant dense<0.000000e+00> : vector<16x48xf32>
      %299 = tpu.matmul %298, %111, %cst_119 {dimension_numbers = #tpu.dot_dimension_numbers<[1], [0], [0], [1], [0, 0, 1, 1], [], []>} : vector<16x16xf32>, vector<16x48xf32>, vector<16x48xf32> -> vector<16x48xf32>
      %300 = vector.extract_strided_slice %299 {offsets = [0, 0], sizes = [16, 16], strides = [1, 1]} : vector<16x48xf32> to vector<16x16xf32>
      %301 = vector.extract_strided_slice %299 {offsets = [0, 16], sizes = [16, 16], strides = [1, 1]} : vector<16x48xf32> to vector<16x16xf32>
      %302 = vector.extract_strided_slice %299 {offsets = [0, 32], sizes = [16, 16], strides = [1, 1]} : vector<16x48xf32> to vector<16x16xf32>
      %303 = tpu.transpose %301, [1, 0] : vector<16x16xf32> -> vector<16x16xf32>
      %cst_120 = arith.constant dense<0.000000e+00> : vector<16x16xf32>
      %304 = tpu.matmul %300, %303, %cst_120 {dimension_numbers = #tpu.dot_dimension_numbers<[1], [0], [0], [1], [0, 0, 1, 1], [], []>} : vector<16x16xf32>, vector<16x16xf32>, vector<16x16xf32> -> vector<16x16xf32>
      %cst_121 = arith.constant 2.500000e-01 : f32
      %305 = vector.broadcast %cst_121 : f32 to vector<16x16xf32>
      %306 = arith.mulf %304, %305 : vector<16x16xf32>
      %cst_122 = arith.constant dense<0xFF800000> : vector<16xf32>
      %307 = vector.multi_reduction <maximumf>, %306, %cst_122 [1] : vector<16x16xf32> to vector<16xf32>
      %308 = vector.shape_cast %307 : vector<16xf32> to vector<16x1xf32>
      %309 = vector.broadcast %308 : vector<16x1xf32> to vector<16x16xf32>
      %310 = arith.subf %306, %309 : vector<16x16xf32>
      %311 = math.exp %310 : vector<16x16xf32>
      %cst_123 = arith.constant dense<0.000000e+00> : vector<16xf32>
      %312 = vector.multi_reduction <add>, %311, %cst_123 [1] : vector<16x16xf32> to vector<16xf32>
      %313 = vector.shape_cast %312 : vector<16xf32> to vector<16x1xf32>
      %314 = tpu.reciprocal %313 {approx = true} : vector<16x1xf32> -> vector<16x1xf32>
      %315 = vector.broadcast %314 : vector<16x1xf32> to vector<16x16xf32>
      %316 = arith.mulf %311, %315 : vector<16x16xf32>
      %cst_124 = arith.constant dense<0.000000e+00> : vector<16x16xf32>
      %317 = tpu.matmul %316, %302, %cst_124 {dimension_numbers = #tpu.dot_dimension_numbers<[1], [0], [0], [1], [0, 0, 1, 1], [], []>} : vector<16x16xf32>, vector<16x16xf32>, vector<16x16xf32> -> vector<16x16xf32>
      %318 = vector.extract_strided_slice %112 {offsets = [48, 0], sizes = [16, 64], strides = [1, 1]} : vector<64x64xf32> to vector<16x64xf32>
      %cst_125 = arith.constant dense<0.000000e+00> : vector<16x64xf32>
      %319 = tpu.matmul %317, %318, %cst_125 {dimension_numbers = #tpu.dot_dimension_numbers<[1], [0], [0], [1], [0, 0, 1, 1], [], []>} : vector<16x16xf32>, vector<16x64xf32>, vector<16x64xf32> -> vector<16x64xf32>
      %c112_126 = arith.constant 112 : index
      %c0_127 = arith.constant 0 : index
      %320 = vector.load %arg10[%c112_126, %c0_127] : memref<128x64xf32, #tpu.memory_space<vmem>>, vector<16x64xf32>
      tpu.vector_store %arg10[%c112_126, %c0_127], %319 {strides = array<i32>} : memref<128x64xf32, #tpu.memory_space<vmem>>, vector<16x64xf32>,
    } else {
    }
    return
  }
  func.func @transform_0(%arg0: i32) -> (i32, i32) {
    %c0_i32 = arith.constant 0 : i32
    %c0_i32_0 = arith.constant 0 : i32
    return %c0_i32, %arg0 : i32, i32
  }
  func.func @transform_1(%arg0: i32) -> (i32, i32) {
    %c0_i32 = arith.constant 0 : i32
    %c0_i32_0 = arith.constant 0 : i32
    return %arg0, %c0_i32 : i32, i32
  }
  func.func @transform_2(%arg0: i32) -> (i32, i32) {
    %c0_i32 = arith.constant 0 : i32
    %c0_i32_0 = arith.constant 0 : i32
    %c0_i32_1 = arith.constant 0 : i32
    return %c0_i32, %c0_i32_0 : i32, i32
  }
  func.func @transform_3(%arg0: i32) -> (i32, i32) {
    %c0_i32 = arith.constant 0 : i32
    %c0_i32_0 = arith.constant 0 : i32
    %c0_i32_1 = arith.constant 0 : i32
    return %c0_i32, %c0_i32_0 : i32, i32
  }
  func.func @transform_4(%arg0: i32) -> (i32, i32) {
    %c0_i32 = arith.constant 0 : i32
    %c0_i32_0 = arith.constant 0 : i32
    %c0_i32_1 = arith.constant 0 : i32
    return %c0_i32, %c0_i32_0 : i32, i32
  }
  func.func @transform_5(%arg0: i32) -> (i32, i32) {
    %c0_i32 = arith.constant 0 : i32
    %c0_i32_0 = arith.constant 0 : i32
    %c0_i32_1 = arith.constant 0 : i32
    return %c0_i32, %c0_i32_0 : i32, i32
  }
  func.func @transform_6(%arg0: i32) -> (i32, i32) {
    %c0_i32 = arith.constant 0 : i32
    %c0_i32_0 = arith.constant 0 : i32
    %c0_i32_1 = arith.constant 0 : i32
    return %c0_i32, %c0_i32_0 : i32, i32
  }
  func.func @transform_7(%arg0: i32) -> (i32, i32) {
    %c0_i32 = arith.constant 0 : i32
    %c0_i32_0 = arith.constant 0 : i32
    %c0_i32_1 = arith.constant 0 : i32
    return %c0_i32, %c0_i32_0 : i32, i32
  }
  func.func @transform_8(%arg0: i32) -> (i32, i32) {
    %c0_i32 = arith.constant 0 : i32
    %c0_i32_0 = arith.constant 0 : i32
    return %arg0, %c0_i32 : i32, i32
  }
  func.func @transform_9(%arg0: i32) -> (i32, i32) {
    %c0_i32 = arith.constant 0 : i32
    %c0_i32_0 = arith.constant 0 : i32
    %c0_i32_1 = arith.constant 0 : i32
    return %c0_i32, %c0_i32_0 : i32, i32
  }
}

module attributes {stable_mosaic.version = 11 : i64} {
  func.func @_gather_mlp_kernel(%arg0: i32, %arg1: memref<128x1xi32, #tpu.memory_space<vmem>>, %arg2: memref<128x64xf32, #tpu.memory_space<vmem>>, %arg3: memref<128x64xf32, #tpu.memory_space<vmem>>, %arg4: memref<1x64xf32, #tpu.memory_space<vmem>>, %arg5: memref<128x64xf32, #tpu.memory_space<vmem>>, %arg6: memref<1x64xf32, #tpu.memory_space<vmem>>, %arg7: memref<1x64xf32, #tpu.memory_space<vmem>>, %arg8: memref<64x64xf32, #tpu.memory_space<vmem>>, %arg9: memref<1x64xf32, #tpu.memory_space<vmem>>, %arg10: memref<64x64xf32, #tpu.memory_space<vmem>>, %arg11: memref<1x64xf32, #tpu.memory_space<vmem>>, %arg12: memref<128x64xf32, #tpu.memory_space<vmem>>) attributes {dimension_semantics = [#tpu.dimension_semantics<parallel>], iteration_bounds = array<i64: 2>, scalar_prefetch = 0 : i64, scratch_operands = 0 : i64, tpu.core_type = #tpu.core_type<tc>, window_params = [{transform_indices = @transform_0, window_bounds = array<i64: 128, 1>}, {transform_indices = @transform_1, window_bounds = array<i64: 128, 64>}, {pipeline_mode = #tpu.pipeline_mode<synchronous>, transform_indices = @transform_2, window_bounds = array<i64: 128, 64>}, {pipeline_mode = #tpu.pipeline_mode<synchronous>, transform_indices = @transform_3, window_bounds = array<i64: 1, 64>}, {transform_indices = @transform_4, window_bounds = array<i64: 128, 64>}, {pipeline_mode = #tpu.pipeline_mode<synchronous>, transform_indices = @transform_5, window_bounds = array<i64: 1, 64>}, {pipeline_mode = #tpu.pipeline_mode<synchronous>, transform_indices = @transform_6, window_bounds = array<i64: 1, 64>}, {pipeline_mode = #tpu.pipeline_mode<synchronous>, transform_indices = @transform_7, window_bounds = array<i64: 64, 64>}, {pipeline_mode = #tpu.pipeline_mode<synchronous>, transform_indices = @transform_8, window_bounds = array<i64: 1, 64>}, {pipeline_mode = #tpu.pipeline_mode<synchronous>, transform_indices = @transform_9, window_bounds = array<i64: 64, 64>}, {pipeline_mode = #tpu.pipeline_mode<synchronous>, transform_indices = @transform_10, window_bounds = array<i64: 1, 64>}, {transform_indices = @transform_11, window_bounds = array<i64: 128, 64>}]} {
    %c0 = arith.constant 0 : index
    %c0_0 = arith.constant 0 : index
    %0 = vector.load %arg2[%c0, %c0_0] : memref<128x64xf32, #tpu.memory_space<vmem>>, vector<128x64xf32>
    %c0_1 = arith.constant 0 : index
    %c0_2 = arith.constant 0 : index
    %1 = vector.load %arg1[%c0_1, %c0_2] : memref<128x1xi32, #tpu.memory_space<vmem>>, vector<128x1xi32>
    %c0_i32 = arith.constant 0 : i32
    %2 = vector.broadcast %c0_i32 : i32 to vector<128x1xi32>
    %3 = arith.cmpi eq, %1, %2 : vector<128x1xi32>
    %4 = arith.extui %3 : vector<128x1xi1> to vector<128x1xi32>
    %5 = arith.sitofp %4 : vector<128x1xi32> to vector<128x1xf32>
    %6 = vector.broadcast %5 : vector<128x1xf32> to vector<128x64xf32>
    %7 = arith.mulf %0, %6 : vector<128x64xf32>
    %c1_i32 = arith.constant 1 : i32
    %8 = vector.broadcast %c1_i32 : i32 to vector<128x1xi32>
    %9 = arith.cmpi eq, %1, %8 : vector<128x1xi32>
    %10 = arith.extui %9 : vector<128x1xi1> to vector<128x1xi32>
    %11 = arith.sitofp %10 : vector<128x1xi32> to vector<128x1xf32>
    %12 = vector.broadcast %11 : vector<128x1xf32> to vector<128x64xf32>
    %13 = arith.mulf %0, %12 : vector<128x64xf32>
    %14 = tpu.concatenate %7, %13 in 1 : vector<128x64xf32>, vector<128x64xf32> -> vector<128x128xf32>
    %c0_3 = arith.constant 0 : index
    %c0_4 = arith.constant 0 : index
    %15 = vector.load %arg3[%c0_3, %c0_4] : memref<128x64xf32, #tpu.memory_space<vmem>>, vector<128x64xf32>
    %cst = arith.constant dense<0.000000e+00> : vector<128x64xf32>
    %16 = tpu.matmul %14, %15, %cst {dimension_numbers = #tpu.dot_dimension_numbers<[1], [0], [0], [1], [0, 0, 1, 1], [], []>} : vector<128x128xf32>, vector<128x64xf32>, vector<128x64xf32> -> vector<128x64xf32>
    %c0_5 = arith.constant 0 : index
    %c0_6 = arith.constant 0 : index
    %17 = vector.load %arg4[%c0_5, %c0_6] : memref<1x64xf32, #tpu.memory_space<vmem>>, vector<1x64xf32>
    %18 = vector.broadcast %17 : vector<1x64xf32> to vector<128x64xf32>
    %19 = arith.addf %16, %18 : vector<128x64xf32>
    %c0_7 = arith.constant 0 : index
    %c0_8 = arith.constant 0 : index
    %20 = vector.load %arg5[%c0_7, %c0_8] : memref<128x64xf32, #tpu.memory_space<vmem>>, vector<128x64xf32>
    %21 = arith.addf %19, %20 : vector<128x64xf32>
    %c0_9 = arith.constant 0 : index
    %c0_10 = arith.constant 0 : index
    %22 = vector.load %arg6[%c0_9, %c0_10] : memref<1x64xf32, #tpu.memory_space<vmem>>, vector<1x64xf32>
    %c0_11 = arith.constant 0 : index
    %c0_12 = arith.constant 0 : index
    %23 = vector.load %arg7[%c0_11, %c0_12] : memref<1x64xf32, #tpu.memory_space<vmem>>, vector<1x64xf32>
    %cst_13 = arith.constant dense<0.000000e+00> : vector<128xf32>
    %24 = vector.multi_reduction <add>, %21, %cst_13 [1] : vector<128x64xf32> to vector<128xf32>
    %25 = vector.shape_cast %24 : vector<128xf32> to vector<128x1xf32>
    %cst_14 = arith.constant 6.400000e+01 : f32
    %26 = vector.broadcast %cst_14 : f32 to vector<128x1xf32>
    %27 = arith.divf %25, %26 : vector<128x1xf32>
    %28 = vector.broadcast %27 : vector<128x1xf32> to vector<128x64xf32>
    %29 = arith.subf %21, %28 : vector<128x64xf32>
    %30 = arith.mulf %29, %29 : vector<128x64xf32>
    %cst_15 = arith.constant dense<0.000000e+00> : vector<128xf32>
    %31 = vector.multi_reduction <add>, %30, %cst_15 [1] : vector<128x64xf32> to vector<128xf32>
    %32 = vector.shape_cast %31 : vector<128xf32> to vector<128x1xf32>
    %cst_16 = arith.constant 6.400000e+01 : f32
    %33 = vector.broadcast %cst_16 : f32 to vector<128x1xf32>
    %34 = arith.divf %32, %33 : vector<128x1xf32>
    %35 = vector.broadcast %27 : vector<128x1xf32> to vector<128x64xf32>
    %36 = arith.subf %21, %35 : vector<128x64xf32>
    %cst_17 = arith.constant 9.99999974E-6 : f32
    %37 = vector.broadcast %cst_17 : f32 to vector<128x1xf32>
    %38 = arith.addf %34, %37 : vector<128x1xf32>
    %39 = math.rsqrt %38 : vector<128x1xf32>
    %40 = vector.broadcast %39 : vector<128x1xf32> to vector<128x64xf32>
    %41 = arith.mulf %36, %40 : vector<128x64xf32>
    %42 = vector.broadcast %22 : vector<1x64xf32> to vector<128x64xf32>
    %43 = arith.mulf %41, %42 : vector<128x64xf32>
    %44 = vector.broadcast %23 : vector<1x64xf32> to vector<128x64xf32>
    %45 = arith.addf %43, %44 : vector<128x64xf32>
    %c0_18 = arith.constant 0 : index
    %c0_19 = arith.constant 0 : index
    %46 = vector.load %arg8[%c0_18, %c0_19] : memref<64x64xf32, #tpu.memory_space<vmem>>, vector<64x64xf32>
    %cst_20 = arith.constant dense<0.000000e+00> : vector<128x64xf32>
    %47 = tpu.matmul %45, %46, %cst_20 {dimension_numbers = #tpu.dot_dimension_numbers<[1], [0], [0], [1], [0, 0, 1, 1], [], []>} : vector<128x64xf32>, vector<64x64xf32>, vector<128x64xf32> -> vector<128x64xf32>
    %c0_21 = arith.constant 0 : index
    %c0_22 = arith.constant 0 : index
    %48 = vector.load %arg9[%c0_21, %c0_22] : memref<1x64xf32, #tpu.memory_space<vmem>>, vector<1x64xf32>
    %49 = vector.broadcast %48 : vector<1x64xf32> to vector<128x64xf32>
    %50 = arith.addf %47, %49 : vector<128x64xf32>
    %cst_23 = arith.constant 5.000000e-01 : f32
    %51 = vector.broadcast %cst_23 : f32 to vector<128x64xf32>
    %52 = arith.mulf %51, %50 : vector<128x64xf32>
    %cst_24 = arith.constant 4.471500e-02 : f32
    %53 = vector.broadcast %cst_24 : f32 to vector<128x64xf32>
    %54 = arith.mulf %53, %50 : vector<128x64xf32>
    %55 = arith.mulf %54, %50 : vector<128x64xf32>
    %56 = arith.mulf %55, %50 : vector<128x64xf32>
    %57 = arith.addf %50, %56 : vector<128x64xf32>
    %cst_25 = arith.constant 0.797884583 : f32
    %58 = vector.broadcast %cst_25 : f32 to vector<128x64xf32>
    %59 = arith.mulf %58, %57 : vector<128x64xf32>
    %60 = math.tanh %59 : vector<128x64xf32>
    %cst_26 = arith.constant 1.000000e+00 : f32
    %61 = vector.broadcast %cst_26 : f32 to vector<128x64xf32>
    %62 = arith.addf %61, %60 : vector<128x64xf32>
    %63 = arith.mulf %52, %62 : vector<128x64xf32>
    %c0_27 = arith.constant 0 : index
    %c0_28 = arith.constant 0 : index
    %64 = vector.load %arg10[%c0_27, %c0_28] : memref<64x64xf32, #tpu.memory_space<vmem>>, vector<64x64xf32>
    %cst_29 = arith.constant dense<0.000000e+00> : vector<128x64xf32>
    %65 = tpu.matmul %63, %64, %cst_29 {dimension_numbers = #tpu.dot_dimension_numbers<[1], [0], [0], [1], [0, 0, 1, 1], [], []>} : vector<128x64xf32>, vector<64x64xf32>, vector<128x64xf32> -> vector<128x64xf32>
    %c0_30 = arith.constant 0 : index
    %c0_31 = arith.constant 0 : index
    %66 = vector.load %arg11[%c0_30, %c0_31] : memref<1x64xf32, #tpu.memory_space<vmem>>, vector<1x64xf32>
    %67 = vector.broadcast %66 : vector<1x64xf32> to vector<128x64xf32>
    %68 = arith.addf %65, %67 : vector<128x64xf32>
    %69 = arith.addf %68, %21 : vector<128x64xf32>
    %c0_32 = arith.constant 0 : index
    %c0_33 = arith.constant 0 : index
    %70 = vector.load %arg12[%c0_32, %c0_33] : memref<128x64xf32, #tpu.memory_space<vmem>>, vector<128x64xf32>
    tpu.vector_store %arg12[%c0_32, %c0_33], %69 {strides = array<i32>} : memref<128x64xf32, #tpu.memory_space<vmem>>, vector<128x64xf32>,
    return
  }
  func.func @transform_0(%arg0: i32) -> (i32, i32) {
    %c0_i32 = arith.constant 0 : i32
    %c0_i32_0 = arith.constant 0 : i32
    return %arg0, %c0_i32 : i32, i32
  }
  func.func @transform_1(%arg0: i32) -> (i32, i32) {
    %c0_i32 = arith.constant 0 : i32
    %c0_i32_0 = arith.constant 0 : i32
    return %arg0, %c0_i32 : i32, i32
  }
  func.func @transform_2(%arg0: i32) -> (i32, i32) {
    %c0_i32 = arith.constant 0 : i32
    %c0_i32_0 = arith.constant 0 : i32
    %c0_i32_1 = arith.constant 0 : i32
    return %c0_i32, %c0_i32_0 : i32, i32
  }
  func.func @transform_3(%arg0: i32) -> (i32, i32) {
    %c0_i32 = arith.constant 0 : i32
    %c0_i32_0 = arith.constant 0 : i32
    %c0_i32_1 = arith.constant 0 : i32
    return %c0_i32, %c0_i32_0 : i32, i32
  }
  func.func @transform_4(%arg0: i32) -> (i32, i32) {
    %c0_i32 = arith.constant 0 : i32
    %c0_i32_0 = arith.constant 0 : i32
    return %arg0, %c0_i32 : i32, i32
  }
  func.func @transform_5(%arg0: i32) -> (i32, i32) {
    %c0_i32 = arith.constant 0 : i32
    %c0_i32_0 = arith.constant 0 : i32
    %c0_i32_1 = arith.constant 0 : i32
    return %c0_i32, %c0_i32_0 : i32, i32
  }
  func.func @transform_6(%arg0: i32) -> (i32, i32) {
    %c0_i32 = arith.constant 0 : i32
    %c0_i32_0 = arith.constant 0 : i32
    %c0_i32_1 = arith.constant 0 : i32
    return %c0_i32, %c0_i32_0 : i32, i32
  }
  func.func @transform_7(%arg0: i32) -> (i32, i32) {
    %c0_i32 = arith.constant 0 : i32
    %c0_i32_0 = arith.constant 0 : i32
    %c0_i32_1 = arith.constant 0 : i32
    return %c0_i32, %c0_i32_0 : i32, i32
  }
  func.func @transform_8(%arg0: i32) -> (i32, i32) {
    %c0_i32 = arith.constant 0 : i32
    %c0_i32_0 = arith.constant 0 : i32
    %c0_i32_1 = arith.constant 0 : i32
    return %c0_i32, %c0_i32_0 : i32, i32
  }
  func.func @transform_9(%arg0: i32) -> (i32, i32) {
    %c0_i32 = arith.constant 0 : i32
    %c0_i32_0 = arith.constant 0 : i32
    %c0_i32_1 = arith.constant 0 : i32
    return %c0_i32, %c0_i32_0 : i32, i32
  }
  func.func @transform_10(%arg0: i32) -> (i32, i32) {
    %c0_i32 = arith.constant 0 : i32
    %c0_i32_0 = arith.constant 0 : i32
    %c0_i32_1 = arith.constant 0 : i32
    return %c0_i32, %c0_i32_0 : i32, i32
  }
  func.func @transform_11(%arg0: i32) -> (i32, i32) {
    %c0_i32 = arith.constant 0 : i32
    %c0_i32_0 = arith.constant 0 : i32
    return %arg0, %c0_i32 : i32, i32
  }
}

module attributes {stable_mosaic.version = 11 : i64} {
  func.func @_decoder_kernel(%arg0: i32, %arg1: memref<128x64xf32, #tpu.memory_space<vmem>>, %arg2: memref<1x64xf32, #tpu.memory_space<vmem>>, %arg3: memref<1x64xf32, #tpu.memory_space<vmem>>, %arg4: memref<64x1xf32, #tpu.memory_space<vmem>>, %arg5: memref<1x1xf32, #tpu.memory_space<vmem>>, %arg6: memref<128x1xf32, #tpu.memory_space<vmem>>) attributes {dimension_semantics = [#tpu.dimension_semantics<parallel>], iteration_bounds = array<i64: 2>, scalar_prefetch = 0 : i64, scratch_operands = 0 : i64, tpu.core_type = #tpu.core_type<tc>, window_params = [{transform_indices = @transform_0, window_bounds = array<i64: 128, 64>}, {pipeline_mode = #tpu.pipeline_mode<synchronous>, transform_indices = @transform_1, window_bounds = array<i64: 1, 64>}, {pipeline_mode = #tpu.pipeline_mode<synchronous>, transform_indices = @transform_2, window_bounds = array<i64: 1, 64>}, {pipeline_mode = #tpu.pipeline_mode<synchronous>, transform_indices = @transform_3, window_bounds = array<i64: 64, 1>}, {pipeline_mode = #tpu.pipeline_mode<synchronous>, transform_indices = @transform_4, window_bounds = array<i64: 1, 1>}, {transform_indices = @transform_5, window_bounds = array<i64: 128, 1>}]} {
    %c0 = arith.constant 0 : index
    %c0_0 = arith.constant 0 : index
    %0 = vector.load %arg1[%c0, %c0_0] : memref<128x64xf32, #tpu.memory_space<vmem>>, vector<128x64xf32>
    %c0_1 = arith.constant 0 : index
    %c0_2 = arith.constant 0 : index
    %1 = vector.load %arg2[%c0_1, %c0_2] : memref<1x64xf32, #tpu.memory_space<vmem>>, vector<1x64xf32>
    %c0_3 = arith.constant 0 : index
    %c0_4 = arith.constant 0 : index
    %2 = vector.load %arg3[%c0_3, %c0_4] : memref<1x64xf32, #tpu.memory_space<vmem>>, vector<1x64xf32>
    %cst = arith.constant dense<0.000000e+00> : vector<128xf32>
    %3 = vector.multi_reduction <add>, %0, %cst [1] : vector<128x64xf32> to vector<128xf32>
    %4 = vector.shape_cast %3 : vector<128xf32> to vector<128x1xf32>
    %cst_5 = arith.constant 6.400000e+01 : f32
    %5 = vector.broadcast %cst_5 : f32 to vector<128x1xf32>
    %6 = arith.divf %4, %5 : vector<128x1xf32>
    %7 = vector.broadcast %6 : vector<128x1xf32> to vector<128x64xf32>
    %8 = arith.subf %0, %7 : vector<128x64xf32>
    %9 = arith.mulf %8, %8 : vector<128x64xf32>
    %cst_6 = arith.constant dense<0.000000e+00> : vector<128xf32>
    %10 = vector.multi_reduction <add>, %9, %cst_6 [1] : vector<128x64xf32> to vector<128xf32>
    %11 = vector.shape_cast %10 : vector<128xf32> to vector<128x1xf32>
    %cst_7 = arith.constant 6.400000e+01 : f32
    %12 = vector.broadcast %cst_7 : f32 to vector<128x1xf32>
    %13 = arith.divf %11, %12 : vector<128x1xf32>
    %14 = vector.broadcast %6 : vector<128x1xf32> to vector<128x64xf32>
    %15 = arith.subf %0, %14 : vector<128x64xf32>
    %cst_8 = arith.constant 9.99999974E-6 : f32
    %16 = vector.broadcast %cst_8 : f32 to vector<128x1xf32>
    %17 = arith.addf %13, %16 : vector<128x1xf32>
    %18 = math.rsqrt %17 : vector<128x1xf32>
    %19 = vector.broadcast %18 : vector<128x1xf32> to vector<128x64xf32>
    %20 = arith.mulf %15, %19 : vector<128x64xf32>
    %21 = vector.broadcast %1 : vector<1x64xf32> to vector<128x64xf32>
    %22 = arith.mulf %20, %21 : vector<128x64xf32>
    %23 = vector.broadcast %2 : vector<1x64xf32> to vector<128x64xf32>
    %24 = arith.addf %22, %23 : vector<128x64xf32>
    %c0_9 = arith.constant 0 : index
    %c0_10 = arith.constant 0 : index
    %25 = vector.load %arg4[%c0_9, %c0_10] : memref<64x1xf32, #tpu.memory_space<vmem>>, vector<64x1xf32>
    %cst_11 = arith.constant dense<0.000000e+00> : vector<128x1xf32>
    %26 = tpu.matmul %24, %25, %cst_11 {dimension_numbers = #tpu.dot_dimension_numbers<[1], [0], [0], [1], [0, 0, 1, 1], [], []>} : vector<128x64xf32>, vector<64x1xf32>, vector<128x1xf32> -> vector<128x1xf32>
    %c0_12 = arith.constant 0 : index
    %c0_13 = arith.constant 0 : index
    %27 = vector.load %arg5[%c0_12, %c0_13] : memref<1x1xf32, #tpu.memory_space<vmem>>, vector<1x1xf32>
    %28 = vector.broadcast %27 : vector<1x1xf32> to vector<128x1xf32>
    %29 = arith.addf %26, %28 : vector<128x1xf32>
    %c0_14 = arith.constant 0 : index
    %c0_15 = arith.constant 0 : index
    %30 = vector.load %arg6[%c0_14, %c0_15] : memref<128x1xf32, #tpu.memory_space<vmem>>, vector<128x1xf32>
    tpu.vector_store %arg6[%c0_14, %c0_15], %29 {strides = array<i32>} : memref<128x1xf32, #tpu.memory_space<vmem>>, vector<128x1xf32>,
    return
  }
  func.func @transform_0(%arg0: i32) -> (i32, i32) {
    %c0_i32 = arith.constant 0 : i32
    %c0_i32_0 = arith.constant 0 : i32
    return %arg0, %c0_i32 : i32, i32
  }
  func.func @transform_1(%arg0: i32) -> (i32, i32) {
    %c0_i32 = arith.constant 0 : i32
    %c0_i32_0 = arith.constant 0 : i32
    %c0_i32_1 = arith.constant 0 : i32
    return %c0_i32, %c0_i32_0 : i32, i32
  }
  func.func @transform_2(%arg0: i32) -> (i32, i32) {
    %c0_i32 = arith.constant 0 : i32
    %c0_i32_0 = arith.constant 0 : i32
    %c0_i32_1 = arith.constant 0 : i32
    return %c0_i32, %c0_i32_0 : i32, i32
  }
  func.func @transform_3(%arg0: i32) -> (i32, i32) {
    %c0_i32 = arith.constant 0 : i32
    %c0_i32_0 = arith.constant 0 : i32
    %c0_i32_1 = arith.constant 0 : i32
    return %c0_i32, %c0_i32_0 : i32, i32
  }
  func.func @transform_4(%arg0: i32) -> (i32, i32) {
    %c0_i32 = arith.constant 0 : i32
    %c0_i32_0 = arith.constant 0 : i32
    %c0_i32_1 = arith.constant 0 : i32
    return %c0_i32, %c0_i32_0 : i32, i32
  }
  func.func @transform_5(%arg0: i32) -> (i32, i32) {
    %c0_i32 = arith.constant 0 : i32
    %c0_i32_0 = arith.constant 0 : i32
    return %arg0, %c0_i32 : i32, i32
  }
}

</mosaic_0001>

<bundles_post_ra>
// kernel: fwd.6
= control target key start
LH: loop header
LB: loop body
LE: loop exit
PB: predicated region body
PF: predicated region fallthrough
CT: control target
= control target key end

     0   :  { %s1122_s18 = smov 0   ;;  %s1387_s0 = inlined_call_operand.vmem [shape: f32[256,2], index: 0, kind: input, shape index: {}]   ;;  %s1388_s1 = inlined_call_operand.vmem [shape: f32[2,128], index: 1, kind: input, shape index: {}]   ;;  %s1389_s2 = inlined_call_operand.vmem [shape: f32[1,128], index: 2, kind: input, shape index: {}]   ;;  %s1390_s3 = inlined_call_operand.vmem [shape: f32[128,64], index: 3, kind: input, shape index: {}]   ;;  %s1391_s4 = inlined_call_operand.vmem [shape: f32[1,64], index: 4, kind: input, shape index: {}]   ;;  %s1392_s5 = inlined_call_operand.vmem [shape: f32[256,64], index: 5, kind: output, shape index: {}]  }
   0x1 LB: > { %s835_s19 = sadd.s32 4294967295, %s1090_s18   ;;  %p839_p0 = scmp.ge.s32.totalorder %s1090_s18, 1  ;;  %s1090_s18 = sphi %s1122_s18, %s15_s18  }
   0x2   : > { %p188_p1 = scmp.lt.s32.totalorder %s1090_s18, 3 }
   0x4   : > { %p189_p2 = pnand %p839_p0, %p188_p1 }
   0x5   : > { %v244_v0 = vld [vmem:[%s1388_s1] sm:$0x3] (!%p189_p2)  ;;  %vm301_vm0 = vcmask (!%p189_p2), 1041408   ;;  %s840_s22 = sshll.u32 (!%p189_p2), %s835_s19, 4  ;;  %v595_v2 = vld [vmem:[%s1390_s3 + $0x8] sm:$0xff] (!%p189_p2)  ;;  %vm252_vm1 = vcmask (!%p189_p2), 15360  }
   0x6   : > { %192 = sbr.rel (%p189_p2) target bundleno = 506 (0x1fa), region = 40  ;;  %v594_v1 = vld [vmem:[%s1390_s3] sm:$0xff] (!%p189_p2)  ;;  %914 = vmatprep.subr.msk.mxu0 (!%p189_p2), %vm301_vm0, %v244_v0  ;;  %p217_p3 = scmp.lt.s32.totalorder (!%p189_p2), %s840_s22, 31  ;;  %v596_v20 = vld [vmem:[%s1390_s3 + $0x10] sm:$0xff] (!%p189_p2)  ;;  %v597_v21 = vld [vmem:[%s1390_s3 + $0x18] sm:$0xff] (!%p189_p2)  ;;  %vm762_vm2 = vcmask (!%p189_p2), 523264  }
   0x7   : > { %915 = vmatpush3.msk.msra.mxu0 (!%p189_p2), %vm301_vm0, %v244_v0  ;;  %v996_v3 = vpack.c.bf16 (!%p189_p2), %v595_v2, %v594_v1  ;;  %v1000_v22 = vpack.c.bf16 (!%p189_p2), %v597_v21, %v596_v20  ;;  %v598_v23 = vld [vmem:[%s1390_s3 + $0x20] sm:$0xff] (!%p189_p2)  ;;  %v599_v24 = vld [vmem:[%s1390_s3 + $0x28] sm:$0xff] (!%p189_p2)  ;;  %v600_v26 = vld [vmem:[%s1390_s3 + $0x30] sm:$0xff] (!%p189_p2) }
   0x8   : > { %v1004_v25 = vpack.c.bf16 (!%p189_p2), %v599_v24, %v598_v23  ;;  %v601_v27 = vld [vmem:[%s1390_s3 + $0x38] sm:$0xff] (!%p189_p2)  ;;  %v602_v29 = vld [vmem:[%s1390_s3 + $0x40] sm:$0xff] (!%p189_p2)  ;;  %v603_v30 = vld [vmem:[%s1390_s3 + $0x48] sm:$0xff] (!%p189_p2) }
   0x9   : > { %997 = vmatprep.subr.bf16.mxu0 (!%p189_p2), %v996_v3  ;;  %1028 = vmatprep.subr.bf16.mxu1 (!%p189_p2), %v996_v3  ;;  %v1008_v28 = vpack.c.bf16 (!%p189_p2), %v601_v27, %v600_v26  ;;  %v1012_v31 = vpack.c.bf16 (!%p189_p2), %v603_v30, %v602_v29  ;;  %v604_v32 = vld [vmem:[%s1390_s3 + $0x50] sm:$0xff] (!%p189_p2)  ;;  %v605_v33 = vld [vmem:[%s1390_s3 + $0x58] sm:$0xff] (!%p189_p2)  ;;  %v606_v35 = vld [vmem:[%s1390_s3 + $0x60] sm:$0xff] (!%p189_p2) }
   0xa   : > { %1036 = vmatpush3.bf16.msra.mxu1 (!%p189_p2), %v996_v3  ;;  %v1016_v34 = vpack.c.bf16 (!%p189_p2), %v605_v33, %v604_v32  ;;  %v607_v36 = vld [vmem:[%s1390_s3 + $0x68] sm:$0xff] (!%p189_p2)  ;;  %v608_v38 = vld [vmem:[%s1390_s3 + $0x70] sm:$0xff] (!%p189_p2)  ;;  %v609_v39 = vld [vmem:[%s1390_s3 + $0x78] sm:$0xff] (!%p189_p2) }
   0xb   : > { %1029 = vmatprep.subr.bf16.mxu1 (!%p189_p2), %v1000_v22  ;;  %v1020_v37 = vpack.c.bf16 (!%p189_p2), %v607_v36, %v606_v35  ;;  %v1024_v40 = vpack.c.bf16 (!%p189_p2), %v609_v39, %v608_v38  ;;  %v1226_v41 = vld [vmem:[%s1389_s2] ss:$0 sm:$0xff] (!%p189_p2) }
   0xd   : > { %s1394_s22 = smov (!%p217_p3, %s840_s22), 31 }
   0xe   : > { %s841_s27 = sshll.u32 %s1394_s22, 3  ;;  %1037 = vmatpush3.bf16.msra.mxu1 %v1000_v22 }
   0xf   : > { %s1147_s30 = scalar_lea.vmem %s1387_s0, %s841_s27  ;;  %1030 = vmatprep.subr.bf16.mxu1 %v1004_v25  ;;  %s1350_s19 = scalar_lea.vmem %s1392_s5, %s841_s27 }
  0x10   : > { %v228_v4 = vld [vmem:[%s1147_s30] sm:$0xff]  ;;  %v229_v5 = vld [vmem:[%s1147_s30 + $0x8] sm:$0xff]  ;;  %v230_v6 = vld [vmem:[%s1147_s30 + $0x10] sm:$0xff] }
  0x11   : > { %916 = vmatprep.mubr.msk.f32.mxu0 %vm252_vm1, %v228_v4  ;;  %v231_v7 = vld [vmem:[%s1147_s30 + $0x18] sm:$0xff]  ;;  %v232_v8 = vld [vmem:[%s1147_s30 + $0x20] sm:$0xff]  ;;  %v233_v9 = vld [vmem:[%s1147_s30 + $0x28] sm:$0xff] }
  0x12   : > { %917 = vmatmul.mubr.msk.f32.vlgmr.msra.gmra.mrb[0].mxu0 %vm252_vm1, %v229_v5  ;;  %v234_v10 = vld [vmem:[%s1147_s30 + $0x30] sm:$0xff]  ;;  %v235_v11 = vld [vmem:[%s1147_s30 + $0x38] sm:$0xff]  ;;  %v236_v12 = vld [vmem:[%s1147_s30 + $0x40] sm:$0xff]  ;;  %1038 = vmatpush3.bf16.msra.mxu1 %v1004_v25 }
  0x13   : > { %919 = vmatprep.mubr.msk.f32.mxu0 %vm252_vm1, %v230_v6  ;;  %999 = vmatpush3.bf16.msra.mxu0 %v996_v3  ;;  %v237_v13 = vld [vmem:[%s1147_s30 + $0x48] sm:$0xff]  ;;  %v238_v14 = vld [vmem:[%s1147_s30 + $0x50] sm:$0xff]  ;;  %v239_v15 = vld [vmem:[%s1147_s30 + $0x58] sm:$0xff] }
  0x14   : > { %v240_v16 = vld [vmem:[%s1147_s30 + $0x60] sm:$0xff]  ;;  %v241_v17 = vld [vmem:[%s1147_s30 + $0x68] sm:$0xff]  ;;  %v242_v18 = vld [vmem:[%s1147_s30 + $0x70] sm:$0xff]  ;;  %1001 = vmatprep.subr.bf16.mxu0 %v1000_v22  ;;  %1031 = vmatprep.subr.bf16.mxu1 %v1008_v28 }
  0x15   : > { %v243_v19 = vld [vmem:[%s1147_s30 + $0x78] sm:$0xff] }
  0x16   : > { %920 = vmatmul.mubr.msk.f32.gmra.mrb[2].mxu0 %vm252_vm1, %v231_v7  ;;  %1039 = vmatpush3.bf16.msra.mxu1 %v1008_v28 }
  0x17   : > { %922 = vmatprep.mubr.msk.f32.mxu0 %vm252_vm1, %v232_v8  ;;  %1003 = vmatpush3.bf16.msra.mxu0 %v1000_v22 }
  0x18   : > { %1005 = vmatprep.subr.bf16.mxu0 %v1004_v25  ;;  %1032 = vmatprep.subr.bf16.mxu1 %v1012_v31 }
  0x1a   : > { %923 = vmatmul.mubr.msk.f32.gmra.mrb[4].mxu0 %vm252_vm1, %v233_v9  ;;  %1040 = vmatpush3.bf16.msra.mxu1 %v1012_v31 }
  0x1b   : > { %925 = vmatprep.mubr.msk.f32.mxu0 %vm252_vm1, %v234_v10  ;;  %1007 = vmatpush3.bf16.msra.mxu0 %v1004_v25 }
  0x1c   : > { %1009 = vmatprep.subr.bf16.mxu0 %v1008_v28  ;;  %1033 = vmatprep.subr.bf16.mxu1 %v1016_v34 }
  0x1e   : > { %926 = vmatmul.mubr.msk.f32.gmra.mrb[6].mxu0 %vm252_vm1, %v235_v11  ;;  %1041 = vmatpush3.bf16.msra.mxu1 %v1016_v34 }
  0x1f   : > { %928 = vmatprep.mubr.msk.f32.mxu0 %vm252_vm1, %v236_v12  ;;  %1011 = vmatpush3.bf16.msra.mxu0 %v1008_v28 }
  0x20   : > { %1013 = vmatprep.subr.bf16.mxu0 %v1012_v31  ;;  %1034 = vmatprep.subr.bf16.mxu1 %v1020_v37 }
  0x22   : > { %929 = vmatmul.mubr.msk.f32.gmra.mrb[8].mxu0 %vm252_vm1, %v237_v13  ;;  %1042 = vmatpush3.bf16.msra.mxu1 %v1020_v37 }
  0x23   : > { %931 = vmatprep.mubr.msk.f32.mxu0 %vm252_vm1, %v238_v14  ;;  %1015 = vmatpush3.bf16.msra.mxu0 %v1012_v31 }
  0x24   : > { %1017 = vmatprep.subr.bf16.mxu0 %v1016_v34  ;;  %1035 = vmatprep.subr.bf16.mxu1 %v1024_v40 }
  0x26   : > { %932 = vmatmul.mubr.msk.f32.gmra.mrb[10].mxu0 %vm252_vm1, %v239_v15  ;;  %1043 = vmatpush3.bf16.msra.mxu1 %v1024_v40 }
  0x27   : > { %934 = vmatprep.mubr.msk.f32.mxu0 %vm252_vm1, %v240_v16  ;;  %1019 = vmatpush3.bf16.msra.mxu0 %v1016_v34 }
  0x28   : > { %1021 = vmatprep.subr.bf16.mxu0 %v1020_v37 }
  0x2a   : > { %935 = vmatmul.mubr.msk.f32.gmra.mrb[12].mxu0 %vm252_vm1, %v241_v17 }
  0x2b   : > { %937 = vmatprep.mubr.msk.f32.mxu0 %vm252_vm1, %v242_v18  ;;  %1023 = vmatpush3.bf16.msra.mxu0 %v1020_v37 }
  0x2c   : > { %1025 = vmatprep.subr.bf16.mxu0 %v1024_v40 }
  0x2e   : > { %938 = vmatmul.mubr.msk.f32.gmra.mrb[14].mxu0 %vm252_vm1, %v243_v19 }
  0x2f   : > { %1027 = vmatpush3.bf16.msra.mxu0 %v1024_v40 }
  0xe5   : > { %v918_v42 = vpop.f32.mrb[0].mxu0 }
  0xe6   : > { %v377_v43 = vadd.f32 %v918_v42, %v1226_v41  ;;  %v371_v44 = vpop.f32.mrb[1].mxu0 }
  0xe7   : > { %v372_v45 = vadd.f32 %v1226_v41, %v371_v44 }
  0xe8   : > { %v467_v46 = vmul.f32 0.044715, %v377_v43  ;;  %v451_v30 = vmul.f32 0.5, %v377_v43 }
  0xe9   : > { %v466_v47 = vmul.f32 0.044715, %v372_v45  ;;  %v921_v48 = vpop.f32.mrb[2].mxu0  ;;  %v450_v36 = vmul.f32 0.5, %v372_v45 }
  0xea   : > { %v483_v49 = vmul.f32 %v467_v46, %v377_v43  ;;  %v1231_v50 = vadd.f32 %v921_v48, %v1226_v41  ;;  %v381_v51 = vpop.f32.mrb[3].mxu0 }
  0xeb   : > { %v482_v52 = vmul.f32 %v466_v47, %v372_v45  ;;  %v1234_v53 = vadd.f32 %v1226_v41, %v381_v51 }
  0xec   : > { %v499_v54 = vmul.f32 %v483_v49, %v377_v43  ;;  %v469_v55 = vmul.f32 0.044715, %v1231_v50  ;;  %v453_v49 = vmul.f32 0.5, %v1231_v50 }
  0xed   : > { %v468_v56 = vmul.f32 0.044715, %v1234_v53  ;;  %v924_v57 = vpop.f32.mrb[4].mxu0  ;;  %v498_v58 = vmul.f32 %v482_v52, %v372_v45 }
  0xee   : > { %v515_v59 = vadd.f32 %v499_v54, %v377_v43  ;;  %v485_v60 = vmul.f32 %v469_v55, %v1231_v50  ;;  %v1240_v61 = vadd.f32 %v924_v57, %v1226_v41  ;;  %v391_v62 = vpop.f32.mrb[5].mxu0 }
  0xef   : > { %v484_v63 = vmul.f32 %v468_v56, %v1234_v53  ;;  %v1244_v0 = vadd.f32 %v1226_v41, %v391_v62  ;;  %v514_v1 = vadd.f32 %v498_v58, %v372_v45 }
  0xf0   : > { %v531_v2 = vmul.f32 0.7978846, %v515_v59  ;;  %v471_v3 = vmul.f32 0.044715, %v1240_v61  ;;  %v501_v4 = vmul.f32 %v485_v60, %v1231_v50 }
  0xf1   : > { %v470_v5 = vmul.f32 0.044715, %v1244_v0  ;;  %v927_v6 = vpop.f32.mrb[6].mxu0  ;;  %v530_v7 = vmul.f32 0.7978846, %v514_v1  ;;  %v500_v8 = vmul.f32 %v484_v63, %v1234_v53  ;;  %v452_v1 = vmul.f32 0.5, %v1234_v53 }
  0xf2   : > { %1052 = vtanh.f32 %v531_v2  ;;  %v487_v9 = vmul.f32 %v471_v3, %v1240_v61  ;;  %v1252_v10 = vadd.f32 %v927_v6, %v1226_v41  ;;  %v401_v11 = vpop.f32.mrb[7].mxu0  ;;  %v517_v12 = vadd.f32 %v501_v4, %v1231_v50 }
  0xf3   : > { %v486_v13 = vmul.f32 %v470_v5, %v1244_v0  ;;  %v1257_v14 = vadd.f32 %v1226_v41, %v401_v11  ;;  %1054 = vtanh.f32 %v530_v7  ;;  %v516_v15 = vadd.f32 %v500_v8, %v1234_v53 }
  0xf4   : > { %v473_v16 = vmul.f32 0.044715, %v1252_v10  ;;  %v533_v17 = vmul.f32 0.7978846, %v517_v12  ;;  %v503_v18 = vmul.f32 %v487_v9, %v1240_v61 }
  0xf5   : > { %v930_v19 = vpop.f32.mrb[8].mxu0  ;;  %v532_v20 = vmul.f32 0.7978846, %v516_v15  ;;  %v502_v21 = vmul.f32 %v486_v13, %v1244_v0  ;;  %v472_v22 = vmul.f32 0.044715, %v1257_v14 }
  0xf6   : > { %v489_v23 = vmul.f32 %v473_v16, %v1252_v10  ;;  %v1266_v24 = vadd.f32 %v930_v19, %v1226_v41  ;;  %v411_v25 = vpop.f32.mrb[9].mxu0  ;;  %1056 = vtanh.f32 %v533_v17  ;;  %v519_v26 = vadd.f32 %v503_v18, %v1240_v61 }
  0xf7   : > { %v1270_v27 = vadd.f32 %v1226_v41, %v411_v25  ;;  %1058 = vtanh.f32 %v532_v20  ;;  %v518_v28 = vadd.f32 %v502_v21, %v1244_v0  ;;  %v488_v29 = vmul.f32 %v472_v22, %v1257_v14 }
  0xf8   : > { %v475_v31 = vmul.f32 0.044715, %v1266_v24  ;;  %v535_v32 = vmul.f32 0.7978846, %v519_v26  ;;  %v505_v33 = vmul.f32 %v489_v23, %v1252_v10 }
  0xf9   : > { %v474_v34 = vmul.f32 0.044715, %v1270_v27  ;;  %v933_v35 = vpop.f32.mrb[10].mxu0  ;;  %v534_v37 = vmul.f32 0.7978846, %v518_v28  ;;  %v504_v38 = vmul.f32 %v488_v29, %v1257_v14 }
  0xfa   : > { %v491_v39 = vmul.f32 %v475_v31, %v1266_v24  ;;  %v1280_v40 = vadd.f32 %v933_v35, %v1226_v41  ;;  %v421_v42 = vpop.f32.mrb[11].mxu0  ;;  %1060 = vtanh.f32 %v535_v32  ;;  %v521_v43 = vadd.f32 %v505_v33, %v1252_v10 }
  0xfb   : > { %v490_v44 = vmul.f32 %v474_v34, %v1270_v27  ;;  %v1285_v46 = vadd.f32 %v1226_v41, %v421_v42  ;;  %1062 = vtanh.f32 %v534_v37  ;;  %v520_v45 = vadd.f32 %v504_v38, %v1257_v14 }
  0xfc   : > { %v1053_v47 = vpop.eup %1052  ;;  %v477_v48 = vmul.f32 0.044715, %v1280_v40  ;;  %v537_v51 = vmul.f32 0.7978846, %v521_v43  ;;  %v507_v52 = vmul.f32 %v491_v39, %v1266_v24 }
  0xfd   : > { %v1055_v54 = vpop.eup %1054  ;;  %v476_v55 = vmul.f32 0.044715, %v1285_v46  ;;  %v936_v56 = vpop.f32.mrb[12].mxu0  ;;  %v563_v57 = vadd.f32 1.0, %v1053_v47  ;;  %v536_v58 = vmul.f32 0.7978846, %v520_v45  ;;  %v506_v59 = vmul.f32 %v490_v44, %v1270_v27 }
  0xfe   : > { %v1294_v60 = vadd.f32 %v936_v56, %v1226_v41  ;;  %v431_v62 = vpop.f32.mrb[13].mxu0  ;;  %v562_v63 = vadd.f32 1.0, %v1055_v54  ;;  %1064 = vtanh.f32 %v537_v51  ;;  %v493_v50 = vmul.f32 %v477_v48, %v1280_v40 }
  0xff   : > { %v492_v2 = vmul.f32 %v476_v55, %v1285_v46  ;;  %v1300_v3 = vadd.f32 %v1226_v41, %v431_v62  ;;  %1066 = vtanh.f32 %v536_v58  ;;  %v522_v7 = vadd.f32 %v506_v59, %v1270_v27 }
 0x100   : > { %v1057_v4 = vpop.eup %1056  ;;  %v479_v5 = vmul.f32 0.044715, %v1294_v60  ;;  %v578_v6 = vmul.f32 %v562_v63, %v450_v36  ;;  %v523_v8 = vadd.f32 %v507_v52, %v1266_v24  ;;  %v579_v12 = vmul.f32 %v563_v57, %v451_v30 }
 0x101   : > { %v1059_v9 = vpop.eup %1058  ;;  %v478_v53 = vmul.f32 0.044715, %v1300_v3  ;;  %v939_v11 = vpop.f32.mrb[14].mxu0  ;;  %v565_v13 = vadd.f32 1.0, %v1057_v4  ;;  %v508_v15 = vmul.f32 %v492_v2, %v1285_v46  ;;  %v538_v20 = vmul.f32 0.7978846, %v522_v7 }
 0x102   : > { %v495_v16 = vmul.f32 %v479_v5, %v1294_v60  ;;  %v1309_v17 = vadd.f32 %v939_v11, %v1226_v41  ;;  %v441_v18 = vpop.f32.mrb[15].mxu0  ;;  %972 = vmatprep.mubr.f32.mxu0 %v578_v6  ;;  %v564_v19 = vadd.f32 1.0, %v1059_v9  ;;  %v539_v25 = vmul.f32 0.7978846, %v523_v8 }
 0x103   : > { %v494_v21 = vmul.f32 %v478_v53, %v1300_v3  ;;  %v1313_v22 = vadd.f32 %v1226_v41, %v441_v18  ;;  %973 = vmatmul.mubr.f32.vlgmr.msra.gmra.mrb[16].mxu0 %v579_v12  ;;  %v581_v23 = vmul.f32 %v565_v13, %v453_v49  ;;  %1068 = vtanh.f32 %v538_v20 }
 0x104   : > { %v1061_v26 = vpop.eup %1060  ;;  %v481_v28 = vmul.f32 0.044715, %v1309_v17  ;;  %v580_v29 = vmul.f32 %v564_v19, %v452_v1  ;;  %v524_v30 = vadd.f32 %v508_v15, %v1285_v46  ;;  %1070 = vtanh.f32 %v539_v25 }
 0x105   : > { %v1063_v31 = vpop.eup %1062  ;;  %v480_v32 = vmul.f32 0.044715, %v1313_v22  ;;  %v567_v33 = vadd.f32 1.0, %v1061_v26  ;;  %v509_v34 = vmul.f32 %v493_v50, %v1280_v40  ;;  %v454_v41 = vmul.f32 0.5, %v1244_v0 }
 0x106   : > { %975 = vmatprep.mubr.f32.mxu0 %v580_v29  ;;  %v566_v35 = vadd.f32 1.0, %v1063_v31  ;;  %v455_v36 = vmul.f32 0.5, %v1240_v61  ;;  %v540_v37 = vmul.f32 0.7978846, %v524_v30  ;;  %v497_v38 = vmul.f32 %v481_v28, %v1309_v17 }
 0x107   : > { %v496_v39 = vmul.f32 %v480_v32, %v1313_v22  ;;  %976 = vmatmul.mubr.f32.gmra.mrb[18].mxu0 %v581_v23  ;;  %v525_v42 = vadd.f32 %v509_v34, %v1280_v40  ;;  %v510_v43 = vmul.f32 %v494_v21, %v1300_v3  ;;  %v511_v47 = vmul.f32 %v495_v16, %v1294_v60 }
 0x108   : > { %v1065_v44 = vpop.eup %1064  ;;  %v582_v45 = vmul.f32 %v566_v35, %v454_v41  ;;  %1072 = vtanh.f32 %v540_v37  ;;  %v583_v0 = vmul.f32 %v567_v33, %v455_v36  ;;  %v456_v52 = vmul.f32 0.5, %v1257_v14  ;;  %v862_v35 = vld [vmem:[%s1391_s4] ss:$0 sm:$0xff] }
 0x109   : > { %v1067_v48 = vpop.eup %1066  ;;  %v569_v49 = vadd.f32 1.0, %v1065_v44  ;;  %v541_v51 = vmul.f32 0.7978846, %v525_v42  ;;  %v526_v61 = vadd.f32 %v510_v43, %v1300_v3  ;;  %v527_v55 = vadd.f32 %v511_v47, %v1294_v60 }
 0x10a   : > { %978 = vmatprep.mubr.f32.mxu0 %v582_v45  ;;  %v568_v54 = vadd.f32 1.0, %v1067_v48  ;;  %v512_v56 = vmul.f32 %v496_v39, %v1313_v22  ;;  %v457_v57 = vmul.f32 0.5, %v1252_v10  ;;  %v513_v59 = vmul.f32 %v497_v38, %v1309_v17 }
 0x10b   : > { %979 = vmatmul.mubr.f32.gmra.mrb[20].mxu0 %v583_v0  ;;  %1074 = vtanh.f32 %v541_v51  ;;  %v542_v58 = vmul.f32 0.7978846, %v526_v61  ;;  %v543_v63 = vmul.f32 0.7978846, %v527_v55  ;;  %v458_v10 = vmul.f32 0.5, %v1270_v27 }
 0x10c   : > { %v584_v62 = vmul.f32 %v568_v54, %v456_v52  ;;  %v528_v1 = vadd.f32 %v512_v56, %v1313_v22  ;;  %v585_v50 = vmul.f32 %v569_v49, %v457_v57  ;;  %v529_v14 = vadd.f32 %v513_v59, %v1309_v17 }
 0x10d   : > { %1076 = vtanh.f32 %v542_v58  ;;  %v1069_v2 = vpop.eup %1068  ;;  %v459_v8 = vmul.f32 0.5, %v1266_v24  ;;  %v460_v13 = vmul.f32 0.5, %v1285_v46  ;;  %v461_v19 = vmul.f32 0.5, %v1280_v40 }
 0x10e   : > { %981 = vmatprep.mubr.f32.mxu1 %v584_v62  ;;  %1078 = vtanh.f32 %v543_v63  ;;  %v544_v4 = vmul.f32 0.7978846, %v528_v1  ;;  %v1071_v5 = vpop.eup %1070  ;;  %v570_v6 = vadd.f32 1.0, %v1069_v2  ;;  %v545_v7 = vmul.f32 0.7978846, %v529_v14 }
 0x10f   : > { %982 = vmatmul.mubr.f32.vlgmr.msra.gmra.mrb[0].mxu1 %v585_v50  ;;  %v571_v9 = vadd.f32 1.0, %v1071_v5  ;;  %v462_v23 = vmul.f32 0.5, %v1300_v3  ;;  %v463_v46 = vmul.f32 0.5, %v1294_v60  ;;  %v464_v31 = vmul.f32 0.5, %v1313_v22 }
 0x110   : > { %1080 = vtanh.f32 %v544_v4  ;;  %v586_v53 = vmul.f32 %v570_v6, %v458_v10  ;;  %v465_v41 = vmul.f32 0.5, %v1309_v17 }
 0x111   : > { %1082 = vtanh.f32 %v545_v7  ;;  %v587_v12 = vmul.f32 %v571_v9, %v459_v8 }
 0x112   : > { %v1073_v11 = vpop.eup %1072  ;;  %984 = vmatprep.mubr.f32.mxu1 %v586_v53 }
 0x113   : > { %v572_v15 = vadd.f32 1.0, %v1073_v11  ;;  %985 = vmatmul.mubr.f32.gmra.mrb[2].mxu1 %v587_v12 }
 0x115   : > { %v1075_v16 = vpop.eup %1074  ;;  %v588_v18 = vmul.f32 %v572_v15, %v460_v13 }
 0x116   : > { %v573_v27 = vadd.f32 1.0, %v1075_v16 }
 0x117   : > { %v1077_v20 = vpop.eup %1076  ;;  %987 = vmatprep.mubr.f32.mxu1 %v588_v18 }
 0x118   : > { %v1079_v21 = vpop.eup %1078  ;;  %v589_v24 = vmul.f32 %v573_v27, %v461_v19  ;;  %v574_v25 = vadd.f32 1.0, %v1077_v20 }
 0x119   : > { %v575_v26 = vadd.f32 1.0, %v1079_v21 }
 0x11a   : > { %v1081_v28 = vpop.eup %1080  ;;  %988 = vmatmul.mubr.f32.gmra.mrb[4].mxu1 %v589_v24  ;;  %v590_v29 = vmul.f32 %v574_v25, %v462_v23 }
 0x11b   : > { %v1083_v30 = vpop.eup %1082  ;;  %v576_v32 = vadd.f32 1.0, %v1081_v28  ;;  %v591_v40 = vmul.f32 %v575_v26, %v463_v46 }
 0x11c   : > { %990 = vmatprep.mubr.f32.mxu1 %v590_v29  ;;  %v577_v33 = vadd.f32 1.0, %v1083_v30 }
 0x11d   : > { %v592_v34 = vmul.f32 %v576_v32, %v464_v31 }
 0x11e   : > { %991 = vmatmul.mubr.f32.gmra.mrb[6].mxu1 %v591_v40  ;;  %v593_v3 = vmul.f32 %v577_v33, %v465_v41 }
 0x11f   : > { %993 = vmatprep.mubr.f32.mxu1 %v592_v34 }
 0x122   : > { %994 = vmatmul.mubr.f32.gmra.mrb[8].mxu1 %v593_v3 }
 0x1d6   : > { %v974_v60 = vpop.f32.mrb[16].mxu0 }
 0x1d7   : > { %v689_v17 = vadd.f32 %v974_v60, %v862_v35  ;;  %v683_v22 = vpop.f32.mrb[17].mxu0 }
 0x1d8   : > { %v684_v36 = vadd.f32 %v862_v35, %v683_v22 }
 0x1d9   : > { %764 = vst.msk [vmem:[%s1350_s19 + $0x8] sm:$0xff] %vm762_vm2, %v689_v17 }
 0x1da   : > { %763 = vst.msk [vmem:[%s1350_s19] sm:$0xff] %vm762_vm2, %v684_v36  ;;  %v977_v37 = vpop.f32.mrb[18].mxu0 }
 0x1db   : > { %v699_v38 = vadd.f32 %v977_v37, %v862_v35  ;;  %v693_v39 = vpop.f32.mrb[19].mxu0 }
 0x1dc   : > { %v694_v42 = vadd.f32 %v862_v35, %v693_v39 }
 0x1dd   : > { %766 = vst.msk [vmem:[%s1350_s19 + $0x18] sm:$0xff] %vm762_vm2, %v699_v38 }
 0x1de   : > { %765 = vst.msk [vmem:[%s1350_s19 + $0x10] sm:$0xff] %vm762_vm2, %v694_v42  ;;  %v980_v43 = vpop.f32.mrb[20].mxu0 }
 0x1df   : > { %v709_v44 = vadd.f32 %v980_v43, %v862_v35  ;;  %v703_v45 = vpop.f32.mrb[21].mxu0 }
 0x1e0   : > { %v704_v47 = vadd.f32 %v862_v35, %v703_v45 }
 0x1e1   : > { %768 = vst.msk [vmem:[%s1350_s19 + $0x28] sm:$0xff] %vm762_vm2, %v709_v44 }
 0x1e2   : > { %767 = vst.msk [vmem:[%s1350_s19 + $0x20] sm:$0xff] %vm762_vm2, %v704_v47  ;;  %v983_v48 = vpop.f32.mrb[0].mxu1 }
 0x1e3   : > { %v719_v0 = vadd.f32 %v983_v48, %v862_v35  ;;  %v713_v49 = vpop.f32.mrb[1].mxu1 }
 0x1e4   : > { %v714_v51 = vadd.f32 %v862_v35, %v713_v49 }
 0x1e5   : > { %770 = vst.msk [vmem:[%s1350_s19 + $0x38] sm:$0xff] %vm762_vm2, %v719_v0 }
 0x1e6   : > { %769 = vst.msk [vmem:[%s1350_s19 + $0x30] sm:$0xff] %vm762_vm2, %v714_v51  ;;  %v986_v61 = vpop.f32.mrb[2].mxu1 }
 0x1e7   : > { %v729_v52 = vadd.f32 %v986_v61, %v862_v35  ;;  %v723_v54 = vpop.f32.mrb[3].mxu1 }
 0x1e8   : > { %v724_v55 = vadd.f32 %v862_v35, %v723_v54 }
 0x1e9   : > { %772 = vst.msk [vmem:[%s1350_s19 + $0x48] sm:$0xff] %vm762_vm2, %v729_v52 }
 0x1ea   : > { %771 = vst.msk [vmem:[%s1350_s19 + $0x40] sm:$0xff] %vm762_vm2, %v724_v55 }
 0x1ed   : > { %v989_v56 = vpop.f32.mrb[4].mxu1 }
 0x1ee   : > { %v739_v57 = vadd.f32 %v989_v56, %v862_v35  ;;  %v733_v58 = vpop.f32.mrb[5].mxu1 }
 0x1ef   : > { %v734_v59 = vadd.f32 %v862_v35, %v733_v58 }
 0x1f0   : > { %774 = vst.msk [vmem:[%s1350_s19 + $0x58] sm:$0xff] %vm762_vm2, %v739_v57 }
 0x1f1   : > { %773 = vst.msk [vmem:[%s1350_s19 + $0x50] sm:$0xff] %vm762_vm2, %v734_v59  ;;  %v992_v62 = vpop.f32.mrb[6].mxu1 }
 0x1f2   : > { %v749_v63 = vadd.f32 %v992_v62, %v862_v35  ;;  %v743_v1 = vpop.f32.mrb[7].mxu1 }
 0x1f3   : > { %v744_v50 = vadd.f32 %v862_v35, %v743_v1 }
 0x1f4   : > { %776 = vst.msk [vmem:[%s1350_s19 + $0x68] sm:$0xff] %vm762_vm2, %v749_v63 }
 0x1f5   : > { %775 = vst.msk [vmem:[%s1350_s19 + $0x60] sm:$0xff] %vm762_vm2, %v744_v50  ;;  %v995_v14 = vpop.f32.mrb[8].mxu1 }
 0x1f6   : > { %v759_v2 = vadd.f32 %v995_v14, %v862_v35  ;;  %v753_v4 = vpop.f32.mrb[9].mxu1 }
 0x1f7   : > { %v754_v5 = vadd.f32 %v862_v35, %v753_v4 }
 0x1f8   : > { %778 = vst.msk [vmem:[%s1350_s19 + $0x78] sm:$0xff] %vm762_vm2, %v759_v2 }
 0x1f9   : > { %777 = vst.msk [vmem:[%s1350_s19 + $0x70] sm:$0xff] %vm762_vm2, %v754_v5 }
 0x1fa PF: > { %s15_s18 = sadd.s32 1, %s1090_s18  }
 0x1fb   : > { %p12_p4 = scmp.ge.s32.totalorder %s15_s18, 4  }
 0x1fd   :  { %14 = sbr.rel (!%p12_p4) target bundleno = 1 (0x1), region = 70 }

// kernel: fwd.11
= control target key start
LH: loop header
LB: loop body
LE: loop exit
PB: predicated region body
PF: predicated region fallthrough
CT: control target
= control target key end

     0   :  { %s982_s20 = smov 0   ;;  %s1292_s0 = inlined_call_operand.vmem [shape: f32[256,64], index: 0, kind: input, shape index: {}]   ;;  %s1293_s1 = inlined_call_operand.vmem [shape: f32[1,64], index: 1, kind: input, shape index: {}]   ;;  %s1294_s2 = inlined_call_operand.vmem [shape: f32[1,64], index: 2, kind: input, shape index: {}]   ;;  %s1295_s3 = inlined_call_operand.vmem [shape: f32[64,1], index: 3, kind: input, shape index: {}]   ;;  %s1296_s4 = inlined_call_operand.<no memory space> [shape: f32[1,1], index: 4, kind: input, shape index: {}]   ;;  %s1297_s5 = inlined_call_operand.vmem [shape: f32[256,1], index: 5, kind: output, shape index: {}]  }
   0x1   :  { %v10_v0 = vstv %s1296_s4 }
   0x2   :  { %11 = vst [vmem:[#allocation2] sm:$0x1] %v10_v0 }
   0x3 LB: > { %s783_s21 = sadd.s32 4294967295, %s947_s20   ;;  %p787_p0 = scmp.ge.s32.totalorder %s947_s20, 1  ;;  %s947_s20 = sphi %s982_s20, %s17_s20  }
   0x4   : > { %p190_p1 = scmp.lt.s32.totalorder %s947_s20, 3 }
   0x6   : > { %p191_p2 = pnand %p787_p0, %p190_p1 }
   0x7   : > { %s788_s22 = sshll.u32 (!%p191_p2), %s783_s21, 4  ;;  %vm248_vm0 = vcmask (!%p191_p2), 523264   ;;  %vm710_vm1 = vcmask (!%p191_p2), 7168  }
   0x8   : > { %194 = sbr.rel (%p191_p2) target bundleno = 580 (0x244), region = 40  ;;  %p219_p3 = scmp.lt.s32.totalorder (!%p191_p2), %s788_s22, 31 }
   0xf   : > { %s1299_s22 = smov (!%p219_p3, %s788_s22), 31 }
  0x10   : > { %s789_s4 = sshll.u32 %s1299_s22, 3 }
  0x11   : > { %s998_s25 = scalar_lea.vmem %s1292_s0, %s789_s4 }
  0x12   : > { %v230_v1 = vld [vmem:[%s998_s25] sm:$0xff]  ;;  %v231_v2 = vld [vmem:[%s998_s25 + $0x8] sm:$0xff]  ;;  %v232_v9 = vld [vmem:[%s998_s25 + $0x10] sm:$0xff] }
  0x13   : > { %v238_v3 = vld [vmem:[%s998_s25 + $0x40] sm:$0xff]  ;;  %v249_v4 = vsel %vm248_vm0, %v230_v1, 0.0  ;;  %v252_v5 = vsel %vm248_vm0, %v231_v2, 0.0  ;;  %v239_v6 = vld [vmem:[%s998_s25 + $0x48] sm:$0xff]  ;;  %v240_v10 = vld [vmem:[%s998_s25 + $0x50] sm:$0xff]  ;;  %v255_v11 = vsel %vm248_vm0, %v232_v9, 0.0 }
  0x14   : > { %250 = vadd.xlane.f32.xlu0 %v249_v4  ;;  %253 = vadd.xlane.f32.xlu1 %v252_v5  ;;  %v273_v7 = vsel %vm248_vm0, %v238_v3, 0.0  ;;  %v276_v8 = vsel %vm248_vm0, %v239_v6, 0.0  ;;  %v279_v12 = vsel %vm248_vm0, %v240_v10, 0.0  ;;  %v1013_v13 = vld [vmem:[%s998_s25 + $0x18] sm:$0xff]  ;;  %v1023_v17 = vld [vmem:[%s998_s25 + $0x20] sm:$0xff]  ;;  %v1033_v21 = vld [vmem:[%s998_s25 + $0x28] sm:$0xff] }
  0x15   : > { %v1016_v14 = vld [vmem:[%s998_s25 + $0x58] sm:$0xff]  ;;  %v258_v15 = vsel %vm248_vm0, %v1013_v13, 0.0  ;;  %v1026_v18 = vld [vmem:[%s998_s25 + $0x60] sm:$0xff]  ;;  %v261_v19 = vsel %vm248_vm0, %v1023_v17, 0.0  ;;  %v1036_v22 = vld [vmem:[%s998_s25 + $0x68] sm:$0xff]  ;;  %v264_v23 = vsel %vm248_vm0, %v1033_v21, 0.0 }
  0x16   : > { %v282_v16 = vsel %vm248_vm0, %v1016_v14, 0.0  ;;  %v285_v20 = vsel %vm248_vm0, %v1026_v18, 0.0  ;;  %v288_v24 = vsel %vm248_vm0, %v1036_v22, 0.0  ;;  %v1043_v25 = vld [vmem:[%s998_s25 + $0x30] sm:$0xff]  ;;  %v1053_v29 = vld [vmem:[%s998_s25 + $0x38] sm:$0xff] }
  0x17   : > { %v1046_v26 = vld [vmem:[%s998_s25 + $0x70] sm:$0xff]  ;;  %v267_v27 = vsel %vm248_vm0, %v1043_v25, 0.0  ;;  %v1056_v30 = vld [vmem:[%s998_s25 + $0x78] sm:$0xff]  ;;  %v270_v31 = vsel %vm248_vm0, %v1053_v29, 0.0  ;;  %s1255_s25 = scalar_lea.vmem %s1297_s5, %s789_s4 }
  0x18   : > { %274 = vadd.xlane.f32.xlu0 %v273_v7  ;;  %277 = vadd.xlane.f32.xlu1 %v276_v8  ;;  %v291_v28 = vsel %vm248_vm0, %v1046_v26, 0.0  ;;  %v294_v32 = vsel %vm248_vm0, %v1056_v30, 0.0 }
  0x1c   : > { %256 = vadd.xlane.f32.xlu0 %v255_v11  ;;  %280 = vadd.xlane.f32.xlu1 %v279_v12 }
  0x20   : > { %259 = vadd.xlane.f32.xlu0 %v258_v15  ;;  %283 = vadd.xlane.f32.xlu1 %v282_v16 }
  0x24   : > { %262 = vadd.xlane.f32.xlu0 %v261_v19  ;;  %286 = vadd.xlane.f32.xlu1 %v285_v20 }
  0x28   : > { %265 = vadd.xlane.f32.xlu0 %v264_v23  ;;  %289 = vadd.xlane.f32.xlu1 %v288_v24 }
  0x2c   : > { %268 = vadd.xlane.f32.xlu0 %v267_v27  ;;  %292 = vadd.xlane.f32.xlu1 %v291_v28 }
  0x30   : > { %271 = vadd.xlane.f32.xlu0 %v270_v31  ;;  %295 = vadd.xlane.f32.xlu1 %v294_v32 }
  0xa1   : > { %v251_v33 = vpop.xlane.xlu0 %250  ;;  %v254_v34 = vpop.xlane.xlu1 %253 }
  0xa2   : > { %v298_v35 = vmul.f32 0.015625, %v251_v33  ;;  %v299_v36 = vmul.f32 0.015625, %v254_v34 }
  0xa4   : > { %v1062_v37 = vsub.f32 %v230_v1, %v298_v35  ;;  %v1064_v38 = vsub.f32 %v231_v2, %v299_v36 }
  0xa5   : > { %v275_v39 = vpop.xlane.xlu0 %274  ;;  %v278_v40 = vpop.xlane.xlu1 %277 }
  0xa6   : > { %v306_v41 = vmul.f32 0.015625, %v275_v39  ;;  %v307_v42 = vmul.f32 0.015625, %v278_v40  ;;  %v330_v43 = vmul.f32 %v1062_v37, %v1062_v37  ;;  %v331_v44 = vmul.f32 %v1064_v38, %v1064_v38 }
  0xa8   : > { %v1070_v45 = vsub.f32 %v238_v3, %v306_v41  ;;  %v1072_v46 = vsub.f32 %v239_v6, %v307_v42  ;;  %v346_v47 = vsel %vm248_vm0, %v330_v43, 0.0  ;;  %v349_v50 = vsel %vm248_vm0, %v331_v44, 0.0 }
  0xa9   : > { %347 = vadd.xlane.f32.xlu0 %v346_v47  ;;  %v257_v48 = vpop.xlane.xlu0 %256  ;;  %v281_v49 = vpop.xlane.xlu1 %280 }
  0xaa   : > { %v300_v51 = vmul.f32 0.015625, %v257_v48  ;;  %v308_v52 = vmul.f32 0.015625, %v281_v49  ;;  %v338_v53 = vmul.f32 %v1070_v45, %v1070_v45  ;;  %v339_v54 = vmul.f32 %v1072_v46, %v1072_v46  ;;  %v503_v48 = vld [vmem:[%s1295_s3 + $0x8] sm:$0xff] }
  0xac   : > { %v1080_v55 = vsub.f32 %v232_v9, %v300_v51  ;;  %v1082_v56 = vsub.f32 %v240_v10, %v308_v52  ;;  %v370_v57 = vsel %vm248_vm0, %v338_v53, 0.0  ;;  %v373_v60 = vsel %vm248_vm0, %v339_v54, 0.0 }
  0xad   : > { %350 = vadd.xlane.f32.xlu0 %v349_v50  ;;  %371 = vadd.xlane.f32.xlu1 %v370_v57  ;;  %v260_v58 = vpop.xlane.xlu0 %259  ;;  %v284_v59 = vpop.xlane.xlu1 %283 }
  0xae   : > { %v301_v61 = vmul.f32 0.015625, %v260_v58  ;;  %v309_v62 = vmul.f32 0.015625, %v284_v59  ;;  %v332_v63 = vmul.f32 %v1080_v55, %v1080_v55  ;;  %v340_v0 = vmul.f32 %v1082_v56, %v1082_v56 }
  0xb0   : > { %v1091_v1 = vsub.f32 %v1013_v13, %v301_v61  ;;  %v1094_v2 = vsub.f32 %v1016_v14, %v309_v62  ;;  %v352_v3 = vsel %vm248_vm0, %v332_v63, 0.0  ;;  %v376_v6 = vsel %vm248_vm0, %v340_v0, 0.0  ;;  %v506_v61 = vld [vmem:[%s1295_s3 + $0x20] sm:$0xff]  ;;  %v507_v62 = vld [vmem:[%s1295_s3 + $0x28] sm:$0xff]  ;;  %v508_v0 = vld [vmem:[%s1295_s3 + $0x30] sm:$0xff] }
  0xb1   : > { %374 = vadd.xlane.f32.xlu1 %v373_v60  ;;  %353 = vadd.xlane.f32.xlu0 %v352_v3  ;;  %v263_v4 = vpop.xlane.xlu0 %262  ;;  %v287_v5 = vpop.xlane.xlu1 %286  ;;  %v885_v63 = vpack.c.bf16 %v507_v62, %v506_v61  ;;  %v509_v3 = vld [vmem:[%s1295_s3 + $0x38] sm:$0xff] }
  0xb2   : > { %v302_v7 = vmul.f32 0.015625, %v263_v4  ;;  %v310_v8 = vmul.f32 0.015625, %v287_v5  ;;  %v333_v9 = vmul.f32 %v1091_v1, %v1091_v1  ;;  %v341_v10 = vmul.f32 %v1094_v2, %v1094_v2 }
  0xb3   : > { %v889_v4 = vpack.c.bf16 %v509_v3, %v508_v0 }
  0xb4   : > { %v1103_v11 = vsub.f32 %v1023_v17, %v302_v7  ;;  %v1106_v12 = vsub.f32 %v1026_v18, %v310_v8  ;;  %v355_v13 = vsel %vm248_vm0, %v333_v9, 0.0  ;;  %v379_v16 = vsel %vm248_vm0, %v341_v10, 0.0 }
  0xb5   : > { %377 = vadd.xlane.f32.xlu1 %v376_v6  ;;  %356 = vadd.xlane.f32.xlu0 %v355_v13  ;;  %v266_v14 = vpop.xlane.xlu0 %265  ;;  %v290_v15 = vpop.xlane.xlu1 %289 }
  0xb6   : > { %v303_v19 = vmul.f32 0.015625, %v266_v14  ;;  %v311_v20 = vmul.f32 0.015625, %v290_v15  ;;  %v334_v23 = vmul.f32 %v1103_v11, %v1103_v11  ;;  %v342_v17 = vmul.f32 %v1106_v12, %v1106_v12 }
  0xb8   : > { %v1115_v24 = vsub.f32 %v1033_v21, %v303_v19  ;;  %v1118_v18 = vsub.f32 %v1036_v22, %v311_v20  ;;  %v358_v27 = vsel %vm248_vm0, %v334_v23, 0.0  ;;  %v382_v32 = vsel %vm248_vm0, %v342_v17, 0.0 }
  0xb9   : > { %380 = vadd.xlane.f32.xlu1 %v379_v16  ;;  %359 = vadd.xlane.f32.xlu0 %v358_v27  ;;  %v269_v28 = vpop.xlane.xlu0 %268  ;;  %v293_v31 = vpop.xlane.xlu1 %292 }
  0xba   : > { %v304_v33 = vmul.f32 0.015625, %v269_v28  ;;  %v312_v34 = vmul.f32 0.015625, %v293_v31  ;;  %v335_v35 = vmul.f32 %v1115_v24, %v1115_v24  ;;  %v343_v21 = vmul.f32 %v1118_v18, %v1118_v18 }
  0xbc   : > { %v1127_v36 = vsub.f32 %v1043_v25, %v304_v33  ;;  %v1130_v22 = vsub.f32 %v1046_v26, %v312_v34  ;;  %v361_v39 = vsel %vm248_vm0, %v335_v35, 0.0  ;;  %v385_v42 = vsel %vm248_vm0, %v343_v21, 0.0  ;;  %v502_v26 = vld [vmem:[%s1295_s3] sm:$0xff] }
  0xbd   : > { %383 = vadd.xlane.f32.xlu1 %v382_v32  ;;  %362 = vadd.xlane.f32.xlu0 %v361_v39  ;;  %v272_v40 = vpop.xlane.xlu0 %271  ;;  %v296_v41 = vpop.xlane.xlu1 %295  ;;  %v877_v49 = vpack.c.bf16 %v503_v48, %v502_v26  ;;  %v1179_v39 = vld [vmem:[%s1293_s1] ss:$0 sm:$0xff] }
  0xbe   : > { %v305_v43 = vmul.f32 0.015625, %v272_v40  ;;  %v313_v44 = vmul.f32 0.015625, %v296_v41  ;;  %v336_v47 = vmul.f32 %v1127_v36, %v1127_v36  ;;  %v344_v25 = vmul.f32 %v1130_v22, %v1130_v22 }
  0xbf   : > { %878 = vmatprep.subr.bf16.mxu0 %v877_v49  ;;  %893 = vmatprep.subr.bf16.mxu1 %v877_v49 }
  0xc0   : > { %v1145_v50 = vsub.f32 %v1053_v29, %v305_v43  ;;  %v1148_v51 = vsub.f32 %v1056_v30, %v313_v44  ;;  %v364_v52 = vsel %vm248_vm0, %v336_v47, 0.0  ;;  %v388_v53 = vsel %vm248_vm0, %v344_v25, 0.0  ;;  %v504_v29 = vld [vmem:[%s1295_s3 + $0x10] sm:$0xff]  ;;  %v505_v30 = vld [vmem:[%s1295_s3 + $0x18] sm:$0xff]  ;;  %880 = vmatpush3.bf16.msra.mxu0 %v877_v49  ;;  %897 = vmatpush3.bf16.msra.mxu1 %v877_v49  ;;  %v1185_v47 = vld [vmem:[%s1294_s2] ss:$0 sm:$0xff] }
  0xc1   : > { %386 = vadd.xlane.f32.xlu1 %v385_v42  ;;  %365 = vadd.xlane.f32.xlu0 %v364_v52  ;;  %v881_v58 = vpack.c.bf16 %v505_v30, %v504_v29 }
  0xc2   : > { %v337_v54 = vmul.f32 %v1145_v50, %v1145_v50  ;;  %v345_v57 = vmul.f32 %v1148_v51, %v1148_v51 }
  0xc3   : > { %882 = vmatprep.subr.bf16.mxu0 %v881_v58  ;;  %894 = vmatprep.subr.bf16.mxu1 %v881_v58 }
  0xc4   : > { %v367_v59 = vsel %vm248_vm0, %v337_v54, 0.0  ;;  %v391_v60 = vsel %vm248_vm0, %v345_v57, 0.0  ;;  %884 = vmatpush3.bf16.msra.mxu0 %v881_v58  ;;  %898 = vmatpush3.bf16.msra.mxu1 %v881_v58 }
  0xc5   : > { %389 = vadd.xlane.f32.xlu1 %v388_v53  ;;  %368 = vadd.xlane.f32.xlu0 %v367_v59 }
  0xc6   : > { %886 = vmatprep.subr.bf16.mxu0 %v885_v63  ;;  %895 = vmatprep.subr.bf16.mxu1 %v885_v63 }
  0xc8   : > { %888 = vmatpush3.bf16.msra.mxu0 %v885_v63  ;;  %899 = vmatpush3.bf16.msra.mxu1 %v885_v63 }
  0xc9   : > { %392 = vadd.xlane.f32.xlu1 %v391_v60  ;;  %890 = vmatprep.subr.bf16.mxu0 %v889_v4 }
  0xca   : > { %896 = vmatprep.subr.bf16.mxu1 %v889_v4 }
  0xcc   : > { %892 = vmatpush3.bf16.msra.mxu0 %v889_v4  ;;  %900 = vmatpush3.bf16.msra.mxu1 %v889_v4 }
 0x136   : > { %v348_v5 = vpop.xlane.xlu0 %347 }
 0x137   : > { %v394_v6 = vmul.f32 0.015625, %v348_v5 }
 0x139   : > { %v410_v7 = vadd.f32 1e-05, %v394_v6 }
 0x13a   : > { %v372_v8 = vpop.xlane.xlu1 %371  ;;  %v351_v9 = vpop.xlane.xlu0 %350 }
 0x13b   : > { %909 = vrsqrt.f32 %v410_v7  ;;  %v402_v10 = vmul.f32 0.015625, %v372_v8  ;;  %v395_v13 = vmul.f32 0.015625, %v351_v9 }
 0x13d   : > { %v418_v14 = vadd.f32 1e-05, %v402_v10  ;;  %v411_v15 = vadd.f32 1e-05, %v395_v13 }
 0x13e   : > { %v375_v16 = vpop.xlane.xlu1 %374  ;;  %v354_v19 = vpop.xlane.xlu0 %353 }
 0x13f   : > { %911 = vrsqrt.f32 %v418_v14  ;;  %v403_v20 = vmul.f32 0.015625, %v375_v16  ;;  %v396_v23 = vmul.f32 0.015625, %v354_v19 }
 0x140   : > { %913 = vrsqrt.f32 %v411_v15 }
 0x141   : > { %v419_v17 = vadd.f32 1e-05, %v403_v20  ;;  %v412_v27 = vadd.f32 1e-05, %v396_v23 }
 0x142   : > { %v378_v28 = vpop.xlane.xlu1 %377  ;;  %v357_v31 = vpop.xlane.xlu0 %356 }
 0x143   : > { %915 = vrsqrt.f32 %v419_v17  ;;  %v404_v32 = vmul.f32 0.015625, %v378_v28  ;;  %v397_v33 = vmul.f32 0.015625, %v357_v31 }
 0x144   : > { %917 = vrsqrt.f32 %v412_v27 }
 0x145   : > { %v910_v34 = vpop.eup %909  ;;  %v420_v35 = vadd.f32 1e-05, %v404_v32  ;;  %v413_v21 = vadd.f32 1e-05, %v397_v33 }
 0x146   : > { %v381_v40 = vpop.xlane.xlu1 %380  ;;  %v360_v41 = vpop.xlane.xlu0 %359  ;;  %v442_v42 = vmul.f32 %v910_v34, %v1062_v37 }
 0x147   : > { %919 = vrsqrt.f32 %v420_v35  ;;  %v405_v43 = vmul.f32 0.015625, %v381_v40  ;;  %v398_v44 = vmul.f32 0.015625, %v360_v41 }
 0x148   : > { %921 = vrsqrt.f32 %v413_v21  ;;  %v464_v25 = vmul.f32 %v1179_v39, %v442_v42 }
 0x149   : > { %v912_v26 = vpop.eup %911  ;;  %v421_v48 = vadd.f32 1e-05, %v405_v43  ;;  %v414_v49 = vadd.f32 1e-05, %v398_v44 }
 0x14a   : > { %v914_v52 = vpop.eup %913  ;;  %v384_v53 = vpop.xlane.xlu1 %383  ;;  %v486_v57 = vadd.f32 %v1185_v47, %v464_v25  ;;  %v450_v37 = vmul.f32 %v912_v26, %v1070_v45 }
 0x14b   : > { %v363_v54 = vpop.xlane.xlu0 %362  ;;  %923 = vrsqrt.f32 %v421_v48  ;;  %v406_v29 = vmul.f32 0.015625, %v384_v53  ;;  %v443_v58 = vmul.f32 %v914_v52, %v1064_v38 }
 0x14c   : > { %v399_v30 = vmul.f32 0.015625, %v363_v54  ;;  %925 = vrsqrt.f32 %v414_v49  ;;  %853 = vmatprep.mubr.msk.f32.mxu0 %vm248_vm0, %v486_v57  ;;  %v472_v59 = vmul.f32 %v1179_v39, %v450_v37 }
 0x14d   : > { %v916_v60 = vpop.eup %915  ;;  %v422_v61 = vadd.f32 1e-05, %v406_v29  ;;  %v465_v63 = vmul.f32 %v1179_v39, %v443_v58 }
 0x14e   : > { %v415_v62 = vadd.f32 1e-05, %v399_v30  ;;  %v918_v0 = vpop.eup %917  ;;  %v387_v3 = vpop.xlane.xlu1 %386  ;;  %v494_v45 = vadd.f32 %v1185_v47, %v472_v59  ;;  %v451_v5 = vmul.f32 %v916_v60, %v1072_v46 }
 0x14f   : > { %v366_v4 = vpop.xlane.xlu0 %365  ;;  %927 = vrsqrt.f32 %v422_v61  ;;  %v407_v6 = vmul.f32 0.015625, %v387_v3  ;;  %v487_v7 = vadd.f32 %v1185_v47, %v465_v63  ;;  %v444_v8 = vmul.f32 %v918_v0, %v1080_v55 }
 0x150   : > { %v400_v38 = vmul.f32 0.015625, %v366_v4  ;;  %929 = vrsqrt.f32 %v415_v62  ;;  %865 = vmatprep.mubr.msk.f32.mxu1 %vm248_vm0, %v494_v45  ;;  %v473_v9 = vmul.f32 %v1179_v39, %v451_v5 }
 0x151   : > { %v920_v10 = vpop.eup %919  ;;  %v423_v13 = vadd.f32 1e-05, %v407_v6  ;;  %854 = vmatmul.mubr.msk.f32.vlgmr.msra.gmra.mrb[0].mxu0 %vm248_vm0, %v487_v7  ;;  %v466_v19 = vmul.f32 %v1179_v39, %v444_v8  ;;  %v794_v7 = vld [vmem:[#allocation2] ss:$0 sm:$0xff] }
 0x152   : > { %v416_v14 = vadd.f32 1e-05, %v400_v38  ;;  %v922_v15 = vpop.eup %921  ;;  %v390_v16 = vpop.xlane.xlu1 %389  ;;  %v495_v20 = vadd.f32 %v1185_v47, %v473_v9  ;;  %v452_v23 = vmul.f32 %v920_v10, %v1082_v56 }
 0x153   : > { %v369_v46 = vpop.xlane.xlu0 %368  ;;  %931 = vrsqrt.f32 %v423_v13  ;;  %v408_v17 = vmul.f32 0.015625, %v390_v16  ;;  %v445_v55 = vmul.f32 %v922_v15, %v1091_v1  ;;  %v488_v28 = vadd.f32 %v1185_v47, %v466_v19 }
 0x154   : > { %v401_v27 = vmul.f32 0.015625, %v369_v46  ;;  %933 = vrsqrt.f32 %v416_v14  ;;  %866 = vmatmul.mubr.msk.f32.vlgmr.msra.gmra.mrb[0].mxu1 %vm248_vm0, %v495_v20  ;;  %v474_v31 = vmul.f32 %v1179_v39, %v452_v23 }
 0x155   : > { %v924_v32 = vpop.eup %923  ;;  %v424_v33 = vadd.f32 1e-05, %v408_v17  ;;  %v467_v35 = vmul.f32 %v1179_v39, %v445_v55  ;;  %856 = vmatprep.mubr.msk.f32.mxu0 %vm248_vm0, %v488_v28 }
 0x156   : > { %v417_v34 = vadd.f32 1e-05, %v401_v27  ;;  %v926_v21 = vpop.eup %925  ;;  %v393_v56 = vpop.xlane.xlu1 %392  ;;  %v496_v40 = vadd.f32 %v1185_v47, %v474_v31  ;;  %v453_v1 = vmul.f32 %v924_v32, %v1094_v2 }
 0x157   : > { %935 = vrsqrt.f32 %v424_v33  ;;  %v409_v41 = vmul.f32 0.015625, %v393_v56  ;;  %v489_v42 = vadd.f32 %v1185_v47, %v467_v35  ;;  %v446_v43 = vmul.f32 %v926_v21, %v1103_v11 }
 0x158   : > { %937 = vrsqrt.f32 %v417_v34  ;;  %868 = vmatprep.mubr.msk.f32.mxu1 %vm248_vm0, %v496_v40  ;;  %v475_v44 = vmul.f32 %v1179_v39, %v453_v1 }
 0x159   : > { %v928_v25 = vpop.eup %927  ;;  %v425_v26 = vadd.f32 1e-05, %v409_v41  ;;  %857 = vmatmul.mubr.msk.f32.gmra.mrb[2].mxu0 %vm248_vm0, %v489_v42  ;;  %v468_v48 = vmul.f32 %v1179_v39, %v446_v43 }
 0x15a   : > { %v930_v49 = vpop.eup %929  ;;  %v497_v2 = vadd.f32 %v1185_v47, %v475_v44  ;;  %v454_v52 = vmul.f32 %v928_v25, %v1106_v12 }
 0x15b   : > { %939 = vrsqrt.f32 %v425_v26  ;;  %v490_v53 = vadd.f32 %v1185_v47, %v468_v48  ;;  %v447_v11 = vmul.f32 %v930_v49, %v1115_v24 }
 0x15c   : > { %869 = vmatmul.mubr.msk.f32.gmra.mrb[2].mxu1 %vm248_vm0, %v497_v2  ;;  %v476_v54 = vmul.f32 %v1179_v39, %v454_v52 }
 0x15d   : > { %v932_v57 = vpop.eup %931  ;;  %859 = vmatprep.mubr.msk.f32.mxu0 %vm248_vm0, %v490_v53  ;;  %v469_v37 = vmul.f32 %v1179_v39, %v447_v11 }
 0x15e   : > { %v934_v29 = vpop.eup %933  ;;  %v498_v30 = vadd.f32 %v1185_v47, %v476_v54  ;;  %v455_v58 = vmul.f32 %v932_v57, %v1118_v18 }
 0x15f   : > { %v491_v12 = vadd.f32 %v1185_v47, %v469_v37  ;;  %v448_v59 = vmul.f32 %v934_v29, %v1127_v36 }
 0x160   : > { %871 = vmatprep.mubr.msk.f32.mxu1 %vm248_vm0, %v498_v30  ;;  %v477_v24 = vmul.f32 %v1179_v39, %v455_v58 }
 0x161   : > { %v936_v60 = vpop.eup %935  ;;  %860 = vmatmul.mubr.msk.f32.gmra.mrb[4].mxu0 %vm248_vm0, %v491_v12  ;;  %v470_v61 = vmul.f32 %v1179_v39, %v448_v59 }
 0x162   : > { %v938_v62 = vpop.eup %937  ;;  %v499_v63 = vadd.f32 %v1185_v47, %v477_v24  ;;  %v456_v0 = vmul.f32 %v936_v60, %v1130_v22 }
 0x163   : > { %v492_v18 = vadd.f32 %v1185_v47, %v470_v61  ;;  %v449_v3 = vmul.f32 %v938_v62, %v1145_v50 }
 0x164   : > { %872 = vmatmul.mubr.msk.f32.gmra.mrb[4].mxu1 %vm248_vm0, %v499_v63  ;;  %v478_v36 = vmul.f32 %v1179_v39, %v456_v0 }
 0x165   : > { %v940_v4 = vpop.eup %939  ;;  %862 = vmatprep.mubr.msk.f32.mxu0 %vm248_vm0, %v492_v18  ;;  %v471_v45 = vmul.f32 %v1179_v39, %v449_v3 }
 0x166   : > { %v500_v5 = vadd.f32 %v1185_v47, %v478_v36  ;;  %v457_v6 = vmul.f32 %v940_v4, %v1148_v51 }
 0x167   : > { %v493_v22 = vadd.f32 %v1185_v47, %v471_v45 }
 0x168   : > { %874 = vmatprep.mubr.msk.f32.mxu1 %vm248_vm0, %v500_v5  ;;  %v479_v38 = vmul.f32 %v1179_v39, %v457_v6 }
 0x169   : > { %863 = vmatmul.mubr.msk.f32.gmra.mrb[6].mxu0 %vm248_vm0, %v493_v22 }
 0x16a   : > { %v501_v50 = vadd.f32 %v1185_v47, %v479_v38 }
 0x16c   : > { %875 = vmatmul.mubr.msk.f32.gmra.mrb[6].mxu1 %vm248_vm0, %v501_v50 }
 0x224   : > { %v855_v51 = vpop.f32.mrb[0].mxu0 }
 0x225   : > { %v637_v39 = vadd.f32 %v855_v51, %v794_v7  ;;  %v631_v8 = vpop.f32.mrb[1].mxu0 }
 0x226   : > { %v632_v47 = vadd.f32 %v794_v7, %v631_v8 }
 0x227   : > { %712 = vst.msk [vmem:[%s1255_s25 + $0x8] sm:$0xff] %vm710_vm1, %v637_v39  ;;  %v867_v9 = vpop.f32.mrb[0].mxu1 }
 0x228   : > { %711 = vst.msk [vmem:[%s1255_s25] sm:$0xff] %vm710_vm1, %v632_v47  ;;  %v677_v10 = vadd.f32 %v867_v9, %v794_v7  ;;  %v671_v13 = vpop.f32.mrb[1].mxu1 }
 0x229   : > { %v672_v14 = vadd.f32 %v794_v7, %v671_v13 }
 0x22a   : > { %720 = vst.msk [vmem:[%s1255_s25 + $0x48] sm:$0xff] %vm710_vm1, %v677_v10 }
 0x22b   : > { %719 = vst.msk [vmem:[%s1255_s25 + $0x40] sm:$0xff] %vm710_vm1, %v672_v14 }
 0x22c   : > { %v858_v15 = vpop.f32.mrb[2].mxu0 }
 0x22d   : > { %v647_v16 = vadd.f32 %v858_v15, %v794_v7  ;;  %v641_v46 = vpop.f32.mrb[3].mxu0 }
 0x22e   : > { %v642_v19 = vadd.f32 %v794_v7, %v641_v46 }
 0x22f   : > { %714 = vst.msk [vmem:[%s1255_s25 + $0x18] sm:$0xff] %vm710_vm1, %v647_v16  ;;  %v870_v20 = vpop.f32.mrb[2].mxu1 }
 0x230   : > { %713 = vst.msk [vmem:[%s1255_s25 + $0x10] sm:$0xff] %vm710_vm1, %v642_v19  ;;  %v687_v23 = vadd.f32 %v870_v20, %v794_v7  ;;  %v681_v17 = vpop.f32.mrb[3].mxu1 }
 0x231   : > { %v682_v27 = vadd.f32 %v794_v7, %v681_v17 }
 0x232   : > { %722 = vst.msk [vmem:[%s1255_s25 + $0x58] sm:$0xff] %vm710_vm1, %v687_v23 }
 0x233   : > { %721 = vst.msk [vmem:[%s1255_s25 + $0x50] sm:$0xff] %vm710_vm1, %v682_v27 }
 0x234   : > { %v861_v55 = vpop.f32.mrb[4].mxu0 }
 0x235   : > { %v657_v28 = vadd.f32 %v861_v55, %v794_v7  ;;  %v651_v31 = vpop.f32.mrb[5].mxu0 }
 0x236   : > { %v652_v32 = vadd.f32 %v794_v7, %v651_v31 }
 0x237   : > { %716 = vst.msk [vmem:[%s1255_s25 + $0x28] sm:$0xff] %vm710_vm1, %v657_v28  ;;  %v873_v33 = vpop.f32.mrb[4].mxu1 }
 0x238   : > { %715 = vst.msk [vmem:[%s1255_s25 + $0x20] sm:$0xff] %vm710_vm1, %v652_v32  ;;  %v697_v34 = vadd.f32 %v873_v33, %v794_v7  ;;  %v691_v35 = vpop.f32.mrb[5].mxu1 }
 0x239   : > { %v692_v21 = vadd.f32 %v794_v7, %v691_v35 }
 0x23a   : > { %724 = vst.msk [vmem:[%s1255_s25 + $0x68] sm:$0xff] %vm710_vm1, %v697_v34 }
 0x23b   : > { %723 = vst.msk [vmem:[%s1255_s25 + $0x60] sm:$0xff] %vm710_vm1, %v692_v21 }
 0x23c   : > { %v864_v56 = vpop.f32.mrb[6].mxu0 }
 0x23d   : > { %v667_v40 = vadd.f32 %v864_v56, %v794_v7  ;;  %v661_v1 = vpop.f32.mrb[7].mxu0 }
 0x23e   : > { %v662_v41 = vadd.f32 %v794_v7, %v661_v1 }
 0x23f   : > { %718 = vst.msk [vmem:[%s1255_s25 + $0x38] sm:$0xff] %vm710_vm1, %v667_v40  ;;  %v876_v42 = vpop.f32.mrb[6].mxu1 }
 0x240   : > { %717 = vst.msk [vmem:[%s1255_s25 + $0x30] sm:$0xff] %vm710_vm1, %v662_v41  ;;  %v707_v43 = vadd.f32 %v876_v42, %v794_v7  ;;  %v701_v44 = vpop.f32.mrb[7].mxu1 }
 0x241   : > { %v702_v25 = vadd.f32 %v794_v7, %v701_v44 }
 0x242   : > { %726 = vst.msk [vmem:[%s1255_s25 + $0x78] sm:$0xff] %vm710_vm1, %v707_v43 }
 0x243   : > { %725 = vst.msk [vmem:[%s1255_s25 + $0x70] sm:$0xff] %vm710_vm1, %v702_v25 }
 0x244 PF: > { %s17_s20 = sadd.s32 1, %s947_s20  }
 0x245   : > { %p14_p4 = scmp.ge.s32.totalorder %s17_s20, 4  }
 0x247   :  { %16 = sbr.rel (!%p14_p4) target bundleno = 3 (0x3), region = 70 }

// kernel: fwd.8
= control target key start
LH: loop header
LB: loop body
LE: loop exit
PB: predicated region body
PF: predicated region fallthrough
CT: control target
= control target key end

     0   :  { %s2602_s17 = smov 0   ;;  %s3392_s0 = inlined_call_operand.vmem [shape: s32[256,1], index: 0, kind: input, shape index: {}]   ;;  %s3393_s1 = inlined_call_operand.vmem [shape: f32[256,64], index: 1, kind: input, shape index: {}]   ;;  %s3394_s2 = inlined_call_operand.vmem [shape: f32[128,64], index: 2, kind: input, shape index: {}]   ;;  %s3395_s3 = inlined_call_operand.vmem [shape: f32[1,64], index: 3, kind: input, shape index: {}]   ;;  %s3396_s4 = inlined_call_operand.vmem [shape: f32[256,64], index: 4, kind: input, shape index: {}]   ;;  %s3397_s5 = inlined_call_operand.vmem [shape: f32[1,64], index: 5, kind: input, shape index: {}]   ;;  %s3398_s6 = inlined_call_operand.vmem [shape: f32[1,64], index: 6, kind: input, shape index: {}]   ;;  %s3399_s7 = inlined_call_operand.vmem [shape: f32[64,64], index: 7, kind: input, shape index: {}]   ;;  %s3400_s8 = inlined_call_operand.vmem [shape: f32[1,64], index: 8, kind: input, shape index: {}]   ;;  %s3401_s9 = inlined_call_operand.vmem [shape: f32[64,64], index: 9, kind: input, shape index: {}]   ;;  %s3402_s10 = inlined_call_operand.vmem [shape: f32[1,64], index: 10, kind: input, shape index: {}]   ;;  %s3403_s11 = inlined_call_operand.vmem [shape: f32[256,64], index: 11, kind: output, shape index: {}]  }
   0x1 LB: > { %s1962_s18 = sadd.s32 4294967295, %s2537_s17   ;;  %p1966_p0 = scmp.ge.s32.totalorder %s2537_s17, 1  ;;  %s2537_s17 = sphi %s2602_s17, %s21_s17  }
   0x2   : > { %p360_p1 = scmp.lt.s32.totalorder %s2537_s17, 3 }
   0x4   : > { %p361_p2 = pnand %p1966_p0, %p360_p1 }
   0x5   : > { %s1967_s19 = sshll.u32 (!%p361_p2), %s1962_s18, 4  ;;  %v2539_v0 = vmov (!%p361_p2), 0   ;;  %v2540_v6 = vmov (!%p361_p2), 0.0   ;;  %s2541_s25 = smov (!%p361_p2), 64  }
   0x6   : > { %364 = sbr.rel (%p361_p2) target bundleno = 1300 (0x514), region = 64  ;;  %2356 = vset.pattern.permute.xlu1 (!%p361_p2), %v2539_v0  ;;  %2345 = vset.pattern.permute.xlu0 (!%p361_p2), %v2539_v0  ;;  %p411_p3 = scmp.lt.s32.totalorder (!%p361_p2), %s1967_s19, 31 }
   0xd   : > { %s3405_s19 = smov (!%p411_p3, %s1967_s19), 31 }
   0xe   : > { %s2610_s20 = sshll.u32 %s3405_s19, 3 }
   0xf   : > { %s2616_s23 = scalar_lea.vmem %s3392_s0, %s2610_s20  ;;  %s2766_s24 = scalar_lea.vmem %s3393_s1, %s2610_s20 }
  0x10   : > { %v2619_v1 = vld [vmem:[%s2616_s23 + $0x20] sm:$0xff]  ;;  %v2622_v2 = vld [vmem:[%s2616_s23 + $0x28] sm:$0xff]  ;;  %v2633_v5 = vld [vmem:[%s2616_s23 + $0x30] sm:$0xff]  ;;  %s2876_s28 = scalar_lea.vmem %s3396_s4, %s2610_s20  ;;  %s3339_s22 = scalar_lea.vmem %s3403_s11, %s2610_s20 }
  0x11   : > { %v2625_v3 = vld [vmem:[%s2616_s23] sm:$0xff]  ;;  %vm614_vm0 = vcmp.eq.s32.totalorder %v2619_v1, 1  ;;  %vm615_vm1 = vcmp.eq.s32.totalorder %v2622_v2, 1  ;;  %v2630_v4 = vld [vmem:[%s2616_s23 + $0x8] sm:$0xff]  ;;  %v2639_v9 = vld [vmem:[%s2616_s23 + $0x38] sm:$0xff]  ;;  %vm616_vm4 = vcmp.eq.s32.totalorder %v2633_v5, 1 }
  0x12   : > { %v1995_v7 = vsel %vm614_vm0, 1.0, %v2540_v6  ;;  %v1996_v8 = vsel %vm615_vm1, 1.0, %v2540_v6  ;;  %vm610_vm2 = vcmp.eq.s32.totalorder %v2625_v3, 1  ;;  %v452_v10 = vld [vmem:[%s2616_s23 + $0x10] sm:$0xff]  ;;  %vm611_vm3 = vcmp.eq.s32.totalorder %v2630_v4, 1  ;;  %v453_v13 = vld [vmem:[%s2616_s23 + $0x18] sm:$0xff] }
  0x13   : > { %v2357_v11 = vpack.i.bf16 %v1996_v8, %v1995_v7  ;;  %v1991_v12 = vsel %vm610_vm2, 1.0, %v2540_v6  ;;  %v2646_v14 = vld [vmem:[%s2616_s23 + $0x50] sm:$0xff]  ;;  %v1992_v15 = vsel %vm611_vm3, 1.0, %v2540_v6  ;;  %vm617_vm5 = vcmp.eq.s32.totalorder %v2639_v9, 1  ;;  %v2652_v16 = vld [vmem:[%s2616_s23 + $0x58] sm:$0xff]  ;;  %v2655_v17 = vld [vmem:[%s2616_s23 + $0x40] sm:$0xff] }
  0x14   : > { %vm612_vm6 = vcmp.eq.s32.totalorder %v452_v10, 1  ;;  %v2346_v18 = vpack.i.bf16 %v1992_v15, %v1991_v12  ;;  %v1997_v19 = vsel %vm616_vm4, 1.0, %v2540_v6  ;;  %v1998_v20 = vsel %vm617_vm5, 1.0, %v2540_v6  ;;  %v2660_v21 = vld [vmem:[%s2616_s23 + $0x48] sm:$0xff]  ;;  %v2663_v22 = vld [vmem:[%s2616_s23 + $0x70] sm:$0xff]  ;;  %v2669_v26 = vld [vmem:[%s2616_s23 + $0x78] sm:$0xff] }
  0x15   : > { %2358 = vperm.xlu1 %2356, %v2357_v11   ;;  %vm613_vm7 = vcmp.eq.s32.totalorder %v453_v13, 1  ;;  %v2362_v23 = vpack.i.bf16 %v1998_v20, %v1997_v19  ;;  %v1993_v24 = vsel %vm612_vm6, 1.0, %v2540_v6  ;;  %vm620_vm8 = vcmp.eq.s32.totalorder %v2646_v14, 1  ;;  %v462_v29 = vld [vmem:[%s2616_s23 + $0x60] sm:$0xff]  ;;  %v463_v30 = vld [vmem:[%s2616_s23 + $0x68] sm:$0xff]  ;;  %v841_v11 = vld [vmem:[%s3394_s2 + $0x30] sm:$0xff] }
  0x16   : > { %v1994_v25 = vsel %vm613_vm7, 1.0, %v2540_v6  ;;  %2347 = vperm.xlu0 %2345, %v2346_v18   ;;  %vm621_vm9 = vcmp.eq.s32.totalorder %v2652_v16, 1  ;;  %v2001_v28 = vsel %vm620_vm8, 1.0, %v2540_v6  ;;  %vm618_vm10 = vcmp.eq.s32.totalorder %v2655_v17, 1  ;;  %v839_v8 = vld [vmem:[%s3394_s2 + $0x20] sm:$0xff]  ;;  %v842_v12 = vld [vmem:[%s3394_s2 + $0x38] sm:$0xff] }
  0x17   : > { %v2351_v27 = vpack.i.bf16 %v1994_v25, %v1993_v24  ;;  %v2002_v31 = vsel %vm621_vm9, 1.0, %v2540_v6  ;;  %vm619_vm11 = vcmp.eq.s32.totalorder %v2660_v21, 1  ;;  %v1999_v32 = vsel %vm618_vm10, 1.0, %v2540_v6  ;;  %v844_v15 = vld [vmem:[%s3394_s2 + $0x48] sm:$0xff]  ;;  %v846_v18 = vld [vmem:[%s3394_s2 + $0x58] sm:$0xff]  ;;  %v847_v20 = vld [vmem:[%s3394_s2 + $0x60] sm:$0xff] }
  0x18   : > { %vm624_vm12 = vcmp.eq.s32.totalorder %v2663_v22, 1  ;;  %v2372_v33 = vpack.i.bf16 %v2002_v31, %v2001_v28  ;;  %v2000_v34 = vsel %vm619_vm11, 1.0, %v2540_v6  ;;  %vm625_vm13 = vcmp.eq.s32.totalorder %v2669_v26, 1  ;;  %v850_v24 = vld [vmem:[%s3394_s2 + $0x78] sm:$0xff] }
  0x19   : > { %2363 = vperm.xlu1 %2356, %v2362_v23   ;;  %v2005_v35 = vsel %vm624_vm12, 1.0, %v2540_v6  ;;  %v2006_v36 = vsel %vm625_vm13, 1.0, %v2540_v6  ;;  %vm622_vm14 = vcmp.eq.s32.totalorder %v462_v29, 1  ;;  %vm623_vm15 = vcmp.eq.s32.totalorder %v463_v30, 1  ;;  %v849_v23 = vld [vmem:[%s3394_s2 + $0x70] sm:$0xff] }
  0x1a   : > { %2352 = vperm.xlu0 %2345, %v2351_v27   ;;  %v2367_v37 = vpack.i.bf16 %v2000_v34, %v1999_v32  ;;  %vm468_vm0 = vcmp.eq.s32.totalorder %v452_v10, 0  ;;  %v2003_v38 = vsel %vm622_vm14, 1.0, %v2540_v6  ;;  %v2004_v39 = vsel %vm623_vm15, 1.0, %v2540_v6  ;;  %v2772_v27 = vld [vmem:[%s2766_s24 + $0x8] sm:$0xff] }
  0x1b   : > { %vm469_vm1 = vcmp.eq.s32.totalorder %v453_v13, 0  ;;  %vm467_vm2 = vcmp.eq.s32.totalorder %v2630_v4, 0  ;;  %vm466_vm3 = vcmp.eq.s32.totalorder %v2625_v3, 0  ;;  %v2382_v40 = vpack.i.bf16 %v2006_v36, %v2005_v35  ;;  %v836_v3 = vld [vmem:[%s3394_s2 + $0x8] sm:$0xff]  ;;  %v837_v4 = vld [vmem:[%s3394_s2 + $0x10] sm:$0xff] }
  0x1c   : > { %v1977_v41 = vsel %vm468_vm0, 1.0, %v2540_v6  ;;  %v1978_v42 = vsel %vm469_vm1, 1.0, %v2540_v6  ;;  %v2377_v43 = vpack.i.bf16 %v2004_v39, %v2003_v38  ;;  %v1975_v44 = vsel %vm466_vm3, 1.0, %v2540_v6  ;;  %v2777_v36 = vld [vmem:[%s2766_s24 + $0x10] sm:$0xff]  ;;  %v2783_v39 = vld [vmem:[%s2766_s24 + $0x20] sm:$0xff] }
  0x1d   : > { %2373 = vperm.xlu1 %2356, %v2372_v33   ;;  %v1976_v45 = vsel %vm467_vm2, 1.0, %v2540_v6  ;;  %vm471_vm4 = vcmp.eq.s32.totalorder %v2622_v2, 0  ;;  %vm470_vm5 = vcmp.eq.s32.totalorder %v2619_v1, 0  ;;  %v2392_v46 = vpack.i.bf16 %v1978_v42, %v1977_v41  ;;  %v835_v2 = vld [vmem:[%s3394_s2] sm:$0xff] }
  0x1e   : > { %2368 = vperm.xlu0 %2345, %v2367_v37   ;;  %v2387_v47 = vpack.i.bf16 %v1976_v45, %v1975_v44  ;;  %v1979_v48 = vsel %vm470_vm5, 1.0, %v2540_v6  ;;  %v1980_v49 = vsel %vm471_vm4, 1.0, %v2540_v6  ;;  %vm472_vm6 = vcmp.eq.s32.totalorder %v2633_v5, 0  ;;  %v2780_v37 = vld [vmem:[%s2766_s24 + $0x18] sm:$0xff] }
  0x1f   : > { %vm473_vm7 = vcmp.eq.s32.totalorder %v2639_v9, 0  ;;  %v2397_v50 = vpack.i.bf16 %v1980_v49, %v1979_v48  ;;  %v1981_v51 = vsel %vm472_vm6, 1.0, %v2540_v6  ;;  %vm474_vm8 = vcmp.eq.s32.totalorder %v2655_v17, 0  ;;  %v840_v9 = vld [vmem:[%s3394_s2 + $0x28] sm:$0xff]  ;;  %v845_v17 = vld [vmem:[%s3394_s2 + $0x50] sm:$0xff] }
  0x20   : > { %v1982_v52 = vsel %vm473_vm7, 1.0, %v2540_v6  ;;  %vm475_vm9 = vcmp.eq.s32.totalorder %v2660_v21, 0  ;;  %v1983_v54 = vsel %vm474_vm8, 1.0, %v2540_v6  ;;  %vm476_vm10 = vcmp.eq.s32.totalorder %v2646_v14, 0  ;;  %v843_v14 = vld [vmem:[%s3394_s2 + $0x40] sm:$0xff]  ;;  %v848_v21 = vld [vmem:[%s3394_s2 + $0x68] sm:$0xff] }
  0x21   : > { %2383 = vperm.xlu1 %2356, %v2382_v40   ;;  %v2402_v53 = vpack.i.bf16 %v1982_v52, %v1981_v51  ;;  %v1984_v55 = vsel %vm475_vm9, 1.0, %v2540_v6  ;;  %vm477_vm11 = vcmp.eq.s32.totalorder %v2652_v16, 0  ;;  %v1985_v57 = vsel %vm476_vm10, 1.0, %v2540_v6  ;;  %v2786_v40 = vld [vmem:[%s2766_s24 + $0x28] sm:$0xff]  ;;  %v2794_v52 = vld [vmem:[%s2766_s24 + $0x30] sm:$0xff] }
  0x22   : > { %2378 = vperm.xlu0 %2345, %v2377_v43   ;;  %v2407_v56 = vpack.i.bf16 %v1984_v55, %v1983_v54  ;;  %v1986_v58 = vsel %vm477_vm11, 1.0, %v2540_v6  ;;  %vm478_vm12 = vcmp.eq.s32.totalorder %v462_v29, 0  ;;  %vm479_vm13 = vcmp.eq.s32.totalorder %v463_v30, 0 }
  0x23   : > { %v2412_v59 = vpack.i.bf16 %v1986_v58, %v1985_v57  ;;  %v1987_v60 = vsel %vm478_vm12, 1.0, %v2540_v6  ;;  %v1988_v61 = vsel %vm479_vm13, 1.0, %v2540_v6  ;;  %vm480_vm14 = vcmp.eq.s32.totalorder %v2663_v22, 0  ;;  %v2803_v57 = vld [vmem:[%s2766_s24 + $0x60] sm:$0xff]  ;;  %v2806_v58 = vld [vmem:[%s2766_s24 + $0x68] sm:$0xff] }
  0x24   : > { %vm481_vm15 = vcmp.eq.s32.totalorder %v2669_v26, 0  ;;  %v2417_v62 = vpack.i.bf16 %v1988_v61, %v1987_v60  ;;  %v1989_v63 = vsel %vm480_vm14, 1.0, %v2540_v6  ;;  %v2262_v5 = vpack.c.bf16 %v836_v3, %v835_v2  ;;  %v2769_v26 = vld [vmem:[%s2766_s24] sm:$0xff]  ;;  %v2812_v3 = vld [vmem:[%s2766_s24 + $0x48] sm:$0xff] }
  0x25   : > { %2393 = vperm.xlu1 %2356, %v2392_v46   ;;  %v1990_v0 = vsel %vm481_vm15, 1.0, %v2540_v6  ;;  %v838_v6 = vld [vmem:[%s3394_s2 + $0x18] sm:$0xff]  ;;  %v2270_v10 = vpack.c.bf16 %v840_v9, %v839_v8  ;;  %v2274_v13 = vpack.c.bf16 %v842_v12, %v841_v11  ;;  %v2278_v16 = vpack.c.bf16 %v844_v15, %v843_v14  ;;  %v2809_v2 = vld [vmem:[%s2766_s24 + $0x40] sm:$0xff] }
  0x26   : > { %2388 = vperm.xlu0 %2345, %v2387_v47   ;;  %v2422_v1 = vpack.i.bf16 %v1990_v0, %v1989_v63  ;;  %v2266_v7 = vpack.c.bf16 %v838_v6, %v837_v4  ;;  %2263 = vmatprep.subr.bf16.mxu0 %v2262_v5  ;;  %v2282_v19 = vpack.c.bf16 %v846_v18, %v845_v17  ;;  %v2818_v8 = vld [vmem:[%s2766_s24 + $0x58] sm:$0xff]  ;;  %vm818_vm0 = vcmask 523264  }
  0x27   : > { %2265 = vmatpush3.bf16.msra.mxu0 %v2262_v5  ;;  %v2286_v22 = vpack.c.bf16 %v848_v21, %v847_v20  ;;  %v2290_v25 = vpack.c.bf16 %v850_v24, %v849_v23  ;;  %v2830_v20 = vld [vmem:[%s2766_s24 + $0x70] sm:$0xff]  ;;  %v2833_v21 = vld [vmem:[%s2766_s24 + $0x78] sm:$0xff] }
  0x28   : > { %2267 = vmatprep.subr.bf16.mxu0 %v2266_v7 }
  0x2a   : > { %2398 = vperm.xlu0 %2345, %v2397_v50  }
  0x2b   : > { %2269 = vmatpush3.bf16.msra.mxu0 %v2266_v7 }
  0x2c   : > { %2271 = vmatprep.subr.bf16.mxu0 %v2270_v10 }
  0x2e   : > { %2403 = vperm.xlu0 %2345, %v2402_v53   ;;  %v2797_v53 = vld [vmem:[%s2766_s24 + $0x38] sm:$0xff] }
  0x2f   : > { %2273 = vmatpush3.bf16.msra.mxu0 %v2270_v10 }
  0x30   : > { %2275 = vmatprep.subr.bf16.mxu0 %v2274_v13 }
  0x32   : > { %2408 = vperm.xlu0 %2345, %v2407_v56  }
  0x33   : > { %2277 = vmatpush3.bf16.msra.mxu0 %v2274_v13  ;;  %v2823_v13 = vld [vmem:[%s2766_s24 + $0x50] sm:$0xff] }
  0x34   : > { %2279 = vmatprep.subr.bf16.mxu0 %v2278_v16 }
  0x36   : > { %2413 = vperm.xlu0 %2345, %v2412_v59  }
  0x37   : > { %2281 = vmatpush3.bf16.msra.mxu0 %v2278_v16 }
  0x38   : > { %2283 = vmatprep.subr.bf16.mxu0 %v2282_v19 }
  0x3a   : > { %2418 = vperm.xlu0 %2345, %v2417_v62  }
  0x3b   : > { %2285 = vmatpush3.bf16.msra.mxu0 %v2282_v19 }
  0x3c   : > { %2287 = vmatprep.subr.bf16.mxu0 %v2286_v22 }
  0x3e   : > { %2423 = vperm.xlu0 %2345, %v2422_v1  }
  0x3f   : > { %2289 = vmatpush3.bf16.msra.mxu0 %v2286_v22 }
  0x40   : > { %2291 = vmatprep.subr.bf16.mxu0 %v2290_v25 }
  0x43   : > { %2293 = vmatpush3.bf16.msra.mxu0 %v2290_v25 }
  0x94   : > { %v2359_v29 = vpop.permute.xlu1 %2358 }
  0x95   : > { %v2348_v28 = vpop.permute.xlu0 %2347  ;;  %v2361_v34 = vunpack.i.h.bf16 %v2359_v29  ;;  %v2360_v35 = vunpack.i.l.bf16 %v2359_v29 }
  0x96   : > { %v2350_v30 = vunpack.i.h.bf16 %v2348_v28  ;;  %v2349_v31 = vunpack.i.l.bf16 %v2348_v28 }
  0x97   : > { %v743_v47 = vmul.f32 %v2361_v34, %v2786_v40  ;;  %v742_v48 = vmul.f32 %v2360_v35, %v2783_v39 }
  0x98   : > { %v739_v32 = vmul.f32 %v2350_v30, %v2772_v27  ;;  %v738_v33 = vmul.f32 %v2349_v31, %v2769_v26  ;;  %v2364_v44 = vpop.permute.xlu1 %2363 }
  0x99   : > { %v2353_v38 = vpop.permute.xlu0 %2352  ;;  %v2366_v49 = vunpack.i.h.bf16 %v2364_v44  ;;  %v2365_v50 = vunpack.i.l.bf16 %v2364_v44  ;;  %v2437_v60 = vpack.i.bf16 %v743_v47, %v742_v48 }
  0x9a   : > { %v2355_v41 = vunpack.i.h.bf16 %v2353_v38  ;;  %v2354_v42 = vunpack.i.l.bf16 %v2353_v38  ;;  %v2427_v43 = vpack.i.bf16 %v739_v32, %v738_v33 }
  0x9b   : > { %v745_v55 = vmul.f32 %v2366_v49, %v2797_v53  ;;  %v744_v56 = vmul.f32 %v2365_v50, %v2794_v52 }
  0x9c   : > { %v741_v45 = vmul.f32 %v2355_v41, %v2780_v37  ;;  %v740_v46 = vmul.f32 %v2354_v42, %v2777_v36  ;;  %2428 = vrot.lane.b32.xlu1 %v2427_v43, %s2541_s25  ;;  %v2374_v61 = vpop.permute.xlu1 %2373 }
  0x9d   : > { %v2369_v51 = vpop.permute.xlu0 %2368  ;;  %v2442_v6 = vpack.i.bf16 %v745_v55, %v744_v56  ;;  %v2376_v7 = vunpack.i.h.bf16 %v2374_v61  ;;  %v2375_v9 = vunpack.i.l.bf16 %v2374_v61 }
  0x9e   : > { %v2432_v54 = vpack.i.bf16 %v741_v45, %v740_v46  ;;  %v2371_v0 = vunpack.i.h.bf16 %v2369_v51  ;;  %v2370_v1 = vunpack.i.l.bf16 %v2369_v51 }
  0x9f   : > { %v749_v15 = vmul.f32 %v2376_v7, %v2818_v8  ;;  %v748_v16 = vmul.f32 %v2375_v9, %v2823_v13 }
  0xa0   : > { %2433 = vrot.lane.b32.xlu1 %v2432_v54, %s2541_s25  ;;  %v747_v10 = vmul.f32 %v2371_v0, %v2812_v3  ;;  %v746_v11 = vmul.f32 %v2370_v1, %v2809_v2  ;;  %v2384_v14 = vpop.permute.xlu1 %2383 }
  0xa1   : > { %v2379_v59 = vpop.permute.xlu0 %2378  ;;  %v2386_v17 = vunpack.i.h.bf16 %v2384_v14  ;;  %v2385_v18 = vunpack.i.l.bf16 %v2384_v14  ;;  %v2452_v24 = vpack.i.bf16 %v749_v15, %v748_v16 }
  0xa2   : > { %v2381_v62 = vunpack.i.h.bf16 %v2379_v59  ;;  %v2380_v63 = vunpack.i.l.bf16 %v2379_v59  ;;  %v2447_v19 = vpack.i.bf16 %v747_v10, %v746_v11 }
  0xa3   : > { %v753_v22 = vmul.f32 %v2386_v17, %v2833_v21  ;;  %v752_v23 = vmul.f32 %v2385_v18, %v2830_v20 }
  0xa4   : > { %v751_v4 = vmul.f32 %v2381_v62, %v2806_v58  ;;  %v750_v5 = vmul.f32 %v2380_v63, %v2803_v57  ;;  %2438 = vrot.lane.b32.xlu1 %v2437_v60, %s2541_s25  ;;  %v2394_v31 = vpop.permute.xlu1 %2393 }
  0xa5   : > { %v2462_v25 = vpack.i.bf16 %v753_v22, %v752_v23  ;;  %v2389_v28 = vpop.permute.xlu0 %2388  ;;  %v2396_v35 = vunpack.i.h.bf16 %v2394_v31  ;;  %v2395_v38 = vunpack.i.l.bf16 %v2394_v31 }
  0xa6   : > { %v2457_v12 = vpack.i.bf16 %v751_v4, %v750_v5  ;;  %v2391_v33 = vunpack.i.h.bf16 %v2389_v28  ;;  %v2390_v34 = vunpack.i.l.bf16 %v2389_v28 }
  0xa7   : > { %v597_v49 = vmul.f32 %v2396_v35, %v2780_v37  ;;  %v596_v54 = vmul.f32 %v2395_v38, %v2777_v36 }
  0xa8   : > { %2443 = vrot.lane.b32.xlu1 %v2442_v6, %s2541_s25  ;;  %2458 = vrot.lane.b32.xlu0 %v2457_v12, %s2541_s25  ;;  %v595_v42 = vmul.f32 %v2391_v33, %v2772_v27  ;;  %v594_v43 = vmul.f32 %v2390_v34, %v2769_v26 }
  0xa9   : > { %v2399_v29 = vpop.permute.xlu0 %2398 }
  0xaa   : > { %v2401_v50 = vunpack.i.h.bf16 %v2399_v29  ;;  %v2400_v55 = vunpack.i.l.bf16 %v2399_v29 }
  0xac   : > { %2448 = vrot.lane.b32.xlu1 %v2447_v19, %s2541_s25  ;;  %v599_v60 = vmul.f32 %v2401_v50, %v2786_v40  ;;  %v598_v37 = vmul.f32 %v2400_v55, %v2783_v39  ;;  %v1003_v55 = vld [vmem:[%s2876_s28] sm:$0xff] }
  0xad   : > { %v2404_v30 = vpop.permute.xlu0 %2403 }
  0xae   : > { %v2406_v61 = vunpack.i.h.bf16 %v2404_v30  ;;  %v2405_v0 = vunpack.i.l.bf16 %v2404_v30 }
  0xb0   : > { %2453 = vrot.lane.b32.xlu1 %v2452_v24, %s2541_s25  ;;  %v601_v6 = vmul.f32 %v2406_v61, %v2797_v53  ;;  %v600_v40 = vmul.f32 %v2405_v0, %v2794_v52  ;;  %v1005_v61 = vld [vmem:[%s2876_s28 + $0x10] sm:$0xff] }
  0xb1   : > { %v2409_v32 = vpop.permute.xlu0 %2408 }
  0xb2   : > { %v2411_v7 = vunpack.i.h.bf16 %v2409_v32  ;;  %v2410_v10 = vunpack.i.l.bf16 %v2409_v32 }
  0xb4   : > { %2463 = vrot.lane.b32.xlu1 %v2462_v25, %s2541_s25  ;;  %v603_v16 = vmul.f32 %v2411_v7, %v2812_v3  ;;  %v602_v53 = vmul.f32 %v2410_v10, %v2809_v2  ;;  %v1007_v7 = vld [vmem:[%s2876_s28 + $0x20] sm:$0xff] }
  0xb5   : > { %v2414_v46 = vpop.permute.xlu0 %2413 }
  0xb6   : > { %v2416_v17 = vunpack.i.h.bf16 %v2414_v46  ;;  %v2415_v19 = vunpack.i.l.bf16 %v2414_v46 }
  0xb8   : > { %v605_v29 = vmul.f32 %v2416_v17, %v2818_v8  ;;  %v604_v3 = vmul.f32 %v2415_v19, %v2823_v13 }
  0xb9   : > { %v2419_v62 = vpop.permute.xlu0 %2418 }
  0xba   : > { %v2420_v24 = vunpack.i.l.bf16 %v2419_v62  ;;  %v2421_v2 = vunpack.i.h.bf16 %v2419_v62 }
  0xbc   : > { %v606_v34 = vmul.f32 %v2420_v24, %v2803_v57 }
  0xbd   : > { %v2424_v39 = vpop.permute.xlu0 %2423 }
  0xbe   : > { %v2425_v35 = vunpack.i.l.bf16 %v2424_v39 }
  0xc0   : > { %v608_v46 = vmul.f32 %v2425_v35, %v2830_v20 }
 0x10e   : > { %v2429_v41 = vpop.permute.xlu1 %2428 }
 0x10f   : > { %v2431_v44 = vunpack.i.h.bf16 %v2429_v41  ;;  %v2430_v45 = vunpack.i.l.bf16 %v2429_v41 }
 0x111   : > { %v819_v47 = vsel %vm818_vm0, %v594_v43, %v2430_v45  ;;  %v820_v48 = vsel %vm818_vm0, %v595_v42, %v2431_v44  ;;  %v607_v44 = vmul.f32 %v2421_v2, %v2806_v58  ;;  %v2426_v45 = vunpack.i.h.bf16 %v2424_v39  ;;  %v2881_v58 = vld [vmem:[%s3395_s3] ss:$0 sm:$0xff] }
 0x112   : > { %v2434_v51 = vpop.permute.xlu1 %2433  ;;  %2158 = vmatprep.mubr.f32.mxu0 %v819_v47 }
 0x113   : > { %v2436_v56 = vunpack.i.h.bf16 %v2434_v51  ;;  %v2435_v59 = vunpack.i.l.bf16 %v2434_v51  ;;  %2159 = vmatmul.mubr.f32.vlgmr.msra.gmra.mrb[0].mxu0 %v820_v48 }
 0x115   : > { %v821_v26 = vsel %vm818_vm0, %v596_v54, %v2435_v59  ;;  %v822_v27 = vsel %vm818_vm0, %v597_v49, %v2436_v56  ;;  %v609_v49 = vmul.f32 %v2426_v45, %v2833_v21  ;;  %v1004_v21 = vld [vmem:[%s2876_s28 + $0x8] sm:$0xff] }
 0x116   : > { %v2439_v63 = vpop.permute.xlu1 %2438  ;;  %2161 = vmatprep.mubr.f32.mxu0 %v821_v26 }
 0x117   : > { %v2441_v1 = vunpack.i.h.bf16 %v2439_v63  ;;  %v2440_v4 = vunpack.i.l.bf16 %v2439_v63  ;;  %2162 = vmatmul.mubr.f32.gmra.mrb[2].mxu0 %v822_v27 }
 0x119   : > { %v823_v36 = vsel %vm818_vm0, %v598_v37, %v2440_v4  ;;  %v824_v5 = vsel %vm818_vm0, %v599_v60, %v2441_v1  ;;  %v1006_v1 = vld [vmem:[%s2876_s28 + $0x18] sm:$0xff] }
 0x11a   : > { %v2444_v9 = vpop.permute.xlu1 %2443  ;;  %2164 = vmatprep.mubr.f32.mxu0 %v823_v36  ;;  %v2459_v52 = vpop.permute.xlu0 %2458 }
 0x11b   : > { %v2446_v11 = vunpack.i.h.bf16 %v2444_v9  ;;  %v2445_v12 = vunpack.i.l.bf16 %v2444_v9  ;;  %2165 = vmatmul.mubr.f32.gmra.mrb[4].mxu0 %v824_v5  ;;  %v2460_v31 = vunpack.i.l.bf16 %v2459_v52  ;;  %v2461_v42 = vunpack.i.h.bf16 %v2459_v52 }
 0x11d   : > { %v825_v14 = vsel %vm818_vm0, %v600_v40, %v2445_v12  ;;  %v826_v15 = vsel %vm818_vm0, %v601_v6, %v2446_v11  ;;  %v831_v13 = vsel %vm818_vm0, %v606_v34, %v2460_v31  ;;  %v832_v47 = vsel %vm818_vm0, %v607_v44, %v2461_v42  ;;  %v1008_v40 = vld [vmem:[%s2876_s28 + $0x28] sm:$0xff]  ;;  %v1014_v42 = vld [vmem:[%s2876_s28 + $0x58] sm:$0xff] }
 0x11e   : > { %v2449_v18 = vpop.permute.xlu1 %2448  ;;  %2167 = vmatprep.mubr.f32.mxu0 %v825_v14 }
 0x11f   : > { %v2451_v22 = vunpack.i.h.bf16 %v2449_v18  ;;  %v2450_v23 = vunpack.i.l.bf16 %v2449_v18  ;;  %2168 = vmatmul.mubr.f32.gmra.mrb[6].mxu0 %v826_v15 }
 0x121   : > { %v827_v25 = vsel %vm818_vm0, %v602_v53, %v2450_v23  ;;  %v828_v28 = vsel %vm818_vm0, %v603_v16, %v2451_v22  ;;  %v1009_v16 = vld [vmem:[%s2876_s28 + $0x30] sm:$0xff]  ;;  %v1010_v22 = vld [vmem:[%s2876_s28 + $0x38] sm:$0xff] }
 0x122   : > { %v2454_v30 = vpop.permute.xlu1 %2453  ;;  %2170 = vmatprep.mubr.f32.mxu0 %v827_v25  ;;  %v1011_v25 = vld [vmem:[%s2876_s28 + $0x40] sm:$0xff] }
 0x123   : > { %v2456_v32 = vunpack.i.h.bf16 %v2454_v30  ;;  %v2455_v33 = vunpack.i.l.bf16 %v2454_v30  ;;  %2171 = vmatmul.mubr.f32.gmra.mrb[8].mxu0 %v828_v28 }
 0x125   : > { %v829_v38 = vsel %vm818_vm0, %v604_v3, %v2455_v33  ;;  %v830_v41 = vsel %vm818_vm0, %v605_v29, %v2456_v32  ;;  %v1012_v32 = vld [vmem:[%s2876_s28 + $0x48] sm:$0xff] }
 0x126   : > { %v2464_v43 = vpop.permute.xlu1 %2463  ;;  %2173 = vmatprep.mubr.f32.mxu0 %v829_v38  ;;  %v1013_v38 = vld [vmem:[%s2876_s28 + $0x50] sm:$0xff] }
 0x127   : > { %v2465_v8 = vunpack.i.l.bf16 %v2464_v43  ;;  %2174 = vmatmul.mubr.f32.gmra.mrb[10].mxu0 %v830_v41  ;;  %v2466_v57 = vunpack.i.h.bf16 %v2464_v43 }
 0x128   : > { %2176 = vmatprep.mubr.f32.mxu0 %v831_v13 }
 0x129   : > { %v833_v48 = vsel %vm818_vm0, %v608_v46, %v2465_v8  ;;  %v834_v50 = vsel %vm818_vm0, %v609_v49, %v2466_v57 }
 0x12b   : > { %2177 = vmatmul.mubr.f32.gmra.mrb[12].mxu0 %v832_v47  ;;  %v1015_v47 = vld [vmem:[%s2876_s28 + $0x60] sm:$0xff] }
 0x12c   : > { %2179 = vmatprep.mubr.f32.mxu0 %v833_v48 }
 0x12f   : > { %2180 = vmatmul.mubr.f32.gmra.mrb[14].mxu0 %v834_v50 }
 0x1e6   : > { %v2160_v20 = vpop.f32.mrb[0].mxu0 }
 0x1e7   : > { %v930_v51 = vadd.f32 %v2160_v20, %v2881_v58  ;;  %v924_v54 = vpop.f32.mrb[1].mxu0 }
 0x1e8   : > { %v925_v56 = vadd.f32 %v2881_v58, %v924_v54 }
 0x1e9   : > { %v2887_v59 = vadd.f32 %v1004_v21, %v930_v51  ;;  %v1016_v21 = vld [vmem:[%s2876_s28 + $0x68] sm:$0xff] }
 0x1ea   : > { %v2889_v26 = vadd.f32 %v1003_v55, %v925_v56  ;;  %v2163_v27 = vpop.f32.mrb[2].mxu0  ;;  %v1017_v56 = vld [vmem:[%s2876_s28 + $0x70] sm:$0xff] }
 0x1eb   : > { %v934_v60 = vpop.f32.mrb[3].mxu0  ;;  %v1040_v62 = vsel %vm818_vm0, %v2887_v59, 0.0  ;;  %v940_v63 = vadd.f32 %v2163_v27, %v2881_v58 }
 0x1ec   : > { %v935_v37 = vadd.f32 %v2881_v58, %v934_v60  ;;  %1041 = vadd.xlane.f32.xlu1 %v1040_v62  ;;  %v1037_v0 = vsel %vm818_vm0, %v2889_v26, 0.0 }
 0x1ed   : > { %1038 = vadd.xlane.f32.xlu0 %v1037_v0  ;;  %v2903_v9 = vadd.f32 %v1006_v1, %v940_v63 }
 0x1ee   : > { %v2899_v4 = vadd.f32 %v1005_v61, %v935_v37  ;;  %v2166_v36 = vpop.f32.mrb[4].mxu0  ;;  %v1018_v37 = vld [vmem:[%s2876_s28 + $0x78] sm:$0xff] }
 0x1ef   : > { %v950_v5 = vadd.f32 %v2166_v36, %v2881_v58  ;;  %v944_v6 = vpop.f32.mrb[5].mxu0  ;;  %v1046_v19 = vsel %vm818_vm0, %v2903_v9, 0.0 }
 0x1f0   : > { %v945_v10 = vadd.f32 %v2881_v58, %v944_v6  ;;  %v1043_v11 = vsel %vm818_vm0, %v2899_v4, 0.0  ;;  %v1290_v6 = vld [vmem:[%s3399_s7] sm:$0xff] }
 0x1f1   : > { %1044 = vadd.xlane.f32.xlu0 %v1043_v11  ;;  %v2911_v14 = vadd.f32 %v1008_v40, %v950_v5 }
 0x1f2   : > { %v2909_v12 = vadd.f32 %v1007_v7, %v945_v10  ;;  %v2169_v39 = vpop.f32.mrb[6].mxu0  ;;  %v1291_v7 = vld [vmem:[%s3399_s7 + $0x8] sm:$0xff] }
 0x1f3   : > { %v954_v15 = vpop.f32.mrb[7].mxu0  ;;  %v960_v17 = vadd.f32 %v2169_v39, %v2881_v58  ;;  %v1052_v28 = vsel %vm818_vm0, %v2911_v14, 0.0  ;;  %v2294_v40 = vpack.c.bf16 %v1291_v7, %v1290_v6 }
 0x1f4   : > { %v955_v18 = vadd.f32 %v2881_v58, %v954_v15  ;;  %v1049_v53 = vsel %vm818_vm0, %v2909_v12, 0.0 }
 0x1f5   : > { %1050 = vadd.xlane.f32.xlu1 %v1049_v53  ;;  %1047 = vadd.xlane.f32.xlu0 %v1046_v19  ;;  %v2926_v29 = vadd.f32 %v1010_v22, %v960_v17 }
 0x1f6   : > { %v2921_v23 = vadd.f32 %v1009_v16, %v955_v18  ;;  %v2172_v52 = vpop.f32.mrb[8].mxu0  ;;  %2295 = vmatprep.subr.bf16.mxu0 %v2294_v40  ;;  %2326 = vmatprep.subr.bf16.mxu1 %v2294_v40 }
 0x1f7   : > { %v964_v24 = vpop.f32.mrb[9].mxu0  ;;  %v970_v30 = vadd.f32 %v2172_v52, %v2881_v58  ;;  %v1058_v13 = vsel %vm818_vm0, %v2926_v29, 0.0  ;;  %2297 = vmatpush3.bf16.msra.mxu0 %v2294_v40  ;;  %2330 = vmatpush3.bf16.msra.mxu1 %v2294_v40 }
 0x1f8   : > { %v965_v3 = vadd.f32 %v2881_v58, %v964_v24  ;;  %v1055_v31 = vsel %vm818_vm0, %v2921_v23, 0.0 }
 0x1f9   : > { %1056 = vadd.xlane.f32.xlu1 %v1055_v31  ;;  %1053 = vadd.xlane.f32.xlu0 %v1052_v28  ;;  %v2937_v41 = vadd.f32 %v1012_v32, %v970_v30 }
 0x1fa   : > { %v2933_v33 = vadd.f32 %v1011_v25, %v965_v3  ;;  %v2175_v2 = vpop.f32.mrb[10].mxu0 }
 0x1fb   : > { %v980_v34 = vadd.f32 %v2175_v2, %v2881_v58  ;;  %v974_v35 = vpop.f32.mrb[11].mxu0  ;;  %v1064_v20 = vsel %vm818_vm0, %v2937_v41, 0.0 }
 0x1fc   : > { %v975_v43 = vadd.f32 %v2881_v58, %v974_v35  ;;  %v1061_v8 = vsel %vm818_vm0, %v2933_v33, 0.0 }
 0x1fd   : > { %1062 = vadd.xlane.f32.xlu1 %v1061_v8  ;;  %1059 = vadd.xlane.f32.xlu0 %v1058_v13  ;;  %v2947_v46 = vadd.f32 %v1014_v42, %v980_v34 }
 0x1fe   : > { %v2945_v44 = vadd.f32 %v1013_v38, %v975_v43  ;;  %v2178_v45 = vpop.f32.mrb[12].mxu0 }
 0x1ff   : > { %v984_v57 = vpop.f32.mrb[13].mxu0  ;;  %v990_v48 = vadd.f32 %v2178_v45, %v2881_v58  ;;  %v1070_v27 = vsel %vm818_vm0, %v2947_v46, 0.0 }
 0x200   : > { %v985_v49 = vadd.f32 %v2881_v58, %v984_v57  ;;  %v1067_v50 = vsel %vm818_vm0, %v2945_v44, 0.0 }
 0x201   : > { %1068 = vadd.xlane.f32.xlu1 %v1067_v50  ;;  %1065 = vadd.xlane.f32.xlu0 %v1064_v20  ;;  %v2962_v60 = vadd.f32 %v1016_v21, %v990_v48 }
 0x202   : > { %v2957_v51 = vadd.f32 %v1015_v47, %v985_v49  ;;  %v2181_v54 = vpop.f32.mrb[14].mxu0 }
 0x203   : > { %v994_v55 = vpop.f32.mrb[15].mxu0  ;;  %v1000_v61 = vadd.f32 %v2181_v54, %v2881_v58  ;;  %v1076_v5 = vsel %vm818_vm0, %v2962_v60, 0.0 }
 0x204   : > { %v995_v62 = vadd.f32 %v2881_v58, %v994_v55  ;;  %v1073_v63 = vsel %vm818_vm0, %v2957_v51, 0.0 }
 0x205   : > { %1074 = vadd.xlane.f32.xlu1 %v1073_v63  ;;  %1071 = vadd.xlane.f32.xlu0 %v1070_v27  ;;  %v2971_v1 = vadd.f32 %v1018_v37, %v1000_v61 }
 0x206   : > { %v2969_v0 = vadd.f32 %v1017_v56, %v995_v62 }
 0x207   : > { %v1082_v58 = vsel %vm818_vm0, %v2971_v1, 0.0 }
 0x208   : > { %v1079_v36 = vsel %vm818_vm0, %v2969_v0, 0.0 }
 0x209   : > { %1080 = vadd.xlane.f32.xlu1 %v1079_v36  ;;  %1077 = vadd.xlane.f32.xlu0 %v1076_v5 }
 0x20d   : > { %1083 = vadd.xlane.f32.xlu0 %v1082_v58 }
 0x279   : > { %v1042_v10 = vpop.xlane.xlu1 %1041 }
 0x27a   : > { %v1087_v11 = vmul.f32 0.015625, %v1042_v10  ;;  %v1039_v39 = vpop.xlane.xlu0 %1038 }
 0x27b   : > { %v1086_v15 = vmul.f32 0.015625, %v1039_v39 }
 0x27c   : > { %v2986_v16 = vsub.f32 %v2887_v59, %v1087_v11 }
 0x27d   : > { %v2989_v17 = vsub.f32 %v2889_v26, %v1086_v15 }
 0x27e   : > { %v1045_v18 = vpop.xlane.xlu0 %1044  ;;  %v1119_v53 = vmul.f32 %v2986_v16, %v2986_v16 }
 0x27f   : > { %v1088_v19 = vmul.f32 0.015625, %v1045_v18  ;;  %v1118_v22 = vmul.f32 %v2989_v17, %v2989_v17 }
 0x280   : > { %v1137_v52 = vsel %vm818_vm0, %v1119_v53, 0.0 }
 0x281   : > { %v2997_v24 = vsub.f32 %v2899_v4, %v1088_v19  ;;  %1138 = vadd.xlane.f32.xlu0 %v1137_v52  ;;  %v1134_v25 = vsel %vm818_vm0, %v1118_v22, 0.0 }
 0x282   : > { %v1051_v28 = vpop.xlane.xlu1 %1050  ;;  %1135 = vadd.xlane.f32.xlu1 %v1134_v25  ;;  %v1048_v30 = vpop.xlane.xlu0 %1047 }
 0x283   : > { %v1090_v3 = vmul.f32 0.015625, %v1051_v28  ;;  %v1089_v31 = vmul.f32 0.015625, %v1048_v30  ;;  %v1120_v32 = vmul.f32 %v2997_v24, %v2997_v24 }
 0x285   : > { %v3003_v2 = vsub.f32 %v2909_v12, %v1090_v3  ;;  %v3006_v34 = vsub.f32 %v2903_v9, %v1089_v31  ;;  %v1140_v35 = vsel %vm818_vm0, %v1120_v32, 0.0 }
 0x286   : > { %v1057_v38 = vpop.xlane.xlu1 %1056  ;;  %1141 = vadd.xlane.f32.xlu1 %v1140_v35  ;;  %v1054_v42 = vpop.xlane.xlu0 %1053 }
 0x287   : > { %v1092_v43 = vmul.f32 0.015625, %v1057_v38  ;;  %v1091_v8 = vmul.f32 0.015625, %v1054_v42  ;;  %v1122_v13 = vmul.f32 %v3003_v2, %v3003_v2  ;;  %v1121_v45 = vmul.f32 %v3006_v34, %v3006_v34 }
 0x289   : > { %v3014_v57 = vsub.f32 %v2921_v23, %v1092_v43  ;;  %v3017_v47 = vsub.f32 %v2911_v14, %v1091_v8  ;;  %v1146_v48 = vsel %vm818_vm0, %v1122_v13, 0.0  ;;  %v1143_v49 = vsel %vm818_vm0, %v1121_v45, 0.0  ;;  %v1292_v8 = vld [vmem:[%s3399_s7 + $0x10] sm:$0xff]  ;;  %v1293_v13 = vld [vmem:[%s3399_s7 + $0x18] sm:$0xff] }
 0x28a   : > { %v1063_v50 = vpop.xlane.xlu1 %1062  ;;  %1147 = vadd.xlane.f32.xlu1 %v1146_v48  ;;  %1144 = vadd.xlane.f32.xlu0 %v1143_v49  ;;  %v1060_v20 = vpop.xlane.xlu0 %1059  ;;  %v2298_v45 = vpack.c.bf16 %v1293_v13, %v1292_v8 }
 0x28b   : > { %v1094_v21 = vmul.f32 0.015625, %v1063_v50  ;;  %v1093_v54 = vmul.f32 0.015625, %v1060_v20  ;;  %v1124_v55 = vmul.f32 %v3014_v57, %v3014_v57  ;;  %v1123_v56 = vmul.f32 %v3017_v47, %v3017_v47 }
 0x28c   : > { %2299 = vmatprep.subr.bf16.mxu0 %v2298_v45  ;;  %2327 = vmatprep.subr.bf16.mxu1 %v2298_v45 }
 0x28d   : > { %v3026_v27 = vsub.f32 %v2933_v33, %v1094_v21  ;;  %v3029_v61 = vsub.f32 %v2926_v29, %v1093_v54  ;;  %v1152_v62 = vsel %vm818_vm0, %v1124_v55, 0.0  ;;  %v1149_v63 = vsel %vm818_vm0, %v1123_v56, 0.0  ;;  %2301 = vmatpush3.bf16.msra.mxu0 %v2298_v45  ;;  %2331 = vmatpush3.bf16.msra.mxu1 %v2298_v45 }
 0x28e   : > { %v1069_v37 = vpop.xlane.xlu1 %1068  ;;  %1153 = vadd.xlane.f32.xlu1 %v1152_v62  ;;  %1150 = vadd.xlane.f32.xlu0 %v1149_v63  ;;  %v1066_v36 = vpop.xlane.xlu0 %1065  ;;  %v1294_v62 = vld [vmem:[%s3399_s7 + $0x20] sm:$0xff]  ;;  %v1295_v63 = vld [vmem:[%s3399_s7 + $0x28] sm:$0xff] }
 0x28f   : > { %v1096_v5 = vmul.f32 0.015625, %v1069_v37  ;;  %v1095_v58 = vmul.f32 0.015625, %v1066_v36  ;;  %v1126_v6 = vmul.f32 %v3026_v27, %v3026_v27  ;;  %v1125_v7 = vmul.f32 %v3029_v61, %v3029_v61 }
 0x291   : > { %v3038_v40 = vsub.f32 %v2945_v44, %v1096_v5  ;;  %v3041_v10 = vsub.f32 %v2937_v41, %v1095_v58  ;;  %v1158_v11 = vsel %vm818_vm0, %v1126_v6, 0.0  ;;  %v1155_v39 = vsel %vm818_vm0, %v1125_v7, 0.0  ;;  %v1296_v7 = vld [vmem:[%s3399_s7 + $0x30] sm:$0xff] }
 0x292   : > { %v1075_v15 = vpop.xlane.xlu1 %1074  ;;  %1159 = vadd.xlane.f32.xlu1 %v1158_v11  ;;  %1156 = vadd.xlane.f32.xlu0 %v1155_v39  ;;  %v1072_v18 = vpop.xlane.xlu0 %1071  ;;  %v2302_v58 = vpack.c.bf16 %v1295_v63, %v1294_v62  ;;  %v1297_v11 = vld [vmem:[%s3399_s7 + $0x38] sm:$0xff] }
 0x293   : > { %v1098_v53 = vmul.f32 0.015625, %v1075_v15  ;;  %v1097_v19 = vmul.f32 0.015625, %v1072_v18  ;;  %v1128_v22 = vmul.f32 %v3038_v40, %v3038_v40  ;;  %v1127_v52 = vmul.f32 %v3041_v10, %v3041_v10 }
 0x294   : > { %2303 = vmatprep.subr.bf16.mxu0 %v2302_v58  ;;  %2328 = vmatprep.subr.bf16.mxu1 %v2302_v58  ;;  %v2306_v15 = vpack.c.bf16 %v1297_v11, %v1296_v7  ;;  %v3109_v7 = vld [vmem:[%s3398_s6] ss:$0 sm:$0xff] }
 0x295   : > { %v3050_v25 = vsub.f32 %v2957_v51, %v1098_v53  ;;  %v3053_v28 = vsub.f32 %v2947_v46, %v1097_v19  ;;  %v1164_v30 = vsel %vm818_vm0, %v1128_v22, 0.0  ;;  %v1161_v3 = vsel %vm818_vm0, %v1127_v52, 0.0  ;;  %2305 = vmatpush3.bf16.msra.mxu0 %v2302_v58  ;;  %2332 = vmatpush3.bf16.msra.mxu1 %v2302_v58 }
 0x296   : > { %v1081_v31 = vpop.xlane.xlu1 %1080  ;;  %1165 = vadd.xlane.f32.xlu1 %v1164_v30  ;;  %1162 = vadd.xlane.f32.xlu0 %v1161_v3  ;;  %v1078_v32 = vpop.xlane.xlu0 %1077 }
 0x297   : > { %v1100_v35 = vmul.f32 0.015625, %v1081_v31  ;;  %v1099_v38 = vmul.f32 0.015625, %v1078_v32  ;;  %v1130_v42 = vmul.f32 %v3050_v25, %v3050_v25  ;;  %v1129_v43 = vmul.f32 %v3053_v28, %v3053_v28  ;;  %2307 = vmatprep.subr.bf16.mxu0 %v2306_v15  ;;  %2329 = vmatprep.subr.bf16.mxu1 %v2306_v15 }
 0x299   : > { %v3068_v48 = vsub.f32 %v2969_v0, %v1100_v35  ;;  %v3071_v49 = vsub.f32 %v2962_v60, %v1099_v38  ;;  %v1170_v50 = vsel %vm818_vm0, %v1130_v42, 0.0  ;;  %v1167_v20 = vsel %vm818_vm0, %v1129_v43, 0.0  ;;  %2309 = vmatpush3.bf16.msra.mxu0 %v2306_v15  ;;  %2333 = vmatpush3.bf16.msra.mxu1 %v2306_v15 }
 0x29a   : > { %1171 = vadd.xlane.f32.xlu1 %v1170_v50  ;;  %1168 = vadd.xlane.f32.xlu0 %v1167_v20  ;;  %v1084_v21 = vpop.xlane.xlu0 %1083 }
 0x29b   : > { %v1101_v54 = vmul.f32 0.015625, %v1084_v21  ;;  %v1132_v55 = vmul.f32 %v3068_v48, %v3068_v48  ;;  %v1131_v56 = vmul.f32 %v3071_v49, %v3071_v49 }
 0x29d   : > { %v3086_v37 = vsub.f32 %v2971_v1, %v1101_v54  ;;  %v1176_v36 = vsel %vm818_vm0, %v1132_v55, 0.0  ;;  %v1173_v5 = vsel %vm818_vm0, %v1131_v56, 0.0  ;;  %v3102_v55 = vld [vmem:[%s3397_s5] ss:$0 sm:$0xff] }
 0x29e   : > { %1177 = vadd.xlane.f32.xlu1 %v1176_v36  ;;  %1174 = vadd.xlane.f32.xlu0 %v1173_v5 }
 0x29f   : > { %v1133_v6 = vmul.f32 %v3086_v37, %v3086_v37 }
 0x2a1   : > { %v1179_v39 = vsel %vm818_vm0, %v1133_v6, 0.0 }
 0x2a2   : > { %1180 = vadd.xlane.f32.xlu0 %v1179_v39 }
 0x30e   : > { %v1139_v18 = vpop.xlane.xlu0 %1138 }
 0x30f   : > { %v1183_v53 = vmul.f32 0.015625, %v1139_v18  ;;  %v1136_v19 = vpop.xlane.xlu1 %1135 }
 0x310   : > { %v1182_v22 = vmul.f32 0.015625, %v1136_v19 }
 0x311   : > { %v1199_v52 = vadd.f32 1e-05, %v1183_v53 }
 0x312   : > { %v1198_v30 = vadd.f32 1e-05, %v1182_v22 }
 0x313   : > { %2467 = vrsqrt.f32 %v1199_v52  ;;  %v1142_v3 = vpop.xlane.xlu1 %1141 }
 0x314   : > { %2469 = vrsqrt.f32 %v1198_v30  ;;  %v1184_v31 = vmul.f32 0.015625, %v1142_v3 }
 0x316   : > { %v1200_v32 = vadd.f32 1e-05, %v1184_v31 }
 0x317   : > { %v1148_v35 = vpop.xlane.xlu1 %1147  ;;  %v1145_v38 = vpop.xlane.xlu0 %1144 }
 0x318   : > { %2471 = vrsqrt.f32 %v1200_v32  ;;  %v1186_v42 = vmul.f32 0.015625, %v1148_v35  ;;  %v1185_v43 = vmul.f32 0.015625, %v1145_v38 }
 0x31a   : > { %v1202_v8 = vadd.f32 1e-05, %v1186_v42  ;;  %v1201_v13 = vadd.f32 1e-05, %v1185_v43 }
 0x31b   : > { %v1154_v45 = vpop.xlane.xlu1 %1153  ;;  %v1151_v50 = vpop.xlane.xlu0 %1150 }
 0x31c   : > { %2473 = vrsqrt.f32 %v1202_v8  ;;  %v1188_v20 = vmul.f32 0.015625, %v1154_v45  ;;  %v1187_v21 = vmul.f32 0.015625, %v1151_v50 }
 0x31d   : > { %v2468_v54 = vpop.eup %2467  ;;  %2475 = vrsqrt.f32 %v1201_v13 }
 0x31e   : > { %v2470_v56 = vpop.eup %2469  ;;  %v1231_v62 = vmul.f32 %v2468_v54, %v2986_v16  ;;  %v1204_v63 = vadd.f32 1e-05, %v1188_v20  ;;  %v1203_v36 = vadd.f32 1e-05, %v1187_v21 }
 0x31f   : > { %v1160_v5 = vpop.xlane.xlu1 %1159  ;;  %v1157_v58 = vpop.xlane.xlu0 %1156  ;;  %v1230_v6 = vmul.f32 %v2470_v56, %v2989_v17 }
 0x320   : > { %v1253_v11 = vmul.f32 %v3102_v55, %v1231_v62  ;;  %2477 = vrsqrt.f32 %v1204_v63  ;;  %v1190_v39 = vmul.f32 0.015625, %v1160_v5  ;;  %v1189_v15 = vmul.f32 0.015625, %v1157_v58 }
 0x321   : > { %2479 = vrsqrt.f32 %v1203_v36  ;;  %v1252_v18 = vmul.f32 %v3102_v55, %v1230_v6 }
 0x322   : > { %v2472_v16 = vpop.eup %2471  ;;  %v1206_v53 = vadd.f32 1e-05, %v1190_v39  ;;  %v1205_v19 = vadd.f32 1e-05, %v1189_v15  ;;  %v1275_v3 = vadd.f32 %v3109_v7, %v1253_v11 }
 0x323   : > { %v1166_v22 = vpop.xlane.xlu1 %1165  ;;  %v1163_v52 = vpop.xlane.xlu0 %1162  ;;  %v1274_v17 = vadd.f32 %v3109_v7, %v1252_v18  ;;  %v1232_v30 = vmul.f32 %v2472_v16, %v2997_v24 }
 0x324   : > { %2481 = vrsqrt.f32 %v1206_v53  ;;  %v1192_v31 = vmul.f32 0.015625, %v1166_v22  ;;  %v1191_v32 = vmul.f32 0.015625, %v1163_v52 }
 0x325   : > { %2483 = vrsqrt.f32 %v1205_v19  ;;  %2198 = vmatprep.mubr.msk.f32.mxu0 %vm818_vm0, %v1274_v17  ;;  %v1254_v35 = vmul.f32 %v3102_v55, %v1232_v30 }
 0x326   : > { %v2474_v38 = vpop.eup %2473  ;;  %v1208_v42 = vadd.f32 1e-05, %v1192_v31  ;;  %v1207_v43 = vadd.f32 1e-05, %v1191_v32  ;;  %2199 = vmatmul.mubr.msk.f32.vlgmr.msra.gmra.mrb[16].mxu0 %vm818_vm0, %v1275_v3 }
 0x327   : > { %v2476_v8 = vpop.eup %2475  ;;  %v1172_v13 = vpop.xlane.xlu1 %1171  ;;  %v1276_v24 = vadd.f32 %v3109_v7, %v1254_v35  ;;  %v1234_v50 = vmul.f32 %v2474_v38, %v3003_v2 }
 0x328   : > { %v1169_v45 = vpop.xlane.xlu0 %1168  ;;  %2485 = vrsqrt.f32 %v1208_v42  ;;  %v1194_v20 = vmul.f32 0.015625, %v1172_v13  ;;  %v1233_v54 = vmul.f32 %v2476_v8, %v3006_v34 }
 0x329   : > { %v1193_v21 = vmul.f32 0.015625, %v1169_v45  ;;  %2487 = vrsqrt.f32 %v1207_v43  ;;  %2201 = vmatprep.mubr.msk.f32.mxu0 %vm818_vm0, %v1276_v24  ;;  %v1256_v56 = vmul.f32 %v3102_v55, %v1234_v50 }
 0x32a   : > { %v2478_v62 = vpop.eup %2477  ;;  %v1210_v63 = vadd.f32 1e-05, %v1194_v20  ;;  %v1255_v5 = vmul.f32 %v3102_v55, %v1233_v54 }
 0x32b   : > { %v1209_v36 = vadd.f32 1e-05, %v1193_v21  ;;  %v2480_v58 = vpop.eup %2479  ;;  %v1178_v6 = vpop.xlane.xlu1 %1177  ;;  %v1278_v2 = vadd.f32 %v3109_v7, %v1256_v56  ;;  %v1236_v39 = vmul.f32 %v2478_v62, %v3014_v57 }
 0x32c   : > { %v1175_v11 = vpop.xlane.xlu0 %1174  ;;  %2489 = vrsqrt.f32 %v1210_v63  ;;  %v1196_v15 = vmul.f32 0.015625, %v1178_v6  ;;  %v1277_v18 = vadd.f32 %v3109_v7, %v1255_v5  ;;  %v1235_v16 = vmul.f32 %v2480_v58, %v3017_v47 }
 0x32d   : > { %v1195_v34 = vmul.f32 0.015625, %v1175_v11  ;;  %2491 = vrsqrt.f32 %v1209_v36  ;;  %2204 = vmatprep.mubr.msk.f32.mxu1 %vm818_vm0, %v1278_v2  ;;  %v1258_v53 = vmul.f32 %v3102_v55, %v1236_v39 }
 0x32e   : > { %v2482_v19 = vpop.eup %2481  ;;  %v1212_v22 = vadd.f32 1e-05, %v1196_v15  ;;  %2202 = vmatmul.mubr.msk.f32.gmra.mrb[18].mxu0 %vm818_vm0, %v1277_v18  ;;  %v1257_v57 = vmul.f32 %v3102_v55, %v1235_v16 }
 0x32f   : > { %v1211_v52 = vadd.f32 1e-05, %v1195_v34  ;;  %v2484_v17 = vpop.eup %2483  ;;  %v1238_v3 = vmul.f32 %v2482_v19, %v3026_v27  ;;  %v1280_v32 = vadd.f32 %v3109_v7, %v1258_v53  ;;  %v1643_v53 = vld [vmem:[%s3401_s9 + $0x8] sm:$0xff] }
 0x330   : > { %v1181_v30 = vpop.xlane.xlu0 %1180  ;;  %2493 = vrsqrt.f32 %v1212_v22  ;;  %v1237_v35 = vmul.f32 %v2484_v17, %v3029_v61  ;;  %v1279_v47 = vadd.f32 %v3109_v7, %v1257_v57  ;;  %v1647_v17 = vld [vmem:[%s3401_s9 + $0x28] sm:$0xff]  ;;  %v1648_v57 = vld [vmem:[%s3401_s9 + $0x30] sm:$0xff] }
 0x331   : > { %v1197_v31 = vmul.f32 0.015625, %v1181_v30  ;;  %2495 = vrsqrt.f32 %v1211_v52  ;;  %v1260_v38 = vmul.f32 %v3102_v55, %v1238_v3  ;;  %v1646_v52 = vld [vmem:[%s3401_s9 + $0x20] sm:$0xff]  ;;  %v1649_v3 = vld [vmem:[%s3401_s9 + $0x38] sm:$0xff] }
 0x332   : > { %v2486_v42 = vpop.eup %2485  ;;  %v1259_v8 = vmul.f32 %v3102_v55, %v1237_v35  ;;  %2205 = vmatmul.mubr.msk.f32.vlgmr.msra.gmra.mrb[0].mxu1 %vm818_vm0, %v1279_v47  ;;  %v2318_v30 = vpack.c.bf16 %v1647_v17, %v1646_v52 }
 0x333   : > { %v1213_v43 = vadd.f32 1e-05, %v1197_v31  ;;  %v2488_v13 = vpop.eup %2487  ;;  %v1240_v27 = vmul.f32 %v2486_v42, %v3038_v40  ;;  %2207 = vmatprep.mubr.msk.f32.mxu1 %vm818_vm0, %v1280_v32  ;;  %v1282_v61 = vadd.f32 %v3109_v7, %v1260_v38  ;;  %v2322_v31 = vpack.c.bf16 %v1649_v3, %v1648_v57  ;;  %v3200_v32 = vld [vmem:[%s3400_s8] ss:$0 sm:$0xff] }
 0x334   : > { %v1281_v45 = vadd.f32 %v3109_v7, %v1259_v8  ;;  %v1239_v24 = vmul.f32 %v2488_v13, %v3041_v10 }
 0x335   : > { %2497 = vrsqrt.f32 %v1213_v43  ;;  %v1262_v50 = vmul.f32 %v3102_v55, %v1240_v27 }
 0x336   : > { %v2490_v20 = vpop.eup %2489  ;;  %v1261_v21 = vmul.f32 %v3102_v55, %v1239_v24  ;;  %2208 = vmatmul.mubr.msk.f32.gmra.mrb[2].mxu1 %vm818_vm0, %v1281_v45 }
 0x337   : > { %v2492_v54 = vpop.eup %2491  ;;  %v1242_v56 = vmul.f32 %v2490_v20, %v3050_v25  ;;  %2210 = vmatprep.mubr.msk.f32.mxu1 %vm818_vm0, %v1282_v61  ;;  %v1284_v62 = vadd.f32 %v3109_v7, %v1262_v50 }
 0x338   : > { %v1283_v40 = vadd.f32 %v3109_v7, %v1261_v21  ;;  %v1241_v63 = vmul.f32 %v2492_v54, %v3053_v28 }
 0x339   : > { %v1264_v10 = vmul.f32 %v3102_v55, %v1242_v56 }
 0x33a   : > { %v2494_v36 = vpop.eup %2493  ;;  %v1263_v5 = vmul.f32 %v3102_v55, %v1241_v63  ;;  %2211 = vmatmul.mubr.msk.f32.gmra.mrb[4].mxu1 %vm818_vm0, %v1283_v40 }
 0x33b   : > { %v2496_v58 = vpop.eup %2495  ;;  %v1244_v6 = vmul.f32 %v2494_v36, %v3068_v48  ;;  %2213 = vmatprep.mubr.msk.f32.mxu1 %vm818_vm0, %v1284_v62  ;;  %v1286_v11 = vadd.f32 %v3109_v7, %v1264_v10 }
 0x33c   : > { %v1285_v25 = vadd.f32 %v3109_v7, %v1263_v5  ;;  %v1243_v2 = vmul.f32 %v2496_v58, %v3071_v49 }
 0x33d   : > { %v1266_v28 = vmul.f32 %v3102_v55, %v1244_v6 }
 0x33e   : > { %v1265_v15 = vmul.f32 %v3102_v55, %v1243_v2  ;;  %2214 = vmatmul.mubr.msk.f32.gmra.mrb[6].mxu1 %vm818_vm0, %v1285_v25 }
 0x33f   : > { %v2498_v39 = vpop.eup %2497  ;;  %2216 = vmatprep.mubr.msk.f32.mxu1 %vm818_vm0, %v1286_v11  ;;  %v1288_v18 = vadd.f32 %v3109_v7, %v1266_v28 }
 0x340   : > { %v1245_v34 = vmul.f32 %v2498_v39, %v3086_v37  ;;  %v1287_v48 = vadd.f32 %v3109_v7, %v1265_v15  ;;  %v1642_v37 = vld [vmem:[%s3401_s9] sm:$0xff] }
 0x341   : > { %v2310_v19 = vpack.c.bf16 %v1643_v53, %v1642_v37 }
 0x342   : > { %v1267_v16 = vmul.f32 %v3102_v55, %v1245_v34  ;;  %2217 = vmatmul.mubr.msk.f32.gmra.mrb[8].mxu1 %vm818_vm0, %v1287_v48  ;;  %v1644_v55 = vld [vmem:[%s3401_s9 + $0x10] sm:$0xff] }
 0x343   : > { %2219 = vmatprep.mubr.msk.f32.mxu1 %vm818_vm0, %v1288_v18  ;;  %2311 = vmatprep.subr.bf16.mxu1 %v2310_v19 }
 0x344   : > { %v1289_v49 = vadd.f32 %v3109_v7, %v1267_v16  ;;  %2313 = vmatpush3.bf16.msra.mxu1 %v2310_v19  ;;  %v1645_v7 = vld [vmem:[%s3401_s9 + $0x18] sm:$0xff] }
 0x345   : > { %v2314_v22 = vpack.c.bf16 %v1645_v7, %v1644_v55 }
 0x346   : > { %2220 = vmatmul.mubr.msk.f32.gmra.mrb[10].mxu1 %vm818_vm0, %v1289_v49 }
 0x347   : > { %2315 = vmatprep.subr.bf16.mxu1 %v2314_v22 }
 0x348   : > { %2317 = vmatpush3.bf16.msra.mxu1 %v2314_v22 }
 0x349   : > { %2319 = vmatprep.subr.bf16.mxu1 %v2318_v30 }
 0x34c   : > { %2321 = vmatpush3.bf16.msra.mxu1 %v2318_v30 }
 0x34d   : > { %2323 = vmatprep.subr.bf16.mxu1 %v2322_v31 }
 0x350   : > { %2325 = vmatpush3.bf16.msra.mxu1 %v2322_v31 }
 0x3f9   : > { %v2200_v35 = vpop.f32.mrb[16].mxu0 }
 0x3fa   : > { %v1425_v47 = vadd.f32 %v2200_v35, %v3200_v32  ;;  %v1419_v38 = vpop.f32.mrb[17].mxu0 }
 0x3fb   : > { %v1420_v42 = vadd.f32 %v3200_v32, %v1419_v38 }
 0x3fc   : > { %v1515_v43 = vmul.f32 0.044715, %v1425_v47  ;;  %v1499_v17 = vmul.f32 0.5, %v1425_v47 }
 0x3fd   : > { %v1514_v8 = vmul.f32 0.044715, %v1420_v42 }
 0x3fe   : > { %v1531_v13 = vmul.f32 %v1515_v43, %v1425_v47 }
 0x3ff   : > { %v1530_v27 = vmul.f32 %v1514_v8, %v1420_v42 }
 0x400   : > { %v1547_v45 = vmul.f32 %v1531_v13, %v1425_v47 }
 0x401   : > { %v1546_v61 = vmul.f32 %v1530_v27, %v1420_v42  ;;  %v2203_v24 = vpop.f32.mrb[18].mxu0 }
 0x402   : > { %v1563_v50 = vadd.f32 %v1547_v45, %v1425_v47  ;;  %v3205_v20 = vadd.f32 %v2203_v24, %v3200_v32  ;;  %v1429_v21 = vpop.f32.mrb[19].mxu0  ;;  %v1498_v45 = vmul.f32 0.5, %v1420_v42 }
 0x403   : > { %v1562_v54 = vadd.f32 %v1546_v61, %v1420_v42  ;;  %v3208_v56 = vadd.f32 %v3200_v32, %v1429_v21 }
 0x404   : > { %v1579_v40 = vmul.f32 0.7978846, %v1563_v50  ;;  %v1517_v62 = vmul.f32 0.044715, %v3205_v20 }
 0x405   : > { %v1516_v63 = vmul.f32 0.044715, %v3208_v56  ;;  %v1578_v10 = vmul.f32 0.7978846, %v1562_v54  ;;  %v2206_v5 = vpop.f32.mrb[0].mxu1 }
 0x406   : > { %2499 = vtanh.f32 %v1579_v40  ;;  %v1533_v36 = vmul.f32 %v1517_v62, %v3205_v20  ;;  %v3215_v6 = vadd.f32 %v2206_v5, %v3200_v32  ;;  %v1439_v25 = vpop.f32.mrb[1].mxu1 }
 0x407   : > { %v1532_v58 = vmul.f32 %v1516_v63, %v3208_v56  ;;  %2501 = vtanh.f32 %v1578_v10  ;;  %v3219_v2 = vadd.f32 %v3200_v32, %v1439_v25 }
 0x408   : > { %v1549_v11 = vmul.f32 %v1533_v36, %v3205_v20  ;;  %v1519_v39 = vmul.f32 0.044715, %v3215_v6 }
 0x409   : > { %v1548_v28 = vmul.f32 %v1532_v58, %v3208_v56  ;;  %v1518_v34 = vmul.f32 0.044715, %v3219_v2  ;;  %v2209_v48 = vpop.f32.mrb[2].mxu1 }
 0x40a   : > { %v1565_v15 = vadd.f32 %v1549_v11, %v3205_v20  ;;  %v1535_v16 = vmul.f32 %v1519_v39, %v3215_v6  ;;  %v3228_v49 = vadd.f32 %v2209_v48, %v3200_v32  ;;  %v1449_v37 = vpop.f32.mrb[3].mxu1 }
 0x40b   : > { %v1564_v18 = vadd.f32 %v1548_v28, %v3208_v56  ;;  %v1534_v53 = vmul.f32 %v1518_v34, %v3219_v2  ;;  %v3232_v19 = vadd.f32 %v3200_v32, %v1449_v37 }
 0x40c   : > { %v1581_v55 = vmul.f32 0.7978846, %v1565_v15  ;;  %v1551_v7 = vmul.f32 %v1535_v16, %v3215_v6  ;;  %v1521_v22 = vmul.f32 0.044715, %v3228_v49 }
 0x40d   : > { %v1580_v52 = vmul.f32 0.7978846, %v1564_v18  ;;  %v1550_v30 = vmul.f32 %v1534_v53, %v3219_v2  ;;  %v1520_v57 = vmul.f32 0.044715, %v3232_v19  ;;  %v2212_v3 = vpop.f32.mrb[4].mxu1 }
 0x40e   : > { %2503 = vtanh.f32 %v1581_v55  ;;  %v1567_v31 = vadd.f32 %v1551_v7, %v3215_v6  ;;  %v1537_v35 = vmul.f32 %v1521_v22, %v3228_v49  ;;  %v3241_v38 = vadd.f32 %v2212_v3, %v3200_v32  ;;  %v1459_v43 = vpop.f32.mrb[5].mxu1 }
 0x40f   : > { %2505 = vtanh.f32 %v1580_v52  ;;  %v1566_v13 = vadd.f32 %v1550_v30, %v3219_v2  ;;  %v1536_v47 = vmul.f32 %v1520_v57, %v3232_v19  ;;  %v3246_v27 = vadd.f32 %v3200_v32, %v1459_v43 }
 0x410   : > { %v2500_v8 = vpop.eup %2499  ;;  %v1553_v50 = vmul.f32 %v1537_v35, %v3228_v49  ;;  %v1523_v21 = vmul.f32 0.044715, %v3241_v38  ;;  %v1583_v54 = vmul.f32 0.7978846, %v1567_v31  ;;  %v1500_v30 = vmul.f32 0.5, %v3208_v56 }
 0x411   : > { %v2502_v61 = vpop.eup %2501  ;;  %v1611_v24 = vadd.f32 1.0, %v2500_v8  ;;  %v1552_v40 = vmul.f32 %v1536_v47, %v3232_v19  ;;  %v1522_v62 = vmul.f32 0.044715, %v3246_v27  ;;  %v2215_v63 = vpop.f32.mrb[6].mxu1  ;;  %v1582_v36 = vmul.f32 0.7978846, %v1566_v13 }
 0x412   : > { %v1610_v10 = vadd.f32 1.0, %v2502_v61  ;;  %v1569_v58 = vadd.f32 %v1553_v50, %v3228_v49  ;;  %v1539_v25 = vmul.f32 %v1523_v21, %v3241_v38  ;;  %v3255_v42 = vadd.f32 %v2215_v63, %v3200_v32  ;;  %v1469_v11 = vpop.f32.mrb[7].mxu1 }
 0x413   : > { %v1627_v5 = vmul.f32 %v1611_v24, %v1499_v17  ;;  %v1568_v28 = vadd.f32 %v1552_v40, %v3232_v19  ;;  %v1538_v39 = vmul.f32 %v1522_v62, %v3246_v27  ;;  %v3260_v15 = vadd.f32 %v3200_v32, %v1469_v11 }
 0x414   : > { %v1626_v34 = vmul.f32 %v1610_v10, %v1498_v45  ;;  %v1555_v48 = vmul.f32 %v1539_v25, %v3241_v38  ;;  %v1525_v18 = vmul.f32 0.044715, %v3255_v42  ;;  %2507 = vtanh.f32 %v1582_v36 }
 0x415   : > { %v1585_v16 = vmul.f32 0.7978846, %v1569_v58  ;;  %v1554_v37 = vmul.f32 %v1538_v39, %v3246_v27  ;;  %v1524_v53 = vmul.f32 0.044715, %v3260_v15  ;;  %v2218_v55 = vpop.f32.mrb[8].mxu1  ;;  %2509 = vtanh.f32 %v1583_v54 }
 0x416   : > { %2238 = vmatprep.mubr.msk.f32.mxu1 %vm818_vm0, %v1626_v34  ;;  %v1584_v7 = vmul.f32 0.7978846, %v1568_v28  ;;  %v1541_v22 = vmul.f32 %v1525_v18, %v3255_v42  ;;  %v3269_v52 = vadd.f32 %v2218_v55, %v3200_v32  ;;  %v1479_v17 = vpop.f32.mrb[9].mxu1  ;;  %v1571_v8 = vadd.f32 %v1555_v48, %v3241_v38 }
 0x417   : > { %2239 = vmatmul.mubr.msk.f32.vlgmr.msra.gmra.mrb[12].mxu1 %vm818_vm0, %v1627_v5  ;;  %2511 = vtanh.f32 %v1585_v16  ;;  %v1570_v3 = vadd.f32 %v1554_v37, %v3246_v27  ;;  %v1540_v31 = vmul.f32 %v1524_v53, %v3260_v15  ;;  %v3276_v35 = vadd.f32 %v3200_v32, %v1479_v17 }
 0x418   : > { %v2504_v57 = vpop.eup %2503  ;;  %2513 = vtanh.f32 %v1584_v7  ;;  %v1557_v13 = vmul.f32 %v1541_v22, %v3255_v42  ;;  %v1527_v47 = vmul.f32 0.044715, %v3269_v52  ;;  %v1501_v10 = vmul.f32 0.5, %v3205_v20 }
 0x419   : > { %v2506_v43 = vpop.eup %2505  ;;  %v1613_v45 = vadd.f32 1.0, %v2504_v57  ;;  %v1556_v56 = vmul.f32 %v1540_v31, %v3260_v15  ;;  %v1526_v61 = vmul.f32 0.044715, %v3276_v35  ;;  %v2221_v24 = vpop.f32.mrb[10].mxu1  ;;  %v1586_v21 = vmul.f32 0.7978846, %v1570_v3 }
 0x41a   : > { %v1612_v50 = vadd.f32 1.0, %v2506_v43  ;;  %v1573_v54 = vadd.f32 %v1557_v13, %v3255_v42  ;;  %v1543_v40 = vmul.f32 %v1527_v47, %v3269_v52  ;;  %v3286_v62 = vadd.f32 %v2221_v24, %v3200_v32  ;;  %v1489_v63 = vpop.f32.mrb[11].mxu1 }
 0x41b   : > { %v1572_v36 = vadd.f32 %v1556_v56, %v3260_v15  ;;  %v1542_v5 = vmul.f32 %v1526_v61, %v3276_v35  ;;  %v3292_v58 = vadd.f32 %v3200_v32, %v1489_v63  ;;  %v1629_v39 = vmul.f32 %v1613_v45, %v1501_v10 }
 0x41c   : > { %v1628_v25 = vmul.f32 %v1612_v50, %v1500_v30  ;;  %v1559_v11 = vmul.f32 %v1543_v40, %v3269_v52  ;;  %v1529_v28 = vmul.f32 0.044715, %v3286_v62  ;;  %2515 = vtanh.f32 %v1586_v21 }
 0x41d   : > { %v1558_v34 = vmul.f32 %v1542_v5, %v3276_v35  ;;  %v1528_v48 = vmul.f32 0.044715, %v3292_v58  ;;  %v1503_v20 = vmul.f32 0.5, %v3215_v6  ;;  %v1587_v18 = vmul.f32 0.7978846, %v1571_v8 }
 0x41e   : > { %2241 = vmatprep.mubr.msk.f32.mxu1 %vm818_vm0, %v1628_v25  ;;  %v2508_v16 = vpop.eup %2507  ;;  %v1575_v32 = vadd.f32 %v1559_v11, %v3269_v52  ;;  %v1545_v37 = vmul.f32 %v1529_v28, %v3286_v62  ;;  %v1502_v53 = vmul.f32 0.5, %v3219_v2  ;;  %v1588_v55 = vmul.f32 0.7978846, %v1572_v36 }
 0x41f   : > { %2242 = vmatmul.mubr.msk.f32.gmra.mrb[14].mxu1 %vm818_vm0, %v1629_v39  ;;  %v2510_v7 = vpop.eup %2509  ;;  %v1574_v22 = vadd.f32 %v1558_v34, %v3276_v35  ;;  %v1544_v17 = vmul.f32 %v1528_v48, %v3292_v58  ;;  %v1614_v30 = vadd.f32 1.0, %v2508_v16  ;;  %2517 = vtanh.f32 %v1587_v18 }
 0x420   : > { %v1561_v6 = vmul.f32 %v1545_v37, %v3286_v62  ;;  %v1615_v3 = vadd.f32 1.0, %v2510_v7  ;;  %2519 = vtanh.f32 %v1588_v55  ;;  %v1589_v31 = vmul.f32 0.7978846, %v1573_v54 }
 0x421   : > { %v2512_v57 = vpop.eup %2511  ;;  %v1560_v8 = vmul.f32 %v1544_v17, %v3292_v58  ;;  %v1630_v13 = vmul.f32 %v1614_v30, %v1502_v53  ;;  %v1504_v2 = vmul.f32 0.5, %v3232_v19  ;;  %v1590_v50 = vmul.f32 0.7978846, %v1574_v22 }
 0x422   : > { %v2514_v43 = vpop.eup %2513  ;;  %v1617_v47 = vadd.f32 1.0, %v2512_v57  ;;  %v1577_v45 = vadd.f32 %v1561_v6, %v3286_v62  ;;  %v1631_v56 = vmul.f32 %v1615_v3, %v1503_v20  ;;  %2521 = vtanh.f32 %v1589_v31 }
 0x423   : > { %v1616_v61 = vadd.f32 1.0, %v2514_v43  ;;  %v1576_v24 = vadd.f32 %v1560_v8, %v3292_v58  ;;  %2244 = vmatprep.mubr.msk.f32.mxu1 %vm818_vm0, %v1630_v13  ;;  %v1505_v54 = vmul.f32 0.5, %v3228_v49  ;;  %v1591_v40 = vmul.f32 0.7978846, %v1575_v32 }
 0x424   : > { %2245 = vmatmul.mubr.msk.f32.gmra.mrb[16].mxu1 %vm818_vm0, %v1631_v56  ;;  %2523 = vtanh.f32 %v1590_v50  ;;  %v1593_v19 = vmul.f32 0.7978846, %v1577_v45  ;;  %v1506_v5 = vmul.f32 0.5, %v3246_v27  ;;  %v1507_v49 = vmul.f32 0.5, %v3241_v38 }
 0x425   : > { %v1632_v21 = vmul.f32 %v1616_v61, %v1504_v2  ;;  %v1592_v63 = vmul.f32 0.7978846, %v1576_v24  ;;  %v1633_v36 = vmul.f32 %v1617_v47, %v1505_v54  ;;  %2525 = vtanh.f32 %v1591_v40 }
 0x426   : > { %v2516_v10 = vpop.eup %2515  ;;  %v1508_v48 = vmul.f32 0.5, %v3260_v15  ;;  %v1509_v37 = vmul.f32 0.5, %v3255_v42  ;;  %v1510_v38 = vmul.f32 0.5, %v3276_v35  ;;  %v1511_v6 = vmul.f32 0.5, %v3269_v52  ;;  %v2027_v52 = vld [vmem:[%s3402_s10] ss:$0 sm:$0xff] }
 0x427   : > { %2247 = vmatprep.mubr.msk.f32.mxu1 %vm818_vm0, %v1632_v21  ;;  %v1618_v25 = vadd.f32 1.0, %v2516_v10  ;;  %2527 = vtanh.f32 %v1592_v63  ;;  %v1512_v3 = vmul.f32 0.5, %v3292_v58  ;;  %v1513_v35 = vmul.f32 0.5, %v3286_v62 }
 0x428   : > { %2248 = vmatmul.mubr.msk.f32.gmra.mrb[18].mxu1 %vm818_vm0, %v1633_v36  ;;  %2529 = vtanh.f32 %v1593_v19 }
 0x429   : > { %v2518_v11 = vpop.eup %2517  ;;  %v1634_v28 = vmul.f32 %v1618_v25, %v1506_v5 }
 0x42a   : > { %v2520_v39 = vpop.eup %2519  ;;  %v1619_v34 = vadd.f32 1.0, %v2518_v11 }
 0x42b   : > { %2250 = vmatprep.mubr.msk.f32.mxu1 %vm818_vm0, %v1634_v28  ;;  %v1620_v20 = vadd.f32 1.0, %v2520_v39 }
 0x42c   : > { %v2522_v18 = vpop.eup %2521  ;;  %v1635_v16 = vmul.f32 %v1619_v34, %v1507_v49 }
 0x42d   : > { %v1636_v32 = vmul.f32 %v1620_v20, %v1508_v48  ;;  %v1621_v27 = vadd.f32 1.0, %v2522_v18 }
 0x42e   : > { %2251 = vmatmul.mubr.msk.f32.gmra.mrb[20].mxu1 %vm818_vm0, %v1635_v16  ;;  %v2524_v53 = vpop.eup %2523 }
 0x42f   : > { %2253 = vmatprep.mubr.msk.f32.mxu1 %vm818_vm0, %v1636_v32  ;;  %v2526_v55 = vpop.eup %2525  ;;  %v1637_v7 = vmul.f32 %v1621_v27, %v1509_v37  ;;  %v1622_v22 = vadd.f32 1.0, %v2524_v53 }
 0x430   : > { %v1623_v30 = vadd.f32 1.0, %v2526_v55 }
 0x431   : > { %v2528_v17 = vpop.eup %2527  ;;  %v1638_v57 = vmul.f32 %v1622_v22, %v1510_v38 }
 0x432   : > { %v2530_v15 = vpop.eup %2529  ;;  %2254 = vmatmul.mubr.msk.f32.gmra.mrb[22].mxu1 %vm818_vm0, %v1637_v7  ;;  %v1624_v42 = vadd.f32 1.0, %v2528_v17  ;;  %v1639_v31 = vmul.f32 %v1623_v30, %v1511_v6 }
 0x433   : > { %2256 = vmatprep.mubr.msk.f32.mxu1 %vm818_vm0, %v1638_v57  ;;  %v1625_v8 = vadd.f32 1.0, %v2530_v15 }
 0x434   : > { %v1640_v43 = vmul.f32 %v1624_v42, %v1512_v3 }
 0x435   : > { %v1641_v13 = vmul.f32 %v1625_v8, %v1513_v35 }
 0x436   : > { %2257 = vmatmul.mubr.msk.f32.gmra.mrb[24].mxu1 %vm818_vm0, %v1639_v31 }
 0x437   : > { %2259 = vmatprep.mubr.msk.f32.mxu1 %vm818_vm0, %v1640_v43 }
 0x43a   : > { %2260 = vmatmul.mubr.msk.f32.gmra.mrb[26].mxu1 %vm818_vm0, %v1641_v13 }
 0x4ea   : > { %v2240_v58 = vpop.f32.mrb[12].mxu1 }
 0x4eb   : > { %v1777_v2 = vadd.f32 %v2240_v58, %v2027_v52  ;;  %v1771_v47 = vpop.f32.mrb[13].mxu1 }
 0x4ec   : > { %v1772_v62 = vadd.f32 %v2027_v52, %v1771_v47 }
 0x4ed   : > { %v1851_v45 = vadd.f32 %v1777_v2, %v2887_v59 }
 0x4ee   : > { %v1850_v56 = vadd.f32 %v1772_v62, %v2889_v26 }
 0x4ef   : > { %1867 = vst.msk [vmem:[%s3339_s22 + $0x8] sm:$0xff] %vm818_vm0, %v1851_v45 }
 0x4f0   : > { %1866 = vst.msk [vmem:[%s3339_s22] sm:$0xff] %vm818_vm0, %v1850_v56 }
 0x4f2   : > { %v2243_v61 = vpop.f32.mrb[14].mxu1 }
 0x4f3   : > { %v1787_v24 = vadd.f32 %v2243_v61, %v2027_v52  ;;  %v1781_v50 = vpop.f32.mrb[15].mxu1 }
 0x4f4   : > { %v1782_v21 = vadd.f32 %v2027_v52, %v1781_v50 }
 0x4f5   : > { %v1853_v54 = vadd.f32 %v1787_v24, %v2903_v9 }
 0x4f6   : > { %v1852_v40 = vadd.f32 %v1782_v21, %v2899_v4 }
 0x4f7   : > { %1869 = vst.msk [vmem:[%s3339_s22 + $0x18] sm:$0xff] %vm818_vm0, %v1853_v54  ;;  %v2246_v59 = vpop.f32.mrb[16].mxu1 }
 0x4f8   : > { %1868 = vst.msk [vmem:[%s3339_s22 + $0x10] sm:$0xff] %vm818_vm0, %v1852_v40  ;;  %v1797_v26 = vadd.f32 %v2246_v59, %v2027_v52  ;;  %v1791_v63 = vpop.f32.mrb[17].mxu1 }
 0x4f9   : > { %v1792_v19 = vadd.f32 %v2027_v52, %v1791_v63 }
 0x4fa   : > { %v1855_v10 = vadd.f32 %v1797_v26, %v2911_v14 }
 0x4fb   : > { %v1854_v36 = vadd.f32 %v1792_v19, %v2909_v12  ;;  %v2249_v5 = vpop.f32.mrb[18].mxu1 }
 0x4fc   : > { %1871 = vst.msk [vmem:[%s3339_s22 + $0x28] sm:$0xff] %vm818_vm0, %v1855_v10  ;;  %v1807_v9 = vadd.f32 %v2249_v5, %v2027_v52  ;;  %v1801_v4 = vpop.f32.mrb[19].mxu1 }
 0x4fd   : > { %1870 = vst.msk [vmem:[%s3339_s22 + $0x20] sm:$0xff] %vm818_vm0, %v1854_v36  ;;  %v1802_v25 = vadd.f32 %v2027_v52, %v1801_v4 }
 0x4fe   : > { %v1857_v11 = vadd.f32 %v1807_v9, %v2926_v29 }
 0x4ff   : > { %v1856_v28 = vadd.f32 %v1802_v25, %v2921_v23 }
 0x500   : > { %1873 = vst.msk [vmem:[%s3339_s22 + $0x38] sm:$0xff] %vm818_vm0, %v1857_v11 }
 0x501   : > { %1872 = vst.msk [vmem:[%s3339_s22 + $0x30] sm:$0xff] %vm818_vm0, %v1856_v28  ;;  %v2252_v12 = vpop.f32.mrb[20].mxu1 }
 0x502   : > { %v1817_v14 = vadd.f32 %v2252_v12, %v2027_v52  ;;  %v1811_v39 = vpop.f32.mrb[21].mxu1 }
 0x503   : > { %v1812_v49 = vadd.f32 %v2027_v52, %v1811_v39 }
 0x504   : > { %v1859_v34 = vadd.f32 %v1817_v14, %v2937_v41 }
 0x505   : > { %v1858_v48 = vadd.f32 %v1812_v49, %v2933_v33  ;;  %v2255_v20 = vpop.f32.mrb[22].mxu1 }
 0x506   : > { %1875 = vst.msk [vmem:[%s3339_s22 + $0x48] sm:$0xff] %vm818_vm0, %v1859_v34  ;;  %v1827_v29 = vadd.f32 %v2255_v20, %v2027_v52  ;;  %v1821_v23 = vpop.f32.mrb[23].mxu1 }
 0x507   : > { %1874 = vst.msk [vmem:[%s3339_s22 + $0x40] sm:$0xff] %vm818_vm0, %v1858_v48  ;;  %v1822_v18 = vadd.f32 %v2027_v52, %v1821_v23 }
 0x508   : > { %v1861_v16 = vadd.f32 %v1827_v29, %v2947_v46 }
 0x509   : > { %v1860_v32 = vadd.f32 %v1822_v18, %v2945_v44  ;;  %v2258_v27 = vpop.f32.mrb[24].mxu1 }
 0x50a   : > { %1877 = vst.msk [vmem:[%s3339_s22 + $0x58] sm:$0xff] %vm818_vm0, %v1861_v16  ;;  %v1837_v33 = vadd.f32 %v2258_v27, %v2027_v52  ;;  %v1831_v41 = vpop.f32.mrb[25].mxu1 }
 0x50b   : > { %1876 = vst.msk [vmem:[%s3339_s22 + $0x50] sm:$0xff] %vm818_vm0, %v1860_v32  ;;  %v1832_v37 = vadd.f32 %v2027_v52, %v1831_v41 }
 0x50c   : > { %v1863_v53 = vadd.f32 %v1837_v33, %v2962_v60 }
 0x50d   : > { %v1862_v55 = vadd.f32 %v1832_v37, %v2957_v51  ;;  %v2261_v7 = vpop.f32.mrb[26].mxu1 }
 0x50e   : > { %1879 = vst.msk [vmem:[%s3339_s22 + $0x68] sm:$0xff] %vm818_vm0, %v1863_v53  ;;  %v1847_v46 = vadd.f32 %v2261_v7, %v2027_v52  ;;  %v1841_v38 = vpop.f32.mrb[27].mxu1 }
 0x50f   : > { %1878 = vst.msk [vmem:[%s3339_s22 + $0x60] sm:$0xff] %vm818_vm0, %v1862_v55  ;;  %v1842_v44 = vadd.f32 %v2027_v52, %v1841_v38 }
 0x510   : > { %v1865_v22 = vadd.f32 %v1847_v46, %v2971_v1 }
 0x511   : > { %v1864_v17 = vadd.f32 %v1842_v44, %v2969_v0 }
 0x512   : > { %1881 = vst.msk [vmem:[%s3339_s22 + $0x78] sm:$0xff] %vm818_vm0, %v1865_v22 }
 0x513   : > { %1880 = vst.msk [vmem:[%s3339_s22 + $0x70] sm:$0xff] %vm818_vm0, %v1864_v17 }
 0x514 PF: > { %s21_s17 = sadd.s32 1, %s2537_s17  }
 0x515   : > { %p18_p4 = scmp.ge.s32.totalorder %s21_s17, 4  }
 0x517   :  { %20 = sbr.rel (!%p18_p4) target bundleno = 1 (0x1), region = 100 }

// kernel: fwd.7
= control target key start
LH: loop header
LB: loop body
LE: loop exit
PB: predicated region body
PF: predicated region fallthrough
CT: control target
= control target key end

     0   :  { %s7053_s30 = smov 0   ;;  %s8526_s0 = inlined_call_operand.vmem [shape: s32[1,256], index: 0, kind: input, shape index: {}]   ;;  %s8527_s1 = inlined_call_operand.vmem [shape: f32[256,64], index: 1, kind: input, shape index: {}]   ;;  %s8528_s2 = inlined_call_operand.vmem [shape: f32[1,64], index: 2, kind: input, shape index: {}]   ;;  %s8529_s3 = inlined_call_operand.vmem [shape: f32[1,64], index: 3, kind: input, shape index: {}]   ;;  %s8530_s4 = inlined_call_operand.vmem [shape: f32[64,128], index: 4, kind: input, shape index: {}]   ;;  %s8531_s5 = inlined_call_operand.vmem [shape: f32[1,128], index: 5, kind: input, shape index: {}]   ;;  %s8532_s6 = inlined_call_operand.vmem [shape: f32[16,48], index: 6, kind: input, shape index: {}]   ;;  %s8533_s7 = inlined_call_operand.vmem [shape: f32[64,64], index: 7, kind: input, shape index: {}]   ;;  %s8534_s8 = inlined_call_operand.vmem [shape: f32[256,64], index: 8, kind: output, shape index: {0}]   ;;  %s8535_s9 = inlined_call_operand.vmem [shape: f32[128,64], index: 9, kind: output, shape index: {1}]  }
   0x1 LB: > { %s7059_s10 = sadd.s32 4294967295, %s6991_s30   ;;  %p5679_p0 = scmp.ge.s32.totalorder %s6991_s30, 1  ;;  %s6991_s30 = sphi %s7053_s30, %s20_s30  }
   0x2   : > { %p294_p1 = scmp.lt.s32.totalorder %s6991_s30, 3 }
   0x4   : > { %p295_p2 = pnand %p5679_p0, %p294_p1 }
   0x6   : > { %298 = sbr.rel (%p295_p2) target bundleno = 8269 (0x204d), region = 52 }
   0xd   : > { %p333_p3 = scmp.lt.s32.totalorder %s7059_s10, 1  ;;  %s5680_s11 = sshll.u32 %s7059_s10, 4 }
   0xe   : > { %p337_p4 = scmp.lt.s32.totalorder %s5680_s11, 31  ;;  %p5684_p5 = scmp.ne.s32.totalorder %s7059_s10, 0 }
   0xf   : > { %s7066_s12 = scalar_select %p333_p3, %s7059_s10, 1 }
  0x10   : > { %s8629_s11 = smov (!%p337_p4, %s5680_s11), 31  ;;  %351 = sbr.rel (%p5684_p5) target bundleno = 34 (0x22), region = 56 }
  0x11   : > { %s335_s15 = scalar_lea.vmem %s8526_s0, %s7066_s12  ;;  %s5681_s16 = sshll.u32 %s8629_s11, 3  ;;  %vm352_vm0 = vcmask (!%p5684_p5), 523264   ;;  %vm369_vm1 = vcmask (!%p5684_p5), 7168   ;;  %v6993_v0 = vmov (!%p5684_p5), 0.0  }
  0x12   : > { %s7075_s19 = scalar_lea.vmem %s8527_s1, %s5681_s16  ;;  %s7080_s22 = scalar_lea.vmem %s8534_s8, %s5681_s16  ;;  %353 = vst.msk [vmem:[#allocation2] sm:$0xff] (!%p5684_p5), %vm352_vm0, %v6993_v0  ;;  %354 = vst.msk [vmem:[#allocation2 + $0x8] sm:$0xff] (!%p5684_p5), %vm352_vm0, %v6993_v0 }
  0x13   : > { %355 = vst.msk [vmem:[#allocation2 + $0x10] sm:$0xff] (!%p5684_p5), %vm352_vm0, %v6993_v0  ;;  %356 = vst.msk [vmem:[#allocation2 + $0x18] sm:$0xff] (!%p5684_p5), %vm352_vm0, %v6993_v0 }
  0x14   : > { %357 = vst.msk [vmem:[#allocation2 + $0x20] sm:$0xff] (!%p5684_p5), %vm352_vm0, %v6993_v0  ;;  %358 = vst.msk [vmem:[#allocation2 + $0x28] sm:$0xff] (!%p5684_p5), %vm352_vm0, %v6993_v0 }
  0x15   : > { %359 = vst.msk [vmem:[#allocation2 + $0x30] sm:$0xff] (!%p5684_p5), %vm352_vm0, %v6993_v0  ;;  %360 = vst.msk [vmem:[#allocation2 + $0x38] sm:$0xff] (!%p5684_p5), %vm352_vm0, %v6993_v0 }
  0x16   : > { %361 = vst.msk [vmem:[#allocation2 + $0x40] sm:$0xff] (!%p5684_p5), %vm352_vm0, %v6993_v0  ;;  %362 = vst.msk [vmem:[#allocation2 + $0x48] sm:$0xff] (!%p5684_p5), %vm352_vm0, %v6993_v0 }
  0x17   : > { %363 = vst.msk [vmem:[#allocation2 + $0x50] sm:$0xff] %vm352_vm0, %v6993_v0  ;;  %364 = vst.msk [vmem:[#allocation2 + $0x58] sm:$0xff] %vm352_vm0, %v6993_v0 }
  0x18   : > { %365 = vst.msk [vmem:[#allocation2 + $0x60] sm:$0xff] %vm352_vm0, %v6993_v0  ;;  %366 = vst.msk [vmem:[#allocation2 + $0x68] sm:$0xff] %vm352_vm0, %v6993_v0 }
  0x19   : > { %367 = vst.msk [vmem:[#allocation2 + $0x70] sm:$0xff] %vm352_vm0, %v6993_v0  ;;  %368 = vst.msk [vmem:[#allocation2 + $0x78] sm:$0xff] %vm352_vm0, %v6993_v0 }
  0x1a   : > { %370 = vst.msk [vmem:[#allocation3] sm:$0xff] %vm369_vm1, %v6993_v0  ;;  %371 = vst.msk [vmem:[#allocation3 + $0x8] sm:$0xff] %vm369_vm1, %v6993_v0 }
  0x1b   : > { %372 = vst.msk [vmem:[#allocation3 + $0x10] sm:$0xff] %vm369_vm1, %v6993_v0  ;;  %373 = vst.msk [vmem:[#allocation3 + $0x18] sm:$0xff] %vm369_vm1, %v6993_v0 }
  0x1c   : > { %374 = vst.msk [vmem:[#allocation3 + $0x20] sm:$0xff] %vm369_vm1, %v6993_v0  ;;  %375 = vst.msk [vmem:[#allocation3 + $0x28] sm:$0xff] %vm369_vm1, %v6993_v0 }
  0x1d   : > { %376 = vst.msk [vmem:[#allocation3 + $0x30] sm:$0xff] %vm369_vm1, %v6993_v0  ;;  %377 = vst.msk [vmem:[#allocation3 + $0x38] sm:$0xff] %vm369_vm1, %v6993_v0 }
  0x1e   : > { %378 = vst.msk [vmem:[#allocation3 + $0x40] sm:$0xff] %vm369_vm1, %v6993_v0  ;;  %379 = vst.msk [vmem:[#allocation3 + $0x48] sm:$0xff] %vm369_vm1, %v6993_v0 }
  0x1f   : > { %380 = vst.msk [vmem:[#allocation3 + $0x50] sm:$0xff] %vm369_vm1, %v6993_v0  ;;  %381 = vst.msk [vmem:[#allocation3 + $0x58] sm:$0xff] %vm369_vm1, %v6993_v0 }
  0x20   : > { %382 = vst.msk [vmem:[#allocation3 + $0x60] sm:$0xff] %vm369_vm1, %v6993_v0  ;;  %383 = vst.msk [vmem:[#allocation3 + $0x68] sm:$0xff] %vm369_vm1, %v6993_v0 }
  0x21   : > { %384 = vst.msk [vmem:[#allocation3 + $0x70] sm:$0xff] %vm369_vm1, %v6993_v0  ;;  %385 = vst.msk [vmem:[#allocation3 + $0x78] sm:$0xff] %vm369_vm1, %v6993_v0 }
  0x22 PF: > { %v386_v1 = vld [vmem:[%s7075_s19] sm:$0xff]  ;;  %vm404_vm2 = vcmask 523264   ;;  %v388_v2 = vld [vmem:[%s7075_s19 + $0x10] sm:$0xff]  ;;  %v387_v3 = vld [vmem:[%s7075_s19 + $0x8] sm:$0xff]  ;;  %vm1108_vm3 = vcmask 786048   ;;  %vm866_vm4 = vcmask 654848  }
  0x23   : > { %v405_v4 = vsel %vm404_vm2, %v386_v1, 0.0  ;;  %v411_v5 = vsel %vm404_vm2, %v388_v2, 0.0  ;;  %v389_v6 = vld [vmem:[%s7075_s19 + $0x18] sm:$0xff]  ;;  %v408_v7 = vsel %vm404_vm2, %v387_v3, 0.0  ;;  %v390_v9 = vld [vmem:[%s7075_s19 + $0x20] sm:$0xff]  ;;  %v391_v10 = vld [vmem:[%s7075_s19 + $0x28] sm:$0xff] }
  0x24   : > { %406 = vadd.xlane.f32.xlu0 %v405_v4  ;;  %412 = vadd.xlane.f32.xlu1 %v411_v5  ;;  %v414_v8 = vsel %vm404_vm2, %v389_v6, 0.0  ;;  %v417_v11 = vsel %vm404_vm2, %v390_v9, 0.0  ;;  %v420_v12 = vsel %vm404_vm2, %v391_v10, 0.0  ;;  %v7128_v13 = vld [vmem:[%s7075_s19 + $0x30] sm:$0xff]  ;;  %v7131_v14 = vld [vmem:[%s7075_s19 + $0x38] sm:$0xff]  ;;  %v7138_v17 = vld [vmem:[%s7075_s19 + $0x40] sm:$0xff] }
  0x25   : > { %v423_v15 = vsel %vm404_vm2, %v7128_v13, 0.0  ;;  %v426_v16 = vsel %vm404_vm2, %v7131_v14, 0.0  ;;  %v7141_v18 = vld [vmem:[%s7075_s19 + $0x48] sm:$0xff]  ;;  %v429_v19 = vsel %vm404_vm2, %v7138_v17, 0.0  ;;  %v7148_v21 = vld [vmem:[%s7075_s19 + $0x50] sm:$0xff]  ;;  %v7151_v22 = vld [vmem:[%s7075_s19 + $0x58] sm:$0xff] }
  0x26   : > { %v432_v20 = vsel %vm404_vm2, %v7141_v18, 0.0  ;;  %v435_v23 = vsel %vm404_vm2, %v7148_v21, 0.0  ;;  %v438_v24 = vsel %vm404_vm2, %v7151_v22, 0.0  ;;  %v7158_v25 = vld [vmem:[%s7075_s19 + $0x60] sm:$0xff]  ;;  %v7161_v26 = vld [vmem:[%s7075_s19 + $0x68] sm:$0xff]  ;;  %v7168_v29 = vld [vmem:[%s7075_s19 + $0x70] sm:$0xff] }
  0x27   : > { %v441_v27 = vsel %vm404_vm2, %v7158_v25, 0.0  ;;  %v444_v28 = vsel %vm404_vm2, %v7161_v26, 0.0  ;;  %v7171_v30 = vld [vmem:[%s7075_s19 + $0x78] sm:$0xff]  ;;  %v447_v31 = vsel %vm404_vm2, %v7168_v29, 0.0  ;;  %vm1349_vm5 = vcmask 917248   ;;  %s6994_s29 = smov 64  }
  0x28   : > { %409 = vadd.xlane.f32.xlu0 %v408_v7  ;;  %415 = vadd.xlane.f32.xlu1 %v414_v8  ;;  %v450_v32 = vsel %vm404_vm2, %v7171_v30, 0.0  ;;  %vm1590_vm6 = vcmask 1048448   ;;  %s6995_s11 = smov 48   ;;  %s6996_s13 = smov 32   ;;  %vm1027_vm7 = vcmask 130048   ;;  %vm2103_vm8 = vcmask 261120  }
  0x29   : > { %s6997_s14 = smov 16   ;;  %vm2120_vm9 = vcmask 392192   ;;  %vm2477_vm12 = vcmask 7168   ;;  %p5706_p6 = scmp.ne.s32.totalorder %s7059_s10, 1 }
  0x2a   : > { %s7000_s18 = smov (!%p5706_p6), 112   ;;  %vm8241_vm13 = vmpackc.low (!%p5706_p6), %vm1027_vm7, %vm1027_vm7  ;;  %s7001_s19 = smov (!%p5706_p6), 96  }
  0x2c   : > { %418 = vadd.xlane.f32.xlu0 %v417_v11  ;;  %421 = vadd.xlane.f32.xlu1 %v420_v12 }
  0x30   : > { %424 = vadd.xlane.f32.xlu0 %v423_v15  ;;  %427 = vadd.xlane.f32.xlu1 %v426_v16 }
  0x34   : > { %430 = vadd.xlane.f32.xlu0 %v429_v19  ;;  %433 = vadd.xlane.f32.xlu1 %v432_v20 }
  0x38   : > { %436 = vadd.xlane.f32.xlu0 %v435_v23  ;;  %439 = vadd.xlane.f32.xlu1 %v438_v24 }
  0x3c   : > { %442 = vadd.xlane.f32.xlu0 %v441_v27  ;;  %445 = vadd.xlane.f32.xlu1 %v444_v28 }
  0x40   : > { %448 = vadd.xlane.f32.xlu0 %v447_v31  ;;  %451 = vadd.xlane.f32.xlu1 %v450_v32 }
  0xb1   : > { %v407_v33 = vpop.xlane.xlu0 %406  ;;  %v413_v34 = vpop.xlane.xlu1 %412 }
  0xb2   : > { %v454_v35 = vmul.f32 0.015625, %v407_v33  ;;  %v456_v36 = vmul.f32 0.015625, %v413_v34 }
  0xb4   : > { %v7177_v37 = vsub.f32 %v386_v1, %v454_v35  ;;  %v7179_v38 = vsub.f32 %v388_v2, %v456_v36 }
  0xb5   : > { %v410_v39 = vpop.xlane.xlu0 %409  ;;  %v416_v40 = vpop.xlane.xlu1 %415 }
  0xb6   : > { %v455_v41 = vmul.f32 0.015625, %v410_v39  ;;  %v457_v42 = vmul.f32 0.015625, %v416_v40  ;;  %v486_v43 = vmul.f32 %v7177_v37, %v7177_v37  ;;  %v488_v44 = vmul.f32 %v7179_v38, %v7179_v38 }
  0xb8   : > { %v7185_v45 = vsub.f32 %v387_v3, %v455_v41  ;;  %v7187_v46 = vsub.f32 %v389_v6, %v457_v42  ;;  %v502_v47 = vsel %vm404_vm2, %v486_v43, 0.0  ;;  %v508_v50 = vsel %vm404_vm2, %v488_v44, 0.0 }
  0xb9   : > { %503 = vadd.xlane.f32.xlu0 %v502_v47  ;;  %v419_v48 = vpop.xlane.xlu0 %418  ;;  %v422_v49 = vpop.xlane.xlu1 %421 }
  0xba   : > { %v458_v51 = vmul.f32 0.015625, %v419_v48  ;;  %v459_v52 = vmul.f32 0.015625, %v422_v49  ;;  %v487_v53 = vmul.f32 %v7185_v45, %v7185_v45  ;;  %v489_v54 = vmul.f32 %v7187_v46, %v7187_v46  ;;  %v659_v48 = vld [vmem:[%s8530_s4 + $0x8] sm:$0xff] }
  0xbc   : > { %v7195_v55 = vsub.f32 %v390_v9, %v458_v51  ;;  %v7197_v56 = vsub.f32 %v391_v10, %v459_v52  ;;  %v505_v57 = vsel %vm404_vm2, %v487_v53, 0.0  ;;  %v511_v60 = vsel %vm404_vm2, %v489_v54, 0.0 }
  0xbd   : > { %509 = vadd.xlane.f32.xlu0 %v508_v50  ;;  %506 = vadd.xlane.f32.xlu1 %v505_v57  ;;  %v425_v58 = vpop.xlane.xlu0 %424  ;;  %v428_v59 = vpop.xlane.xlu1 %427 }
  0xbe   : > { %v460_v61 = vmul.f32 0.015625, %v425_v58  ;;  %v461_v62 = vmul.f32 0.015625, %v428_v59  ;;  %v490_v63 = vmul.f32 %v7195_v55, %v7195_v55  ;;  %v491_v0 = vmul.f32 %v7197_v56, %v7197_v56 }
  0xc0   : > { %v7206_v1 = vsub.f32 %v7128_v13, %v460_v61  ;;  %v7209_v2 = vsub.f32 %v7131_v14, %v461_v62  ;;  %v514_v3 = vsel %vm404_vm2, %v490_v63, 0.0  ;;  %v517_v6 = vsel %vm404_vm2, %v491_v0, 0.0  ;;  %v662_v61 = vld [vmem:[%s8530_s4 + $0x20] sm:$0xff]  ;;  %v663_v62 = vld [vmem:[%s8530_s4 + $0x28] sm:$0xff]  ;;  %v664_v0 = vld [vmem:[%s8530_s4 + $0x30] sm:$0xff] }
  0xc1   : > { %512 = vadd.xlane.f32.xlu1 %v511_v60  ;;  %515 = vadd.xlane.f32.xlu0 %v514_v3  ;;  %v431_v4 = vpop.xlane.xlu0 %430  ;;  %v434_v5 = vpop.xlane.xlu1 %433  ;;  %v6301_v63 = vpack.c.bf16 %v663_v62, %v662_v61  ;;  %v665_v3 = vld [vmem:[%s8530_s4 + $0x38] sm:$0xff] }
  0xc2   : > { %v462_v7 = vmul.f32 0.015625, %v431_v4  ;;  %v463_v8 = vmul.f32 0.015625, %v434_v5  ;;  %v492_v9 = vmul.f32 %v7206_v1, %v7206_v1  ;;  %v493_v10 = vmul.f32 %v7209_v2, %v7209_v2 }
  0xc3   : > { %v6305_v4 = vpack.c.bf16 %v665_v3, %v664_v0 }
  0xc4   : > { %v7218_v11 = vsub.f32 %v7138_v17, %v462_v7  ;;  %v7221_v12 = vsub.f32 %v7141_v18, %v463_v8  ;;  %v520_v13 = vsel %vm404_vm2, %v492_v9, 0.0  ;;  %v523_v16 = vsel %vm404_vm2, %v493_v10, 0.0 }
  0xc5   : > { %518 = vadd.xlane.f32.xlu1 %v517_v6  ;;  %521 = vadd.xlane.f32.xlu0 %v520_v13  ;;  %v437_v14 = vpop.xlane.xlu0 %436  ;;  %v440_v15 = vpop.xlane.xlu1 %439 }
  0xc6   : > { %v464_v19 = vmul.f32 0.015625, %v437_v14  ;;  %v465_v20 = vmul.f32 0.015625, %v440_v15  ;;  %v494_v23 = vmul.f32 %v7218_v11, %v7218_v11  ;;  %v495_v17 = vmul.f32 %v7221_v12, %v7221_v12 }
  0xc8   : > { %v7230_v24 = vsub.f32 %v7148_v21, %v464_v19  ;;  %v7233_v18 = vsub.f32 %v7151_v22, %v465_v20  ;;  %v526_v27 = vsel %vm404_vm2, %v494_v23, 0.0  ;;  %v529_v32 = vsel %vm404_vm2, %v495_v17, 0.0 }
  0xc9   : > { %524 = vadd.xlane.f32.xlu1 %v523_v16  ;;  %527 = vadd.xlane.f32.xlu0 %v526_v27  ;;  %v443_v28 = vpop.xlane.xlu0 %442  ;;  %v446_v31 = vpop.xlane.xlu1 %445 }
  0xca   : > { %v466_v33 = vmul.f32 0.015625, %v443_v28  ;;  %v467_v34 = vmul.f32 0.015625, %v446_v31  ;;  %v496_v35 = vmul.f32 %v7230_v24, %v7230_v24  ;;  %v497_v21 = vmul.f32 %v7233_v18, %v7233_v18 }
  0xcc   : > { %v7242_v36 = vsub.f32 %v7158_v25, %v466_v33  ;;  %v7245_v22 = vsub.f32 %v7161_v26, %v467_v34  ;;  %v532_v39 = vsel %vm404_vm2, %v496_v35, 0.0  ;;  %v535_v42 = vsel %vm404_vm2, %v497_v21, 0.0  ;;  %v658_v26 = vld [vmem:[%s8530_s4] sm:$0xff] }
  0xcd   : > { %530 = vadd.xlane.f32.xlu1 %v529_v32  ;;  %533 = vadd.xlane.f32.xlu0 %v532_v39  ;;  %v449_v40 = vpop.xlane.xlu0 %448  ;;  %v452_v41 = vpop.xlane.xlu1 %451  ;;  %v6293_v49 = vpack.c.bf16 %v659_v48, %v658_v26  ;;  %v7294_v39 = vld [vmem:[%s8528_s2] ss:$0 sm:$0xff] }
  0xce   : > { %v468_v43 = vmul.f32 0.015625, %v449_v40  ;;  %v469_v44 = vmul.f32 0.015625, %v452_v41  ;;  %v498_v47 = vmul.f32 %v7242_v36, %v7242_v36  ;;  %v499_v25 = vmul.f32 %v7245_v22, %v7245_v22 }
  0xcf   : > { %6294 = vmatprep.subr.bf16.mxu0 %v6293_v49 }
  0xd0   : > { %v7260_v50 = vsub.f32 %v7168_v29, %v468_v43  ;;  %v7263_v51 = vsub.f32 %v7171_v30, %v469_v44  ;;  %v538_v52 = vsel %vm404_vm2, %v498_v47, 0.0  ;;  %v541_v53 = vsel %vm404_vm2, %v499_v25, 0.0  ;;  %v660_v29 = vld [vmem:[%s8530_s4 + $0x10] sm:$0xff]  ;;  %v661_v30 = vld [vmem:[%s8530_s4 + $0x18] sm:$0xff]  ;;  %6296 = vmatpush3.bf16.msra.mxu0 %v6293_v49  ;;  %v7300_v47 = vld [vmem:[%s8529_s3] ss:$0 sm:$0xff] }
  0xd1   : > { %536 = vadd.xlane.f32.xlu1 %v535_v42  ;;  %539 = vadd.xlane.f32.xlu0 %v538_v52  ;;  %v6297_v58 = vpack.c.bf16 %v661_v30, %v660_v29 }
  0xd2   : > { %v500_v54 = vmul.f32 %v7260_v50, %v7260_v50  ;;  %v501_v57 = vmul.f32 %v7263_v51, %v7263_v51 }
  0xd3   : > { %6298 = vmatprep.subr.bf16.mxu0 %v6297_v58 }
  0xd4   : > { %v544_v59 = vsel %vm404_vm2, %v500_v54, 0.0  ;;  %v547_v60 = vsel %vm404_vm2, %v501_v57, 0.0  ;;  %6300 = vmatpush3.bf16.msra.mxu0 %v6297_v58 }
  0xd5   : > { %542 = vadd.xlane.f32.xlu1 %v541_v53  ;;  %545 = vadd.xlane.f32.xlu0 %v544_v59 }
  0xd6   : > { %6302 = vmatprep.subr.bf16.mxu0 %v6301_v63 }
  0xd8   : > { %6304 = vmatpush3.bf16.msra.mxu0 %v6301_v63 }
  0xd9   : > { %548 = vadd.xlane.f32.xlu1 %v547_v60  ;;  %6306 = vmatprep.subr.bf16.mxu0 %v6305_v4 }
  0xdc   : > { %6308 = vmatpush3.bf16.msra.mxu0 %v6305_v4 }
 0x146   : > { %v504_v5 = vpop.xlane.xlu0 %503 }
 0x147   : > { %v550_v6 = vmul.f32 0.015625, %v504_v5 }
 0x149   : > { %v566_v7 = vadd.f32 1e-05, %v550_v6 }
 0x14a   : > { %v507_v8 = vpop.xlane.xlu1 %506  ;;  %v510_v9 = vpop.xlane.xlu0 %509 }
 0x14b   : > { %6519 = vrsqrt.f32 %v566_v7  ;;  %v551_v10 = vmul.f32 0.015625, %v507_v8  ;;  %v552_v13 = vmul.f32 0.015625, %v510_v9 }
 0x14d   : > { %v567_v14 = vadd.f32 1e-05, %v551_v10  ;;  %v568_v15 = vadd.f32 1e-05, %v552_v13 }
 0x14e   : > { %v513_v16 = vpop.xlane.xlu1 %512  ;;  %v516_v19 = vpop.xlane.xlu0 %515 }
 0x14f   : > { %6521 = vrsqrt.f32 %v567_v14  ;;  %v553_v20 = vmul.f32 0.015625, %v513_v16  ;;  %v554_v23 = vmul.f32 0.015625, %v516_v19 }
 0x150   : > { %6523 = vrsqrt.f32 %v568_v15 }
 0x151   : > { %v569_v17 = vadd.f32 1e-05, %v553_v20  ;;  %v570_v27 = vadd.f32 1e-05, %v554_v23 }
 0x152   : > { %v519_v28 = vpop.xlane.xlu1 %518  ;;  %v522_v31 = vpop.xlane.xlu0 %521 }
 0x153   : > { %6525 = vrsqrt.f32 %v569_v17  ;;  %v555_v32 = vmul.f32 0.015625, %v519_v28  ;;  %v556_v33 = vmul.f32 0.015625, %v522_v31 }
 0x154   : > { %6527 = vrsqrt.f32 %v570_v27 }
 0x155   : > { %v6520_v34 = vpop.eup %6519  ;;  %v571_v35 = vadd.f32 1e-05, %v555_v32  ;;  %v572_v21 = vadd.f32 1e-05, %v556_v33 }
 0x156   : > { %v525_v40 = vpop.xlane.xlu1 %524  ;;  %v528_v41 = vpop.xlane.xlu0 %527  ;;  %v598_v42 = vmul.f32 %v6520_v34, %v7177_v37 }
 0x157   : > { %6529 = vrsqrt.f32 %v571_v35  ;;  %v557_v43 = vmul.f32 0.015625, %v525_v40  ;;  %v558_v44 = vmul.f32 0.015625, %v528_v41 }
 0x158   : > { %6531 = vrsqrt.f32 %v572_v21  ;;  %v620_v25 = vmul.f32 %v7294_v39, %v598_v42 }
 0x159   : > { %v6522_v26 = vpop.eup %6521  ;;  %v573_v48 = vadd.f32 1e-05, %v557_v43  ;;  %v574_v49 = vadd.f32 1e-05, %v558_v44 }
 0x15a   : > { %v6524_v52 = vpop.eup %6523  ;;  %v531_v53 = vpop.xlane.xlu1 %530  ;;  %v642_v57 = vadd.f32 %v7300_v47, %v620_v25  ;;  %v599_v37 = vmul.f32 %v6522_v26, %v7185_v45 }
 0x15b   : > { %v534_v54 = vpop.xlane.xlu0 %533  ;;  %6533 = vrsqrt.f32 %v573_v48  ;;  %v559_v29 = vmul.f32 0.015625, %v531_v53  ;;  %v600_v58 = vmul.f32 %v6524_v52, %v7179_v38 }
 0x15c   : > { %v560_v30 = vmul.f32 0.015625, %v534_v54  ;;  %6535 = vrsqrt.f32 %v574_v49  ;;  %5989 = vmatprep.mubr.msk.f32.mxu0 %vm404_vm2, %v642_v57  ;;  %v621_v59 = vmul.f32 %v7294_v39, %v599_v37 }
 0x15d   : > { %v6526_v60 = vpop.eup %6525  ;;  %v575_v61 = vadd.f32 1e-05, %v559_v29  ;;  %v622_v63 = vmul.f32 %v7294_v39, %v600_v58 }
 0x15e   : > { %v576_v62 = vadd.f32 1e-05, %v560_v30  ;;  %v6528_v0 = vpop.eup %6527  ;;  %v537_v3 = vpop.xlane.xlu1 %536  ;;  %v643_v45 = vadd.f32 %v7300_v47, %v621_v59  ;;  %v601_v5 = vmul.f32 %v6526_v60, %v7187_v46 }
 0x15f   : > { %v540_v4 = vpop.xlane.xlu0 %539  ;;  %6537 = vrsqrt.f32 %v575_v61  ;;  %v561_v6 = vmul.f32 0.015625, %v537_v3  ;;  %v644_v7 = vadd.f32 %v7300_v47, %v622_v63  ;;  %v602_v9 = vmul.f32 %v6528_v0, %v7195_v55 }
 0x160   : > { %v562_v38 = vmul.f32 0.015625, %v540_v4  ;;  %6539 = vrsqrt.f32 %v576_v62  ;;  %5990 = vmatmul.mubr.msk.f32.vlgmr.msra.gmra.mrb[0].mxu0 %vm404_vm2, %v643_v45  ;;  %v623_v8 = vmul.f32 %v7294_v39, %v601_v5 }
 0x161   : > { %v6530_v10 = vpop.eup %6529  ;;  %v577_v13 = vadd.f32 1e-05, %v561_v6  ;;  %5992 = vmatprep.mubr.msk.f32.mxu0 %vm404_vm2, %v644_v7  ;;  %v624_v20 = vmul.f32 %v7294_v39, %v602_v9  ;;  %v7368_v7 = vld [vmem:[%s8531_s5] ss:$0 sm:$0xff] }
 0x162   : > { %v578_v14 = vadd.f32 1e-05, %v562_v38  ;;  %v6532_v15 = vpop.eup %6531  ;;  %v543_v16 = vpop.xlane.xlu1 %542  ;;  %v645_v19 = vadd.f32 %v7300_v47, %v623_v8  ;;  %v603_v23 = vmul.f32 %v6530_v10, %v7197_v56 }
 0x163   : > { %v546_v46 = vpop.xlane.xlu0 %545  ;;  %6541 = vrsqrt.f32 %v577_v13  ;;  %v563_v17 = vmul.f32 0.015625, %v543_v16  ;;  %v604_v28 = vmul.f32 %v6532_v15, %v7206_v1  ;;  %v646_v55 = vadd.f32 %v7300_v47, %v624_v20 }
 0x164   : > { %v564_v27 = vmul.f32 0.015625, %v546_v46  ;;  %6543 = vrsqrt.f32 %v578_v14  ;;  %5993 = vmatmul.mubr.msk.f32.gmra.mrb[2].mxu0 %vm404_vm2, %v645_v19  ;;  %v625_v31 = vmul.f32 %v7294_v39, %v603_v23 }
 0x165   : > { %v6534_v32 = vpop.eup %6533  ;;  %v579_v33 = vadd.f32 1e-05, %v563_v17  ;;  %v626_v35 = vmul.f32 %v7294_v39, %v604_v28  ;;  %5995 = vmatprep.mubr.msk.f32.mxu0 %vm404_vm2, %v646_v55 }
 0x166   : > { %v580_v34 = vadd.f32 1e-05, %v564_v27  ;;  %v6536_v21 = vpop.eup %6535  ;;  %v549_v56 = vpop.xlane.xlu1 %548  ;;  %v647_v40 = vadd.f32 %v7300_v47, %v625_v31  ;;  %v605_v1 = vmul.f32 %v6534_v32, %v7209_v2 }
 0x167   : > { %6545 = vrsqrt.f32 %v579_v33  ;;  %v565_v41 = vmul.f32 0.015625, %v549_v56  ;;  %v648_v42 = vadd.f32 %v7300_v47, %v626_v35  ;;  %v606_v43 = vmul.f32 %v6536_v21, %v7218_v11 }
 0x168   : > { %6547 = vrsqrt.f32 %v580_v34  ;;  %5996 = vmatmul.mubr.msk.f32.gmra.mrb[4].mxu0 %vm404_vm2, %v647_v40  ;;  %v627_v44 = vmul.f32 %v7294_v39, %v605_v1 }
 0x169   : > { %v6538_v25 = vpop.eup %6537  ;;  %v581_v26 = vadd.f32 1e-05, %v565_v41  ;;  %5998 = vmatprep.mubr.msk.f32.mxu0 %vm404_vm2, %v648_v42  ;;  %v628_v48 = vmul.f32 %v7294_v39, %v606_v43 }
 0x16a   : > { %v6540_v49 = vpop.eup %6539  ;;  %v649_v2 = vadd.f32 %v7300_v47, %v627_v44  ;;  %v607_v52 = vmul.f32 %v6538_v25, %v7221_v12 }
 0x16b   : > { %6549 = vrsqrt.f32 %v581_v26  ;;  %v650_v53 = vadd.f32 %v7300_v47, %v628_v48  ;;  %v608_v11 = vmul.f32 %v6540_v49, %v7230_v24 }
 0x16c   : > { %5999 = vmatmul.mubr.msk.f32.gmra.mrb[6].mxu0 %vm404_vm2, %v649_v2  ;;  %v629_v54 = vmul.f32 %v7294_v39, %v607_v52 }
 0x16d   : > { %v6542_v57 = vpop.eup %6541  ;;  %6001 = vmatprep.mubr.msk.f32.mxu0 %vm404_vm2, %v650_v53  ;;  %v630_v37 = vmul.f32 %v7294_v39, %v608_v11 }
 0x16e   : > { %v6544_v29 = vpop.eup %6543  ;;  %v651_v30 = vadd.f32 %v7300_v47, %v629_v54  ;;  %v609_v58 = vmul.f32 %v6542_v57, %v7233_v18 }
 0x16f   : > { %v652_v12 = vadd.f32 %v7300_v47, %v630_v37  ;;  %v610_v59 = vmul.f32 %v6544_v29, %v7242_v36 }
 0x170   : > { %6002 = vmatmul.mubr.msk.f32.gmra.mrb[8].mxu0 %vm404_vm2, %v651_v30  ;;  %v631_v24 = vmul.f32 %v7294_v39, %v609_v58 }
 0x171   : > { %v6546_v60 = vpop.eup %6545  ;;  %6004 = vmatprep.mubr.msk.f32.mxu0 %vm404_vm2, %v652_v12  ;;  %v632_v61 = vmul.f32 %v7294_v39, %v610_v59 }
 0x172   : > { %v6548_v62 = vpop.eup %6547  ;;  %v653_v63 = vadd.f32 %v7300_v47, %v631_v24  ;;  %v611_v0 = vmul.f32 %v6546_v60, %v7245_v22 }
 0x173   : > { %v654_v18 = vadd.f32 %v7300_v47, %v632_v61  ;;  %v612_v3 = vmul.f32 %v6548_v62, %v7260_v50 }
 0x174   : > { %6005 = vmatmul.mubr.msk.f32.gmra.mrb[10].mxu0 %vm404_vm2, %v653_v63  ;;  %v633_v36 = vmul.f32 %v7294_v39, %v611_v0 }
 0x175   : > { %v6550_v4 = vpop.eup %6549  ;;  %6007 = vmatprep.mubr.msk.f32.mxu0 %vm404_vm2, %v654_v18  ;;  %v634_v45 = vmul.f32 %v7294_v39, %v612_v3 }
 0x176   : > { %v655_v5 = vadd.f32 %v7300_v47, %v633_v36  ;;  %v613_v6 = vmul.f32 %v6550_v4, %v7263_v51 }
 0x177   : > { %v656_v38 = vadd.f32 %v7300_v47, %v634_v45 }
 0x178   : > { %6008 = vmatmul.mubr.msk.f32.gmra.mrb[12].mxu0 %vm404_vm2, %v655_v5  ;;  %v635_v22 = vmul.f32 %v7294_v39, %v613_v6 }
 0x179   : > { %6010 = vmatprep.mubr.msk.f32.mxu0 %vm404_vm2, %v656_v38 }
 0x17a   : > { %v657_v50 = vadd.f32 %v7300_v47, %v635_v22 }
 0x17c   : > { %6011 = vmatmul.mubr.msk.f32.gmra.mrb[14].mxu0 %vm404_vm2, %v657_v50 }
 0x233   : > { %v5991_v8 = vpop.f32.mrb[0].mxu0 }
 0x234   : > { %v7371_v51 = vadd.f32 %v5991_v8, %v7368_v7  ;;  %v787_v9 = vpop.f32.mrb[1].mxu0 }
 0x235   : > { %v7374_v39 = vadd.f32 %v7368_v7, %v787_v9 }
 0x236   : > { %v1112_v47 = vsel %vm1108_vm3, %v7371_v51, -inf  ;;  %v870_v10 = vsel %vm866_vm4, %v7371_v51, -inf  ;;  %v1353_v19 = vsel %vm1349_vm5, %v7371_v51, -inf  ;;  %v1594_v31 = vsel %vm1590_vm6, %v7371_v51, -inf }
 0x237   : > { %1113 = vmax.xlane.f32.xlu0 %v1112_v47  ;;  %871 = vmax.xlane.f32.xlu1 %v870_v10  ;;  %v5994_v13 = vpop.f32.mrb[2].mxu0  ;;  %v6309_v14 = vpack.c.bf16 %v7371_v51, %v7374_v39  ;;  %v1350_v20 = vsel %vm1349_vm5, %v7374_v39, -inf  ;;  %v1591_v32 = vsel %vm1590_vm6, %v7374_v39, -inf  ;;  %v867_v40 = vsel %vm866_vm4, %v7374_v39, -inf }
 0x238   : > { %v7383_v15 = vadd.f32 %v5994_v13, %v7368_v7  ;;  %v797_v16 = vpop.f32.mrb[3].mxu0  ;;  %v1109_v26 = vsel %vm1108_vm3, %v7374_v39, -inf }
 0x239   : > { %v7386_v46 = vadd.f32 %v7368_v7, %v797_v16  ;;  %6310 = vmatprep.subr.bf16.mxu0 %v6309_v14  ;;  %6485 = vmatprep.subr.bf16.mxu1 %v6309_v14 }
 0x23a   : > { %6312 = vmatpush3.bf16.msra.mxu0 %v6309_v14  ;;  %6493 = vmatpush3.bf16.msra.mxu1 %v6309_v14  ;;  %v876_v1 = vsel %vm866_vm4, %v7383_v15, -inf  ;;  %v1118_v54 = vsel %vm1108_vm3, %v7383_v15, -inf  ;;  %v1359_v59 = vsel %vm1349_vm5, %v7383_v15, -inf  ;;  %v1600_v18 = vsel %vm1590_vm6, %v7383_v15, -inf }
 0x23b   : > { %1354 = vmax.xlane.f32.xlu0 %v1353_v19  ;;  %1351 = vmax.xlane.f32.xlu1 %v1350_v20  ;;  %v5997_v23 = vpop.f32.mrb[4].mxu0  ;;  %v6313_v17 = vpack.c.bf16 %v7383_v15, %v7386_v46  ;;  %v1115_v48 = vsel %vm1108_vm3, %v7386_v46, -inf  ;;  %v1356_v57 = vsel %vm1349_vm5, %v7386_v46, -inf  ;;  %v1597_v24 = vsel %vm1590_vm6, %v7386_v46, -inf }
 0x23c   : > { %v7395_v27 = vadd.f32 %v5997_v23, %v7368_v7  ;;  %v807_v28 = vpop.f32.mrb[5].mxu0  ;;  %v873_v4 = vsel %vm866_vm4, %v7386_v46, -inf }
 0x23d   : > { %v7398_v55 = vadd.f32 %v7368_v7, %v807_v28  ;;  %6314 = vmatprep.subr.bf16.mxu0 %v6313_v17  ;;  %6486 = vmatprep.subr.bf16.mxu1 %v6313_v17 }
 0x23e   : > { %6316 = vmatpush3.bf16.msra.mxu0 %v6313_v17  ;;  %6494 = vmatpush3.bf16.msra.mxu1 %v6313_v17  ;;  %v882_v3 = vsel %vm866_vm4, %v7395_v27, -inf  ;;  %v1124_v5 = vsel %vm1108_vm3, %v7395_v27, -inf  ;;  %v1365_v38 = vsel %vm1349_vm5, %v7395_v27, -inf  ;;  %v1606_v50 = vsel %vm1590_vm6, %v7395_v27, -inf }
 0x23f   : > { %1595 = vmax.xlane.f32.xlu0 %v1594_v31  ;;  %1592 = vmax.xlane.f32.xlu1 %v1591_v32  ;;  %v6000_v33 = vpop.f32.mrb[6].mxu0  ;;  %v6317_v34 = vpack.c.bf16 %v7395_v27, %v7398_v55  ;;  %v1121_v45 = vsel %vm1108_vm3, %v7398_v55, -inf  ;;  %v1362_v6 = vsel %vm1349_vm5, %v7398_v55, -inf  ;;  %v1603_v22 = vsel %vm1590_vm6, %v7398_v55, -inf }
 0x240   : > { %v7407_v35 = vadd.f32 %v6000_v33, %v7368_v7  ;;  %v817_v21 = vpop.f32.mrb[7].mxu0  ;;  %v879_v8 = vsel %vm866_vm4, %v7398_v55, -inf }
 0x241   : > { %v7410_v56 = vadd.f32 %v7368_v7, %v817_v21  ;;  %6318 = vmatprep.subr.bf16.mxu0 %v6317_v34  ;;  %6487 = vmatprep.subr.bf16.mxu1 %v6317_v34 }
 0x242   : > { %6320 = vmatpush3.bf16.msra.mxu0 %v6317_v34  ;;  %6495 = vmatpush3.bf16.msra.mxu1 %v6317_v34  ;;  %v1130_v47 = vsel %vm1108_vm3, %v7407_v35, -inf  ;;  %v1371_v13 = vsel %vm1349_vm5, %v7407_v35, -inf  ;;  %v1612_v16 = vsel %vm1590_vm6, %v7407_v35, -inf }
 0x243   : > { %868 = vmax.xlane.f32.xlu0 %v867_v40  ;;  %877 = vmax.xlane.f32.xlu1 %v876_v1  ;;  %v6003_v41 = vpop.f32.mrb[8].mxu0  ;;  %v6321_v42 = vpack.c.bf16 %v7407_v35, %v7410_v56  ;;  %v1127_v9 = vsel %vm1108_vm3, %v7410_v56, -inf  ;;  %v1368_v10 = vsel %vm1349_vm5, %v7410_v56, -inf  ;;  %v1609_v14 = vsel %vm1590_vm6, %v7410_v56, -inf }
 0x244   : > { %v7419_v43 = vadd.f32 %v6003_v41, %v7368_v7  ;;  %v827_v44 = vpop.f32.mrb[9].mxu0  ;;  %v885_v20 = vsel %vm866_vm4, %v7410_v56, -inf }
 0x245   : > { %v7422_v25 = vadd.f32 %v7368_v7, %v827_v44  ;;  %6322 = vmatprep.subr.bf16.mxu0 %v6321_v42  ;;  %6488 = vmatprep.subr.bf16.mxu1 %v6321_v42 }
 0x246   : > { %6324 = vmatpush3.bf16.msra.mxu0 %v6321_v42  ;;  %6496 = vmatpush3.bf16.msra.mxu1 %v6321_v42  ;;  %v894_v19 = vsel %vm866_vm4, %v7419_v43, -inf  ;;  %v1136_v17 = vsel %vm1108_vm3, %v7419_v43, -inf  ;;  %v1377_v31 = vsel %vm1349_vm5, %v7419_v43, -inf  ;;  %v1618_v33 = vsel %vm1590_vm6, %v7419_v43, -inf }
 0x247   : > { %1110 = vmax.xlane.f32.xlu0 %v1109_v26  ;;  %1116 = vmax.xlane.f32.xlu1 %v1115_v48  ;;  %v6006_v49 = vpop.f32.mrb[10].mxu0  ;;  %v6325_v2 = vpack.c.bf16 %v7419_v43, %v7422_v25  ;;  %v1133_v23 = vsel %vm1108_vm3, %v7422_v25, -inf  ;;  %v1374_v28 = vsel %vm1349_vm5, %v7422_v25, -inf  ;;  %v1615_v32 = vsel %vm1590_vm6, %v7422_v25, -inf }
 0x248   : > { %v7431_v52 = vadd.f32 %v6006_v49, %v7368_v7  ;;  %v837_v53 = vpop.f32.mrb[11].mxu0  ;;  %v891_v21 = vsel %vm866_vm4, %v7422_v25, -inf }
 0x249   : > { %v7434_v11 = vadd.f32 %v7368_v7, %v837_v53  ;;  %6326 = vmatprep.subr.bf16.mxu0 %v6325_v2  ;;  %6489 = vmatprep.subr.bf16.mxu1 %v6325_v2 }
 0x24a   : > { %6328 = vmatpush3.bf16.msra.mxu0 %v6325_v2  ;;  %6497 = vmatpush3.bf16.msra.mxu1 %v6325_v2  ;;  %v900_v34 = vsel %vm866_vm4, %v7431_v52, -inf  ;;  %v1142_v1 = vsel %vm1108_vm3, %v7431_v52, -inf  ;;  %v1383_v42 = vsel %vm1349_vm5, %v7431_v52, -inf  ;;  %v1624_v26 = vsel %vm1590_vm6, %v7431_v52, -inf }
 0x24b   : > { %1119 = vmax.xlane.f32.xlu0 %v1118_v54  ;;  %1357 = vmax.xlane.f32.xlu1 %v1356_v57  ;;  %v6009_v37 = vpop.f32.mrb[12].mxu0  ;;  %v6329_v29 = vpack.c.bf16 %v7431_v52, %v7434_v11  ;;  %v1139_v40 = vsel %vm1108_vm3, %v7434_v11, -inf  ;;  %v1380_v41 = vsel %vm1349_vm5, %v7434_v11, -inf  ;;  %v1621_v44 = vsel %vm1590_vm6, %v7434_v11, -inf }
 0x24c   : > { %v7443_v30 = vadd.f32 %v6009_v37, %v7368_v7  ;;  %v847_v58 = vpop.f32.mrb[13].mxu0  ;;  %v897_v49 = vsel %vm866_vm4, %v7434_v11, -inf }
 0x24d   : > { %v7446_v12 = vadd.f32 %v7368_v7, %v847_v58  ;;  %6330 = vmatprep.subr.bf16.mxu0 %v6329_v29  ;;  %6490 = vmatprep.subr.bf16.mxu1 %v6329_v29 }
 0x24e   : > { %6332 = vmatpush3.bf16.msra.mxu0 %v6329_v29  ;;  %6498 = vmatpush3.bf16.msra.mxu1 %v6329_v29  ;;  %v906_v48 = vsel %vm866_vm4, %v7443_v30, -inf  ;;  %v1148_v53 = vsel %vm1108_vm3, %v7443_v30, -inf  ;;  %v1389_v57 = vsel %vm1349_vm5, %v7443_v30, -inf  ;;  %v1630_v29 = vsel %vm1590_vm6, %v7443_v30, -inf }
 0x24f   : > { %1360 = vmax.xlane.f32.xlu0 %v1359_v59  ;;  %1598 = vmax.xlane.f32.xlu1 %v1597_v24  ;;  %v6012_v60 = vpop.f32.mrb[14].mxu0  ;;  %v6333_v61 = vpack.c.bf16 %v7443_v30, %v7446_v12  ;;  %v1145_v2 = vsel %vm1108_vm3, %v7446_v12, -inf  ;;  %v1386_v54 = vsel %vm1349_vm5, %v7446_v12, -inf  ;;  %v1627_v37 = vsel %vm1590_vm6, %v7446_v12, -inf }
 0x250   : > { %v7455_v62 = vadd.f32 %v6012_v60, %v7368_v7  ;;  %v857_v63 = vpop.f32.mrb[15].mxu0  ;;  %v903_v59 = vsel %vm866_vm4, %v7446_v12, -inf }
 0x251   : > { %v7458_v0 = vadd.f32 %v7368_v7, %v857_v63  ;;  %6334 = vmatprep.subr.bf16.mxu0 %v6333_v61  ;;  %6491 = vmatprep.subr.bf16.mxu1 %v6333_v61  ;;  %v888_v7 = vsel %vm866_vm4, %v7407_v35, -inf }
 0x252   : > { %6336 = vmatpush3.bf16.msra.mxu0 %v6333_v61  ;;  %6499 = vmatpush3.bf16.msra.mxu1 %v6333_v61  ;;  %v912_v58 = vsel %vm866_vm4, %v7455_v62, -inf  ;;  %v1636_v24 = vsel %vm1590_vm6, %v7455_v62, -inf  ;;  %v1154_v60 = vsel %vm1108_vm3, %v7455_v62, -inf  ;;  %v1395_v63 = vsel %vm1349_vm5, %v7455_v62, -inf }
 0x253   : > { %1601 = vmax.xlane.f32.xlu0 %v1600_v18  ;;  %883 = vmax.xlane.f32.xlu1 %v882_v3  ;;  %v6337_v36 = vpack.c.bf16 %v7455_v62, %v7458_v0  ;;  %v1151_v61 = vsel %vm1108_vm3, %v7458_v0, -inf  ;;  %v1392_v18 = vsel %vm1349_vm5, %v7458_v0, -inf  ;;  %v1633_v3 = vsel %vm1590_vm6, %v7458_v0, -inf }
 0x255   : > { %6338 = vmatprep.subr.bf16.mxu0 %v6337_v36  ;;  %6492 = vmatprep.subr.bf16.mxu1 %v6337_v36 }
 0x256   : > { %6340 = vmatpush3.bf16.msra.mxu0 %v6337_v36  ;;  %6500 = vmatpush3.bf16.msra.mxu1 %v6337_v36  ;;  %v909_v36 = vsel %vm866_vm4, %v7458_v0, -inf }
 0x257   : > { %874 = vmax.xlane.f32.xlu0 %v873_v4  ;;  %1122 = vmax.xlane.f32.xlu1 %v1121_v45 }
 0x25b   : > { %1125 = vmax.xlane.f32.xlu0 %v1124_v5  ;;  %1363 = vmax.xlane.f32.xlu1 %v1362_v6 }
 0x25f   : > { %1366 = vmax.xlane.f32.xlu0 %v1365_v38  ;;  %1604 = vmax.xlane.f32.xlu1 %v1603_v22 }
 0x263   : > { %1607 = vmax.xlane.f32.xlu0 %v1606_v50  ;;  %889 = vmax.xlane.f32.xlu1 %v888_v7 }
 0x267   : > { %880 = vmax.xlane.f32.xlu0 %v879_v8  ;;  %1128 = vmax.xlane.f32.xlu1 %v1127_v9 }
 0x26b   : > { %1131 = vmax.xlane.f32.xlu0 %v1130_v47  ;;  %1369 = vmax.xlane.f32.xlu1 %v1368_v10 }
 0x26f   : > { %1372 = vmax.xlane.f32.xlu0 %v1371_v13  ;;  %1610 = vmax.xlane.f32.xlu1 %v1609_v14 }
 0x273   : > { %1613 = vmax.xlane.f32.xlu0 %v1612_v16  ;;  %895 = vmax.xlane.f32.xlu1 %v894_v19 }
 0x277   : > { %886 = vmax.xlane.f32.xlu0 %v885_v20  ;;  %1134 = vmax.xlane.f32.xlu1 %v1133_v23 }
 0x27b   : > { %1137 = vmax.xlane.f32.xlu0 %v1136_v17  ;;  %1375 = vmax.xlane.f32.xlu1 %v1374_v28 }
 0x27f   : > { %1378 = vmax.xlane.f32.xlu0 %v1377_v31  ;;  %1616 = vmax.xlane.f32.xlu1 %v1615_v32 }
 0x283   : > { %1619 = vmax.xlane.f32.xlu0 %v1618_v33  ;;  %901 = vmax.xlane.f32.xlu1 %v900_v34 }
 0x287   : > { %892 = vmax.xlane.f32.xlu0 %v891_v21  ;;  %1140 = vmax.xlane.f32.xlu1 %v1139_v40 }
 0x28b   : > { %1143 = vmax.xlane.f32.xlu0 %v1142_v1  ;;  %1381 = vmax.xlane.f32.xlu1 %v1380_v41 }
 0x28f   : > { %1384 = vmax.xlane.f32.xlu0 %v1383_v42  ;;  %1622 = vmax.xlane.f32.xlu1 %v1621_v44 }
 0x293   : > { %1625 = vmax.xlane.f32.xlu0 %v1624_v26  ;;  %907 = vmax.xlane.f32.xlu1 %v906_v48 }
 0x297   : > { %898 = vmax.xlane.f32.xlu0 %v897_v49  ;;  %1146 = vmax.xlane.f32.xlu1 %v1145_v2 }
 0x29b   : > { %1149 = vmax.xlane.f32.xlu0 %v1148_v53  ;;  %1387 = vmax.xlane.f32.xlu1 %v1386_v54 }
 0x29f   : > { %1390 = vmax.xlane.f32.xlu0 %v1389_v57  ;;  %1628 = vmax.xlane.f32.xlu1 %v1627_v37 }
 0x2a3   : > { %1631 = vmax.xlane.f32.xlu0 %v1630_v29  ;;  %913 = vmax.xlane.f32.xlu1 %v912_v58 }
 0x2a7   : > { %904 = vmax.xlane.f32.xlu0 %v903_v59  ;;  %1637 = vmax.xlane.f32.xlu1 %v1636_v24 }
 0x2ab   : > { %1155 = vmax.xlane.f32.xlu0 %v1154_v60  ;;  %1152 = vmax.xlane.f32.xlu1 %v1151_v61 }
 0x2af   : > { %1396 = vmax.xlane.f32.xlu0 %v1395_v63  ;;  %1393 = vmax.xlane.f32.xlu1 %v1392_v18 }
 0x2b3   : > { %1634 = vmax.xlane.f32.xlu1 %v1633_v3  ;;  %910 = vmax.xlane.f32.xlu0 %v909_v36 }
 0x2c4   : > { %v872_v4 = vpop.xlane.xlu1 %871  ;;  %v1114_v45 = vpop.xlane.xlu0 %1113 }
 0x2c5   : > { %v916_v5 = vsub.f32 %v7371_v51, %v872_v4  ;;  %v1158_v6 = vsub.f32 %v7371_v51, %v1114_v45 }
 0x2c7   : > { %v933_v38 = vmul.f32 1.442695, %v916_v5  ;;  %v1175_v7 = vmul.f32 1.442695, %v1158_v6 }
 0x2c8   : > { %v1352_v22 = vpop.xlane.xlu1 %1351  ;;  %v1355_v50 = vpop.xlane.xlu0 %1354 }
 0x2c9   : > { %6551 = vpow2.f32 %v933_v38  ;;  %v1398_v8 = vsub.f32 %v7374_v39, %v1352_v22  ;;  %v1399_v9 = vsub.f32 %v7371_v51, %v1355_v50 }
 0x2ca   : > { %6553 = vpow2.f32 %v1175_v7 }
 0x2cb   : > { %v1416_v47 = vmul.f32 1.442695, %v1399_v9  ;;  %v1414_v14 = vmul.f32 1.442695, %v1398_v8 }
 0x2cc   : > { %v1593_v10 = vpop.xlane.xlu1 %1592  ;;  %v1596_v13 = vpop.xlane.xlu0 %1595 }
 0x2cd   : > { %v1639_v16 = vsub.f32 %v7374_v39, %v1593_v10  ;;  %v1640_v19 = vsub.f32 %v7371_v51, %v1596_v13  ;;  %6555 = vpow2.f32 %v1416_v47 }
 0x2ce   : > { %6557 = vpow2.f32 %v1414_v14 }
 0x2cf   : > { %v1657_v20 = vmul.f32 1.442695, %v1640_v19  ;;  %v1655_v28 = vmul.f32 1.442695, %v1639_v16 }
 0x2d0   : > { %v878_v23 = vpop.xlane.xlu1 %877  ;;  %v869_v17 = vpop.xlane.xlu0 %868 }
 0x2d1   : > { %v918_v31 = vsub.f32 %v7383_v15, %v878_v23  ;;  %v915_v32 = vsub.f32 %v7374_v39, %v869_v17  ;;  %6559 = vpow2.f32 %v1657_v20 }
 0x2d2   : > { %6561 = vpow2.f32 %v1655_v28 }
 0x2d3   : > { %v7570_v33 = vpop.eup %6551  ;;  %v931_v34 = vmul.f32 1.442695, %v915_v32  ;;  %v937_v40 = vmul.f32 1.442695, %v918_v31 }
 0x2d4   : > { %v1117_v21 = vpop.xlane.xlu1 %1116  ;;  %981 = vrot.lane.b32.xlu1 %v7570_v33, %s6994_s29  ;;  %v1111_v51 = vpop.xlane.xlu0 %1110 }
 0x2d5   : > { %v1157_v1 = vsub.f32 %v7374_v39, %v1111_v51  ;;  %6563 = vpow2.f32 %v931_v34  ;;  %v7575_v41 = vpop.eup %6553  ;;  %v1159_v45 = vsub.f32 %v7386_v46, %v1117_v21 }
 0x2d6   : > { %6565 = vpow2.f32 %v937_v40 }
 0x2d7   : > { %v1173_v42 = vmul.f32 1.442695, %v1157_v1  ;;  %v7577_v44 = vpop.eup %6555  ;;  %v1177_v50 = vmul.f32 1.442695, %v1159_v45 }
 0x2d8   : > { %v1358_v26 = vpop.xlane.xlu1 %1357  ;;  %1223 = vrot.lane.b32.xlu1 %v7575_v41, %s6995_s11  ;;  %v1120_v48 = vpop.xlane.xlu0 %1119  ;;  %1464 = vrot.lane.b32.xlu0 %v7577_v44, %s6996_s13 }
 0x2d9   : > { %v1160_v49 = vsub.f32 %v7383_v15, %v1120_v48  ;;  %6567 = vpow2.f32 %v1173_v42  ;;  %v7584_v39 = vpop.eup %6557  ;;  %v1400_v7 = vsub.f32 %v7386_v46, %v1358_v26 }
 0x2db   : > { %v1179_v2 = vmul.f32 1.442695, %v1160_v49  ;;  %v7586_v53 = vpop.eup %6559  ;;  %v1418_v14 = vmul.f32 1.442695, %v1400_v7 }
 0x2dc   : > { %v1599_v54 = vpop.xlane.xlu1 %1598  ;;  %1462 = vrot.lane.b32.xlu1 %v7584_v39, %s6996_s13  ;;  %v1361_v57 = vpop.xlane.xlu0 %1360  ;;  %1705 = vrot.lane.b32.xlu0 %v7586_v53, %s6997_s14 }
 0x2dd   : > { %v1401_v37 = vsub.f32 %v7383_v15, %v1361_v57  ;;  %6569 = vpow2.f32 %v1179_v2  ;;  %v7593_v29 = vpop.eup %6561  ;;  %v1641_v16 = vsub.f32 %v7386_v46, %v1599_v54 }
 0x2df   : > { %v1420_v58 = vmul.f32 1.442695, %v1401_v37  ;;  %v7595_v59 = vpop.eup %6563  ;;  %v1659_v31 = vmul.f32 1.442695, %v1641_v16 }
 0x2e0   : > { %v884_v24 = vpop.xlane.xlu1 %883  ;;  %1703 = vrot.lane.b32.xlu1 %v7593_v29, %s6997_s14  ;;  %v1602_v60 = vpop.xlane.xlu0 %1601  ;;  %979 = vrot.lane.b32.xlu0 %v7595_v59, %s6994_s29 }
 0x2e1   : > { %v1642_v61 = vsub.f32 %v7383_v15, %v1602_v60  ;;  %6571 = vpow2.f32 %v1420_v58  ;;  %v7602_v63 = vpop.eup %6565  ;;  %v920_v32 = vsub.f32 %v7395_v27, %v884_v24 }
 0x2e3   : > { %v1661_v18 = vmul.f32 1.442695, %v1642_v61  ;;  %v7604_v3 = vpop.eup %6567  ;;  %v941_v1 = vmul.f32 1.442695, %v920_v32 }
 0x2e4   : > { %v1123_v36 = vpop.xlane.xlu1 %1122  ;;  %985 = vrot.lane.b32.xlu1 %v7602_v63, %s6994_s29  ;;  %v875_v4 = vpop.xlane.xlu0 %874  ;;  %1221 = vrot.lane.b32.xlu0 %v7604_v3, %s6995_s11 }
 0x2e5   : > { %v917_v5 = vsub.f32 %v7386_v46, %v875_v4  ;;  %6573 = vpow2.f32 %v1661_v18  ;;  %v1161_v42 = vsub.f32 %v7398_v55, %v1123_v36 }
 0x2e7   : > { %v935_v15 = vmul.f32 1.442695, %v917_v5  ;;  %v7612_v6 = vpop.eup %6569  ;;  %v1181_v57 = vmul.f32 1.442695, %v1161_v42 }
 0x2e8   : > { %v1364_v38 = vpop.xlane.xlu1 %1363  ;;  %v1126_v22 = vpop.xlane.xlu0 %1125  ;;  %1227 = vrot.lane.b32.xlu0 %v7612_v6, %s6995_s11 }
 0x2e9   : > { %v1162_v8 = vsub.f32 %v7395_v27, %v1126_v22  ;;  %6575 = vpow2.f32 %v935_v15  ;;  %v1402_v37 = vsub.f32 %v7398_v55, %v1364_v38 }
 0x2ea   : > { %6577 = vpow2.f32 %v1177_v50 }
 0x2eb   : > { %v1183_v9 = vmul.f32 1.442695, %v1162_v8  ;;  %v7618_v47 = vpop.eup %6571  ;;  %v1422_v4 = vmul.f32 1.442695, %v1402_v37 }
 0x2ec   : > { %v1605_v10 = vpop.xlane.xlu1 %1604  ;;  %v1367_v13 = vpop.xlane.xlu0 %1366  ;;  %1468 = vrot.lane.b32.xlu0 %v7618_v47, %s6996_s13 }
 0x2ed   : > { %v1403_v19 = vsub.f32 %v7395_v27, %v1367_v13  ;;  %6579 = vpow2.f32 %v1183_v9  ;;  %v1643_v45 = vsub.f32 %v7398_v55, %v1605_v10 }
 0x2ee   : > { %6581 = vpow2.f32 %v1418_v14 }
 0x2ef   : > { %v1424_v20 = vmul.f32 1.442695, %v1403_v19  ;;  %v7624_v23 = vpop.eup %6573  ;;  %v1663_v8 = vmul.f32 1.442695, %v1643_v45 }
 0x2f0   : > { %v890_v17 = vpop.xlane.xlu1 %889  ;;  %v1608_v28 = vpop.xlane.xlu0 %1607  ;;  %1709 = vrot.lane.b32.xlu0 %v7624_v23, %s6997_s14 }
 0x2f1   : > { %v1644_v46 = vsub.f32 %v7395_v27, %v1608_v28  ;;  %6583 = vpow2.f32 %v1424_v20 }
 0x2f2   : > { %6585 = vpow2.f32 %v1659_v31 }
 0x2f3   : > { %v1665_v34 = vmul.f32 1.442695, %v1644_v46  ;;  %v7630_v21 = vpop.eup %6575 }
 0x2f4   : > { %v1129_v51 = vpop.xlane.xlu1 %1128  ;;  %v881_v40 = vpop.xlane.xlu0 %880  ;;  %983 = vrot.lane.b32.xlu1 %v7630_v21, %s6994_s29 }
 0x2f5   : > { %v919_v26 = vsub.f32 %v7398_v55, %v881_v40  ;;  %6587 = vpow2.f32 %v1665_v34  ;;  %v7636_v48 = vpop.eup %6577  ;;  %v922_v55 = vsub.f32 %v7407_v35, %v890_v17  ;;  %v1163_v17 = vsub.f32 %v7410_v56, %v1129_v51 }
 0x2f6   : > { %6589 = vpow2.f32 %v941_v1 }
 0x2f7   : > { %v939_v49 = vmul.f32 1.442695, %v919_v26  ;;  %v7638_v27 = vpop.eup %6579  ;;  %v945_v20 = vmul.f32 1.442695, %v922_v55  ;;  %v1185_v40 = vmul.f32 1.442695, %v1163_v17 }
 0x2f8   : > { %v7640_v2 = vpop.xlane.xlu1 %1369  ;;  %v1132_v54 = vpop.xlane.xlu0 %1131  ;;  %1225 = vrot.lane.b32.xlu1 %v7636_v48, %s6995_s11  ;;  %1231 = vrot.lane.b32.xlu0 %v7638_v27, %s6995_s11 }
 0x2f9   : > { %v1164_v58 = vsub.f32 %v7407_v35, %v1132_v54  ;;  %6591 = vpow2.f32 %v939_v49  ;;  %v7648_v24 = vpop.eup %6581  ;;  %v1404_v51 = vsub.f32 %v7410_v56, %v7640_v2 }
 0x2fa   : > { %6593 = vpow2.f32 %v1181_v57 }
 0x2fb   : > { %v1187_v60 = vmul.f32 1.442695, %v1164_v58  ;;  %v7650_v61 = vpop.eup %6583  ;;  %v1426_v37 = vmul.f32 1.442695, %v1404_v51 }
 0x2fc   : > { %v7652_v18 = vpop.xlane.xlu1 %1610  ;;  %v1373_v36 = vpop.xlane.xlu0 %1372  ;;  %1466 = vrot.lane.b32.xlu1 %v7648_v24, %s6996_s13  ;;  %1472 = vrot.lane.b32.xlu0 %v7650_v61, %s6996_s13 }
 0x2fd   : > { %v1405_v5 = vsub.f32 %v7407_v35, %v1373_v36  ;;  %6595 = vpow2.f32 %v1187_v60  ;;  %v7660_v15 = vpop.eup %6585  ;;  %v1645_v2 = vsub.f32 %v7410_v56, %v7652_v18 }
 0x2fe   : > { %6597 = vpow2.f32 %v1422_v4 }
 0x2ff   : > { %v1428_v38 = vmul.f32 1.442695, %v1405_v5  ;;  %v7662_v22 = vpop.eup %6587 }
 0x300   : > { %v7664_v50 = vpop.xlane.xlu1 %895  ;;  %v1614_v7 = vpop.xlane.xlu0 %1613  ;;  %1707 = vrot.lane.b32.xlu1 %v7660_v15, %s6997_s14  ;;  %1713 = vrot.lane.b32.xlu0 %v7662_v22, %s6997_s14 }
 0x301   : > { %v1646_v9 = vsub.f32 %v7407_v35, %v1614_v7  ;;  %6599 = vpow2.f32 %v1428_v38  ;;  %v7672_v10 = vpop.eup %6589  ;;  %v1667_v38 = vmul.f32 1.442695, %v1645_v2 }
 0x302   : > { %6601 = vpow2.f32 %v1663_v8 }
 0x303   : > { %v1669_v13 = vmul.f32 1.442695, %v1646_v9  ;;  %v7674_v14 = vpop.eup %6591 }
 0x304   : > { %v7676_v16 = vpop.xlane.xlu1 %1134  ;;  %v887_v19 = vpop.xlane.xlu0 %886  ;;  %989 = vrot.lane.b32.xlu1 %v7672_v10, %s6994_s29  ;;  %987 = vrot.lane.b32.xlu0 %v7674_v14, %s6994_s29 }
 0x305   : > { %v921_v35 = vsub.f32 %v7410_v56, %v887_v19  ;;  %6603 = vpow2.f32 %v1669_v13  ;;  %v7684_v28 = vpop.eup %6593  ;;  %v924_v56 = vsub.f32 %v7419_v43, %v7664_v50  ;;  %v1165_v50 = vsub.f32 %v7422_v25, %v7676_v16 }
 0x306   : > { %6605 = vpow2.f32 %v945_v20 }
 0x307   : > { %v943_v31 = vmul.f32 1.442695, %v921_v35  ;;  %v7686_v32 = vpop.eup %6595  ;;  %v949_v19 = vmul.f32 1.442695, %v924_v56 }
 0x308   : > { %v7688_v46 = vpop.xlane.xlu1 %1375  ;;  %v1138_v34 = vpop.xlane.xlu0 %1137  ;;  %1229 = vrot.lane.b32.xlu1 %v7684_v28, %s6995_s11  ;;  %1235 = vrot.lane.b32.xlu0 %v7686_v32, %s6995_s11 }
 0x309   : > { %v1166_v1 = vsub.f32 %v7419_v43, %v1138_v34  ;;  %6607 = vpow2.f32 %v943_v31  ;;  %v7697_v42 = vpop.eup %6597  ;;  %v1406_v16 = vsub.f32 %v7422_v25, %v7688_v46 }
 0x30a   : > { %6609 = vpow2.f32 %v1185_v40  ;;  %v1189_v40 = vmul.f32 1.442695, %v1165_v50 }
 0x30b   : > { %v1191_v26 = vmul.f32 1.442695, %v1166_v1  ;;  %v7699_v49 = vpop.eup %6599 }
 0x30c   : > { %v7701_v54 = vpop.xlane.xlu1 %1616  ;;  %v1379_v57 = vpop.xlane.xlu0 %1378  ;;  %1470 = vrot.lane.b32.xlu1 %v7697_v42, %s6996_s13  ;;  %1476 = vrot.lane.b32.xlu0 %v7699_v49, %s6996_s13 }
 0x30d   : > { %v1407_v58 = vsub.f32 %v7419_v43, %v1379_v57  ;;  %6611 = vpow2.f32 %v1191_v26  ;;  %v7710_v60 = vpop.eup %6601  ;;  %v1647_v46 = vsub.f32 %v7422_v25, %v7701_v54 }
 0x30e   : > { %6613 = vpow2.f32 %v1426_v37 }
 0x30f   : > { %v1432_v36 = vmul.f32 1.442695, %v1407_v58  ;;  %v7712_v4 = vpop.eup %6603  ;;  %v1430_v58 = vmul.f32 1.442695, %v1406_v16 }
 0x310   : > { %v7714_v45 = vpop.xlane.xlu1 %901  ;;  %v1620_v5 = vpop.xlane.xlu0 %1619  ;;  %1711 = vrot.lane.b32.xlu1 %v7710_v60, %s6997_s14  ;;  %1717 = vrot.lane.b32.xlu0 %v7712_v4, %s6997_s14 }
 0x311   : > { %v1648_v18 = vsub.f32 %v7419_v43, %v1620_v5  ;;  %6615 = vpow2.f32 %v1432_v36  ;;  %v7723_v7 = vpop.eup %6605 }
 0x312   : > { %6617 = vpow2.f32 %v1667_v38 }
 0x313   : > { %v1673_v8 = vmul.f32 1.442695, %v1648_v18  ;;  %v7725_v55 = vpop.eup %6607 }
 0x314   : > { %v7727_v9 = vpop.xlane.xlu1 %1140  ;;  %v893_v13 = vpop.xlane.xlu0 %892  ;;  %993 = vrot.lane.b32.xlu1 %v7723_v7, %s6994_s29  ;;  %991 = vrot.lane.b32.xlu0 %v7725_v55, %s6994_s29 }
 0x315   : > { %v923_v43 = vsub.f32 %v7422_v25, %v893_v13  ;;  %6619 = vpow2.f32 %v1673_v8  ;;  %v7736_v20 = vpop.eup %6609  ;;  %v1671_v13 = vmul.f32 1.442695, %v1647_v46  ;;  %v926_v25 = vsub.f32 %v7431_v52, %v7714_v45 }
 0x316   : > { %6621 = vpow2.f32 %v949_v19  ;;  %v1167_v45 = vsub.f32 %v7434_v11, %v7727_v9 }
 0x317   : > { %v947_v17 = vmul.f32 1.442695, %v923_v43  ;;  %v7738_v35 = vpop.eup %6611 }
 0x318   : > { %v7740_v31 = vpop.xlane.xlu1 %1381  ;;  %v1144_v34 = vpop.xlane.xlu0 %1143  ;;  %1233 = vrot.lane.b32.xlu1 %v7736_v20, %s6995_s11  ;;  %1239 = vrot.lane.b32.xlu0 %v7738_v35, %s6995_s11  ;;  %v1193_v46 = vmul.f32 1.442695, %v1167_v45 }
 0x319   : > { %v1168_v51 = vsub.f32 %v7431_v52, %v1144_v34  ;;  %6623 = vpow2.f32 %v947_v17  ;;  %v7749_v1 = vpop.eup %6613  ;;  %v1408_v9 = vsub.f32 %v7434_v11, %v7740_v31 }
 0x31a   : > { %6625 = vpow2.f32 %v1189_v40  ;;  %v953_v40 = vmul.f32 1.442695, %v926_v25 }
 0x31b   : > { %v1195_v26 = vmul.f32 1.442695, %v1168_v51  ;;  %v7751_v57 = vpop.eup %6615 }
 0x31c   : > { %v7753_v37 = vpop.xlane.xlu1 %1622  ;;  %v1385_v2 = vpop.xlane.xlu0 %1384  ;;  %1474 = vrot.lane.b32.xlu1 %v7749_v1, %s6996_s13  ;;  %1480 = vrot.lane.b32.xlu0 %v7751_v57, %s6996_s13 }
 0x31d   : > { %v1409_v36 = vsub.f32 %v7431_v52, %v1385_v2  ;;  %6627 = vpow2.f32 %v1195_v26  ;;  %v7762_v5 = vpop.eup %6617  ;;  %v1649_v31 = vsub.f32 %v7434_v11, %v7753_v37 }
 0x31e   : > { %8566 = vst [vmem:[#allocation4_spill] sm:$0xff] %v7762_v5  ;;  %6629 = vpow2.f32 %v1430_v58 }
 0x31f   : > { %v1436_v38 = vmul.f32 1.442695, %v1409_v36  ;;  %v7764_v56 = vpop.eup %6619 }
 0x320   : > { %8567 = vst [vmem:[#allocation5_spill] sm:$0xff] %v7764_v56  ;;  %v908_v18 = vpop.xlane.xlu1 %907  ;;  %v1626_v8 = vpop.xlane.xlu0 %1625  ;;  %1715 = vrot.lane.b32.xlu1 %v7762_v5, %s6997_s14  ;;  %1721 = vrot.lane.b32.xlu0 %v7764_v56, %s6997_s14 }
 0x321   : > { %v1650_v54 = vsub.f32 %v7431_v52, %v1626_v8  ;;  %6631 = vpow2.f32 %v1436_v38  ;;  %v7773_v19 = vpop.eup %6621 }
 0x322   : > { %8568 = vst [vmem:[#allocation6_spill] sm:$0xff] %v7773_v19  ;;  %6633 = vpow2.f32 %v1671_v13 }
 0x323   : > { %v1677_v50 = vmul.f32 1.442695, %v1650_v54  ;;  %v7775_v43 = vpop.eup %6623 }
 0x324   : > { %8569 = vst [vmem:[#allocation7_spill] sm:$0xff] %v7775_v43  ;;  %v1147_v17 = vpop.xlane.xlu1 %1146  ;;  %v899_v34 = vpop.xlane.xlu0 %898  ;;  %997 = vrot.lane.b32.xlu1 %v7773_v19, %s6994_s29  ;;  %995 = vrot.lane.b32.xlu0 %v7775_v43, %s6994_s29 }
 0x325   : > { %v925_v52 = vsub.f32 %v7434_v11, %v899_v34  ;;  %6635 = vpow2.f32 %v1677_v50  ;;  %v7784_v16 = vpop.eup %6625  ;;  %v1434_v50 = vmul.f32 1.442695, %v1408_v9  ;;  %v928_v11 = vsub.f32 %v7443_v30, %v908_v18 }
 0x326   : > { %6637 = vpow2.f32 %v953_v40 }
 0x327   : > { %v951_v51 = vmul.f32 1.442695, %v925_v52  ;;  %v7786_v26 = vpop.eup %6627 }
 0x328   : > { %8570 = vst [vmem:[#allocation8_spill] sm:$0xff] %v7786_v26  ;;  %v1388_v2 = vpop.xlane.xlu1 %1387  ;;  %v1150_v58 = vpop.xlane.xlu0 %1149  ;;  %1237 = vrot.lane.b32.xlu1 %v7784_v16, %s6995_s11  ;;  %1243 = vrot.lane.b32.xlu0 %v7786_v26, %s6995_s11 }
 0x329   : > { %v1170_v36 = vsub.f32 %v7443_v30, %v1150_v58  ;;  %6639 = vpow2.f32 %v951_v51  ;;  %v7795_v38 = vpop.eup %6629 }
 0x32a   : > { %8571 = vst [vmem:[#allocation9_spill] sm:$0xff] %v7795_v38  ;;  %6641 = vpow2.f32 %v1193_v46  ;;  %v1675_v46 = vmul.f32 1.442695, %v1649_v31  ;;  %v1169_v31 = vsub.f32 %v7446_v12, %v1147_v17  ;;  %v1410_v17 = vsub.f32 %v7446_v12, %v1388_v2 }
 0x32b   : > { %v1199_v8 = vmul.f32 1.442695, %v1170_v36  ;;  %v7797_v13 = vpop.eup %6631 }
 0x32c   : > { %8572 = vst [vmem:[#allocation10_spill] sm:$0xff] %v7797_v13  ;;  %v1629_v25 = vpop.xlane.xlu1 %1628  ;;  %v1391_v54 = vpop.xlane.xlu0 %1390  ;;  %1478 = vrot.lane.b32.xlu1 %v7795_v38, %s6996_s13  ;;  %1484 = vrot.lane.b32.xlu0 %v7797_v13, %s6996_s13 }
 0x32d   : > { %v1411_v34 = vsub.f32 %v7443_v30, %v1391_v54  ;;  %6643 = vpow2.f32 %v1199_v8  ;;  %v7806_v40 = vpop.eup %6633  ;;  %v1651_v2 = vsub.f32 %v7446_v12, %v1629_v25 }
 0x32e   : > { %8573 = vst [vmem:[#allocation11_spill] sm:$0xff] %v7806_v40  ;;  %6645 = vpow2.f32 %v1434_v50  ;;  %v957_v50 = vmul.f32 1.442695, %v928_v11 }
 0x32f   : > { %v1440_v45 = vmul.f32 1.442695, %v1411_v34  ;;  %v7808_v52 = vpop.eup %6635 }
 0x330   : > { %8574 = vst [vmem:[#allocation12_spill] sm:$0xff] %v7808_v52  ;;  %v914_v51 = vpop.xlane.xlu1 %913  ;;  %v1632_v58 = vpop.xlane.xlu0 %1631  ;;  %1719 = vrot.lane.b32.xlu1 %v7806_v40, %s6997_s14  ;;  %1725 = vrot.lane.b32.xlu0 %v7808_v52, %s6997_s14 }
 0x331   : > { %v1652_v37 = vsub.f32 %v7443_v30, %v1632_v58  ;;  %6647 = vpow2.f32 %v1440_v45  ;;  %v7816_v9 = vpop.eup %6637  ;;  %v930_v25 = vsub.f32 %v7455_v62, %v914_v51 }
 0x332   : > { %8575 = vst [vmem:[#allocation13_spill] sm:$0xff] %v7816_v9  ;;  %6649 = vpow2.f32 %v1675_v46  ;;  %v1197_v46 = vmul.f32 1.442695, %v1169_v31 }
 0x333   : > { %v1681_v36 = vmul.f32 1.442695, %v1652_v37  ;;  %v7818_v8 = vpop.eup %6639 }
 0x334   : > { %8576 = vst [vmem:[#allocation14_spill] sm:$0xff] %v7818_v8  ;;  %v905_v54 = vpop.xlane.xlu0 %904  ;;  %v1638_v18 = vpop.xlane.xlu1 %1637  ;;  %1001 = vrot.lane.b32.xlu1 %v7816_v9, %s6994_s29  ;;  %999 = vrot.lane.b32.xlu0 %v7818_v8, %s6994_s29 }
 0x335   : > { %v927_v30 = vsub.f32 %v7446_v12, %v905_v54  ;;  %6651 = vpow2.f32 %v1681_v36  ;;  %v7826_v34 = vpop.eup %6641 }
 0x336   : > { %8577 = vst [vmem:[#allocation15_spill] sm:$0xff] %v7826_v34  ;;  %6653 = vpow2.f32 %v957_v50  ;;  %v1438_v50 = vmul.f32 1.442695, %v1410_v17 }
 0x337   : > { %v955_v45 = vmul.f32 1.442695, %v927_v30  ;;  %v7828_v58 = vpop.eup %6643 }
 0x338   : > { %8578 = vst [vmem:[#allocation16_spill] sm:$0xff] %v7828_v58  ;;  %v1156_v37 = vpop.xlane.xlu0 %1155  ;;  %1241 = vrot.lane.b32.xlu1 %v7826_v34, %s6995_s11  ;;  %1247 = vrot.lane.b32.xlu0 %v7828_v58, %s6995_s11  ;;  %v7836_v36 = vpop.eup %6645 }
 0x339   : > { %v1172_v11 = vsub.f32 %v7455_v62, %v1156_v37  ;;  %6655 = vpow2.f32 %v955_v45  ;;  %8579 = vst [vmem:[#allocation17_spill] sm:$0xff] %v7836_v36  ;;  %v1153_v54 = vpop.xlane.xlu1 %1152 }
 0x33a   : > { %6657 = vpow2.f32 %v1197_v46  ;;  %v1679_v46 = vmul.f32 1.442695, %v1651_v2  ;;  %v1654_v2 = vsub.f32 %v7455_v62, %v1638_v18 }
 0x33b   : > { %v1203_v30 = vmul.f32 1.442695, %v1172_v11  ;;  %v7838_v8 = vpop.eup %6647 }
 0x33c   : > { %8580 = vst [vmem:[#allocation18_spill] sm:$0xff] %v7838_v8  ;;  %v1397_v52 = vpop.xlane.xlu0 %1396  ;;  %1482 = vrot.lane.b32.xlu1 %v7836_v36, %s6996_s13  ;;  %1488 = vrot.lane.b32.xlu0 %v7838_v8, %s6996_s13  ;;  %v7846_v45 = vpop.eup %6649 }
 0x33d   : > { %v1413_v31 = vsub.f32 %v7455_v62, %v1397_v52  ;;  %6659 = vpow2.f32 %v1203_v30  ;;  %8581 = vst [vmem:[#allocation19_spill] sm:$0xff] %v7846_v45  ;;  %v1394_v17 = vpop.xlane.xlu1 %1393 }
 0x33e   : > { %6661 = vpow2.f32 %v1438_v50  ;;  %v961_v50 = vmul.f32 1.442695, %v930_v25 }
 0x33f   : > { %v1444_v37 = vmul.f32 1.442695, %v1413_v31  ;;  %v7848_v11 = vpop.eup %6651 }
 0x340   : > { %8582 = vst [vmem:[#allocation20_spill] sm:$0xff] %v7848_v11  ;;  %v911_v58 = vpop.xlane.xlu0 %910  ;;  %1723 = vrot.lane.b32.xlu1 %v7846_v45, %s6997_s14  ;;  %1729 = vrot.lane.b32.xlu0 %v7848_v11, %s6997_s14  ;;  %v7856_v52 = vpop.eup %6653 }
 0x341   : > { %v929_v12 = vsub.f32 %v7458_v0, %v911_v58  ;;  %6663 = vpow2.f32 %v1444_v37  ;;  %8583 = vst [vmem:[#allocation21_spill] sm:$0xff] %v7856_v52  ;;  %v1635_v51 = vpop.xlane.xlu1 %1634 }
 0x342   : > { %6665 = vpow2.f32 %v1679_v46  ;;  %v1685_v46 = vmul.f32 1.442695, %v1654_v2 }
 0x343   : > { %v959_v30 = vmul.f32 1.442695, %v929_v12  ;;  %v7858_v31 = vpop.eup %6655  ;;  %v1171_v12 = vsub.f32 %v7458_v0, %v1153_v54 }
 0x344   : > { %8584 = vst [vmem:[#allocation22_spill] sm:$0xff] %v7858_v31  ;;  %1005 = vrot.lane.b32.xlu1 %v7856_v52, %s6994_s29  ;;  %1003 = vrot.lane.b32.xlu0 %v7858_v31, %s6994_s29  ;;  %v7865_v58 = vpop.eup %6657 }
 0x345   : > { %6667 = vpow2.f32 %v959_v30  ;;  %8585 = vst [vmem:[#allocation23_spill] sm:$0xff] %v7865_v58  ;;  %v1201_v30 = vmul.f32 1.442695, %v1171_v12 }
 0x346   : > { %6669 = vpow2.f32 %v961_v50  ;;  %v7876_v25 = vpop.permute.xlu1 %981  ;;  %v1412_v50 = vsub.f32 %v7458_v0, %v1394_v17 }
 0x347   : > { %v7867_v37 = vpop.eup %6659  ;;  %6671 = vpow2.f32 %v1685_v46 }
 0x348   : > { %8586 = vst [vmem:[#allocation24_spill] sm:$0xff] %v7867_v37  ;;  %1245 = vrot.lane.b32.xlu1 %v7865_v58, %s6995_s11  ;;  %1251 = vrot.lane.b32.xlu0 %v7867_v37, %s6995_s11  ;;  %v7874_v31 = vpop.eup %6661  ;;  %6673 = vpow2.f32 %v1201_v30  ;;  %v1442_v52 = vmul.f32 1.442695, %v1412_v50 }
 0x349   : > { %8587 = vst [vmem:[#allocation25_spill] sm:$0xff] %v7874_v31 }
 0x34a   : > { %v1465_v62 = vpop.permute.xlu0 %1464  ;;  %v1224_v37 = vpop.permute.xlu1 %1223  ;;  %6675 = vpow2.f32 %v1442_v52 }
 0x34b   : > { %v7878_v18 = vpop.eup %6663  ;;  %v1513_v40 = vsel %vm1027_vm7, %v1465_v62, 0.0 }
 0x34c   : > { %8588 = vst [vmem:[#allocation26_spill] sm:$0xff] %v7878_v18  ;;  %1486 = vrot.lane.b32.xlu1 %v7874_v31, %s6996_s13  ;;  %1492 = vrot.lane.b32.xlu0 %v7878_v18, %s6996_s13  ;;  %v7885_v2 = vpop.eup %6665  ;;  %v1653_v18 = vsub.f32 %v7458_v0, %v1635_v51 }
 0x34d   : > { %8589 = vst [vmem:[#allocation27_spill] sm:$0xff] %v7885_v2 }
 0x34e   : > { %v1706_v54 = vpop.permute.xlu0 %1705  ;;  %v1683_v17 = vmul.f32 1.442695, %v1653_v18  ;;  %v1463_v31 = vpop.permute.xlu1 %1462 }
 0x34f   : > { %v7887_v11 = vpop.eup %6667  ;;  %v1754_v43 = vsel %vm1027_vm7, %v1706_v54, 0.0 }
 0x350   : > { %8590 = vst [vmem:[#allocation28_spill] sm:$0xff] %v7887_v11  ;;  %1727 = vrot.lane.b32.xlu1 %v7885_v2, %s6997_s14  ;;  %1007 = vrot.lane.b32.xlu0 %v7887_v11, %s6994_s29  ;;  %v7894_v12 = vpop.eup %6669  ;;  %6677 = vpow2.f32 %v1683_v17 }
 0x351   : > { %8591 = vst [vmem:[#allocation29_spill] sm:$0xff] %v7894_v12  ;;  %v7898_v58 = vpop.eup %6671 }
 0x352   : > { %v980_v46 = vpop.permute.xlu0 %979  ;;  %8592 = vst [vmem:[#allocation30_spill] sm:$0xff] %v7898_v58  ;;  %v7902_v50 = vpop.eup %6673 }
 0x353   : > { %8593 = vst [vmem:[#allocation31_spill] sm:$0xff] %v7902_v50  ;;  %v1704_v0 = vpop.permute.xlu1 %1703  ;;  %v1028_v13 = vsel %vm1027_vm7, %v980_v46, 0.0 }
 0x354   : > { %1009 = vrot.lane.b32.xlu1 %v7894_v12, %s6994_s29  ;;  %v7906_v51 = vpop.eup %6675  ;;  %v1751_v38 = vsel %vm1027_vm7, %v1704_v0, 0.0 }
 0x355   : > { %8594 = vst [vmem:[#allocation32_spill] sm:$0xff] %v7906_v51 }
 0x356   : > { %v1222_v45 = vpop.permute.xlu0 %1221 }
 0x357   : > { %v986_v52 = vpop.permute.xlu1 %985  ;;  %v1269_v19 = vsel %vm1027_vm7, %v1222_v45, 0.0 }
 0x358   : > { %1733 = vrot.lane.b32.xlu1 %v7898_v58, %s6997_s14  ;;  %v1037_v62 = vsel %vm1027_vm7, %v986_v52, 0.0 }
 0x35a   : > { %v1228_v30 = vpop.permute.xlu0 %1227  ;;  %v7910_v18 = vpop.eup %6677 }
 0x35b   : > { %8595 = vst [vmem:[#allocation33_spill] sm:$0xff] %v7910_v18 }
 0x35c   : > { %1249 = vrot.lane.b32.xlu1 %v7902_v50, %s6995_s11  ;;  %v1272_v50 = vsel %vm1027_vm7, %v1224_v37, 0.0 }
 0x35e   : > { %v1469_v11 = vpop.permute.xlu0 %1468 }
 0x360   : > { %1490 = vrot.lane.b32.xlu1 %v7906_v51, %s6996_s13 }
 0x362   : > { %v1710_v17 = vpop.permute.xlu0 %1709 }
 0x364   : > { %1731 = vrot.lane.b32.xlu1 %v7910_v18, %s6997_s14 }
 0x366   : > { %v984_v58 = vpop.permute.xlu1 %983 }
 0x36a   : > { %v1226_v12 = vpop.permute.xlu1 %1225  ;;  %v1232_v2 = vpop.permute.xlu0 %1231 }
 0x36b   : > { %v1275_v0 = vsel %vm1027_vm7, %v1226_v12, 0.0 }
 0x36e   : > { %v1467_v8 = vpop.permute.xlu1 %1466  ;;  %v1473_v9 = vpop.permute.xlu0 %1472 }
 0x36f   : > { %1273 = vadd.xlane.f32.xlu0 %v1272_v50 }
 0x372   : > { %v1708_v36 = vpop.permute.xlu1 %1707  ;;  %v1714_v51 = vpop.permute.xlu0 %1713 }
 0x373   : > { %1514 = vadd.xlane.f32.xlu0 %v1513_v40 }
 0x376   : > { %v990_v34 = vpop.permute.xlu1 %989  ;;  %v988_v56 = vpop.permute.xlu0 %987 }
 0x377   : > { %1755 = vadd.xlane.f32.xlu0 %v1754_v43  ;;  %v1031_v43 = vsel %vm1027_vm7, %v7876_v25, 0.0 }
 0x37a   : > { %v1230_v18 = vpop.permute.xlu1 %1229  ;;  %v1236_v37 = vpop.permute.xlu0 %1235 }
 0x37b   : > { %1029 = vadd.xlane.f32.xlu0 %v1028_v13  ;;  %v1278_v13 = vsel %vm1027_vm7, %v1228_v30, 0.0 }
 0x37e   : > { %v1471_v26 = vpop.permute.xlu1 %1470  ;;  %v1477_v5 = vpop.permute.xlu0 %1476 }
 0x37f   : > { %1270 = vadd.xlane.f32.xlu0 %v1269_v19  ;;  %v1510_v19 = vsel %vm1027_vm7, %v1463_v31, 0.0  ;;  %v1034_v31 = vsel %vm1027_vm7, %v984_v58, 0.0 }
 0x382   : > { %v1712_v50 = vpop.permute.xlu1 %1711  ;;  %v1718_v45 = vpop.permute.xlu0 %1717 }
 0x383   : > { %1752 = vadd.xlane.f32.xlu0 %v1751_v38  ;;  %v1519_v38 = vsel %vm1027_vm7, %v1469_v11, 0.0 }
 0x386   : > { %v994_v40 = vpop.permute.xlu1 %993  ;;  %v992_v25 = vpop.permute.xlu0 %991 }
 0x387   : > { %1038 = vadd.xlane.f32.xlu0 %v1037_v62  ;;  %v1760_v62 = vsel %vm1027_vm7, %v1710_v17, 0.0  ;;  %v1525_v17 = vsel %vm1027_vm7, %v1473_v9, 0.0  ;;  %v1290_v9 = vsel %vm1027_vm7, %v1236_v37, 0.0  ;;  %v1046_v37 = vsel %vm1027_vm7, %v992_v25, 0.0 }
 0x388   : > { %1032 = vadd.xlane.f32.xlu1 %v1031_v43  ;;  %v1516_v43 = vsel %vm1027_vm7, %v1467_v8, 0.0  ;;  %v1281_v8 = vsel %vm1027_vm7, %v1230_v18, 0.0  ;;  %v1049_v18 = vsel %vm1027_vm7, %v994_v40, 0.0 }
 0x38a   : > { %v1234_v54 = vpop.permute.xlu1 %1233  ;;  %v1240_v11 = vpop.permute.xlu0 %1239 }
 0x38b   : > { %1279 = vadd.xlane.f32.xlu0 %v1278_v13  ;;  %v1757_v13 = vsel %vm1027_vm7, %v1708_v36, 0.0  ;;  %v1522_v36 = vsel %vm1027_vm7, %v1471_v26, 0.0  ;;  %v1287_v26 = vsel %vm1027_vm7, %v1234_v54, 0.0 }
 0x38c   : > { %1511 = vadd.xlane.f32.xlu1 %v1510_v19  ;;  %v1284_v19 = vsel %vm1027_vm7, %v1232_v2, 0.0 }
 0x38e   : > { %v1475_v46 = vpop.permute.xlu1 %1474 }
 0x38f   : > { %1520 = vadd.xlane.f32.xlu0 %v1519_v38  ;;  %v1043_v38 = vsel %vm1027_vm7, %v990_v34, 0.0  ;;  %v1763_v34 = vsel %vm1027_vm7, %v1712_v50, 0.0  ;;  %v1528_v50 = vsel %vm1027_vm7, %v1475_v46, 0.0 }
 0x390   : > { %1276 = vadd.xlane.f32.xlu1 %v1275_v0  ;;  %v1481_v0 = vpop.permute.xlu0 %1480 }
 0x392   : > { %v1716_v52 = vpop.permute.xlu1 %1715 }
 0x393   : > { %1761 = vadd.xlane.f32.xlu0 %v1760_v62  ;;  %v1766_v62 = vsel %vm1027_vm7, %v1714_v51, 0.0  ;;  %v1769_v40 = vsel %vm1027_vm7, %v1716_v52, 0.0 }
 0x394   : > { %1517 = vadd.xlane.f32.xlu1 %v1516_v43  ;;  %v1722_v2 = vpop.permute.xlu0 %1721  ;;  %v1040_v43 = vsel %vm1027_vm7, %v988_v56, 0.0 }
 0x395   : > { %v1778_v46 = vsel %vm1027_vm7, %v1722_v2, 0.0 }
 0x396   : > { %v998_v30 = vpop.permute.xlu1 %997 }
 0x397   : > { %1035 = vadd.xlane.f32.xlu0 %v1034_v31  ;;  %v1055_v54 = vsel %vm1027_vm7, %v998_v30, 0.0 }
 0x398   : > { %1758 = vadd.xlane.f32.xlu1 %v1757_v13  ;;  %v996_v13 = vpop.permute.xlu0 %995 }
 0x399   : > { %v1052_v25 = vsel %vm1027_vm7, %v996_v13, 0.0 }
 0x39a   : > { %v1238_v12 = vpop.permute.xlu1 %1237 }
 0x39b   : > { %1285 = vadd.xlane.f32.xlu0 %v1284_v19  ;;  %v1531_v19 = vsel %vm1027_vm7, %v1477_v5, 0.0  ;;  %v1293_v52 = vsel %vm1027_vm7, %v1238_v12, 0.0 }
 0x39c   : > { %1044 = vadd.xlane.f32.xlu1 %v1043_v38  ;;  %v1244_v56 = vpop.permute.xlu0 %1243  ;;  %v1772_v38 = vsel %vm1027_vm7, %v1718_v45, 0.0 }
 0x39e   : > { %v1479_v58 = vpop.permute.xlu1 %1478 }
 0x39f   : > { %1526 = vadd.xlane.f32.xlu0 %v1525_v17  ;;  %v1534_v30 = vsel %vm1027_vm7, %v1479_v58, 0.0 }
 0x3a0   : > { %1282 = vadd.xlane.f32.xlu1 %v1281_v8  ;;  %v1485_v8 = vpop.permute.xlu0 %1484 }
 0x3a2   : > { %v1720_v31 = vpop.permute.xlu1 %1719 }
 0x3a3   : > { %1767 = vadd.xlane.f32.xlu0 %v1766_v62  ;;  %v1296_v62 = vsel %vm1027_vm7, %v1240_v11, 0.0  ;;  %v1775_v2 = vsel %vm1027_vm7, %v1720_v31, 0.0 }
 0x3a4   : > { %1523 = vadd.xlane.f32.xlu1 %v1522_v36  ;;  %v1726_v45 = vpop.permute.xlu0 %1725  ;;  %v1537_v36 = vsel %vm1027_vm7, %v1481_v0, 0.0 }
 0x3a5   : > { %v1784_v58 = vsel %vm1027_vm7, %v1726_v45, 0.0 }
 0x3a6   : > { %v1002_v51 = vpop.permute.xlu1 %1001 }
 0x3a7   : > { %1041 = vadd.xlane.f32.xlu0 %v1040_v43  ;;  %v1061_v12 = vsel %vm1027_vm7, %v1002_v51, 0.0 }
 0x3a8   : > { %1764 = vadd.xlane.f32.xlu1 %v1763_v34  ;;  %v1000_v34 = vpop.permute.xlu0 %999 }
 0x3a9   : > { %v1058_v31 = vsel %vm1027_vm7, %v1000_v34, 0.0 }
 0x3aa   : > { %v1242_v17 = vpop.permute.xlu1 %1241 }
 0x3ab   : > { %1291 = vadd.xlane.f32.xlu0 %v1290_v9  ;;  %v1302_v9 = vsel %vm1027_vm7, %v1244_v56, 0.0  ;;  %v1299_v13 = vsel %vm1027_vm7, %v1242_v17, 0.0 }
 0x3ac   : > { %1050 = vadd.xlane.f32.xlu1 %v1049_v18  ;;  %v1248_v0 = vpop.permute.xlu0 %1247  ;;  %v1543_v18 = vsel %vm1027_vm7, %v1485_v8, 0.0 }
 0x3ae   : > { %v1483_v5 = vpop.permute.xlu1 %1482 }
 0x3af   : > { %1532 = vadd.xlane.f32.xlu0 %v1531_v19 }
 0x3b0   : > { %1288 = vadd.xlane.f32.xlu1 %v1287_v26  ;;  %v1489_v26 = vpop.permute.xlu0 %1488 }
 0x3b1   : > { %v1549_v17 = vsel %vm1027_vm7, %v1489_v26, 0.0 }
 0x3b2   : > { %v1724_v43 = vpop.permute.xlu1 %1723 }
 0x3b3   : > { %1773 = vadd.xlane.f32.xlu0 %v1772_v38  ;;  %v1540_v38 = vsel %vm1027_vm7, %v1483_v5, 0.0  ;;  %v1781_v51 = vsel %vm1027_vm7, %v1724_v43, 0.0 }
 0x3b4   : > { %1529 = vadd.xlane.f32.xlu1 %v1528_v50  ;;  %v1730_v50 = vpop.permute.xlu0 %1729 }
 0x3b6   : > { %v1006_v11 = vpop.permute.xlu1 %1005 }
 0x3b7   : > { %1047 = vadd.xlane.f32.xlu0 %v1046_v37  ;;  %v1308_v37 = vsel %vm1027_vm7, %v1248_v0, 0.0 }
 0x3b8   : > { %1770 = vadd.xlane.f32.xlu1 %v1769_v40  ;;  %v1004_v40 = vpop.permute.xlu0 %1003 }
 0x3b9   : > { %v1064_v43 = vsel %vm1027_vm7, %v1004_v40, 0.0 }
 0x3ba   : > { %v1246_v19 = vpop.permute.xlu1 %1245 }
 0x3bb   : > { %1297 = vadd.xlane.f32.xlu0 %v1296_v62  ;;  %v1305_v62 = vsel %vm1027_vm7, %v1246_v19, 0.0 }
 0x3bc   : > { %1056 = vadd.xlane.f32.xlu1 %v1055_v54  ;;  %v1067_v54 = vsel %vm1027_vm7, %v1006_v11, 0.0  ;;  %v1252_v45 = vpop.permute.xlu0 %1251 }
 0x3bd   : > { %v1314_v34 = vsel %vm1027_vm7, %v1252_v45, 0.0 }
 0x3be   : > { %v1487_v56 = vpop.permute.xlu1 %1486 }
 0x3bf   : > { %1538 = vadd.xlane.f32.xlu0 %v1537_v36  ;;  %v1546_v36 = vsel %vm1027_vm7, %v1487_v56, 0.0 }
 0x3c0   : > { %1779 = vadd.xlane.f32.xlu1 %v1778_v46 }
 0x3c2   : > { %v1728_v8 = vpop.permute.xlu1 %1727 }
 0x3c3   : > { %1053 = vadd.xlane.f32.xlu0 %v1052_v25  ;;  %v1790_v25 = vsel %vm1027_vm7, %v1730_v50, 0.0  ;;  %v1787_v11 = vsel %vm1027_vm7, %v1728_v8, 0.0 }
 0x3c4   : > { %1294 = vadd.xlane.f32.xlu1 %v1293_v52  ;;  %v1493_v52 = vpop.permute.xlu0 %1492 }
 0x3c6   : > { %v1010_v5 = vpop.permute.xlu1 %1009 }
 0x3c7   : > { %1303 = vadd.xlane.f32.xlu0 %v1302_v9  ;;  %v1073_v19 = vsel %vm1027_vm7, %v1010_v5, 0.0 }
 0x3c8   : > { %1535 = vadd.xlane.f32.xlu1 %v1534_v30  ;;  %v1555_v30 = vsel %vm1027_vm7, %v1493_v52, 0.0  ;;  %v1008_v26 = vpop.permute.xlu0 %1007 }
 0x3ca   : > { %v1734_v46 = vpop.permute.xlu1 %1733 }
 0x3cb   : > { %1544 = vadd.xlane.f32.xlu0 %v1543_v18 }
 0x3cc   : > { %1776 = vadd.xlane.f32.xlu1 %v1775_v2 }
 0x3ce   : > { %v1250_v9 = vpop.permute.xlu1 %1249 }
 0x3cf   : > { %1300 = vadd.xlane.f32.xlu0 %v1299_v13  ;;  %v1311_v0 = vsel %vm1027_vm7, %v1250_v9, 0.0  ;;  %v1796_v13 = vsel %vm1027_vm7, %v1734_v46, 0.0 }
 0x3d0   : > { %1062 = vadd.xlane.f32.xlu1 %v1061_v12  ;;  %v1070_v12 = vsel %vm1027_vm7, %v1008_v26, 0.0 }
 0x3d2   : > { %v1491_v18 = vpop.permute.xlu1 %1490 }
 0x3d3   : > { %1541 = vadd.xlane.f32.xlu0 %v1540_v38  ;;  %v1552_v2 = vsel %vm1027_vm7, %v1491_v18, 0.0 }
 0x3d4   : > { %1785 = vadd.xlane.f32.xlu1 %v1784_v58 }
 0x3d6   : > { %v1732_v56 = vpop.permute.xlu1 %1731 }
 0x3d7   : > { %1309 = vadd.xlane.f32.xlu0 %v1308_v37  ;;  %v1793_v38 = vsel %vm1027_vm7, %v1732_v56, 0.0 }
 0x3d8   : > { %1059 = vadd.xlane.f32.xlu1 %v1058_v31 }
 0x3db   : > { %1550 = vadd.xlane.f32.xlu0 %v1549_v17 }
 0x3dc   : > { %1782 = vadd.xlane.f32.xlu1 %v1781_v51 }
 0x3df   : > { %1306 = vadd.xlane.f32.xlu0 %v1305_v62 }
 0x3e0   : > { %1068 = vadd.xlane.f32.xlu1 %v1067_v54 }
 0x3e3   : > { %1547 = vadd.xlane.f32.xlu0 %v1546_v36 }
 0x3e4   : > { %1791 = vadd.xlane.f32.xlu1 %v1790_v25 }
 0x3e7   : > { %1315 = vadd.xlane.f32.xlu0 %v1314_v34 }
 0x3e8   : > { %1065 = vadd.xlane.f32.xlu1 %v1064_v43 }
 0x3eb   : > { %1556 = vadd.xlane.f32.xlu0 %v1555_v30 }
 0x3ec   : > { %1788 = vadd.xlane.f32.xlu1 %v1787_v11 }
 0x3ef   : > { %1312 = vadd.xlane.f32.xlu0 %v1311_v0 }
 0x3f0   : > { %1074 = vadd.xlane.f32.xlu1 %v1073_v19 }
 0x3f3   : > { %1553 = vadd.xlane.f32.xlu0 %v1552_v2 }
 0x3f4   : > { %1797 = vadd.xlane.f32.xlu1 %v1796_v13 }
 0x3f8   : > { %1071 = vadd.xlane.f32.xlu1 %v1070_v12 }
 0x3fc   : > { %1794 = vadd.xlane.f32.xlu1 %v1793_v38  ;;  %v1274_v58 = vpop.xlane.xlu0 %1273 }
 0x3fd   : > { %6679 = vrcp.f32 %v1274_v58 }
 0x400   : > { %v1515_v50 = vpop.xlane.xlu0 %1514 }
 0x401   : > { %6681 = vrcp.f32 %v1515_v50 }
 0x404   : > { %v1756_v37 = vpop.xlane.xlu0 %1755 }
 0x407   : > { %v6680_v8 = vpop.eup %6679 }
 0x408   : > { %v1030_v31 = vpop.xlane.xlu0 %1029  ;;  %v1334_v17 = vmul.f32 %v6680_v8, %v7575_v41 }
 0x409   : > { %6683 = vrcp.f32 %v1030_v31 }
 0x40a   : > { %1913 = vrot.lane.b32.xlu0 %v1334_v17, %s6994_s29 }
 0x40b   : > { %v6682_v40 = vpop.eup %6681 }
 0x40c   : > { %v1271_v51 = vpop.xlane.xlu0 %1270  ;;  %v1575_v5 = vmul.f32 %v6682_v40, %v7577_v44 }
 0x40e   : > { %1977 = vrot.lane.b32.xlu0 %v1575_v5, %s6994_s29 }
 0x410   : > { %v1753_v62 = vpop.xlane.xlu0 %1752 }
 0x413   : > { %v6684_v54 = vpop.eup %6683 }
 0x414   : > { %v1039_v45 = vpop.xlane.xlu0 %1038  ;;  %v1092_v36 = vmul.f32 %v6684_v54, %v7595_v59 }
 0x415   : > { %v1033_v46 = vpop.xlane.xlu1 %1032 }
 0x416   : > { %6685 = vrcp.f32 %v1033_v46  ;;  %1847 = vrot.lane.b32.xlu0 %v1092_v36, %s6994_s29 }
 0x417   : > { %6687 = vrcp.f32 %v1756_v37 }
 0x418   : > { %v1280_v41 = vpop.xlane.xlu0 %1279 }
 0x419   : > { %6689 = vrcp.f32 %v1280_v41  ;;  %v1512_v25 = vpop.xlane.xlu1 %1511 }
 0x41a   : > { %6691 = vrcp.f32 %v1271_v51 }
 0x41c   : > { %v1521_v34 = vpop.xlane.xlu0 %1520 }
 0x41d   : > { %6693 = vrcp.f32 %v1521_v34  ;;  %v1277_v52 = vpop.xlane.xlu1 %1276 }
 0x41e   : > { %6695 = vrcp.f32 %v1277_v52 }
 0x41f   : > { %6697 = vrcp.f32 %v1512_v25 }
 0x420   : > { %v6686_v44 = vpop.eup %6685  ;;  %v1762_v43 = vpop.xlane.xlu0 %1761 }
 0x421   : > { %v1518_v9 = vpop.xlane.xlu1 %1517  ;;  %v1093_v30 = vmul.f32 %v6686_v44, %v7570_v33  ;;  %v6688_v59 = vpop.eup %6687 }
 0x422   : > { %6699 = vrcp.f32 %v1518_v9  ;;  %v1816_v2 = vmul.f32 %v6688_v59, %v7586_v53 }
 0x423   : > { %v6690_v11 = vpop.eup %6689  ;;  %1849 = vrot.lane.b32.xlu1 %v1093_v30, %s6994_s29  ;;  %6701 = vrcp.f32 %v1753_v62 }
 0x424   : > { %v1036_v0 = vpop.xlane.xlu0 %1035  ;;  %v1336_v18 = vmul.f32 %v6690_v11, %v7612_v6  ;;  %v6692_v13 = vpop.eup %6691  ;;  %6703 = vrcp.f32 %v1039_v45 }
 0x425   : > { %v1759_v19 = vpop.xlane.xlu1 %1758  ;;  %v1333_v58 = vmul.f32 %v6692_v13, %v7604_v3 }
 0x426   : > { %1917 = vrot.lane.b32.xlu0 %v1336_v18, %s6994_s29 }
 0x427   : > { %v6694_v26 = vpop.eup %6693  ;;  %2041 = vrot.lane.b32.xlu1 %v1816_v2, %s6994_s29 }
 0x428   : > { %v1286_v33 = vpop.xlane.xlu0 %1285  ;;  %v1577_v12 = vmul.f32 %v6694_v26, %v7618_v47  ;;  %v6696_v56 = vpop.eup %6695 }
 0x429   : > { %6705 = vrcp.f32 %v1286_v33  ;;  %v1045_v38 = vpop.xlane.xlu1 %1044  ;;  %v6698_v50 = vpop.eup %6697  ;;  %v1335_v6 = vmul.f32 %v6696_v56, %v7636_v48 }
 0x42a   : > { %1981 = vrot.lane.b32.xlu0 %v1577_v12, %s6994_s29  ;;  %6707 = vrcp.f32 %v1762_v43  ;;  %v1574_v31 = vmul.f32 %v6698_v50, %v7584_v39 }
 0x42b   : > { %1911 = vrot.lane.b32.xlu1 %v1333_v58, %s6994_s29 }
 0x42c   : > { %v1527_v53 = vpop.xlane.xlu0 %1526  ;;  %v6700_v37 = vpop.eup %6699 }
 0x42d   : > { %6709 = vrcp.f32 %v1527_v53  ;;  %v1283_v8 = vpop.xlane.xlu1 %1282  ;;  %v6702_v47 = vpop.eup %6701  ;;  %v1576_v17 = vmul.f32 %v6700_v37, %v7648_v24 }
 0x42e   : > { %1915 = vrot.lane.b32.xlu0 %v1335_v6, %s6994_s29  ;;  %6711 = vrcp.f32 %v1283_v8  ;;  %v1815_v51 = vmul.f32 %v6702_v47, %v7593_v29  ;;  %v6704_v5 = vpop.eup %6703 }
 0x42f   : > { %1975 = vrot.lane.b32.xlu1 %v1574_v31, %s6994_s29  ;;  %6713 = vrcp.f32 %v1036_v0  ;;  %v1095_v45 = vmul.f32 %v6704_v5, %v7602_v63 }
 0x430   : > { %v1768_v3 = vpop.xlane.xlu0 %1767 }
 0x431   : > { %v1524_v40 = vpop.xlane.xlu1 %1523 }
 0x432   : > { %1979 = vrot.lane.b32.xlu0 %v1576_v17, %s6994_s29  ;;  %6715 = vrcp.f32 %v1524_v40 }
 0x433   : > { %v6706_v48 = vpop.eup %6705  ;;  %2039 = vrot.lane.b32.xlu1 %v1815_v51, %s6994_s29  ;;  %6717 = vrcp.f32 %v1759_v19 }
 0x434   : > { %v1042_v39 = vpop.xlane.xlu0 %1041  ;;  %v1338_v62 = vmul.f32 %v6706_v48, %v7638_v27  ;;  %v6708_v36 = vpop.eup %6707  ;;  %6719 = vrcp.f32 %v1045_v38 }
 0x435   : > { %v1765_v54 = vpop.xlane.xlu1 %1764  ;;  %v1818_v34 = vmul.f32 %v6708_v36, %v7624_v23 }
 0x436   : > { %1921 = vrot.lane.b32.xlu0 %v1338_v62, %s6994_s29 }
 0x437   : > { %v6710_v24 = vpop.eup %6709  ;;  %1853 = vrot.lane.b32.xlu1 %v1095_v45, %s6994_s29 }
 0x438   : > { %v1292_v29 = vpop.xlane.xlu0 %1291  ;;  %v1579_v46 = vmul.f32 %v6710_v24, %v7650_v61  ;;  %v6712_v41 = vpop.eup %6711 }
 0x439   : > { %6721 = vrcp.f32 %v1292_v29  ;;  %v1051_v25 = vpop.xlane.xlu1 %1050  ;;  %v6714_v52 = vpop.eup %6713  ;;  %v1337_v27 = vmul.f32 %v6712_v41, %v7684_v28 }
 0x43a   : > { %1985 = vrot.lane.b32.xlu0 %v1579_v46, %s6994_s29  ;;  %6723 = vrcp.f32 %v1768_v3  ;;  %v1094_v9 = vmul.f32 %v6714_v52, %v7630_v21  ;;  %v8596_v46 = vld [vmem:[#allocation4_spill] sm:$0xff] }
 0x43b   : > { %2045 = vrot.lane.b32.xlu1 %v1818_v34, %s6994_s29 }
 0x43c   : > { %v1533_v63 = vpop.xlane.xlu0 %1532  ;;  %v6716_v44 = vpop.eup %6715 }
 0x43d   : > { %6725 = vrcp.f32 %v1533_v63  ;;  %v1289_v43 = vpop.xlane.xlu1 %1288  ;;  %v6718_v61 = vpop.eup %6717  ;;  %v1578_v30 = vmul.f32 %v6716_v44, %v7697_v42 }
 0x43e   : > { %1919 = vrot.lane.b32.xlu0 %v1337_v27, %s6994_s29  ;;  %6727 = vrcp.f32 %v1289_v43  ;;  %v1817_v11 = vmul.f32 %v6718_v61, %v7660_v15  ;;  %v6720_v0 = vpop.eup %6719  ;;  %v8598_v27 = vld [vmem:[#allocation6_spill] sm:$0xff]  ;;  %v8599_v43 = vld [vmem:[#allocation8_spill] sm:$0xff] }
 0x43f   : > { %1851 = vrot.lane.b32.xlu1 %v1094_v9, %s6994_s29  ;;  %6729 = vrcp.f32 %v1042_v39  ;;  %v1097_v2 = vmul.f32 %v6720_v0, %v7672_v10 }
 0x440   : > { %v1774_v23 = vpop.xlane.xlu0 %1773 }
 0x441   : > { %v1530_v59 = vpop.xlane.xlu1 %1529 }
 0x442   : > { %1983 = vrot.lane.b32.xlu0 %v1578_v30, %s6994_s29  ;;  %6731 = vrcp.f32 %v1530_v59 }
 0x443   : > { %v6722_v28 = vpop.eup %6721  ;;  %2043 = vrot.lane.b32.xlu1 %v1817_v11, %s6994_s29  ;;  %6733 = vrcp.f32 %v1765_v54  ;;  %v8600_v11 = vld [vmem:[#allocation5_spill] sm:$0xff] }
 0x444   : > { %v1048_v21 = vpop.xlane.xlu0 %1047  ;;  %v1340_v18 = vmul.f32 %v6722_v28, %v7686_v32  ;;  %v6724_v13 = vpop.eup %6723  ;;  %6735 = vrcp.f32 %v1051_v25  ;;  %v8597_v25 = vld [vmem:[#allocation9_spill] sm:$0xff]  ;;  %v8601_v28 = vld [vmem:[#allocation10_spill] sm:$0xff] }
 0x445   : > { %v1771_v19 = vpop.xlane.xlu1 %1770  ;;  %v1820_v56 = vmul.f32 %v6724_v13, %v7662_v22 }
 0x446   : > { %1925 = vrot.lane.b32.xlu0 %v1340_v18, %s6994_s29 }
 0x447   : > { %v6726_v42 = vpop.eup %6725  ;;  %1857 = vrot.lane.b32.xlu1 %v1097_v2, %s6994_s29 }
 0x448   : > { %v1298_v15 = vpop.xlane.xlu0 %1297  ;;  %v1581_v26 = vmul.f32 %v6726_v42, %v7699_v49  ;;  %v6728_v33 = vpop.eup %6727  ;;  %v8602_v42 = vld [vmem:[#allocation7_spill] sm:$0xff] }
 0x449   : > { %6737 = vrcp.f32 %v1298_v15  ;;  %v1057_v12 = vpop.xlane.xlu1 %1056  ;;  %v6730_v38 = vpop.eup %6729  ;;  %v1339_v32 = vmul.f32 %v6728_v33, %v7736_v20 }
 0x44a   : > { %1989 = vrot.lane.b32.xlu0 %v1581_v26, %s6994_s29  ;;  %6739 = vrcp.f32 %v1774_v23  ;;  %v1096_v53 = vmul.f32 %v6730_v38, %v7674_v14  ;;  %v8603_v26 = vld [vmem:[#allocation15_spill] sm:$0xff] }
 0x44b   : > { %2049 = vrot.lane.b32.xlu1 %v1820_v56, %s6994_s29 }
 0x44c   : > { %v1539_v10 = vpop.xlane.xlu0 %1538  ;;  %v6732_v58 = vpop.eup %6731 }
 0x44d   : > { %6741 = vrcp.f32 %v1539_v10  ;;  %v1780_v50 = vpop.xlane.xlu1 %1779  ;;  %v6734_v49 = vpop.eup %6733  ;;  %v1580_v6 = vmul.f32 %v6732_v58, %v7749_v1 }
 0x44e   : > { %1923 = vrot.lane.b32.xlu0 %v1339_v32, %s6994_s29  ;;  %6743 = vrcp.f32 %v1048_v21  ;;  %v1819_v8 = vmul.f32 %v6734_v49, %v7710_v60  ;;  %v6736_v31 = vpop.eup %6735  ;;  %v8604_v32 = vld [vmem:[#allocation11_spill] sm:$0xff] }
 0x44f   : > { %1855 = vrot.lane.b32.xlu1 %v1096_v53, %s6994_s29  ;;  %v1099_v17 = vmul.f32 %v6736_v31, %v7723_v7 }
 0x450   : > { %v1054_v22 = vpop.xlane.xlu0 %1053 }
 0x451   : > { %v1295_v37 = vpop.xlane.xlu1 %1294 }
 0x452   : > { %6745 = vrcp.f32 %v1295_v37  ;;  %1987 = vrot.lane.b32.xlu0 %v1580_v6, %s6994_s29 }
 0x453   : > { %v6738_v20 = vpop.eup %6737  ;;  %2047 = vrot.lane.b32.xlu1 %v1819_v8, %s6994_s29  ;;  %6747 = vrcp.f32 %v1771_v19  ;;  %v8606_v8 = vld [vmem:[#allocation13_spill] sm:$0xff] }
 0x454   : > { %v1304_v14 = vpop.xlane.xlu0 %1303  ;;  %v1342_v47 = vmul.f32 %v6738_v20, %v7738_v35  ;;  %v6740_v40 = vpop.eup %6739  ;;  %v8607_v20 = vld [vmem:[#allocation16_spill] sm:$0xff] }
 0x455   : > { %v1536_v3 = vpop.xlane.xlu1 %1535  ;;  %v1822_v48 = vmul.f32 %v6740_v40, %v7712_v4 }
 0x456   : > { %6749 = vrcp.f32 %v1536_v3  ;;  %1929 = vrot.lane.b32.xlu0 %v1342_v47, %s6994_s29 }
 0x457   : > { %v6742_v1 = vpop.eup %6741  ;;  %6751 = vrcp.f32 %v1057_v12  ;;  %1861 = vrot.lane.b32.xlu1 %v1099_v17, %s6994_s29 }
 0x458   : > { %6753 = vrcp.f32 %v1304_v14  ;;  %v1545_v60 = vpop.xlane.xlu0 %1544  ;;  %v1583_v51 = vmul.f32 %v6742_v1, %v7751_v57  ;;  %v6744_v39 = vpop.eup %6743  ;;  %v8608_v1 = vld [vmem:[#allocation12_spill] sm:$0xff] }
 0x459   : > { %v1777_v5 = vpop.xlane.xlu1 %1776  ;;  %6755 = vrcp.f32 %v1780_v50  ;;  %v1098_v54 = vmul.f32 %v6744_v39, %v7725_v55  ;;  %v8605_v50 = vld [vmem:[#allocation17_spill] sm:$0xff] }
 0x45a   : > { %1993 = vrot.lane.b32.xlu0 %v1583_v51, %s6994_s29  ;;  %6757 = vrcp.f32 %v1545_v60  ;;  %v8609_v51 = vld [vmem:[#allocation18_spill] sm:$0xff] }
 0x45b   : > { %2053 = vrot.lane.b32.xlu1 %v1822_v48, %s6994_s29  ;;  %6759 = vrcp.f32 %v1054_v22 }
 0x45c   : > { %v6746_v7 = vpop.eup %6745  ;;  %v1301_v35 = vpop.xlane.xlu0 %1300 }
 0x45d   : > { %v1063_v62 = vpop.xlane.xlu1 %1062  ;;  %v1341_v45 = vmul.f32 %v6746_v7, %v7784_v16  ;;  %v6748_v36 = vpop.eup %6747  ;;  %6761 = vrcp.f32 %v1301_v35 }
 0x45e   : > { %v1821_v41 = vmul.f32 %v6748_v36, %v8596_v46  ;;  %6763 = vrcp.f32 %v1777_v5  ;;  %v8612_v46 = vld [vmem:[#allocation19_spill] sm:$0xff] }
 0x45f   : > { %1859 = vrot.lane.b32.xlu1 %v1098_v54, %s6994_s29  ;;  %1927 = vrot.lane.b32.xlu0 %v1341_v45, %s6994_s29  ;;  %v8611_v45 = vld [vmem:[#allocation23_spill] sm:$0xff] }
 0x460   : > { %v6750_v4 = vpop.eup %6749  ;;  %v1542_v57 = vpop.xlane.xlu0 %1541 }
 0x461   : > { %v6752_v24 = vpop.eup %6751  ;;  %v1786_v29 = vpop.xlane.xlu1 %1785  ;;  %v1582_v34 = vmul.f32 %v6750_v4, %v8597_v25  ;;  %6765 = vrcp.f32 %v1542_v57  ;;  %v8613_v25 = vld [vmem:[#allocation25_spill] sm:$0xff] }
 0x462   : > { %v6754_v52 = vpop.eup %6753  ;;  %v1101_v44 = vmul.f32 %v6752_v24, %v8598_v27  ;;  %6767 = vrcp.f32 %v1063_v62  ;;  %v8610_v62 = vld [vmem:[#allocation14_spill] sm:$0xff]  ;;  %v8615_v27 = vld [vmem:[#allocation24_spill] sm:$0xff] }
 0x463   : > { %2051 = vrot.lane.b32.xlu1 %v1821_v41, %s6994_s29  ;;  %1991 = vrot.lane.b32.xlu0 %v1582_v34, %s6994_s29  ;;  %v6756_v16 = vpop.eup %6755  ;;  %v1344_v9 = vmul.f32 %v6754_v52, %v8599_v43 }
 0x464   : > { %v1310_v55 = vpop.xlane.xlu0 %1309  ;;  %v6758_v61 = vpop.eup %6757  ;;  %v1824_v0 = vmul.f32 %v6756_v16, %v8600_v11  ;;  %v8614_v16 = vld [vmem:[#allocation21_spill] sm:$0xff]  ;;  %v8617_v11 = vld [vmem:[#allocation26_spill] sm:$0xff] }
 0x465   : > { %v1060_v63 = vpop.xlane.xlu1 %1059  ;;  %6769 = vrcp.f32 %v1310_v55  ;;  %v6760_v30 = vpop.eup %6759  ;;  %v1585_v21 = vmul.f32 %v6758_v61, %v8601_v28 }
 0x466   : > { %6771 = vrcp.f32 %v1786_v29  ;;  %v1100_v15 = vmul.f32 %v6760_v30, %v8602_v42  ;;  %v8616_v30 = vld [vmem:[#allocation20_spill] sm:$0xff] }
 0x467   : > { %1865 = vrot.lane.b32.xlu1 %v1101_v44, %s6994_s29  ;;  %1933 = vrot.lane.b32.xlu0 %v1344_v9, %s6994_s29  ;;  %v6762_v18 = vpop.eup %6761 }
 0x468   : > { %v1551_v23 = vpop.xlane.xlu0 %1550  ;;  %v6764_v2 = vpop.eup %6763  ;;  %v1343_v33 = vmul.f32 %v6762_v18, %v8603_v26 }
 0x469   : > { %v1783_v59 = vpop.xlane.xlu1 %1782  ;;  %6773 = vrcp.f32 %v1551_v23  ;;  %v1823_v58 = vmul.f32 %v6764_v2, %v8604_v32 }
 0x46a   : > { %6775 = vrcp.f32 %v1060_v63 }
 0x46b   : > { %2057 = vrot.lane.b32.xlu1 %v1824_v0, %s6994_s29  ;;  %1997 = vrot.lane.b32.xlu0 %v1585_v21, %s6994_s29  ;;  %v6766_v12 = vpop.eup %6765 }
 0x46c   : > { %v1307_v19 = vpop.xlane.xlu0 %1306  ;;  %v6768_v38 = vpop.eup %6767  ;;  %v1584_v53 = vmul.f32 %v6766_v12, %v8605_v50  ;;  %v8622_v50 = vld [vmem:[#allocation29_spill] sm:$0xff] }
 0x46d   : > { %v1069_v13 = vpop.xlane.xlu1 %1068  ;;  %6777 = vrcp.f32 %v1307_v19  ;;  %v1103_v31 = vmul.f32 %v6768_v38, %v8606_v8  ;;  %v8618_v19 = vld [vmem:[#allocation22_spill] sm:$0xff]  ;;  %v8623_v8 = vld [vmem:[#allocation28_spill] sm:$0xff] }
 0x46e   : > { %6779 = vrcp.f32 %v1783_v59 }
 0x46f   : > { %1863 = vrot.lane.b32.xlu1 %v1100_v15, %s6994_s29  ;;  %1931 = vrot.lane.b32.xlu0 %v1343_v33, %s6994_s29  ;;  %v6770_v49 = vpop.eup %6769  ;;  %v8620_v33 = vld [vmem:[#allocation27_spill] sm:$0xff] }
 0x470   : > { %v1548_v56 = vpop.xlane.xlu0 %1547  ;;  %v6772_v6 = vpop.eup %6771  ;;  %v1346_v14 = vmul.f32 %v6770_v49, %v8607_v20 }
 0x471   : > { %v1792_v10 = vpop.xlane.xlu1 %1791  ;;  %6781 = vrcp.f32 %v1548_v56  ;;  %v1826_v60 = vmul.f32 %v6772_v6, %v8608_v1  ;;  %v8621_v56 = vld [vmem:[#allocation32_spill] sm:$0xff] }
 0x472   : > { %6783 = vrcp.f32 %v1069_v13  ;;  %v8619_v13 = vld [vmem:[#allocation31_spill] sm:$0xff] }
 0x473   : > { %2055 = vrot.lane.b32.xlu1 %v1823_v58, %s6994_s29  ;;  %1995 = vrot.lane.b32.xlu0 %v1584_v53, %s6994_s29  ;;  %v6774_v47 = vpop.eup %6773 }
 0x474   : > { %v1316_v22 = vpop.xlane.xlu0 %1315  ;;  %v6776_v17 = vpop.eup %6775  ;;  %v1587_v5 = vmul.f32 %v6774_v47, %v8609_v51 }
 0x475   : > { %v1066_v37 = vpop.xlane.xlu1 %1065  ;;  %6785 = vrcp.f32 %v1316_v22  ;;  %v1102_v54 = vmul.f32 %v6776_v17, %v8610_v62 }
 0x476   : > { %6787 = vrcp.f32 %v1792_v10 }
 0x477   : > { %1869 = vrot.lane.b32.xlu1 %v1103_v31, %s6994_s29  ;;  %1937 = vrot.lane.b32.xlu0 %v1346_v14, %s6994_s29  ;;  %v6778_v48 = vpop.eup %6777 }
 0x478   : > { %v1557_v3 = vpop.xlane.xlu0 %1556  ;;  %v6780_v7 = vpop.eup %6779  ;;  %v1345_v36 = vmul.f32 %v6778_v48, %v8611_v45  ;;  %v8625_v48 = vld [vmem:[#allocation30_spill] sm:$0xff] }
 0x479   : > { %v1789_v40 = vpop.xlane.xlu1 %1788  ;;  %6789 = vrcp.f32 %v1557_v3  ;;  %v1825_v41 = vmul.f32 %v6780_v7, %v8612_v46 }
 0x47a   : > { %6791 = vrcp.f32 %v1066_v37 }
 0x47b   : > { %2061 = vrot.lane.b32.xlu1 %v1826_v60, %s6994_s29  ;;  %2001 = vrot.lane.b32.xlu0 %v1587_v5, %s6994_s29  ;;  %v6782_v4 = vpop.eup %6781 }
 0x47c   : > { %v1313_v39 = vpop.xlane.xlu0 %1312  ;;  %v6784_v57 = vpop.eup %6783  ;;  %v1586_v34 = vmul.f32 %v6782_v4, %v8613_v25 }
 0x47d   : > { %v1075_v35 = vpop.xlane.xlu1 %1074  ;;  %6793 = vrcp.f32 %v1313_v39  ;;  %v1105_v63 = vmul.f32 %v6784_v57, %v8614_v16 }
 0x47e   : > { %6795 = vrcp.f32 %v1789_v40  ;;  %v8624_v40 = vld [vmem:[#allocation33_spill] sm:$0xff] }
 0x47f   : > { %1867 = vrot.lane.b32.xlu1 %v1102_v54, %s6994_s29  ;;  %1935 = vrot.lane.b32.xlu0 %v1345_v36, %s6994_s29  ;;  %v6786_v52 = vpop.eup %6785 }
 0x480   : > { %v1554_v24 = vpop.xlane.xlu0 %1553  ;;  %v6788_v55 = vpop.eup %6787  ;;  %v1348_v44 = vmul.f32 %v6786_v52, %v8615_v27 }
 0x481   : > { %v1798_v29 = vpop.xlane.xlu1 %1797  ;;  %6797 = vrcp.f32 %v1554_v24  ;;  %v1828_v59 = vmul.f32 %v6788_v55, %v8616_v30 }
 0x482   : > { %6799 = vrcp.f32 %v1075_v35 }
 0x483   : > { %2059 = vrot.lane.b32.xlu1 %v1825_v41, %s6994_s29  ;;  %1999 = vrot.lane.b32.xlu0 %v1586_v34, %s6994_s29  ;;  %v6790_v43 = vpop.eup %6789 }
 0x484   : > { %v1914_v61 = vpop.permute.xlu0 %1913  ;;  %v6792_v23 = vpop.eup %6791  ;;  %v1589_v0 = vmul.f32 %v6790_v43, %v8617_v11 }
 0x485   : > { %v1072_v9 = vpop.xlane.xlu1 %1071  ;;  %v1104_v2 = vmul.f32 %v6792_v23, %v8618_v19 }
 0x486   : > { %6801 = vrcp.f32 %v1072_v9 }
 0x487   : > { %1873 = vrot.lane.b32.xlu1 %v1105_v63, %s6994_s29  ;;  %1941 = vrot.lane.b32.xlu0 %v1348_v44, %s6994_s29  ;;  %v6794_v28 = vpop.eup %6793 }
 0x488   : > { %v6796_v21 = vpop.eup %6795  ;;  %v1347_v42 = vmul.f32 %v6794_v28, %v8619_v13  ;;  %v1978_v26 = vpop.permute.xlu0 %1977 }
 0x489   : > { %v1795_v18 = vpop.xlane.xlu1 %1794  ;;  %v1827_v12 = vmul.f32 %v6796_v21, %v8620_v33 }
 0x48a   : > { %6803 = vrcp.f32 %v1795_v18 }
 0x48b   : > { %2065 = vrot.lane.b32.xlu1 %v1828_v59, %s6994_s29  ;;  %2005 = vrot.lane.b32.xlu0 %v1589_v0, %s6994_s29  ;;  %v6798_v15 = vpop.eup %6797  ;;  %6805 = vrcp.f32 %v1798_v29 }
 0x48c   : > { %v1588_v38 = vmul.f32 %v6798_v15, %v8621_v56  ;;  %v6800_v10 = vpop.eup %6799  ;;  %v1848_v32 = vpop.permute.xlu0 %1847 }
 0x48d   : > { %v1107_v53 = vmul.f32 %v6800_v10, %v8622_v50 }
 0x48f   : > { %1871 = vrot.lane.b32.xlu1 %v1104_v2, %s6994_s29  ;;  %1939 = vrot.lane.b32.xlu0 %v1347_v42, %s6994_s29 }
 0x490   : > { %v6802_v49 = vpop.eup %6801 }
 0x491   : > { %v1106_v31 = vmul.f32 %v6802_v49, %v8623_v8 }
 0x493   : > { %2063 = vrot.lane.b32.xlu1 %v1827_v12, %s6994_s29  ;;  %2003 = vrot.lane.b32.xlu0 %v1588_v38, %s6994_s29 }
 0x494   : > { %v6804_v14 = vpop.eup %6803 }
 0x495   : > { %v1850_v58 = vpop.permute.xlu1 %1849  ;;  %v1829_v1 = vmul.f32 %v6804_v14, %v8624_v40  ;;  %v6806_v60 = vpop.eup %6805 }
 0x496   : > { %v2088_v22 = vsel %vm1027_vm7, %v1850_v58, %v1914_v61  ;;  %v1830_v39 = vmul.f32 %v6806_v60, %v8625_v48 }
 0x497   : > { %1877 = vrot.lane.b32.xlu1 %v1107_v53, %s6994_s29  ;;  %v2105_v20 = vsel %vm2103_vm8, %v2088_v22, %v1978_v26 }
 0x498   : > { %v1918_v6 = vpop.permute.xlu0 %1917 }
 0x499   : > { %v2042_v37 = vpop.permute.xlu1 %2041 }
 0x49a   : > { %v2122_v47 = vsel %vm2120_vm9, %v2105_v20, %v2042_v37 }
 0x49b   : > { %1875 = vrot.lane.b32.xlu1 %v1106_v31, %s6994_s29  ;;  %2138 = vst.msk [vmem:[%s7080_s22 + $0x8] sm:$0xff] %vm404_vm2, %v2122_v47 }
 0x49c   : > { %v1982_v3 = vpop.permute.xlu0 %1981 }
 0x49d   : > { %v1912_v17 = vpop.permute.xlu1 %1911 }
 0x49e   : > { %v2087_v7 = vsel %vm1027_vm7, %v1848_v32, %v1912_v17 }
 0x49f   : > { %2067 = vrot.lane.b32.xlu1 %v1829_v1, %s6994_s29 }
 0x4a0   : > { %v1916_v51 = vpop.permute.xlu0 %1915 }
 0x4a1   : > { %v1976_v5 = vpop.permute.xlu1 %1975 }
 0x4a2   : > { %v2104_v62 = vsel %vm2103_vm8, %v2087_v7, %v1976_v5 }
 0x4a3   : > { %2069 = vrot.lane.b32.xlu1 %v1830_v39, %s6994_s29 }
 0x4a4   : > { %v1980_v35 = vpop.permute.xlu0 %1979 }
 0x4a5   : > { %v2040_v54 = vpop.permute.xlu1 %2039 }
 0x4a6   : > { %v2121_v45 = vsel %vm2120_vm9, %v2104_v62, %v2040_v54 }
 0x4a7   : > { %2137 = vst.msk [vmem:[%s7080_s22] sm:$0xff] %vm404_vm2, %v2121_v45 }
 0x4a8   : > { %v1922_v36 = vpop.permute.xlu0 %1921 }
 0x4a9   : > { %v1854_v4 = vpop.permute.xlu1 %1853 }
 0x4aa   : > { %v2090_v57 = vsel %vm1027_vm7, %v1854_v4, %v1918_v6 }
 0x4ab   : > { %v2107_v46 = vsel %vm2103_vm8, %v2090_v57, %v1982_v3 }
 0x4ac   : > { %v1986_v24 = vpop.permute.xlu0 %1985 }
 0x4ad   : > { %v2046_v29 = vpop.permute.xlu1 %2045 }
 0x4ae   : > { %v2124_v41 = vsel %vm2120_vm9, %v2107_v46, %v2046_v29 }
 0x4af   : > { %2140 = vst.msk [vmem:[%s7080_s22 + $0x18] sm:$0xff] %vm404_vm2, %v2124_v41 }
 0x4b0   : > { %v1920_v25 = vpop.permute.xlu0 %1919 }
 0x4b1   : > { %v1852_v34 = vpop.permute.xlu1 %1851  ;;  %2153 = vxpose.xlu0.b32.start [1/16] (narrow) %v2121_v45, 64 }
 0x4b2   : > { %v2089_v52 = vsel %vm1027_vm7, %v1852_v34, %v1916_v51 }
 0x4b3   : > { %v2106_v63 = vsel %vm2103_vm8, %v2089_v52, %v1980_v35 }
 0x4b4   : > { %v1984_v55 = vpop.permute.xlu0 %1983 }
 0x4b5   : > { %v2044_v16 = vpop.permute.xlu1 %2043  ;;  %2154 = vxpose.xlu0.b32.cont [2/16] (narrow) %v2122_v47, 64 }
 0x4b6   : > { %v2123_v27 = vsel %vm2120_vm9, %v2106_v63, %v2044_v16 }
 0x4b7   : > { %2139 = vst.msk [vmem:[%s7080_s22 + $0x10] sm:$0xff] %vm404_vm2, %v2123_v27 }
 0x4b8   : > { %v1926_v44 = vpop.permute.xlu0 %1925 }
 0x4b9   : > { %v1858_v43 = vpop.permute.xlu1 %1857  ;;  %2155 = vxpose.xlu0.b32.cont [3/16] (narrow) %v2123_v27, 64 }
 0x4ba   : > { %v2092_v9 = vsel %vm1027_vm7, %v1858_v43, %v1922_v36 }
 0x4bb   : > { %v2109_v30 = vsel %vm2103_vm8, %v2092_v9, %v1986_v24 }
 0x4bc   : > { %v1990_v61 = vpop.permute.xlu0 %1989 }
 0x4bd   : > { %v2050_v23 = vpop.permute.xlu1 %2049  ;;  %2156 = vxpose.xlu0.b32.cont [4/16] (narrow) %v2124_v41, 64 }
 0x4be   : > { %v2126_v59 = vsel %vm2120_vm9, %v2109_v30, %v2050_v23 }
 0x4bf   : > { %2142 = vst.msk [vmem:[%s7080_s22 + $0x28] sm:$0xff] %vm404_vm2, %v2126_v59 }
 0x4c0   : > { %v1924_v11 = vpop.permute.xlu0 %1923 }
 0x4c1   : > { %v1856_v0 = vpop.permute.xlu1 %1855 }
 0x4c2   : > { %v2091_v28 = vsel %vm1027_vm7, %v1856_v0, %v1920_v25 }
 0x4c3   : > { %v2108_v19 = vsel %vm2103_vm8, %v2091_v28, %v1984_v55 }
 0x4c4   : > { %v1988_v21 = vpop.permute.xlu0 %1987 }
 0x4c5   : > { %v2048_v18 = vpop.permute.xlu1 %2047 }
 0x4c6   : > { %v2125_v2 = vsel %vm2120_vm9, %v2108_v19, %v2048_v18 }
 0x4c7   : > { %2157 = vxpose.xlu0.b32.cont [5/16] (narrow) %v2125_v2, 64  ;;  %2141 = vst.msk [vmem:[%s7080_s22 + $0x20] sm:$0xff] %vm404_vm2, %v2125_v2 }
 0x4c8   : > { %v1930_v13 = vpop.permute.xlu0 %1929 }
 0x4c9   : > { %v1862_v42 = vpop.permute.xlu1 %1861 }
 0x4ca   : > { %v2094_v15 = vsel %vm1027_vm7, %v1862_v42, %v1926_v44 }
 0x4cb   : > { %2158 = vxpose.xlu0.b32.cont [6/16] (narrow) %v2126_v59, 64  ;;  %v2111_v12 = vsel %vm2103_vm8, %v2094_v15, %v1990_v61  ;;  %v2190_v15 = vlaneseq }
 0x4cc   : > { %v1994_v26 = vpop.permute.xlu0 %1993 }
 0x4cd   : > { %v2054_v33 = vpop.permute.xlu1 %2053 }
 0x4ce   : > { %v2128_v56 = vsel %vm2120_vm9, %v2111_v12, %v2054_v33  ;;  %v2191_v33 = vshrl.u32 %v2190_v15, 7 }
 0x4cf   : > { %2144 = vst.msk [vmem:[%s7080_s22 + $0x38] sm:$0xff] %vm404_vm2, %v2128_v56 }
 0x4d0   : > { %v2192_v12 = vsub.s32 0, %v2191_v33  ;;  %v2418_v33 = vld [vmem:[#allocation3 + $0x28] sm:$0xff] }
 0x4d1   : > { %v1860_v38 = vpop.permute.xlu1 %1859  ;;  %v1928_v10 = vpop.permute.xlu0 %1927 }
 0x4d2   : > { %v2093_v32 = vsel %vm1027_vm7, %v1860_v38, %v1924_v11 }
 0x4d3   : > { %v2110_v53 = vsel %vm2103_vm8, %v2093_v32, %v1988_v21 }
 0x4d5   : > { %v2052_v58 = vpop.permute.xlu1 %2051  ;;  %v1992_v50 = vpop.permute.xlu0 %1991 }
 0x4d6   : > { %v2127_v49 = vsel %vm2120_vm9, %v2110_v53, %v2052_v58 }
 0x4d7   : > { %2159 = vxpose.xlu0.b32.cont [7/16] (narrow) %v2127_v49, 64  ;;  %2143 = vst.msk [vmem:[%s7080_s22 + $0x30] sm:$0xff] %vm404_vm2, %v2127_v49 }
 0x4d9   : > { %v1866_v22 = vpop.permute.xlu1 %1865  ;;  %v1934_v6 = vpop.permute.xlu0 %1933 }
 0x4da   : > { %v2096_v37 = vsel %vm1027_vm7, %v1866_v22, %v1930_v13 }
 0x4db   : > { %2160 = vxpose.xlu0.b32.cont [8/16] (narrow) %v2128_v56, 64  ;;  %v2113_v20 = vsel %vm2103_vm8, %v2096_v37, %v1994_v26  ;;  %v2185_v26 = vld [vmem:[%s335_s15] sm:$0x1]  ;;  %v6998_v56 = vmov 0.0  }
 0x4dc   : > { %vm2186_vm10 = vcmp.eq.s32.totalorder %v2185_v26, 0  ;;  %vm2203_vm11 = vcmp.eq.s32.totalorder %v2185_v26, 1 }
 0x4dd   : > { %v2058_v8 = vpop.permute.xlu1 %2057  ;;  %v1998_v31 = vpop.permute.xlu0 %1997  ;;  %v5704_v38 = vsel %vm2186_vm10, 1.0, %v6998_v56  ;;  %v5705_v32 = vsel %vm2203_vm11, 1.0, %v6998_v56 }
 0x4de   : > { %v2130_v14 = vsel %vm2120_vm9, %v2113_v20, %v2058_v8 }
 0x4df   : > { %2146 = vst.msk [vmem:[%s7080_s22 + $0x48] sm:$0xff] %vm404_vm2, %v2130_v14 }
 0x4e1   : > { %v1864_v47 = vpop.permute.xlu1 %1863  ;;  %v1932_v3 = vpop.permute.xlu0 %1931 }
 0x4e2   : > { %v2095_v17 = vsel %vm1027_vm7, %v1864_v47, %v1928_v10  ;;  %v2193_v10 = vrot.slane %v5704_v38, %v2192_v12  ;;  %v2426_v38 = vld [vmem:[#allocation3 + $0x68] sm:$0xff] }
 0x4e3   : > { %v2112_v60 = vsel %vm2103_vm8, %v2095_v17, %v1992_v50  ;;  %v2210_v50 = vrot.slane %v5705_v32, %v2192_v12 }
 0x4e5   : > { %v2056_v40 = vpop.permute.xlu1 %2055  ;;  %v1996_v1 = vpop.permute.xlu0 %1995 }
 0x4e6   : > { %v2129_v51 = vsel %vm2120_vm9, %v2112_v60, %v2056_v40 }
 0x4e7   : > { %2161 = vxpose.xlu0.b32.cont [9/16] (narrow) %v2129_v51, 64  ;;  %2145 = vst.msk [vmem:[%s7080_s22 + $0x40] sm:$0xff] %vm404_vm2, %v2129_v51 }
 0x4e9   : > { %v1870_v5 = vpop.permute.xlu1 %1869  ;;  %v1938_v48 = vpop.permute.xlu0 %1937 }
 0x4ea   : > { %v2098_v39 = vsel %vm1027_vm7, %v1870_v5, %v1934_v6 }
 0x4eb   : > { %2162 = vxpose.xlu0.b32.cont [10/16] (narrow) %v2130_v14, 64  ;;  %v2115_v62 = vsel %vm2103_vm8, %v2098_v39, %v1998_v31 }
 0x4ed   : > { %v2062_v7 = vpop.permute.xlu1 %2061  ;;  %v2002_v35 = vpop.permute.xlu0 %2001 }
 0x4ee   : > { %v2132_v54 = vsel %vm2120_vm9, %v2115_v62, %v2062_v7 }
 0x4ef   : > { %2148 = vst.msk [vmem:[%s7080_s22 + $0x58] sm:$0xff] %vm404_vm2, %v2132_v54 }
 0x4f1   : > { %v1868_v45 = vpop.permute.xlu1 %1867  ;;  %v1936_v4 = vpop.permute.xlu0 %1935 }
 0x4f2   : > { %v2097_v36 = vsel %vm1027_vm7, %v1868_v45, %v1932_v3  ;;  %v2413_v45 = vld [vmem:[#allocation3] sm:$0xff] }
 0x4f3   : > { %v2114_v24 = vsel %vm2103_vm8, %v2097_v36, %v1996_v1 }
 0x4f5   : > { %v2060_v57 = vpop.permute.xlu1 %2059  ;;  %v2000_v46 = vpop.permute.xlu0 %1999 }
 0x4f6   : > { %v2131_v29 = vsel %vm2120_vm9, %v2114_v24, %v2060_v57  ;;  %v2421_v57 = vld [vmem:[#allocation3 + $0x40] sm:$0xff] }
 0x4f7   : > { %2163 = vxpose.xlu0.b32.cont [11/16] (narrow) %v2131_v29, 64  ;;  %2147 = vst.msk [vmem:[%s7080_s22 + $0x50] sm:$0xff] %vm404_vm2, %v2131_v29 }
 0x4f9   : > { %v1874_v41 = vpop.permute.xlu1 %1873  ;;  %v1942_v55 = vpop.permute.xlu0 %1941 }
 0x4fa   : > { %v2100_v25 = vsel %vm1027_vm7, %v1874_v41, %v1938_v48 }
 0x4fb   : > { %2164 = vxpose.xlu0.b32.cont [12/16] (narrow) %v2132_v54, 64  ;;  %v2117_v52 = vsel %vm2103_vm8, %v2100_v25, %v2002_v35 }
 0x4fd   : > { %v2066_v34 = vpop.permute.xlu1 %2065  ;;  %v2006_v44 = vpop.permute.xlu0 %2005 }
 0x4fe   : > { %v2134_v16 = vsel %vm2120_vm9, %v2117_v52, %v2066_v34  ;;  %v2422_v34 = vld [vmem:[#allocation3 + $0x48] sm:$0xff] }
 0x4ff   : > { %2150 = vst.msk [vmem:[%s7080_s22 + $0x68] sm:$0xff] %vm404_vm2, %v2134_v16 }
 0x501   : > { %v1872_v63 = vpop.permute.xlu1 %1871  ;;  %v1940_v30 = vpop.permute.xlu0 %1939 }
 0x502   : > { %v2099_v27 = vsel %vm1027_vm7, %v1872_v63, %v1936_v4 }
 0x503   : > { %v2116_v9 = vsel %vm2103_vm8, %v2099_v27, %v2000_v46  ;;  %v2414_v46 = vld [vmem:[#allocation3 + $0x8] sm:$0xff] }
 0x505   : > { %v2064_v43 = vpop.permute.xlu1 %2063  ;;  %v2004_v0 = vpop.permute.xlu0 %2003 }
 0x506   : > { %v2133_v61 = vsel %vm2120_vm9, %v2116_v9, %v2064_v43 }
 0x507   : > { %2165 = vxpose.xlu0.b32.cont [13/16] (narrow) %v2133_v61, 64  ;;  %2149 = vst.msk [vmem:[%s7080_s22 + $0x60] sm:$0xff] %vm404_vm2, %v2133_v61  ;;  %v2416_v61 = vld [vmem:[#allocation3 + $0x18] sm:$0xff] }
 0x509   : > { %v1878_v23 = vpop.permute.xlu1 %1877 }
 0x50a   : > { %v2102_v18 = vsel %vm1027_vm7, %v1878_v23, %v1942_v55  ;;  %v2427_v23 = vld [vmem:[#allocation3 + $0x70] sm:$0xff] }
 0x50b   : > { %2166 = vxpose.xlu0.b32.cont [14/16] (narrow) %v2134_v16, 64  ;;  %v2119_v13 = vsel %vm2103_vm8, %v2102_v18, %v2006_v44  ;;  %v2415_v16 = vld [vmem:[#allocation3 + $0x10] sm:$0xff] }
 0x50c   : > { %v2423_v44 = vld [vmem:[#allocation3 + $0x50] sm:$0xff] }
 0x50d   : > { %v1876_v59 = vpop.permute.xlu1 %1875 }
 0x50e   : > { %v2101_v11 = vsel %vm1027_vm7, %v1876_v59, %v1940_v30 }
 0x50f   : > { %v2118_v21 = vsel %vm2103_vm8, %v2101_v11, %v2004_v0 }
 0x511   : > { %v2068_v28 = vpop.permute.xlu1 %2067 }
 0x512   : > { %v2135_v19 = vsel %vm2120_vm9, %v2118_v21, %v2068_v28  ;;  %v2424_v28 = vld [vmem:[#allocation3 + $0x58] sm:$0xff] }
 0x513   : > { %2167 = vxpose.xlu0.b32.cont [15/16] (narrow) %v2135_v19, 64  ;;  %2151 = vst.msk [vmem:[%s7080_s22 + $0x70] sm:$0xff] %vm404_vm2, %v2135_v19  ;;  %v2417_v19 = vld [vmem:[#allocation3 + $0x20] sm:$0xff] }
 0x515   : > { %v2070_v2 = vpop.permute.xlu1 %2069 }
 0x516   : > { %v2136_v42 = vsel %vm2120_vm9, %v2119_v13, %v2070_v2 }
 0x517   : > { %2152 = vst.msk [vmem:[%s7080_s22 + $0x78] sm:$0xff] %vm404_vm2, %v2136_v42  ;;  %2168 = vxpose.xlu0.b32.end [16/16] (narrow) %v2136_v42, 64  ;;  %v2425_v42 = vld [vmem:[#allocation3 + $0x60] sm:$0xff]  ;;  %s7002_s22 = smov (!%p5706_p6), 80  }
 0x55b   : > { %v2169_v58 = vpop.trf.xlu0 }
 0x55c   : > { %v2195_v53 = vmul.f32 %v2193_v10, %v2169_v58  ;;  %v2212_v22 = vmul.f32 %v2210_v50, %v2169_v58  ;;  %v2419_v58 = vld [vmem:[#allocation3 + $0x30] sm:$0xff] }
 0x55e   : > { %2429 = vadd.xlane.f32.xlu1 %v2195_v53  ;;  %6045 = vmatprep.mubr.f32.mxu0 %v2195_v53 }
 0x55f   : > { %v2170_v49 = vpop.trf.xlu0 }
 0x560   : > { %v2196_v6 = vmul.f32 %v2193_v10, %v2170_v49  ;;  %v2213_v20 = vmul.f32 %v2210_v50, %v2170_v49  ;;  %v2420_v49 = vld [vmem:[#allocation3 + $0x38] sm:$0xff] }
 0x562   : > { %2445 = vadd.xlane.f32.xlu1 %v2212_v22  ;;  %6046 = vmatmul.mubr.f32.vlgmr.msra.gmra.mrb[16].mxu0 %v2196_v6 }
 0x563   : > { %v2171_v37 = vpop.trf.xlu0 }
 0x564   : > { %v2197_v8 = vmul.f32 %v2193_v10, %v2171_v37  ;;  %v2214_v40 = vmul.f32 %v2210_v50, %v2171_v37  ;;  %v2428_v37 = vld [vmem:[#allocation3 + $0x78] sm:$0xff] }
 0x566   : > { %2431 = vadd.xlane.f32.xlu1 %v2196_v6  ;;  %6048 = vmatprep.mubr.f32.mxu0 %v2197_v8 }
 0x567   : > { %v2172_v31 = vpop.trf.xlu0 }
 0x568   : > { %v2198_v14 = vmul.f32 %v2193_v10, %v2172_v31  ;;  %v2215_v39 = vmul.f32 %v2210_v50, %v2172_v31 }
 0x56a   : > { %2447 = vadd.xlane.f32.xlu1 %v2213_v20  ;;  %6049 = vmatmul.mubr.f32.gmra.mrb[18].mxu0 %v2198_v14 }
 0x56b   : > { %v2173_v47 = vpop.trf.xlu0 }
 0x56c   : > { %v2199_v3 = vmul.f32 %v2193_v10, %v2173_v47  ;;  %v2216_v35 = vmul.f32 %v2210_v50, %v2173_v47 }
 0x56e   : > { %2433 = vadd.xlane.f32.xlu1 %v2197_v8  ;;  %6051 = vmatprep.mubr.f32.mxu1 %v2199_v3 }
 0x56f   : > { %v2174_v17 = vpop.trf.xlu0 }
 0x570   : > { %v2200_v1 = vmul.f32 %v2193_v10, %v2174_v17  ;;  %v2217_v62 = vmul.f32 %v2210_v50, %v2174_v17 }
 0x572   : > { %2449 = vadd.xlane.f32.xlu1 %v2214_v40  ;;  %6052 = vmatmul.mubr.f32.vlgmr.msra.gmra.mrb[0].mxu1 %v2200_v1 }
 0x573   : > { %v2175_v60 = vpop.trf.xlu0 }
 0x574   : > { %v2201_v51 = vmul.f32 %v2193_v10, %v2175_v60  ;;  %v2218_v5 = vmul.f32 %v2210_v50, %v2175_v60  ;;  %v2222_v60 = vld [vmem:[#allocation2 + $0x10] sm:$0xff] }
 0x576   : > { %2435 = vadd.xlane.f32.xlu1 %v2198_v14  ;;  %2457 = vadd.xlane.f32.xlu0 %v2218_v5  ;;  %v2220_v14 = vld [vmem:[#allocation2] sm:$0xff] }
 0x577   : > { %6054 = vmatprep.mubr.f32.mxu1 %v2201_v51  ;;  %v2176_v48 = vpop.trf.xlu0 }
 0x578   : > { %v2202_v7 = vmul.f32 %v2193_v10, %v2176_v48  ;;  %v2219_v54 = vmul.f32 %v2210_v50, %v2176_v48 }
 0x57a   : > { %2451 = vadd.xlane.f32.xlu1 %v2215_v39  ;;  %6055 = vmatmul.mubr.f32.gmra.mrb[2].mxu1 %v2202_v7 }
 0x57b   : > { %6057 = vmatprep.mubr.f32.mxu1 %v2212_v22 }
 0x57e   : > { %2437 = vadd.xlane.f32.xlu1 %v2199_v3  ;;  %6058 = vmatmul.mubr.f32.gmra.mrb[4].mxu1 %v2213_v20  ;;  %v2221_v20 = vld [vmem:[#allocation2 + $0x8] sm:$0xff] }
 0x57f   : > { %6060 = vmatprep.mubr.f32.mxu1 %v2214_v40 }
 0x582   : > { %2453 = vadd.xlane.f32.xlu1 %v2216_v35  ;;  %6061 = vmatmul.mubr.f32.gmra.mrb[6].mxu1 %v2215_v39 }
 0x583   : > { %6063 = vmatprep.mubr.f32.mxu1 %v2216_v35  ;;  %v2224_v35 = vld [vmem:[#allocation2 + $0x20] sm:$0xff] }
 0x586   : > { %2439 = vadd.xlane.f32.xlu1 %v2200_v1  ;;  %6064 = vmatmul.mubr.f32.gmra.mrb[8].mxu1 %v2217_v62  ;;  %v2223_v1 = vld [vmem:[#allocation2 + $0x18] sm:$0xff] }
 0x587   : > { %6066 = vmatprep.mubr.f32.mxu1 %v2218_v5 }
 0x58a   : > { %2455 = vadd.xlane.f32.xlu1 %v2217_v62  ;;  %6067 = vmatmul.mubr.f32.gmra.mrb[10].mxu1 %v2219_v54 }
 0x58e   : > { %2441 = vadd.xlane.f32.xlu1 %v2201_v51 }
 0x592   : > { %2443 = vadd.xlane.f32.xlu1 %v2202_v7  ;;  %v2225_v7 = vld [vmem:[#allocation2 + $0x28] sm:$0xff] }
 0x596   : > { %2459 = vadd.xlane.f32.xlu1 %v2219_v54 }
 0x5eb   : > { %v2430_v36 = vpop.xlane.xlu1 %2429 }
 0x5ec   : > { %v2461_v4 = vadd.f32 %v2430_v36, %v2413_v45 }
 0x5ee   : > { %2478 = vst.msk [vmem:[#allocation3] sm:$0xff] %vm2477_vm12, %v2461_v4  ;;  %v2227_v4 = vld [vmem:[#allocation2 + $0x38] sm:$0xff] }
 0x5ef   : > { %v2446_v24 = vpop.xlane.xlu1 %2445 }
 0x5f0   : > { %v2469_v29 = vadd.f32 %v2446_v24, %v2421_v57  ;;  %v2226_v57 = vld [vmem:[#allocation2 + $0x30] sm:$0xff] }
 0x5f2   : > { %2486 = vst.msk [vmem:[#allocation3 + $0x40] sm:$0xff] %vm2477_vm12, %v2469_v29 }
 0x5f3   : > { %v2432_v41 = vpop.xlane.xlu1 %2431 }
 0x5f4   : > { %v2462_v25 = vadd.f32 %v2432_v41, %v2414_v46 }
 0x5f6   : > { %2479 = vst.msk [vmem:[#allocation3 + $0x8] sm:$0xff] %vm2477_vm12, %v2462_v25  ;;  %v2229_v25 = vld [vmem:[#allocation2 + $0x48] sm:$0xff] }
 0x5f7   : > { %v2448_v52 = vpop.xlane.xlu1 %2447 }
 0x5f8   : > { %v2470_v55 = vadd.f32 %v2448_v52, %v2422_v34  ;;  %v2228_v34 = vld [vmem:[#allocation2 + $0x40] sm:$0xff] }
 0x5fa   : > { %2487 = vst.msk [vmem:[#allocation3 + $0x48] sm:$0xff] %vm2477_vm12, %v2470_v55 }
 0x5fb   : > { %v2434_v63 = vpop.xlane.xlu1 %2433 }
 0x5fc   : > { %v2463_v27 = vadd.f32 %v2434_v63, %v2415_v16 }
 0x5fe   : > { %2480 = vst.msk [vmem:[#allocation3 + $0x10] sm:$0xff] %vm2477_vm12, %v2463_v27  ;;  %v2231_v27 = vld [vmem:[#allocation2 + $0x58] sm:$0xff] }
 0x5ff   : > { %v2450_v43 = vpop.xlane.xlu1 %2449 }
 0x600   : > { %v2471_v9 = vadd.f32 %v2450_v43, %v2423_v44  ;;  %v2230_v44 = vld [vmem:[#allocation2 + $0x50] sm:$0xff] }
 0x602   : > { %2488 = vst.msk [vmem:[#allocation3 + $0x50] sm:$0xff] %vm2477_vm12, %v2471_v9 }
 0x603   : > { %v2436_v30 = vpop.xlane.xlu1 %2435  ;;  %v2458_v59 = vpop.xlane.xlu0 %2457 }
 0x604   : > { %v2464_v11 = vadd.f32 %v2436_v30, %v2416_v61  ;;  %v2475_v0 = vadd.f32 %v2458_v59, %v2427_v23  ;;  %v2233_v30 = vld [vmem:[#allocation2 + $0x68] sm:$0xff]  ;;  %v2232_v59 = vld [vmem:[#allocation2 + $0x60] sm:$0xff] }
 0x606   : > { %2481 = vst.msk [vmem:[#allocation3 + $0x18] sm:$0xff] %vm2477_vm12, %v2464_v11  ;;  %2492 = vst.msk [vmem:[#allocation3 + $0x70] sm:$0xff] %vm2477_vm12, %v2475_v0 }
 0x607   : > { %v2452_v21 = vpop.xlane.xlu1 %2451 }
 0x608   : > { %v2472_v18 = vadd.f32 %v2452_v21, %v2424_v28 }
 0x60a   : > { %2489 = vst.msk [vmem:[#allocation3 + $0x58] sm:$0xff] %vm2477_vm12, %v2472_v18  ;;  %v2235_v18 = vld [vmem:[#allocation2 + $0x78] sm:$0xff] }
 0x60b   : > { %v2438_v2 = vpop.xlane.xlu1 %2437 }
 0x60c   : > { %v2465_v13 = vadd.f32 %v2438_v2, %v2417_v19  ;;  %v2234_v19 = vld [vmem:[#allocation2 + $0x70] sm:$0xff] }
 0x60e   : > { %2482 = vst.msk [vmem:[#allocation3 + $0x20] sm:$0xff] %vm2477_vm12, %v2465_v13 }
 0x60f   : > { %v2454_v15 = vpop.xlane.xlu1 %2453 }
 0x610   : > { %v2473_v26 = vadd.f32 %v2454_v15, %v2425_v42 }
 0x612   : > { %2490 = vst.msk [vmem:[#allocation3 + $0x60] sm:$0xff] %vm2477_vm12, %v2473_v26  ;;  %v2498_v26 = vld [vmem:[#allocation3] sm:$0xff] (!%p5706_p6) }
 0x613   : > { %v2440_v12 = vpop.xlane.xlu1 %2439 }
 0x614   : > { %v2466_v56 = vadd.f32 %v2440_v12, %v2418_v33  ;;  %v2499_v33 = vld [vmem:[#allocation3 + $0x8] sm:$0xff] (!%p5706_p6)  ;;  %v6999_v12 = vmov (!%p5706_p6), 0  }
 0x615   : > { %6807 = vset.pattern.permute.xlu0 (!%p5706_p6), %v6999_v12  ;;  %6813 = vset.pattern.permute.xlu1 (!%p5706_p6), %v6999_v12 }
 0x616   : > { %2483 = vst.msk [vmem:[#allocation3 + $0x28] sm:$0xff] %vm2477_vm12, %v2466_v56  ;;  %v2514_v56 = vadd.f32 (!%p5706_p6), 1e-05, %v2498_v26 }
 0x617   : > { %v2456_v10 = vpop.xlane.xlu1 %2455 }
 0x618   : > { %v2474_v32 = vadd.f32 %v2456_v10, %v2426_v38  ;;  %v2515_v38 = vadd.f32 (!%p5706_p6), 1e-05, %v2499_v33  ;;  %v2501_v10 = vld [vmem:[#allocation3 + $0x18] sm:$0xff] (!%p5706_p6)  ;;  %6889 = vrcp.f32 (!%p5706_p6), %v2514_v56  ;;  %v2502_v56 = vld [vmem:[#allocation3 + $0x20] sm:$0xff] (!%p5706_p6) }
 0x61a   : > { %2491 = vst.msk [vmem:[#allocation3 + $0x68] sm:$0xff] %vm2477_vm12, %v2474_v32  ;;  %6891 = vrcp.f32 (!%p5706_p6), %v2515_v38  ;;  %v2517_v32 = vadd.f32 (!%p5706_p6), 1e-05, %v2501_v10  ;;  %v2548_v38 = vld [vmem:[%s8533_s7] sm:$0xff] (!%p5706_p6)  ;;  %v2549_v10 = vld [vmem:[%s8533_s7 + $0x8] sm:$0xff] (!%p5706_p6) }
 0x61b   : > { %v2442_v50 = vpop.xlane.xlu1 %2441 }
 0x61c   : > { %v2467_v53 = vadd.f32 %v2442_v50, %v2419_v58  ;;  %6893 = vrcp.f32 (!%p5706_p6), %v2517_v32  ;;  %v2546_v50 = vld [vmem:[%s8532_s6] sm:$0xff] (!%p5706_p6)  ;;  %v2518_v32 = vadd.f32 (!%p5706_p6), 1e-05, %v2502_v56 }
 0x61e   : > { %2484 = vst.msk [vmem:[#allocation3 + $0x30] sm:$0xff] %vm2477_vm12, %v2467_v53  ;;  %v2547_v53 = vld [vmem:[%s8532_s6 + $0x8] sm:$0xff] (!%p5706_p6) }
 0x61f   : > { %v2444_v22 = vpop.xlane.xlu1 %2443 }
 0x620   : > { %v2468_v6 = vadd.f32 %v2444_v22, %v2420_v49  ;;  %v8231_v49 = vpack.c.bf16 (!%p5706_p6), %v2547_v53, %v2546_v50 }
 0x622   : > { %2485 = vst.msk [vmem:[#allocation3 + $0x38] sm:$0xff] %vm2477_vm12, %v2468_v6  ;;  %v6890_v58 = vpop.eup (!%p5706_p6), %6889  ;;  %6342 = vmatprep.subr.bf16.mxu0 (!%p5706_p6), %v8231_v49 }
 0x623   : > { %v2460_v8 = vpop.xlane.xlu1 %2459  ;;  %2560 = vperm.xlu0 (!%p5706_p6), %6807, %v6890_v58   ;;  %6344 = vmatpush3.bf16.msra.mxu0 (!%p5706_p6), %v8231_v49  ;;  %v8269_v58 = vpack.c.bf16 (!%p5706_p6), %v2549_v10, %v2548_v38 }
 0x624   : > { %v2476_v31 = vadd.f32 %v2460_v8, %v2428_v37  ;;  %v6892_v22 = vpop.eup (!%p5706_p6), %6891 }
 0x626   : > { %2493 = vst.msk [vmem:[#allocation3 + $0x78] sm:$0xff] %vm2477_vm12, %v2476_v31  ;;  %v6894_v6 = vpop.eup (!%p5706_p6), %6893 }
 0x627   : > { %2565 = vperm.xlu0 (!%p5706_p6), %6807, %v6892_v22  }
 0x62b   : > { %2943 = vperm.xlu0 (!%p5706_p6), %6807, %v6894_v6  }
 0x635   : > { %v6047_v47 = vpop.f32.mrb[16].mxu0 }
 0x636   : > { %v2382_v3 = vadd.f32 %v6047_v47, %v2221_v20  ;;  %v2302_v17 = vpop.f32.mrb[17].mxu0 }
 0x637   : > { %v2381_v40 = vadd.f32 %v2302_v17, %v2220_v14 }
 0x638   : > { %2398 = vst.msk [vmem:[#allocation2 + $0x8] sm:$0xff] %vm404_vm2, %v2382_v3 }
 0x639   : > { %2397 = vst.msk [vmem:[#allocation2] sm:$0xff] %vm404_vm2, %v2381_v40 }
 0x63d   : > { %v6050_v51 = vpop.f32.mrb[18].mxu0 }
 0x63e   : > { %v2384_v5 = vadd.f32 %v6050_v51, %v2223_v1  ;;  %v2312_v48 = vpop.f32.mrb[19].mxu0  ;;  %v2500_v1 = vld [vmem:[#allocation3 + $0x10] sm:$0xff] (!%p5706_p6) }
 0x63f   : > { %v2383_v39 = vadd.f32 %v2312_v48, %v2222_v60  ;;  %v2557_v20 = vld [vmem:[#allocation2 + $0x8] sm:$0xff] (!%p5706_p6)  ;;  %v2516_v60 = vadd.f32 (!%p5706_p6), 1e-05, %v2500_v1 }
 0x640   : > { %2400 = vst.msk [vmem:[#allocation2 + $0x18] sm:$0xff] %vm404_vm2, %v2384_v5  ;;  %v2556_v37 = vld [vmem:[#allocation2] sm:$0xff] (!%p5706_p6) }
 0x641   : > { %2399 = vst.msk [vmem:[#allocation2 + $0x10] sm:$0xff] %vm404_vm2, %v2383_v39  ;;  %6895 = vrcp.f32 (!%p5706_p6), %v2516_v60 }
 0x645   : > { %v6053_v62 = vpop.f32.mrb[0].mxu1 }
 0x646   : > { %v2386_v54 = vadd.f32 %v6053_v62, %v2225_v7  ;;  %v2322_v45 = vpop.f32.mrb[1].mxu1 }
 0x647   : > { %v2385_v36 = vadd.f32 %v2322_v45, %v2224_v35 }
 0x648   : > { %2402 = vst.msk [vmem:[#allocation2 + $0x28] sm:$0xff] %vm404_vm2, %v2386_v54 }
 0x649   : > { %2401 = vst.msk [vmem:[#allocation2 + $0x20] sm:$0xff] %vm404_vm2, %v2385_v36 }
 0x64b   : > { %v6896_v51 = vpop.eup (!%p5706_p6), %6895 }
 0x64d   : > { %v6056_v24 = vpop.f32.mrb[2].mxu1 }
 0x64e   : > { %v2388_v29 = vadd.f32 %v6056_v24, %v2227_v4  ;;  %v2332_v46 = vpop.f32.mrb[3].mxu1  ;;  %v2935_v24 = vld [vmem:[#allocation2 + $0x18] sm:$0xff] (!%p5706_p6) }
 0x64f   : > { %v2387_v41 = vadd.f32 %v2332_v46, %v2226_v57  ;;  %v2934_v46 = vld [vmem:[#allocation2 + $0x10] sm:$0xff] (!%p5706_p6) }
 0x650   : > { %2404 = vst.msk [vmem:[#allocation2 + $0x38] sm:$0xff] %vm404_vm2, %v2388_v29 }
 0x651   : > { %2403 = vst.msk [vmem:[#allocation2 + $0x30] sm:$0xff] %vm404_vm2, %v2387_v41  ;;  %v6059_v52 = vpop.f32.mrb[4].mxu1 }
 0x652   : > { %v2390_v55 = vadd.f32 %v6059_v52, %v2229_v25  ;;  %v2342_v16 = vpop.f32.mrb[5].mxu1 }
 0x653   : > { %v2389_v63 = vadd.f32 %v2342_v16, %v2228_v34 }
 0x654   : > { %2406 = vst.msk [vmem:[#allocation2 + $0x48] sm:$0xff] %vm404_vm2, %v2390_v55 }
 0x655   : > { %2405 = vst.msk [vmem:[#allocation2 + $0x40] sm:$0xff] %vm404_vm2, %v2389_v63  ;;  %v6062_v43 = vpop.f32.mrb[6].mxu1 }
 0x656   : > { %v2392_v9 = vadd.f32 %v6062_v43, %v2231_v27  ;;  %v2352_v61 = vpop.f32.mrb[7].mxu1 }
 0x657   : > { %v2391_v23 = vadd.f32 %v2352_v61, %v2230_v44 }
 0x658   : > { %2408 = vst.msk [vmem:[#allocation2 + $0x58] sm:$0xff] %vm404_vm2, %v2392_v9 }
 0x659   : > { %2407 = vst.msk [vmem:[#allocation2 + $0x50] sm:$0xff] %vm404_vm2, %v2391_v23  ;;  %v6065_v11 = vpop.f32.mrb[8].mxu1 }
 0x65a   : > { %v2394_v0 = vadd.f32 %v6065_v11, %v2233_v30  ;;  %v2362_v28 = vpop.f32.mrb[9].mxu1  ;;  %v2503_v11 = vld [vmem:[#allocation3 + $0x28] sm:$0xff] (!%p5706_p6) }
 0x65b   : > { %v2393_v21 = vadd.f32 %v2362_v28, %v2232_v59  ;;  %2497 = sbr.rel (%p5706_p6) target bundleno = 8269 (0x204d), region = 60 }
 0x65c   : > { %2410 = vst.msk [vmem:[#allocation2 + $0x68] sm:$0xff] %vm404_vm2, %v2394_v0  ;;  %v2519_v0 = vadd.f32 (!%p5706_p6), 1e-05, %v2503_v11 }
 0x65d   : > { %2409 = vst.msk [vmem:[#allocation2 + $0x60] sm:$0xff] %vm404_vm2, %v2393_v21  ;;  %v6068_v2 = vpop.f32.mrb[10].mxu1 }
 0x65e   : > { %v2396_v13 = vadd.f32 %v6068_v2, %v2235_v18  ;;  %v2372_v42 = vpop.f32.mrb[11].mxu1 }
 0x65f   : > { %v2395_v15 = vadd.f32 %v2372_v42, %v2234_v19 }
 0x660   : > { %2412 = vst.msk [vmem:[#allocation2 + $0x78] sm:$0xff] %vm404_vm2, %v2396_v13 }
 0x661   : > { %2411 = vst.msk [vmem:[#allocation2 + $0x70] sm:$0xff] %vm404_vm2, %v2395_v15 }
 0x6a2   : > { %v2561_v8 = vpop.permute.xlu0 %2560 }
 0x6a3   : > { %v2568_v31 = vmul.f32 %v2561_v8, %v2556_v37 }
 0x6a5   : > { %6073 = vmatprep.mubr.msk.f32.mxu0 %vm1027_vm7, %v2568_v31 }
 0x6a6   : > { %v2566_v14 = vpop.permute.xlu0 %2565 }
 0x6a7   : > { %v2569_v47 = vmul.f32 %v2566_v14, %v2557_v20 }
 0x6a9   : > { %6074 = vmatmul.mubr.msk.f32.vlgmr.msra.gmra.mrb[0].mxu0 %vm1027_vm7, %v2569_v47 }
 0x6aa   : > { %v2944_v29 = vpop.permute.xlu0 %2943 }
 0x6ab   : > { %v2947_v25 = vmul.f32 %v2944_v29, %v2935_v24 }
 0x77c   : > { %v6075_v3 = vpop.f32.mrb[0].mxu0 }
 0x77d   : > { %v2642_v17 = vpop.f32.mrb[1].mxu0 }
 0x77e   : > { %v6814_v40 = vpack.i.bf16 %v6075_v3, %v2642_v17  ;;  %6080 = vmatprep.mubr.msk.f32.mxu1 %vm1027_vm7, %v2642_v17 }
 0x780   : > { %6809 = vrot.lane.b32.xlu1 %v6814_v40, %s7000_s18 }
 0x784   : > { %2938 = vperm.xlu1 %6813, %v6896_v51  }
 0x7f2   : > { %v6810_v5 = vpop.permute.xlu1 %6809 }
 0x7f3   : > { %v6812_v48 = vunpack.i.h.bf16 %v6810_v5  ;;  %v6811_v39 = vunpack.i.l.bf16 %v6810_v5 }
 0x7f5   : > { %v6345_v35 = vpack.c.bf16 %v6812_v48, %v6811_v39  ;;  %v3317_v39 = vld [vmem:[#allocation2 + $0x28] sm:$0xff] }
 0x7f7   : > { %6347 = vmatprep.subr.msk.bf16.mxu1 %vm8241_vm13, %v6345_v35 }
 0x7f8   : > { %6350 = vmatpush3.bf16.xpose.msk.msra.mxu1 %vm8241_vm13, %v6345_v35 }
 0x7f9   : > { %6360 = vmatprep.subr.bf16.mxu1 %v8231_v49 }
 0x7ff   : > { %6081 = vmatmul.mubr.msk.f32.vlgmr.msra.gmra.mrb[0].mxu1 %vm1027_vm7, %v6075_v3 }
 0x800   : > { %6362 = vmatpush3.bf16.msra.mxu1 %v8231_v49 }
 0x803   : > { %v2939_v41 = vpop.permute.xlu1 %2938 }
 0x804   : > { %v2946_v34 = vmul.f32 %v2939_v41, %v2934_v46 }
 0x8d2   : > { %v6082_v62 = vpop.f32.mrb[0].mxu1 }
 0x8d3   : > { %v2741_v54 = vmul.f32 0.25, %v6082_v62  ;;  %v2731_v45 = vpop.f32.mrb[1].mxu1 }
 0x8d4   : > { %v2740_v36 = vmul.f32 0.25, %v2731_v45 }
 0x8d5   : > { %v2745_v4 = vsel %vm1027_vm7, %v2741_v54, -inf }
 0x8d6   : > { %2746 = vmax.xlane.f32.xlu0 %v2745_v4  ;;  %v2742_v57 = vsel %vm1027_vm7, %v2740_v36, -inf }
 0x8d7   : > { %2743 = vmax.xlane.f32.xlu1 %v2742_v57 }
 0x8e8   : > { %2952 = vrot.lane.b32.xlu1 %v2947_v25, %s7000_s18 }
 0x8ec   : > { %2950 = vrot.lane.b32.xlu0 %v2946_v34, %s7000_s18 }
 0x963   : > { %v2747_v52 = vpop.xlane.xlu0 %2746 }
 0x964   : > { %v2749_v55 = vsub.f32 %v2741_v54, %v2747_v52  ;;  %v2744_v16 = vpop.xlane.xlu1 %2743  ;;  %v3316_v54 = vld [vmem:[#allocation2 + $0x20] sm:$0xff] }
 0x965   : > { %v2748_v63 = vsub.f32 %v2740_v36, %v2744_v16 }
 0x966   : > { %v2752_v27 = vmul.f32 1.442695, %v2749_v55 }
 0x967   : > { %v2750_v44 = vmul.f32 1.442695, %v2748_v63  ;;  %v2951_v43 = vpop.permute.xlu0 %2950 }
 0x968   : > { %6897 = vpow2.f32 %v2752_v27  ;;  %v2953_v9 = vpop.permute.xlu1 %2952  ;;  %6101 = vmatprep.mubr.msk.f32.mxu1 %vm1027_vm7, %v2951_v43  ;;  %v2505_v27 = vld [vmem:[#allocation3 + $0x38] sm:$0xff] }
 0x969   : > { %6899 = vpow2.f32 %v2750_v44  ;;  %6102 = vmatmul.mubr.msk.f32.vlgmr.msra.gmra.mrb[2].mxu1 %vm1027_vm7, %v2953_v9  ;;  %v2521_v44 = vadd.f32 1e-05, %v2505_v27 }
 0x96a   : > { %6901 = vrcp.f32 %v2519_v0 }
 0x972   : > { %v6898_v61 = vpop.eup %6897 }
 0x973   : > { %v6900_v23 = vpop.eup %6899  ;;  %v2757_v30 = vsel %vm1027_vm7, %v6898_v61, 0.0 }
 0x974   : > { %2758 = vadd.xlane.f32.xlu0 %v2757_v30  ;;  %v2754_v59 = vsel %vm1027_vm7, %v6900_v23, 0.0  ;;  %v6902_v28 = vpop.eup %6901 }
 0x975   : > { %2755 = vadd.xlane.f32.xlu1 %v2754_v59 }
 0x98a   : > { %6815 = vrot.lane.b32.xlu0 %v6814_v40, %s7001_s19 }
 0x98e   : > { %3325 = vperm.xlu0 %6807, %v6902_v28  }
 0xa01   : > { %v2759_v21 = vpop.xlane.xlu0 %2758 }
 0xa02   : > { %6903 = vrcp.f32 %v2759_v21  ;;  %v2756_v18 = vpop.xlane.xlu1 %2755 }
 0xa03   : > { %6905 = vrcp.f32 %v2756_v18 }
 0xa04   : > { %6907 = vrcp.f32 %v2518_v32 }
 0xa05   : > { %v6816_v19 = vpop.permute.xlu0 %6815 }
 0xa06   : > { %v6818_v2 = vunpack.i.h.bf16 %v6816_v19  ;;  %v6817_v13 = vunpack.i.l.bf16 %v6816_v19  ;;  %v2504_v19 = vld [vmem:[#allocation3 + $0x30] sm:$0xff] }
 0xa08   : > { %v6351_v42 = vpack.c.bf16 %v6818_v2, %v6817_v13  ;;  %v2550_v2 = vld [vmem:[%s8533_s7 + $0x10] sm:$0xff]  ;;  %v2551_v13 = vld [vmem:[%s8533_s7 + $0x18] sm:$0xff] }
 0xa0a   : > { %6352 = vmatprep.subr.bf16.mxu0 %v6351_v42 }
 0xa0b   : > { %6354 = vmatpush3.bf16.msra.mxu0 %v6351_v42  ;;  %v2520_v42 = vadd.f32 1e-05, %v2504_v19 }
 0xa0c   : > { %v6904_v15 = vpop.eup %6903  ;;  %6356 = vmatprep.subr.bf16.mxu0 %v8269_v58 }
 0xa0d   : > { %v6906_v26 = vpop.eup %6905  ;;  %v2763_v12 = vmul.f32 %v6904_v15, %v6898_v61  ;;  %v3326_v35 = vpop.permute.xlu0 %3325  ;;  %v8309_v15 = vpack.c.bf16 %v2551_v13, %v2550_v2 }
 0xa0e   : > { %v2762_v33 = vmul.f32 %v6906_v26, %v6900_v23  ;;  %v6908_v6 = vpop.eup %6907  ;;  %v3329_v62 = vmul.f32 %v3326_v35, %v3317_v39 }
 0xa10   : > { %6087 = vmatprep.mubr.msk.f32.mxu0 %vm1027_vm7, %v2762_v33 }
 0xa11   : > { %6088 = vmatmul.mubr.msk.f32.vlgmr.msra.gmra.mrb[2].mxu0 %vm1027_vm7, %v2763_v12 }
 0xa12   : > { %6358 = vmatpush3.bf16.msra.mxu0 %v8269_v58 }
 0xa3c   : > { %v6103_v50 = vpop.f32.mrb[2].mxu1 }
 0xa3d   : > { %v3024_v53 = vpop.f32.mrb[3].mxu1 }
 0xa3e   : > { %v6824_v22 = vpack.i.bf16 %v6103_v50, %v3024_v53 }
 0xa40   : > { %6820 = vrot.lane.b32.xlu1 %v6824_v22, %s7000_s18 }
 0xa44   : > { %3320 = vperm.xlu1 %6813, %v6908_v6  }
 0xab2   : > { %v6821_v37 = vpop.permute.xlu1 %6820 }
 0xab3   : > { %v6823_v8 = vunpack.i.h.bf16 %v6821_v37  ;;  %v6822_v31 = vunpack.i.l.bf16 %v6821_v37 }
 0xab5   : > { %v6363_v20 = vpack.c.bf16 %v6823_v8, %v6822_v31 }
 0xab7   : > { %6365 = vmatprep.subr.msk.bf16.mxu0 %vm8241_vm13, %v6363_v20 }
 0xac3   : > { %v3321_v45 = vpop.permute.xlu1 %3320 }
 0xac4   : > { %v3328_v36 = vmul.f32 %v3321_v45, %v3316_v54 }
 0xae4   : > { %v6089_v14 = vpop.f32.mrb[2].mxu0 }
 0xae5   : > { %v2842_v47 = vpop.f32.mrb[3].mxu0 }
 0xae6   : > { %6094 = vmatprep.mubr.msk.f32.mxu0 %vm1027_vm7, %v2842_v47 }
 0xae7   : > { %6095 = vmatmul.mubr.msk.f32.vlgmr.msra.gmra.mrb[4].mxu0 %vm1027_vm7, %v6089_v14 }
 0xae8   : > { %6368 = vmatpush3.bf16.xpose.msk.msra.mxu0 %vm8241_vm13, %v6363_v20  ;;  %6108 = vmatprep.mubr.msk.f32.mxu0 %vm1027_vm7, %v3024_v53 }
 0xae9   : > { %6378 = vmatprep.subr.bf16.mxu0 %v8231_v49 }
 0xaef   : > { %6109 = vmatmul.mubr.msk.f32.vlgmr.msra.gmra.mrb[6].mxu0 %vm1027_vm7, %v6103_v50 }
 0xaf0   : > { %6380 = vmatpush3.bf16.msra.mxu0 %v8231_v49 }
 0xbba   : > { %v6096_v3 = vpop.f32.mrb[4].mxu0 }
 0xbbb   : > { %2933 = vst.msk [vmem:[%s8535_s9 + $0x8] sm:$0xff] %vm404_vm2, %v6096_v3  ;;  %v2923_v17 = vpop.f32.mrb[5].mxu0 }
 0xbbc   : > { %2932 = vst.msk [vmem:[%s8535_s9] sm:$0xff] %vm404_vm2, %v2923_v17  ;;  %v3699_v17 = vld [vmem:[#allocation2 + $0x38] sm:$0xff] }
 0xbc2   : > { %v6110_v40 = vpop.f32.mrb[6].mxu0 }
 0xbc3   : > { %v3123_v1 = vmul.f32 0.25, %v6110_v40  ;;  %v3113_v60 = vpop.f32.mrb[7].mxu0 }
 0xbc4   : > { %v3122_v51 = vmul.f32 0.25, %v3113_v60  ;;  %v3698_v60 = vld [vmem:[#allocation2 + $0x30] sm:$0xff] }
 0xbc5   : > { %v3127_v5 = vsel %vm1027_vm7, %v3123_v1, -inf }
 0xbc6   : > { %3128 = vmax.xlane.f32.xlu0 %v3127_v5  ;;  %v3124_v48 = vsel %vm1027_vm7, %v3122_v51, -inf }
 0xbc7   : > { %3125 = vmax.xlane.f32.xlu1 %v3124_v48 }
 0xbd8   : > { %3334 = vrot.lane.b32.xlu1 %v3329_v62, %s7001_s19 }
 0xbdc   : > { %3332 = vrot.lane.b32.xlu0 %v3328_v36, %s7001_s19 }
 0xc53   : > { %v3129_v4 = vpop.xlane.xlu0 %3128 }
 0xc54   : > { %v3131_v57 = vsub.f32 %v3123_v1, %v3129_v4  ;;  %v3126_v24 = vpop.xlane.xlu1 %3125 }
 0xc55   : > { %v3130_v29 = vsub.f32 %v3122_v51, %v3126_v24 }
 0xc56   : > { %v3134_v46 = vmul.f32 1.442695, %v3131_v57 }
 0xc57   : > { %v3132_v41 = vmul.f32 1.442695, %v3130_v29  ;;  %v3333_v25 = vpop.permute.xlu0 %3332 }
 0xc58   : > { %6909 = vpow2.f32 %v3134_v46  ;;  %6129 = vmatprep.mubr.msk.f32.mxu0 %vm1027_vm7, %v3333_v25  ;;  %v3335_v34 = vpop.permute.xlu1 %3334 }
 0xc59   : > { %6911 = vpow2.f32 %v3132_v41  ;;  %6130 = vmatmul.mubr.msk.f32.vlgmr.msra.gmra.mrb[8].mxu0 %vm1027_vm7, %v3335_v34 }
 0xc5a   : > { %6913 = vrcp.f32 %v2521_v44 }
 0xc62   : > { %v6910_v52 = vpop.eup %6909 }
 0xc63   : > { %v6912_v55 = vpop.eup %6911  ;;  %v3139_v16 = vsel %vm1027_vm7, %v6910_v52, 0.0 }
 0xc64   : > { %3140 = vadd.xlane.f32.xlu0 %v3139_v16  ;;  %v3136_v63 = vsel %vm1027_vm7, %v6912_v55, 0.0  ;;  %v6914_v43 = vpop.eup %6913 }
 0xc65   : > { %3137 = vadd.xlane.f32.xlu1 %v3136_v63 }
 0xc7a   : > { %6825 = vrot.lane.b32.xlu0 %v6824_v22, %s7001_s19 }
 0xc7e   : > { %3707 = vperm.xlu0 %6807, %v6914_v43  }
 0xcf1   : > { %v3141_v9 = vpop.xlane.xlu0 %3140 }
 0xcf2   : > { %6915 = vrcp.f32 %v3141_v9  ;;  %v3138_v61 = vpop.xlane.xlu1 %3137  ;;  %v2552_v9 = vld [vmem:[%s8533_s7 + $0x20] sm:$0xff] }
 0xcf3   : > { %6917 = vrcp.f32 %v3138_v61  ;;  %v2553_v61 = vld [vmem:[%s8533_s7 + $0x28] sm:$0xff] }
 0xcf4   : > { %6919 = vrcp.f32 %v2520_v42 }
 0xcf5   : > { %v6826_v23 = vpop.permute.xlu0 %6825 }
 0xcf6   : > { %v6828_v30 = vunpack.i.h.bf16 %v6826_v23  ;;  %v6827_v59 = vunpack.i.l.bf16 %v6826_v23  ;;  %v8349_v23 = vpack.c.bf16 %v2553_v61, %v2552_v9 }
 0xcf8   : > { %v6369_v11 = vpack.c.bf16 %v6828_v30, %v6827_v59 }
 0xcfa   : > { %6370 = vmatprep.subr.bf16.mxu1 %v6369_v11 }
 0xcfb   : > { %6372 = vmatpush3.bf16.msra.mxu1 %v6369_v11 }
 0xcfc   : > { %v6916_v0 = vpop.eup %6915  ;;  %6374 = vmatprep.subr.bf16.mxu1 %v8309_v15 }
 0xcfd   : > { %v6918_v28 = vpop.eup %6917  ;;  %v3145_v18 = vmul.f32 %v6916_v0, %v6910_v52  ;;  %v3708_v40 = vpop.permute.xlu0 %3707 }
 0xcfe   : > { %v3144_v21 = vmul.f32 %v6918_v28, %v6912_v55  ;;  %v6920_v56 = vpop.eup %6919  ;;  %v3711_v1 = vmul.f32 %v3708_v40, %v3699_v17  ;;  %v4080_v17 = vld [vmem:[#allocation2 + $0x40] sm:$0xff]  ;;  %v4081_v40 = vld [vmem:[#allocation2 + $0x48] sm:$0xff] }
 0xd00   : > { %6115 = vmatprep.mubr.msk.f32.mxu1 %vm1027_vm7, %v3144_v21 }
 0xd01   : > { %6116 = vmatmul.mubr.msk.f32.vlgmr.msra.gmra.mrb[4].mxu1 %vm1027_vm7, %v3145_v18 }
 0xd02   : > { %6376 = vmatpush3.bf16.msra.mxu1 %v8309_v15 }
 0xd2c   : > { %v6131_v26 = vpop.f32.mrb[8].mxu0 }
 0xd2d   : > { %v3406_v33 = vpop.f32.mrb[9].mxu0 }
 0xd2e   : > { %v6834_v12 = vpack.i.bf16 %v6131_v26, %v3406_v33 }
 0xd30   : > { %6830 = vrot.lane.b32.xlu1 %v6834_v12, %s7000_s18 }
 0xd34   : > { %3702 = vperm.xlu1 %6813, %v6920_v56  }
 0xda2   : > { %v6831_v38 = vpop.permute.xlu1 %6830 }
 0xda3   : > { %v6833_v10 = vunpack.i.h.bf16 %v6831_v38  ;;  %v6832_v32 = vunpack.i.l.bf16 %v6831_v38  ;;  %v2507_v38 = vld [vmem:[#allocation3 + $0x48] sm:$0xff] }
 0xda5   : > { %v6381_v50 = vpack.c.bf16 %v6833_v10, %v6832_v32 }
 0xda7   : > { %6383 = vmatprep.subr.msk.bf16.mxu1 %vm8241_vm13, %v6381_v50 }
 0xdb3   : > { %v3703_v51 = vpop.permute.xlu1 %3702 }
 0xdb4   : > { %v3710_v5 = vmul.f32 %v3703_v51, %v3698_v60 }
 0xdd4   : > { %v6117_v53 = vpop.f32.mrb[4].mxu1 }
 0xdd5   : > { %v3224_v22 = vpop.f32.mrb[5].mxu1 }
 0xdd6   : > { %6122 = vmatprep.mubr.msk.f32.mxu1 %vm1027_vm7, %v3224_v22 }
 0xdd7   : > { %6123 = vmatmul.mubr.msk.f32.vlgmr.msra.gmra.mrb[6].mxu1 %vm1027_vm7, %v6117_v53  ;;  %v2506_v53 = vld [vmem:[#allocation3 + $0x40] sm:$0xff] }
 0xdd8   : > { %6386 = vmatpush3.bf16.xpose.msk.msra.mxu1 %vm8241_vm13, %v6381_v50  ;;  %6136 = vmatprep.mubr.msk.f32.mxu1 %vm1027_vm7, %v3406_v33  ;;  %v2523_v50 = vadd.f32 1e-05, %v2507_v38  ;;  %v2522_v22 = vadd.f32 1e-05, %v2506_v53  ;;  %v4458_v53 = vld [vmem:[#allocation2 + $0x50] sm:$0xff] }
 0xdd9   : > { %6396 = vmatprep.subr.bf16.mxu1 %v8231_v49 }
 0xddf   : > { %6137 = vmatmul.mubr.msk.f32.vlgmr.msra.gmra.mrb[8].mxu1 %vm1027_vm7, %v6131_v26 }
 0xde0   : > { %6398 = vmatpush3.bf16.msra.mxu1 %v8231_v49 }
 0xeaa   : > { %v6124_v6 = vpop.f32.mrb[6].mxu1 }
 0xeab   : > { %3315 = vst.msk [vmem:[%s8535_s9 + $0x18] sm:$0xff] %vm404_vm2, %v6124_v6  ;;  %v3305_v37 = vpop.f32.mrb[7].mxu1 }
 0xeac   : > { %3314 = vst.msk [vmem:[%s8535_s9 + $0x10] sm:$0xff] %vm404_vm2, %v3305_v37 }
 0xeb2   : > { %v6138_v8 = vpop.f32.mrb[8].mxu1 }
 0xeb3   : > { %v3505_v31 = vmul.f32 0.25, %v6138_v8  ;;  %v3495_v20 = vpop.f32.mrb[9].mxu1 }
 0xeb4   : > { %v3504_v14 = vmul.f32 0.25, %v3495_v20 }
 0xeb5   : > { %v3509_v47 = vsel %vm1027_vm7, %v3505_v31, -inf }
 0xeb6   : > { %3510 = vmax.xlane.f32.xlu0 %v3509_v47  ;;  %v3506_v3 = vsel %vm1027_vm7, %v3504_v14, -inf }
 0xeb7   : > { %3507 = vmax.xlane.f32.xlu1 %v3506_v3 }
 0xec8   : > { %3716 = vrot.lane.b32.xlu1 %v3711_v1, %s7002_s22 }
 0xecc   : > { %3714 = vrot.lane.b32.xlu0 %v3710_v5, %s7002_s22 }
 0xf43   : > { %v3511_v48 = vpop.xlane.xlu0 %3510 }
 0xf44   : > { %v3513_v39 = vsub.f32 %v3505_v31, %v3511_v48  ;;  %v3508_v35 = vpop.xlane.xlu1 %3507 }
 0xf45   : > { %v3512_v62 = vsub.f32 %v3504_v14, %v3508_v35 }
 0xf46   : > { %v3516_v54 = vmul.f32 1.442695, %v3513_v39 }
 0xf47   : > { %v3514_v45 = vmul.f32 1.442695, %v3512_v62  ;;  %v3715_v36 = vpop.permute.xlu0 %3714 }
 0xf48   : > { %6921 = vpow2.f32 %v3516_v54  ;;  %6157 = vmatprep.mubr.msk.f32.mxu1 %vm1027_vm7, %v3715_v36  ;;  %v3717_v4 = vpop.permute.xlu1 %3716  ;;  %v2509_v54 = vld [vmem:[#allocation3 + $0x58] sm:$0xff] }
 0xf49   : > { %6923 = vpow2.f32 %v3514_v45  ;;  %6158 = vmatmul.mubr.msk.f32.vlgmr.msra.gmra.mrb[10].mxu1 %vm1027_vm7, %v3717_v4  ;;  %v2525_v45 = vadd.f32 1e-05, %v2509_v54 }
 0xf52   : > { %v6922_v57 = vpop.eup %6921 }
 0xf53   : > { %v6924_v24 = vpop.eup %6923  ;;  %v3521_v29 = vsel %vm1027_vm7, %v6922_v57, 0.0 }
 0xf54   : > { %3522 = vadd.xlane.f32.xlu0 %v3521_v29  ;;  %v3518_v46 = vsel %vm1027_vm7, %v6924_v24, 0.0 }
 0xf55   : > { %3519 = vadd.xlane.f32.xlu1 %v3518_v46 }
 0xf6a   : > { %6835 = vrot.lane.b32.xlu0 %v6834_v12, %s7001_s19 }
 0xfe1   : > { %v3523_v41 = vpop.xlane.xlu0 %3522 }
 0xfe2   : > { %6925 = vrcp.f32 %v3523_v41  ;;  %v3520_v25 = vpop.xlane.xlu1 %3519 }
 0xfe3   : > { %6927 = vrcp.f32 %v3520_v25 }
 0xfe4   : > { %6929 = vrcp.f32 %v2523_v50 }
 0xfe5   : > { %v6836_v34 = vpop.permute.xlu0 %6835  ;;  %6931 = vrcp.f32 %v2522_v22 }
 0xfe6   : > { %v6838_v52 = vunpack.i.h.bf16 %v6836_v34  ;;  %v6837_v55 = vunpack.i.l.bf16 %v6836_v34 }
 0xfe8   : > { %v6387_v16 = vpack.c.bf16 %v6838_v52, %v6837_v55 }
 0xfea   : > { %6388 = vmatprep.subr.bf16.mxu0 %v6387_v16 }
 0xfeb   : > { %6390 = vmatpush3.bf16.msra.mxu0 %v6387_v16  ;;  %v2508_v16 = vld [vmem:[#allocation3 + $0x50] sm:$0xff] }
 0xfec   : > { %v6926_v63 = vpop.eup %6925  ;;  %6392 = vmatprep.subr.bf16.mxu0 %v8349_v23 }
 0xfed   : > { %v6928_v27 = vpop.eup %6927  ;;  %v3527_v43 = vmul.f32 %v6926_v63, %v6922_v57  ;;  %v2554_v63 = vld [vmem:[%s8533_s7 + $0x30] sm:$0xff] }
 0xfee   : > { %v3526_v44 = vmul.f32 %v6928_v27, %v6924_v24  ;;  %v6930_v6 = vpop.eup %6929  ;;  %v2555_v27 = vld [vmem:[%s8533_s7 + $0x38] sm:$0xff] }
 0xfef   : > { %v6932_v37 = vpop.eup %6931 }
 0xff0   : > { %6143 = vmatprep.mubr.msk.f32.mxu0 %vm1027_vm7, %v3526_v44  ;;  %v2524_v44 = vadd.f32 1e-05, %v2508_v16 }
 0xff1   : > { %6144 = vmatmul.mubr.msk.f32.vlgmr.msra.gmra.mrb[10].mxu0 %vm1027_vm7, %v3527_v43  ;;  %v8387_v43 = vpack.c.bf16 %v2555_v27, %v2554_v63 }
 0xff2   : > { %6394 = vmatpush3.bf16.msra.mxu0 %v8349_v23 }
0x101c   : > { %v6159_v30 = vpop.f32.mrb[10].mxu1 }
0x101d   : > { %v3788_v59 = vpop.f32.mrb[11].mxu1 }
0x101e   : > { %v6844_v11 = vpack.i.bf16 %v6159_v30, %v3788_v59 }
0x1020   : > { %6840 = vrot.lane.b32.xlu1 %v6844_v11, %s7000_s18 }
0x1092   : > { %v6841_v0 = vpop.permute.xlu1 %6840 }
0x1093   : > { %v6843_v28 = vunpack.i.h.bf16 %v6841_v0  ;;  %v6842_v21 = vunpack.i.l.bf16 %v6841_v0 }
0x1095   : > { %v6399_v18 = vpack.c.bf16 %v6843_v28, %v6842_v21 }
0x1097   : > { %6401 = vmatprep.subr.msk.bf16.mxu0 %vm8241_vm13, %v6399_v18 }
0x10c4   : > { %v6145_v19 = vpop.f32.mrb[10].mxu0 }
0x10c5   : > { %v3606_v2 = vpop.f32.mrb[11].mxu0 }
0x10c6   : > { %6150 = vmatprep.mubr.msk.f32.mxu0 %vm1027_vm7, %v3606_v2 }
0x10c7   : > { %6151 = vmatmul.mubr.msk.f32.vlgmr.msra.gmra.mrb[12].mxu0 %vm1027_vm7, %v6145_v19 }
0x10c8   : > { %6404 = vmatpush3.bf16.xpose.msk.msra.mxu0 %vm8241_vm13, %v6399_v18  ;;  %6164 = vmatprep.mubr.msk.f32.mxu0 %vm1027_vm7, %v3788_v59 }
0x10c9   : > { %6414 = vmatprep.subr.bf16.mxu0 %v8231_v49 }
0x10cf   : > { %6165 = vmatmul.mubr.msk.f32.vlgmr.msra.gmra.mrb[14].mxu0 %vm1027_vm7, %v6159_v30 }
0x10d0   : > { %6416 = vmatpush3.bf16.msra.mxu0 %v8231_v49 }
0x119a   : > { %v6152_v13 = vpop.f32.mrb[12].mxu0 }
0x119b   : > { %3697 = vst.msk [vmem:[%s8535_s9 + $0x28] sm:$0xff] %vm404_vm2, %v6152_v13  ;;  %v3687_v42 = vpop.f32.mrb[13].mxu0 }
0x119c   : > { %3696 = vst.msk [vmem:[%s8535_s9 + $0x20] sm:$0xff] %vm404_vm2, %v3687_v42 }
0x11a2   : > { %v6166_v26 = vpop.f32.mrb[14].mxu0 }
0x11a3   : > { %v3887_v33 = vmul.f32 0.25, %v6166_v26  ;;  %v3877_v12 = vpop.f32.mrb[15].mxu0 }
0x11a4   : > { %v3886_v56 = vmul.f32 0.25, %v3877_v12 }
0x11a5   : > { %v3891_v10 = vsel %vm1027_vm7, %v3887_v33, -inf }
0x11a6   : > { %3892 = vmax.xlane.f32.xlu0 %v3891_v10  ;;  %v3888_v32 = vsel %vm1027_vm7, %v3886_v56, -inf  ;;  %v4459_v10 = vld [vmem:[#allocation2 + $0x58] sm:$0xff] }
0x11a7   : > { %3889 = vmax.xlane.f32.xlu1 %v3888_v32 }
0x11b8   : > { %4089 = vperm.xlu1 %6813, %v6930_v6  }
0x11bc   : > { %4084 = vperm.xlu0 %6807, %v6932_v37  }
0x1233   : > { %v3893_v8 = vpop.xlane.xlu0 %3892 }
0x1234   : > { %v3895_v31 = vsub.f32 %v3887_v33, %v3893_v8  ;;  %v3890_v20 = vpop.xlane.xlu1 %3889 }
0x1235   : > { %v3894_v14 = vsub.f32 %v3886_v56, %v3890_v20 }
0x1236   : > { %v3898_v47 = vmul.f32 1.442695, %v3895_v31 }
0x1237   : > { %v3896_v3 = vmul.f32 1.442695, %v3894_v14 }
0x1238   : > { %6933 = vpow2.f32 %v3898_v47  ;;  %v4090_v1 = vpop.permute.xlu1 %4089 }
0x1239   : > { %6935 = vpow2.f32 %v3896_v3  ;;  %v4093_v5 = vmul.f32 %v4090_v1, %v4081_v40 }
0x123a   : > { %6937 = vrcp.f32 %v2525_v45 }
0x123b   : > { %v4085_v60 = vpop.permute.xlu0 %4084 }
0x123c   : > { %v4092_v51 = vmul.f32 %v4085_v60, %v4080_v17 }
0x123e   : > { %6185 = vmatprep.mubr.msk.f32.mxu0 %vm1027_vm7, %v4092_v51 }
0x123f   : > { %6186 = vmatmul.mubr.msk.f32.vlgmr.msra.gmra.mrb[16].mxu0 %vm1027_vm7, %v4093_v5  ;;  %v2511_v5 = vld [vmem:[#allocation3 + $0x68] sm:$0xff] }
0x1242   : > { %v6934_v48 = vpop.eup %6933 }
0x1243   : > { %v6936_v39 = vpop.eup %6935  ;;  %v3903_v35 = vsel %vm1027_vm7, %v6934_v48, 0.0 }
0x1244   : > { %3904 = vadd.xlane.f32.xlu0 %v3903_v35  ;;  %v3900_v62 = vsel %vm1027_vm7, %v6936_v39, 0.0  ;;  %v6938_v36 = vpop.eup %6937 }
0x1245   : > { %3901 = vadd.xlane.f32.xlu1 %v3900_v62 }
0x125a   : > { %6845 = vrot.lane.b32.xlu0 %v6844_v11, %s7001_s19 }
0x125e   : > { %4467 = vperm.xlu0 %6807, %v6938_v36  }
0x12d1   : > { %v3905_v4 = vpop.xlane.xlu0 %3904 }
0x12d2   : > { %6939 = vrcp.f32 %v3905_v4  ;;  %v3902_v57 = vpop.xlane.xlu1 %3901 }
0x12d3   : > { %6941 = vrcp.f32 %v3902_v57 }
0x12d4   : > { %6943 = vrcp.f32 %v2524_v44 }
0x12d5   : > { %v6846_v24 = vpop.permute.xlu0 %6845 }
0x12d6   : > { %v6848_v29 = vunpack.i.h.bf16 %v6846_v24  ;;  %v6847_v46 = vunpack.i.l.bf16 %v6846_v24 }
0x12d8   : > { %v6405_v41 = vpack.c.bf16 %v6848_v29, %v6847_v46 }
0x12da   : > { %6406 = vmatprep.subr.bf16.mxu1 %v6405_v41 }
0x12db   : > { %6408 = vmatpush3.bf16.msra.mxu1 %v6405_v41  ;;  %v2510_v41 = vld [vmem:[#allocation3 + $0x60] sm:$0xff] }
0x12dc   : > { %v6940_v25 = vpop.eup %6939  ;;  %6410 = vmatprep.subr.bf16.mxu1 %v8387_v43 }
0x12dd   : > { %v6942_v34 = vpop.eup %6941  ;;  %v3909_v55 = vmul.f32 %v6940_v25, %v6934_v48  ;;  %v4468_v32 = vpop.permute.xlu0 %4467  ;;  %v2527_v48 = vadd.f32 1e-05, %v2511_v5  ;;  %v2526_v25 = vadd.f32 1e-05, %v2510_v41 }
0x12de   : > { %v3908_v52 = vmul.f32 %v6942_v34, %v6936_v39  ;;  %v6944_v59 = vpop.eup %6943  ;;  %v4471_v50 = vmul.f32 %v4468_v32, %v4459_v10 }
0x12e0   : > { %6171 = vmatprep.mubr.msk.f32.mxu1 %vm1027_vm7, %v3908_v52 }
0x12e1   : > { %6172 = vmatmul.mubr.msk.f32.vlgmr.msra.gmra.mrb[12].mxu1 %vm1027_vm7, %v3909_v55 }
0x12e2   : > { %6412 = vmatpush3.bf16.msra.mxu1 %v8387_v43 }
0x1312   : > { %v6187_v9 = vpop.f32.mrb[16].mxu0 }
0x1313   : > { %v4166_v61 = vpop.f32.mrb[17].mxu0 }
0x1314   : > { %v6854_v30 = vpack.i.bf16 %v6187_v9, %v4166_v61 }
0x1316   : > { %6850 = vrot.lane.b32.xlu1 %v6854_v30, %s7000_s18 }
0x131a   : > { %4462 = vperm.xlu1 %6813, %v6944_v59  }
0x1388   : > { %v6851_v11 = vpop.permute.xlu1 %6850 }
0x1389   : > { %v6853_v0 = vunpack.i.h.bf16 %v6851_v11  ;;  %v6852_v28 = vunpack.i.l.bf16 %v6851_v11 }
0x138b   : > { %v6417_v21 = vpack.c.bf16 %v6853_v0, %v6852_v28 }
0x138d   : > { %6419 = vmatprep.subr.msk.bf16.mxu1 %vm8241_vm13, %v6417_v21 }
0x1399   : > { %v4463_v22 = vpop.permute.xlu1 %4462 }
0x139a   : > { %v4470_v6 = vmul.f32 %v4463_v22, %v4458_v53 }
0x13b4   : > { %v6173_v18 = vpop.f32.mrb[12].mxu1 }
0x13b5   : > { %v3988_v19 = vpop.f32.mrb[13].mxu1 }
0x13b6   : > { %6178 = vmatprep.mubr.msk.f32.mxu1 %vm1027_vm7, %v3988_v19 }
0x13b7   : > { %6179 = vmatmul.mubr.msk.f32.vlgmr.msra.gmra.mrb[14].mxu1 %vm1027_vm7, %v6173_v18 }
0x13b8   : > { %6422 = vmatpush3.bf16.xpose.msk.msra.mxu1 %vm8241_vm13, %v6417_v21  ;;  %6192 = vmatprep.mubr.msk.f32.mxu1 %vm1027_vm7, %v4166_v61 }
0x13b9   : > { %6432 = vmatprep.subr.bf16.mxu1 %v8231_v49 }
0x13bf   : > { %6193 = vmatmul.mubr.msk.f32.vlgmr.msra.gmra.mrb[16].mxu1 %vm1027_vm7, %v6187_v9 }
0x13c0   : > { %6434 = vmatpush3.bf16.msra.mxu1 %v8231_v49 }
0x148a   : > { %v6180_v2 = vpop.f32.mrb[14].mxu1 }
0x148b   : > { %4079 = vst.msk [vmem:[%s8535_s9 + $0x38] sm:$0xff] %vm404_vm2, %v6180_v2  ;;  %v4069_v13 = vpop.f32.mrb[15].mxu1  ;;  %v4841_v2 = vld [vmem:[#allocation2 + $0x68] sm:$0xff] }
0x148c   : > { %4078 = vst.msk [vmem:[%s8535_s9 + $0x30] sm:$0xff] %vm404_vm2, %v4069_v13 }
0x1492   : > { %v6194_v42 = vpop.f32.mrb[16].mxu1 }
0x1493   : > { %v4265_v26 = vmul.f32 0.25, %v6194_v42  ;;  %v4255_v33 = vpop.f32.mrb[17].mxu1 }
0x1494   : > { %v4264_v12 = vmul.f32 0.25, %v4255_v33 }
0x1495   : > { %v4269_v56 = vsel %vm1027_vm7, %v4265_v26, -inf }
0x1496   : > { %4270 = vmax.xlane.f32.xlu0 %v4269_v56  ;;  %v4266_v38 = vsel %vm1027_vm7, %v4264_v12, -inf }
0x1497   : > { %4267 = vmax.xlane.f32.xlu1 %v4266_v38 }
0x14a8   : > { %4476 = vrot.lane.b32.xlu1 %v4471_v50, %s7000_s18 }
0x14ac   : > { %4474 = vrot.lane.b32.xlu0 %v4470_v6, %s7000_s18 }
0x1523   : > { %v4271_v37 = vpop.xlane.xlu0 %4270 }
0x1524   : > { %v4273_v8 = vsub.f32 %v4265_v26, %v4271_v37  ;;  %v4268_v31 = vpop.xlane.xlu1 %4267  ;;  %v4840_v26 = vld [vmem:[#allocation2 + $0x60] sm:$0xff] }
0x1525   : > { %v4272_v20 = vsub.f32 %v4264_v12, %v4268_v31 }
0x1526   : > { %v4276_v14 = vmul.f32 1.442695, %v4273_v8 }
0x1527   : > { %v4274_v47 = vmul.f32 1.442695, %v4272_v20  ;;  %v4475_v3 = vpop.permute.xlu0 %4474 }
0x1528   : > { %6945 = vpow2.f32 %v4276_v14  ;;  %6213 = vmatprep.mubr.msk.f32.mxu1 %vm1027_vm7, %v4475_v3  ;;  %v4477_v17 = vpop.permute.xlu1 %4476  ;;  %v2513_v14 = vld [vmem:[#allocation3 + $0x78] sm:$0xff] }
0x1529   : > { %6947 = vpow2.f32 %v4274_v47  ;;  %6214 = vmatmul.mubr.msk.f32.vlgmr.msra.gmra.mrb[18].mxu1 %vm1027_vm7, %v4477_v17  ;;  %v2529_v47 = vadd.f32 1e-05, %v2513_v14 }
0x152a   : > { %6949 = vrcp.f32 %v2527_v48 }
0x1532   : > { %v6946_v40 = vpop.eup %6945 }
0x1533   : > { %v6948_v1 = vpop.eup %6947  ;;  %v4281_v60 = vsel %vm1027_vm7, %v6946_v40, 0.0 }
0x1534   : > { %4282 = vadd.xlane.f32.xlu0 %v4281_v60  ;;  %v4278_v51 = vsel %vm1027_vm7, %v6948_v1, 0.0  ;;  %v6950_v39 = vpop.eup %6949 }
0x1535   : > { %4279 = vadd.xlane.f32.xlu1 %v4278_v51 }
0x154a   : > { %6855 = vrot.lane.b32.xlu0 %v6854_v30, %s7001_s19 }
0x154e   : > { %4849 = vperm.xlu0 %6807, %v6950_v39  }
0x15c1   : > { %v4283_v35 = vpop.xlane.xlu0 %4282 }
0x15c2   : > { %6951 = vrcp.f32 %v4283_v35  ;;  %v4280_v62 = vpop.xlane.xlu1 %4279 }
0x15c3   : > { %6953 = vrcp.f32 %v4280_v62 }
0x15c4   : > { %6955 = vrcp.f32 %v2526_v25 }
0x15c5   : > { %v6856_v54 = vpop.permute.xlu0 %6855 }
0x15c6   : > { %v6858_v45 = vunpack.i.h.bf16 %v6856_v54  ;;  %v6857_v36 = vunpack.i.l.bf16 %v6856_v54  ;;  %v2512_v54 = vld [vmem:[#allocation3 + $0x70] sm:$0xff] }
0x15c8   : > { %v6423_v4 = vpack.c.bf16 %v6858_v45, %v6857_v36  ;;  %v2528_v45 = vadd.f32 1e-05, %v2512_v54 }
0x15ca   : > { %6424 = vmatprep.subr.bf16.mxu0 %v6423_v4 }
0x15cb   : > { %6426 = vmatpush3.bf16.msra.mxu0 %v6423_v4 }
0x15cc   : > { %v6952_v57 = vpop.eup %6951  ;;  %6428 = vmatprep.subr.bf16.mxu0 %v8269_v58 }
0x15cd   : > { %v6954_v24 = vpop.eup %6953  ;;  %v4287_v46 = vmul.f32 %v6952_v57, %v6946_v40  ;;  %v4850_v13 = vpop.permute.xlu0 %4849 }
0x15ce   : > { %v4286_v29 = vmul.f32 %v6954_v24, %v6948_v1  ;;  %v6956_v16 = vpop.eup %6955  ;;  %v4853_v42 = vmul.f32 %v4850_v13, %v4841_v2 }
0x15d0   : > { %6199 = vmatprep.mubr.msk.f32.mxu0 %vm1027_vm7, %v4286_v29 }
0x15d1   : > { %6200 = vmatmul.mubr.msk.f32.vlgmr.msra.gmra.mrb[18].mxu0 %vm1027_vm7, %v4287_v46 }
0x15d2   : > { %6430 = vmatpush3.bf16.msra.mxu0 %v8269_v58 }
0x15fc   : > { %v6215_v34 = vpop.f32.mrb[18].mxu1 }
0x15fd   : > { %v4548_v52 = vpop.f32.mrb[19].mxu1 }
0x15fe   : > { %v6864_v55 = vpack.i.bf16 %v6215_v34, %v4548_v52 }
0x1600   : > { %6860 = vrot.lane.b32.xlu1 %v6864_v55, %s7000_s18 }
0x1604   : > { %4844 = vperm.xlu1 %6813, %v6956_v16  }
0x1672   : > { %v6861_v63 = vpop.permute.xlu1 %6860 }
0x1673   : > { %v6863_v27 = vunpack.i.h.bf16 %v6861_v63  ;;  %v6862_v44 = vunpack.i.l.bf16 %v6861_v63 }
0x1675   : > { %v6435_v9 = vpack.c.bf16 %v6863_v27, %v6862_v44 }
0x1677   : > { %6437 = vmatprep.subr.msk.bf16.mxu0 %vm8241_vm13, %v6435_v9 }
0x1683   : > { %v4845_v33 = vpop.permute.xlu1 %4844 }
0x1684   : > { %v4852_v12 = vmul.f32 %v4845_v33, %v4840_v26 }
0x16a4   : > { %v6201_v61 = vpop.f32.mrb[18].mxu0 }
0x16a5   : > { %v4366_v30 = vpop.f32.mrb[19].mxu0 }
0x16a6   : > { %6206 = vmatprep.mubr.msk.f32.mxu0 %vm1027_vm7, %v4366_v30 }
0x16a7   : > { %6207 = vmatmul.mubr.msk.f32.vlgmr.msra.gmra.mrb[20].mxu0 %vm1027_vm7, %v6201_v61  ;;  %v5223_v61 = vld [vmem:[#allocation2 + $0x78] sm:$0xff] }
0x16a8   : > { %6440 = vmatpush3.bf16.xpose.msk.msra.mxu0 %vm8241_vm13, %v6435_v9  ;;  %6220 = vmatprep.mubr.msk.f32.mxu0 %vm1027_vm7, %v4548_v52 }
0x16a9   : > { %6450 = vmatprep.subr.bf16.mxu0 %v8231_v49 }
0x16af   : > { %6221 = vmatmul.mubr.msk.f32.vlgmr.msra.gmra.mrb[22].mxu0 %vm1027_vm7, %v6215_v34 }
0x16b0   : > { %6452 = vmatpush3.bf16.msra.mxu0 %v8231_v49 }
0x177a   : > { %v6208_v58 = vpop.f32.mrb[20].mxu0 }
0x177b   : > { %4457 = vst.msk [vmem:[%s8535_s9 + $0x48] sm:$0xff] %vm404_vm2, %v6208_v58  ;;  %v4447_v59 = vpop.f32.mrb[21].mxu0 }
0x177c   : > { %4456 = vst.msk [vmem:[%s8535_s9 + $0x40] sm:$0xff] %vm404_vm2, %v4447_v59  ;;  %v5222_v59 = vld [vmem:[#allocation2 + $0x70] sm:$0xff] }
0x1782   : > { %v6222_v11 = vpop.f32.mrb[22].mxu0 }
0x1783   : > { %v4647_v0 = vmul.f32 0.25, %v6222_v11  ;;  %v4637_v28 = vpop.f32.mrb[23].mxu0 }
0x1784   : > { %v4646_v21 = vmul.f32 0.25, %v4637_v28 }
0x1785   : > { %v4651_v18 = vsel %vm1027_vm7, %v4647_v0, -inf }
0x1786   : > { %4652 = vmax.xlane.f32.xlu0 %v4651_v18  ;;  %v4648_v19 = vsel %vm1027_vm7, %v4646_v21, -inf }
0x1787   : > { %4649 = vmax.xlane.f32.xlu1 %v4648_v19 }
0x1798   : > { %4858 = vrot.lane.b32.xlu1 %v4853_v42, %s7001_s19 }
0x179c   : > { %4856 = vrot.lane.b32.xlu0 %v4852_v12, %s7001_s19 }
0x1813   : > { %v4653_v56 = vpop.xlane.xlu0 %4652 }
0x1814   : > { %v4655_v38 = vsub.f32 %v4647_v0, %v4653_v56  ;;  %v4650_v10 = vpop.xlane.xlu1 %4649 }
0x1815   : > { %v4654_v32 = vsub.f32 %v4646_v21, %v4650_v10 }
0x1816   : > { %v4658_v50 = vmul.f32 1.442695, %v4655_v38 }
0x1817   : > { %v4656_v53 = vmul.f32 1.442695, %v4654_v32  ;;  %v4857_v22 = vpop.permute.xlu0 %4856 }
0x1818   : > { %6957 = vpow2.f32 %v4658_v50  ;;  %6241 = vmatprep.mubr.msk.f32.mxu0 %vm1027_vm7, %v4857_v22  ;;  %v4859_v6 = vpop.permute.xlu1 %4858 }
0x1819   : > { %6959 = vpow2.f32 %v4656_v53  ;;  %6242 = vmatmul.mubr.msk.f32.vlgmr.msra.gmra.mrb[24].mxu0 %vm1027_vm7, %v4859_v6 }
0x181a   : > { %6961 = vrcp.f32 %v2529_v47 }
0x1822   : > { %v6958_v37 = vpop.eup %6957 }
0x1823   : > { %v6960_v8 = vpop.eup %6959  ;;  %v4663_v31 = vsel %vm1027_vm7, %v6958_v37, 0.0 }
0x1824   : > { %4664 = vadd.xlane.f32.xlu0 %v4663_v31  ;;  %v4660_v20 = vsel %vm1027_vm7, %v6960_v8, 0.0  ;;  %v6962_v3 = vpop.eup %6961 }
0x1825   : > { %4661 = vadd.xlane.f32.xlu1 %v4660_v20 }
0x183a   : > { %6865 = vrot.lane.b32.xlu0 %v6864_v55, %s7001_s19 }
0x183e   : > { %5231 = vperm.xlu0 %6807, %v6962_v3  }
0x18b1   : > { %v4665_v17 = vpop.xlane.xlu0 %4664 }
0x18b2   : > { %6963 = vrcp.f32 %v4665_v17  ;;  %v4662_v40 = vpop.xlane.xlu1 %4661 }
0x18b3   : > { %6965 = vrcp.f32 %v4662_v40 }
0x18b4   : > { %6967 = vrcp.f32 %v2528_v45 }
0x18b5   : > { %v6866_v1 = vpop.permute.xlu0 %6865 }
0x18b6   : > { %v6868_v60 = vunpack.i.h.bf16 %v6866_v1  ;;  %v6867_v51 = vunpack.i.l.bf16 %v6866_v1 }
0x18b8   : > { %v6441_v5 = vpack.c.bf16 %v6868_v60, %v6867_v51 }
0x18ba   : > { %6442 = vmatprep.subr.bf16.mxu1 %v6441_v5 }
0x18bb   : > { %6444 = vmatpush3.bf16.msra.mxu1 %v6441_v5 }
0x18bc   : > { %v6964_v48 = vpop.eup %6963  ;;  %6446 = vmatprep.subr.bf16.mxu1 %v8309_v15 }
0x18bd   : > { %v6966_v39 = vpop.eup %6965  ;;  %v4669_v62 = vmul.f32 %v6964_v48, %v6958_v37  ;;  %v5232_v30 = vpop.permute.xlu0 %5231 }
0x18be   : > { %v4668_v35 = vmul.f32 %v6966_v39, %v6960_v8  ;;  %v6968_v24 = vpop.eup %6967  ;;  %v5235_v58 = vmul.f32 %v5232_v30, %v5223_v61 }
0x18c0   : > { %6227 = vmatprep.mubr.msk.f32.mxu1 %vm1027_vm7, %v4668_v35 }
0x18c1   : > { %6228 = vmatmul.mubr.msk.f32.vlgmr.msra.gmra.mrb[20].mxu1 %vm1027_vm7, %v4669_v62 }
0x18c2   : > { %6448 = vmatpush3.bf16.msra.mxu1 %v8309_v15 }
0x18ec   : > { %v6243_v36 = vpop.f32.mrb[24].mxu0 }
0x18ed   : > { %v4930_v4 = vpop.f32.mrb[25].mxu0 }
0x18ee   : > { %v6874_v57 = vpack.i.bf16 %v6243_v36, %v4930_v4 }
0x18f0   : > { %6870 = vrot.lane.b32.xlu1 %v6874_v57, %s7000_s18 }
0x18f4   : > { %5226 = vperm.xlu1 %6813, %v6968_v24  }
0x1962   : > { %v6871_v29 = vpop.permute.xlu1 %6870 }
0x1963   : > { %v6873_v46 = vunpack.i.h.bf16 %v6871_v29  ;;  %v6872_v41 = vunpack.i.l.bf16 %v6871_v29 }
0x1965   : > { %v6453_v25 = vpack.c.bf16 %v6873_v46, %v6872_v41 }
0x1967   : > { %6455 = vmatprep.subr.msk.bf16.mxu1 %vm8241_vm13, %v6453_v25 }
0x1973   : > { %v5227_v11 = vpop.permute.xlu1 %5226 }
0x1974   : > { %v5234_v0 = vmul.f32 %v5227_v11, %v5222_v59 }
0x1994   : > { %v6229_v34 = vpop.f32.mrb[20].mxu1 }
0x1995   : > { %v4748_v52 = vpop.f32.mrb[21].mxu1 }
0x1996   : > { %6234 = vmatprep.mubr.msk.f32.mxu1 %vm1027_vm7, %v4748_v52 }
0x1997   : > { %6235 = vmatmul.mubr.msk.f32.vlgmr.msra.gmra.mrb[22].mxu1 %vm1027_vm7, %v6229_v34 }
0x1998   : > { %6458 = vmatpush3.bf16.xpose.msk.msra.mxu1 %vm8241_vm13, %v6453_v25  ;;  %6248 = vmatprep.mubr.msk.f32.mxu1 %vm1027_vm7, %v4930_v4 }
0x1999   : > { %6468 = vmatprep.subr.bf16.mxu1 %v8231_v49 }
0x199f   : > { %6249 = vmatmul.mubr.msk.f32.vlgmr.msra.gmra.mrb[24].mxu1 %vm1027_vm7, %v6243_v36 }
0x19a0   : > { %6470 = vmatpush3.bf16.msra.mxu1 %v8231_v49 }
0x1a6a   : > { %v6236_v15 = vpop.f32.mrb[22].mxu1 }
0x1a6b   : > { %4839 = vst.msk [vmem:[%s8535_s9 + $0x58] sm:$0xff] %vm404_vm2, %v6236_v15  ;;  %v4829_v55 = vpop.f32.mrb[23].mxu1 }
0x1a6c   : > { %4838 = vst.msk [vmem:[%s8535_s9 + $0x50] sm:$0xff] %vm404_vm2, %v4829_v55 }
0x1a72   : > { %v6250_v16 = vpop.f32.mrb[24].mxu1 }
0x1a73   : > { %v5029_v63 = vmul.f32 0.25, %v6250_v16  ;;  %v5019_v27 = vpop.f32.mrb[25].mxu1 }
0x1a74   : > { %v5028_v44 = vmul.f32 0.25, %v5019_v27 }
0x1a75   : > { %v5033_v9 = vsel %vm1027_vm7, %v5029_v63, -inf }
0x1a76   : > { %5034 = vmax.xlane.f32.xlu0 %v5033_v9  ;;  %v5030_v49 = vsel %vm1027_vm7, %v5028_v44, -inf }
0x1a77   : > { %5031 = vmax.xlane.f32.xlu1 %v5030_v49 }
0x1a88   : > { %5240 = vrot.lane.b32.xlu1 %v5235_v58, %s7002_s22 }
0x1a8c   : > { %5238 = vrot.lane.b32.xlu0 %v5234_v0, %s7002_s22 }
0x1b03   : > { %v5035_v28 = vpop.xlane.xlu0 %5034 }
0x1b04   : > { %v5037_v21 = vsub.f32 %v5029_v63, %v5035_v28  ;;  %v5032_v18 = vpop.xlane.xlu1 %5031 }
0x1b05   : > { %v5036_v19 = vsub.f32 %v5028_v44, %v5032_v18 }
0x1b06   : > { %v5040_v2 = vmul.f32 1.442695, %v5037_v21 }
0x1b07   : > { %v5038_v13 = vmul.f32 1.442695, %v5036_v19  ;;  %v5239_v42 = vpop.permute.xlu0 %5238 }
0x1b08   : > { %6969 = vpow2.f32 %v5040_v2  ;;  %6269 = vmatprep.mubr.msk.f32.mxu1 %vm1027_vm7, %v5239_v42  ;;  %v5241_v26 = vpop.permute.xlu1 %5240 }
0x1b09   : > { %6971 = vpow2.f32 %v5038_v13  ;;  %6270 = vmatmul.mubr.msk.f32.vlgmr.msra.gmra.mrb[26].mxu1 %vm1027_vm7, %v5241_v26 }
0x1b12   : > { %v6970_v33 = vpop.eup %6969 }
0x1b13   : > { %v6972_v12 = vpop.eup %6971  ;;  %v5045_v56 = vsel %vm1027_vm7, %v6970_v33, 0.0 }
0x1b14   : > { %5046 = vadd.xlane.f32.xlu0 %v5045_v56  ;;  %v5042_v38 = vsel %vm1027_vm7, %v6972_v12, 0.0 }
0x1b15   : > { %5043 = vadd.xlane.f32.xlu1 %v5042_v38 }
0x1b2a   : > { %6875 = vrot.lane.b32.xlu0 %v6874_v57, %s7001_s19 }
0x1ba1   : > { %v5047_v10 = vpop.xlane.xlu0 %5046 }
0x1ba2   : > { %6973 = vrcp.f32 %v5047_v10  ;;  %v5044_v32 = vpop.xlane.xlu1 %5043 }
0x1ba3   : > { %6975 = vrcp.f32 %v5044_v32 }
0x1ba5   : > { %v6876_v50 = vpop.permute.xlu0 %6875 }
0x1ba6   : > { %v6878_v53 = vunpack.i.h.bf16 %v6876_v50  ;;  %v6877_v22 = vunpack.i.l.bf16 %v6876_v50 }
0x1ba8   : > { %v6459_v6 = vpack.c.bf16 %v6878_v53, %v6877_v22 }
0x1baa   : > { %6460 = vmatprep.subr.bf16.mxu0 %v6459_v6 }
0x1bab   : > { %6462 = vmatpush3.bf16.msra.mxu0 %v6459_v6 }
0x1bac   : > { %v6974_v37 = vpop.eup %6973  ;;  %6464 = vmatprep.subr.bf16.mxu0 %v8349_v23 }
0x1bad   : > { %v6976_v8 = vpop.eup %6975  ;;  %v5051_v20 = vmul.f32 %v6974_v37, %v6970_v33 }
0x1bae   : > { %v5050_v31 = vmul.f32 %v6976_v8, %v6972_v12 }
0x1bb0   : > { %6255 = vmatprep.mubr.msk.f32.mxu0 %vm1027_vm7, %v5050_v31 }
0x1bb1   : > { %6256 = vmatmul.mubr.msk.f32.vlgmr.msra.gmra.mrb[26].mxu0 %vm1027_vm7, %v5051_v20 }
0x1bb2   : > { %6466 = vmatpush3.bf16.msra.mxu0 %v8349_v23 }
0x1bdc   : > { %v6271_v14 = vpop.f32.mrb[26].mxu1 }
0x1bdd   : > { %v5312_v47 = vpop.f32.mrb[27].mxu1 }
0x1bde   : > { %v6884_v3 = vpack.i.bf16 %v6271_v14, %v5312_v47 }
0x1be0   : > { %6880 = vrot.lane.b32.xlu1 %v6884_v3, %s7000_s18 }
0x1c52   : > { %v6881_v17 = vpop.permute.xlu1 %6880 }
0x1c53   : > { %v6883_v40 = vunpack.i.h.bf16 %v6881_v17  ;;  %v6882_v1 = vunpack.i.l.bf16 %v6881_v17 }
0x1c55   : > { %v6471_v60 = vpack.c.bf16 %v6883_v40, %v6882_v1 }
0x1c57   : > { %6473 = vmatprep.subr.msk.bf16.mxu0 %vm8241_vm13, %v6471_v60 }
0x1c84   : > { %v6257_v51 = vpop.f32.mrb[26].mxu0 }
0x1c85   : > { %v5130_v5 = vpop.f32.mrb[27].mxu0 }
0x1c86   : > { %6262 = vmatprep.mubr.msk.f32.mxu0 %vm1027_vm7, %v5130_v5 }
0x1c87   : > { %6263 = vmatmul.mubr.msk.f32.vlgmr.msra.gmra.mrb[28].mxu0 %vm1027_vm7, %v6257_v51 }
0x1c88   : > { %6476 = vmatpush3.bf16.xpose.msk.msra.mxu0 %vm8241_vm13, %v6471_v60  ;;  %6276 = vmatprep.mubr.msk.f32.mxu0 %vm1027_vm7, %v5312_v47 }
0x1c8f   : > { %6277 = vmatmul.mubr.msk.f32.vlgmr.msra.gmra.mrb[30].mxu0 %vm1027_vm7, %v6271_v14 }
0x1d5a   : > { %v6264_v23 = vpop.f32.mrb[28].mxu0 }
0x1d5b   : > { %5221 = vst.msk [vmem:[%s8535_s9 + $0x68] sm:$0xff] %vm404_vm2, %v6264_v23  ;;  %v5211_v48 = vpop.f32.mrb[29].mxu0 }
0x1d5c   : > { %5220 = vst.msk [vmem:[%s8535_s9 + $0x60] sm:$0xff] %vm404_vm2, %v5211_v48 }
0x1d62   : > { %v6278_v39 = vpop.f32.mrb[30].mxu0 }
0x1d63   : > { %v5411_v35 = vmul.f32 0.25, %v6278_v39  ;;  %v5401_v7 = vpop.f32.mrb[31].mxu0 }
0x1d64   : > { %v5410_v62 = vmul.f32 0.25, %v5401_v7 }
0x1d65   : > { %v5415_v54 = vsel %vm1027_vm7, %v5411_v35, -inf }
0x1d66   : > { %5416 = vmax.xlane.f32.xlu0 %v5415_v54  ;;  %v5412_v45 = vsel %vm1027_vm7, %v5410_v62, -inf }
0x1d67   : > { %5413 = vmax.xlane.f32.xlu1 %v5412_v45 }
0x1df3   : > { %v5417_v36 = vpop.xlane.xlu0 %5416 }
0x1df4   : > { %v5419_v4 = vsub.f32 %v5411_v35, %v5417_v36  ;;  %v5414_v57 = vpop.xlane.xlu1 %5413 }
0x1df5   : > { %v5418_v24 = vsub.f32 %v5410_v62, %v5414_v57 }
0x1df6   : > { %v5422_v29 = vmul.f32 1.442695, %v5419_v4 }
0x1df7   : > { %v5420_v46 = vmul.f32 1.442695, %v5418_v24 }
0x1df8   : > { %6977 = vpow2.f32 %v5422_v29 }
0x1df9   : > { %6979 = vpow2.f32 %v5420_v46 }
0x1e02   : > { %v6978_v41 = vpop.eup %6977 }
0x1e03   : > { %v6980_v25 = vpop.eup %6979  ;;  %v5427_v34 = vsel %vm1027_vm7, %v6978_v41, 0.0 }
0x1e04   : > { %5428 = vadd.xlane.f32.xlu1 %v5427_v34  ;;  %v5424_v52 = vsel %vm1027_vm7, %v6980_v25, 0.0 }
0x1e05   : > { %5425 = vadd.xlane.f32.xlu0 %v5424_v52 }
0x1e1b   : > { %6885 = vrot.lane.b32.xlu0 %v6884_v3, %s7001_s19 }
0x1e91   : > { %v5429_v15 = vpop.xlane.xlu1 %5428 }
0x1e92   : > { %6981 = vrcp.f32 %v5429_v15  ;;  %v5426_v55 = vpop.xlane.xlu0 %5425 }
0x1e93   : > { %6983 = vrcp.f32 %v5426_v55 }
0x1e96   : > { %v6886_v16 = vpop.permute.xlu0 %6885 }
0x1e97   : > { %v6888_v63 = vunpack.i.h.bf16 %v6886_v16  ;;  %v6887_v27 = vunpack.i.l.bf16 %v6886_v16 }
0x1e99   : > { %v6477_v44 = vpack.c.bf16 %v6888_v63, %v6887_v27 }
0x1e9b   : > { %6478 = vmatprep.subr.bf16.mxu1 %v6477_v44 }
0x1e9c   : > { %v6982_v9 = vpop.eup %6981  ;;  %6480 = vmatpush3.bf16.msra.mxu1 %v6477_v44 }
0x1e9d   : > { %v6984_v49 = vpop.eup %6983  ;;  %6482 = vmatprep.subr.bf16.mxu1 %v8387_v43  ;;  %v5433_v30 = vmul.f32 %v6982_v9, %v6978_v41 }
0x1e9e   : > { %v5432_v61 = vmul.f32 %v6984_v49, %v6980_v25 }
0x1ea0   : > { %6283 = vmatprep.mubr.msk.f32.mxu1 %vm1027_vm7, %v5432_v61 }
0x1ea1   : > { %6284 = vmatmul.mubr.msk.f32.vlgmr.msra.gmra.mrb[28].mxu1 %vm1027_vm7, %v5433_v30 }
0x1ea2   : > { %6484 = vmatpush3.bf16.msra.mxu1 %v8387_v43 }
0x1f74   : > { %v6285_v58 = vpop.f32.mrb[28].mxu1 }
0x1f75   : > { %v5512_v59 = vpop.f32.mrb[29].mxu1 }
0x1f76   : > { %6290 = vmatprep.mubr.msk.f32.mxu1 %vm1027_vm7, %v5512_v59 }
0x1f77   : > { %6291 = vmatmul.mubr.msk.f32.vlgmr.msra.gmra.mrb[30].mxu1 %vm1027_vm7, %v6285_v58 }
0x204a   : > { %v6292_v11 = vpop.f32.mrb[30].mxu1 }
0x204b   : > { %5603 = vst.msk [vmem:[%s8535_s9 + $0x78] sm:$0xff] %vm404_vm2, %v6292_v11  ;;  %v5593_v0 = vpop.f32.mrb[31].mxu1 }
0x204c   : > { %5602 = vst.msk [vmem:[%s8535_s9 + $0x70] sm:$0xff] %vm404_vm2, %v5593_v0 }
0x204d PF: > { %s20_s30 = sadd.s32 1, %s6991_s30  }
0x204e   : > { %p17_p7 = scmp.ge.s32.totalorder %s20_s30, 4  }
0x2050   :  { %19 = sbr.rel (!%p17_p7) target bundleno = 1 (0x1), region = 101 }

</bundles_post_ra>
